<compile_context>
chip_gen: v7x
topology: tpu7x:2x2x1
jax: 0.10.0
libtpu: 0.0.40
codegen_flags: <defaults>
</compile_context>

<pallas_src>
import jax
import jax.numpy as jnp
from jax import lax
from jax.experimental import pallas as pl
from jax.experimental.pallas import tpu as pltpu


def _cs_bottleneck_kernel(
    x_ref,                  # (NB, H, W, C4)  f32 input block
    w1_ref,                 # (C4, P)         bf16 conv1 1x1
    bn1s_ref, bn1b_ref,     # (1, P)          f32 folded BN1 scale / bias
    w2_ref,                 # (9*P, P)        bf16 conv2 3x3, im2col-flattened
    bn2s_ref, bn2b_ref,     # (1, P)
    w3_ref,                 # (P, C4)         bf16 conv3 1x1
    bn3s_ref, bn3b_ref,     # (1, C4)
    wc1_ref,                # (C4, Cr)        bf16 channel-attention fc1
    wc2_ref,                # (Cr, C4)        bf16 channel-attention fc2
    wsa_ref,                # (98, C4)        bf16 7x7 SA taps, replicated lanes
    o_ref,                  # (NB, H, W, C4)  f32 output block
):
    NB, H, W, C4 = x_ref.shape
    P = w1_ref.shape[1]
    M = NB * H * W
    bf16 = jnp.bfloat16

    x = x_ref[...].reshape(M, C4)                          # f32, residual

    # ---- conv1 (1x1) + bn1 + relu: one (M, C4) @ (C4, P) matmul --------------
    h = jnp.dot(x.astype(bf16), w1_ref[...],
                preferred_element_type=jnp.float32)
    h = jnp.maximum(h * bn1s_ref[...] + bn1b_ref[...], 0.0)      # (M, P) f32

    # ---- conv2 (3x3, pad 1) + bn2 + relu: single im2col matmul, K = 9P -------
    hb = h.reshape(NB, H, W, P)
    zr = jnp.zeros((NB, 1, W, P), jnp.float32)
    hp = jnp.concatenate([zr, hb, zr], axis=1)             # (NB, H+2, W,   P)
    zc = jnp.zeros((NB, H + 2, 1, P), jnp.float32)
    hp = jnp.concatenate([zc, hp, zc], axis=2)             # (NB, H+2, W+2, P)
    cols = [hp[:, ky:ky + H, kx:kx + W, :].reshape(M, P)
            for ky in range(3) for kx in range(3)]
    im2col = jnp.concatenate(cols, axis=1).astype(bf16)    # (M, 9P)
    h = jnp.dot(im2col, w2_ref[...], preferred_element_type=jnp.float32)
    h = jnp.maximum(h * bn2s_ref[...] + bn2b_ref[...], 0.0)      # (M, P)

    # ---- conv3 (1x1) + bn3 ----------------------------------------------------
    h = jnp.dot(h.astype(bf16), w3_ref[...],
                preferred_element_type=jnp.float32)
    h = h * bn3s_ref[...] + bn3b_ref[...]                  # (M, C4) f32

    # ---- channel attention (avg & max branches share one FC pass) -------------
    h_img = h.reshape(NB, H * W, C4)
    avg_c = jnp.mean(h_img, axis=1)                        # (NB, C4)
    max_c = jnp.max(h_img, axis=1)                         # (NB, C4)
    pooled = jnp.concatenate([avg_c, max_c], axis=0).astype(bf16)   # (2*NB, C4)
    z = jnp.dot(pooled, wc1_ref[...], preferred_element_type=jnp.float32)
    z = jnp.maximum(z, 0.0).astype(bf16)
    z = jnp.dot(z, wc2_ref[...], preferred_element_type=jnp.float32)   # (2NB,C4)
    ca = jax.nn.sigmoid(z[:NB] + z[NB:])                   # (NB, C4)
    h = (h_img * ca[:, None, :]).reshape(M, C4)

    # ---- spatial attention: 7x7 conv over [avg_ch, max_ch] as one matmul ------
    avg_s = jnp.mean(h, axis=1, keepdims=True)             # (M, 1)
    max_s = jnp.max(h, axis=1, keepdims=True)              # (M, 1)
    s = jnp.concatenate([avg_s, max_s], axis=1).reshape(NB, H, W, 2)
    zr = jnp.zeros((NB, 3, W, 2), jnp.float32)
    sp = jnp.concatenate([zr, s, zr], axis=1)              # (NB, H+6, W,   2)
    zc = jnp.zeros((NB, H + 6, 3, 2), jnp.float32)
    sp = jnp.concatenate([zc, sp, zc], axis=2)             # (NB, H+6, W+6, 2)
    scols = [sp[:, ky:ky + H, kx:kx + W, :].reshape(M, 2)
             for ky in range(7) for kx in range(7)]
    s_im2col = jnp.concatenate(scols, axis=1).astype(bf16)  # (M, 98)
    # wsa columns are identical, so every lane of the product is the SA logit,
    # i.e. the result is already broadcast across the channel (lane) axis.
    sa = jax.nn.sigmoid(jnp.dot(s_im2col, wsa_ref[...],
                                preferred_element_type=jnp.float32))  # (M, C4)
    h = h * sa

    # ---- residual add + relu --------------------------------------------------
    out = jnp.maximum(h + x, 0.0)
    o_ref[...] = out.reshape(NB, H, W, C4).astype(o_ref.dtype)


def cs_bottleneck_pallas(x_nchw, params):
    """x_nchw: (N, inplanes, H, W) float32. Returns (N, inplanes, H, W)."""
    x = jnp.transpose(x_nchw, (0, 2, 3, 1))                # NCHW -> NHWC
    N, H, W, C4 = x.shape
    P = params["w1"].shape[1]
    Cr = params["wc1"].shape[1]

    # Pack several images per grid step so matmul M = NB*H*W fills the MXU and
    # the ~0.35us per-grid-step overhead is amortized.
    NB = min(N, max(1, 128 // (H * W)))
    while N % NB:
        NB -= 1
    grid = (N // NB,)

    bf16 = jnp.bfloat16
    w1 = params["w1"].astype(bf16)
    w2 = params["w2"].reshape(9 * P, P).astype(bf16)       # im2col weight layout
    w3 = params["w3"].astype(bf16)
    wc1 = params["wc1"].astype(bf16)
    wc2 = params["wc2"].astype(bf16)
    # Replicate the 7x7x2 spatial-attention taps across all C4 lanes so the
    # in-kernel im2col matmul directly yields a channel-broadcast logit.
    wsa = jnp.tile(params["wsa"].reshape(98, 1), (1, C4)).astype(bf16)

    def rep(shape):
        r = len(shape)
        return pl.BlockSpec(shape, lambda n, r=r: (0,) * r)

    out = pl.pallas_call(
        _cs_bottleneck_kernel,
        out_shape=jax.ShapeDtypeStruct((N, H, W, C4), jnp.float32),
        grid_spec=pltpu.PrefetchScalarGridSpec(
            num_scalar_prefetch=0,
            grid=grid,
            in_specs=[
                pl.BlockSpec((NB, H, W, C4), lambda n: (n, 0, 0, 0)),
                rep((C4, P)),
                rep((1, P)), rep((1, P)),
                rep((9 * P, P)),
                rep((1, P)), rep((1, P)),
                rep((P, C4)),
                rep((1, C4)), rep((1, C4)),
                rep((C4, Cr)),
                rep((Cr, C4)),
                rep((98, C4)),
            ],
            out_specs=pl.BlockSpec((NB, H, W, C4), lambda n: (n, 0, 0, 0)),
        ),
        compiler_params=pltpu.CompilerParams(
            dimension_semantics=("parallel",),     # image blocks are independent
            vmem_limit_bytes=32 * 1024 * 1024,
        ),
    )(x, w1, params["bn1s"], params["bn1b"],
      w2, params["bn2s"], params["bn2b"],
      w3, params["bn3s"], params["bn3b"],
      wc1, wc2, wsa)

    return jnp.transpose(out, (0, 3, 1, 2))                # NHWC -> NCHW


# ------------------------- parameter init (synthetic) -------------------------
def init_params(key, inplanes, planes):
    C4 = planes * 4
    assert C4 == inplanes, "downsample=None requires inplanes == planes*4"
    Cr = C4 // 16
    assert Cr >= 1
    ks = list(jax.random.split(key, 20))

    def nrm(k, shape, scale):
        return (scale * jax.random.normal(k, shape)).astype(jnp.float32)

    def folded_bn(k, c):
        k1, k2, k3, k4 = jax.random.split(k, 4)
        gamma = 1.0 + 0.1 * jax.random.normal(k1, (1, c))
        beta = 0.1 * jax.random.normal(k2, (1, c))
        mean = 0.1 * jax.random.normal(k3, (1, c))
        var = 0.5 + jax.random.uniform(k4, (1, c))
        scale = gamma / jnp.sqrt(var + 1e-5)
        bias = beta - mean * scale
        return scale.astype(jnp.float32), bias.astype(jnp.float32)

    bn1s, bn1b = folded_bn(ks[0], planes)
    bn2s, bn2b = folded_bn(ks[1], planes)
    bn3s, bn3b = folded_bn(ks[2], C4)
    return dict(
        w1=nrm(ks[3], (C4, planes), 0.1),            # conv1 1x1 (Cin, Cout)
        bn1s=bn1s, bn1b=bn1b,
        w2=nrm(ks[4], (3, 3, planes, planes), 0.1),  # conv2 3x3 HWIO
        bn2s=bn2s, bn2b=bn2b,
        w3=nrm(ks[5], (planes, C4), 0.1),            # conv3 1x1
        bn3s=bn3s, bn3b=bn3b,
        wc1=nrm(ks[6], (C4, Cr), 0.2),               # channel-attn fc1
        wc2=nrm(ks[7], (Cr, C4), 0.2),               # channel-attn fc2
        wsa=nrm(ks[8], (7, 7, 2), 0.2),              # spatial-attn 7x7 conv
    )


# ---------------------------- pure-JAX reference ------------------------------
def reference_forward(x_nchw, p):
    dn = ("NHWC", "HWIO", "NHWC")
    x = jnp.transpose(x_nchw, (0, 2, 3, 1))
    h = lax.conv_general_dilated(x, p["w1"][None, None], (1, 1), "VALID",
                                 dimension_numbers=dn)
    h = jnp.maximum(h * p["bn1s"] + p["bn1b"], 0.0)
    h = lax.conv_general_dilated(h, p["w2"], (1, 1), "SAME",
                                 dimension_numbers=dn)
    h = jnp.maximum(h * p["bn2s"] + p["bn2b"], 0.0)
    h = lax.conv_general_dilated(h, p["w3"][None, None], (1, 1), "VALID",
                                 dimension_numbers=dn)
    h = h * p["bn3s"] + p["bn3b"]
    # channel attention
    avg_c = jnp.mean(h, axis=(1, 2), keepdims=True)
    max_c = jnp.max(h, axis=(1, 2), keepdims=True)

    def fc(v):
        v = jnp.maximum(jnp.einsum("nijc,cr->nijr", v, p["wc1"]), 0.0)
        return jnp.einsum("nijr,rc->nijc", v, p["wc2"])

    h = h * jax.nn.sigmoid(fc(avg_c) + fc(max_c))
    # spatial attention
    sa_in = jnp.concatenate([jnp.mean(h, axis=3, keepdims=True),
                             jnp.max(h, axis=3, keepdims=True)], axis=3)
    sa = lax.conv_general_dilated(sa_in, p["wsa"][..., None], (1, 1), "SAME",
                                  dimension_numbers=dn)
    h = h * jax.nn.sigmoid(sa)
    out = jnp.maximum(h + x, 0.0)
    return jnp.transpose(out, (0, 3, 1, 2))


if __name__ == "__main__":
    inplanes, planes = 64, 16          # expansion=4, no downsample
    N, H, W = 2, 8, 8

    key = jax.random.PRNGKey(0)
    kx, kp = jax.random.split(key)
    x = jax.random.normal(kx, (N, inplanes, H, W), jnp.float32)
    params = init_params(kp, inplanes, planes)

    out = jax.jit(cs_bottleneck_pallas)(x, params)
    out = jax.block_until_ready(out)

    ref = reference_forward(x, params)
    assert out.shape == (N, inplanes, H, W)
    max_diff = float(jnp.max(jnp.abs(out - ref)))
    # bf16 MXU operands vs. an all-f32 XLA reference; typical diff is ~1e-2.
    assert max_diff < 1e-1, f"mismatch vs reference: {max_diff}"
    print("KERNEL_OK")
</pallas_src>

<mosaic_0001>
module attributes {stable_mosaic.version = 11 : i64} {
  func.func @_cs_bottleneck_kernel(%arg0: i32, %arg1: memref<2x8x8x64xf32, #tpu.memory_space<vmem>>, %arg2: memref<64x16xbf16, #tpu.memory_space<vmem>>, %arg3: memref<1x16xf32, #tpu.memory_space<vmem>>, %arg4: memref<1x16xf32, #tpu.memory_space<vmem>>, %arg5: memref<144x16xbf16, #tpu.memory_space<vmem>>, %arg6: memref<1x16xf32, #tpu.memory_space<vmem>>, %arg7: memref<1x16xf32, #tpu.memory_space<vmem>>, %arg8: memref<16x64xbf16, #tpu.memory_space<vmem>>, %arg9: memref<1x64xf32, #tpu.memory_space<vmem>>, %arg10: memref<1x64xf32, #tpu.memory_space<vmem>>, %arg11: memref<64x4xbf16, #tpu.memory_space<vmem>>, %arg12: memref<4x64xbf16, #tpu.memory_space<vmem>>, %arg13: memref<98x64xbf16, #tpu.memory_space<vmem>>, %arg14: memref<2x8x8x64xf32, #tpu.memory_space<vmem>>) attributes {dimension_semantics = [#tpu.dimension_semantics<parallel>], iteration_bounds = array<i64: 1>, scalar_prefetch = 0 : i64, scratch_operands = 0 : i64, tpu.core_type = #tpu.core_type<tc>, window_params = [{transform_indices = @transform_0, window_bounds = array<i64: 2, 8, 8, 64>}, {pipeline_mode = #tpu.pipeline_mode<synchronous>, transform_indices = @transform_1, window_bounds = array<i64: 64, 16>}, {pipeline_mode = #tpu.pipeline_mode<synchronous>, transform_indices = @transform_2, window_bounds = array<i64: 1, 16>}, {pipeline_mode = #tpu.pipeline_mode<synchronous>, transform_indices = @transform_3, window_bounds = array<i64: 1, 16>}, {pipeline_mode = #tpu.pipeline_mode<synchronous>, transform_indices = @transform_4, window_bounds = array<i64: 144, 16>}, {pipeline_mode = #tpu.pipeline_mode<synchronous>, transform_indices = @transform_5, window_bounds = array<i64: 1, 16>}, {pipeline_mode = #tpu.pipeline_mode<synchronous>, transform_indices = @transform_6, window_bounds = array<i64: 1, 16>}, {pipeline_mode = #tpu.pipeline_mode<synchronous>, transform_indices = @transform_7, window_bounds = array<i64: 16, 64>}, {pipeline_mode = #tpu.pipeline_mode<synchronous>, transform_indices = @transform_8, window_bounds = array<i64: 1, 64>}, {pipeline_mode = #tpu.pipeline_mode<synchronous>, transform_indices = @transform_9, window_bounds = array<i64: 1, 64>}, {pipeline_mode = #tpu.pipeline_mode<synchronous>, transform_indices = @transform_10, window_bounds = array<i64: 64, 4>}, {pipeline_mode = #tpu.pipeline_mode<synchronous>, transform_indices = @transform_11, window_bounds = array<i64: 4, 64>}, {pipeline_mode = #tpu.pipeline_mode<synchronous>, transform_indices = @transform_12, window_bounds = array<i64: 98, 64>}, {transform_indices = @transform_13, window_bounds = array<i64: 2, 8, 8, 64>}]} {
    %c0 = arith.constant 0 : index
    %c0_0 = arith.constant 0 : index
    %c0_1 = arith.constant 0 : index
    %c0_2 = arith.constant 0 : index
    %0 = vector.load %arg1[%c0, %c0_0, %c0_1, %c0_2] : memref<2x8x8x64xf32, #tpu.memory_space<vmem>>, vector<2x8x8x64xf32>
    %1 = vector.shape_cast %0 : vector<2x8x8x64xf32> to vector<128x64xf32>
    %2 = arith.truncf %1 : vector<128x64xf32> to vector<128x64xbf16>
    %c0_3 = arith.constant 0 : index
    %c0_4 = arith.constant 0 : index
    %3 = vector.load %arg2[%c0_3, %c0_4] : memref<64x16xbf16, #tpu.memory_space<vmem>>, vector<64x16xbf16>
    %cst = arith.constant dense<0.000000e+00> : vector<128x16xf32>
    %4 = tpu.matmul %2, %3, %cst {dimension_numbers = #tpu.dot_dimension_numbers<[1], [0], [0], [1], [0, 0, 1, 1], [], []>} : vector<128x64xbf16>, vector<64x16xbf16>, vector<128x16xf32> -> vector<128x16xf32>
    %c0_5 = arith.constant 0 : index
    %c0_6 = arith.constant 0 : index
    %5 = vector.load %arg3[%c0_5, %c0_6] : memref<1x16xf32, #tpu.memory_space<vmem>>, vector<1x16xf32>
    %6 = vector.broadcast %5 : vector<1x16xf32> to vector<128x16xf32>
    %7 = arith.mulf %4, %6 : vector<128x16xf32>
    %c0_7 = arith.constant 0 : index
    %c0_8 = arith.constant 0 : index
    %8 = vector.load %arg4[%c0_7, %c0_8] : memref<1x16xf32, #tpu.memory_space<vmem>>, vector<1x16xf32>
    %9 = vector.broadcast %8 : vector<1x16xf32> to vector<128x16xf32>
    %10 = arith.addf %7, %9 : vector<128x16xf32>
    %cst_9 = arith.constant 0.000000e+00 : f32
    %11 = vector.broadcast %cst_9 : f32 to vector<128x16xf32>
    %12 = arith.maximumf %10, %11 : vector<128x16xf32>
    %13 = vector.shape_cast %12 : vector<128x16xf32> to vector<2x8x8x16xf32>
    %cst_10 = arith.constant 0.000000e+00 : f32
    %14 = vector.broadcast %cst_10 : f32 to vector<2x1x8x16xf32>
    %15 = tpu.concatenate %14, %13, %14 in 1 : vector<2x1x8x16xf32>, vector<2x8x8x16xf32>, vector<2x1x8x16xf32> -> vector<2x10x8x16xf32>
    %cst_11 = arith.constant 0.000000e+00 : f32
    %16 = vector.broadcast %cst_11 : f32 to vector<2x10x1x16xf32>
    %17 = tpu.concatenate %16, %15, %16 in 2 : vector<2x10x1x16xf32>, vector<2x10x8x16xf32>, vector<2x10x1x16xf32> -> vector<2x10x10x16xf32>
    %18 = vector.extract_strided_slice %17 {offsets = [0, 0, 0, 0], sizes = [2, 8, 8, 16], strides = [1, 1, 1, 1]} : vector<2x10x10x16xf32> to vector<2x8x8x16xf32>
    %19 = vector.shape_cast %18 : vector<2x8x8x16xf32> to vector<128x16xf32>
    %20 = vector.extract_strided_slice %17 {offsets = [0, 0, 1, 0], sizes = [2, 8, 8, 16], strides = [1, 1, 1, 1]} : vector<2x10x10x16xf32> to vector<2x8x8x16xf32>
    %21 = vector.shape_cast %20 : vector<2x8x8x16xf32> to vector<128x16xf32>
    %22 = vector.extract_strided_slice %17 {offsets = [0, 0, 2, 0], sizes = [2, 8, 8, 16], strides = [1, 1, 1, 1]} : vector<2x10x10x16xf32> to vector<2x8x8x16xf32>
    %23 = vector.shape_cast %22 : vector<2x8x8x16xf32> to vector<128x16xf32>
    %24 = vector.extract_strided_slice %17 {offsets = [0, 1, 0, 0], sizes = [2, 8, 8, 16], strides = [1, 1, 1, 1]} : vector<2x10x10x16xf32> to vector<2x8x8x16xf32>
    %25 = vector.shape_cast %24 : vector<2x8x8x16xf32> to vector<128x16xf32>
    %26 = vector.extract_strided_slice %17 {offsets = [0, 1, 1, 0], sizes = [2, 8, 8, 16], strides = [1, 1, 1, 1]} : vector<2x10x10x16xf32> to vector<2x8x8x16xf32>
    %27 = vector.shape_cast %26 : vector<2x8x8x16xf32> to vector<128x16xf32>
    %28 = vector.extract_strided_slice %17 {offsets = [0, 1, 2, 0], sizes = [2, 8, 8, 16], strides = [1, 1, 1, 1]} : vector<2x10x10x16xf32> to vector<2x8x8x16xf32>
    %29 = vector.shape_cast %28 : vector<2x8x8x16xf32> to vector<128x16xf32>
    %30 = vector.extract_strided_slice %17 {offsets = [0, 2, 0, 0], sizes = [2, 8, 8, 16], strides = [1, 1, 1, 1]} : vector<2x10x10x16xf32> to vector<2x8x8x16xf32>
    %31 = vector.shape_cast %30 : vector<2x8x8x16xf32> to vector<128x16xf32>
    %32 = vector.extract_strided_slice %17 {offsets = [0, 2, 1, 0], sizes = [2, 8, 8, 16], strides = [1, 1, 1, 1]} : vector<2x10x10x16xf32> to vector<2x8x8x16xf32>
    %33 = vector.shape_cast %32 : vector<2x8x8x16xf32> to vector<128x16xf32>
    %34 = vector.extract_strided_slice %17 {offsets = [0, 2, 2, 0], sizes = [2, 8, 8, 16], strides = [1, 1, 1, 1]} : vector<2x10x10x16xf32> to vector<2x8x8x16xf32>
    %35 = vector.shape_cast %34 : vector<2x8x8x16xf32> to vector<128x16xf32>
    %36 = tpu.concatenate %19, %21, %23, %25, %27, %29, %31, %33, %35 in 1 : vector<128x16xf32>, vector<128x16xf32>, vector<128x16xf32>, vector<128x16xf32>, vector<128x16xf32>, vector<128x16xf32>, vector<128x16xf32>, vector<128x16xf32>, vector<128x16xf32> -> vector<128x144xf32>
    %37 = arith.truncf %36 : vector<128x144xf32> to vector<128x144xbf16>
    %c0_12 = arith.constant 0 : index
    %c0_13 = arith.constant 0 : index
    %38 = vector.load %arg5[%c0_12, %c0_13] : memref<144x16xbf16, #tpu.memory_space<vmem>>, vector<144x16xbf16>
    %cst_14 = arith.constant dense<0.000000e+00> : vector<128x16xf32>
    %39 = tpu.matmul %37, %38, %cst_14 {dimension_numbers = #tpu.dot_dimension_numbers<[1], [0], [0], [1], [0, 0, 1, 1], [], []>} : vector<128x144xbf16>, vector<144x16xbf16>, vector<128x16xf32> -> vector<128x16xf32>
    %c0_15 = arith.constant 0 : index
    %c0_16 = arith.constant 0 : index
    %40 = vector.load %arg6[%c0_15, %c0_16] : memref<1x16xf32, #tpu.memory_space<vmem>>, vector<1x16xf32>
    %41 = vector.broadcast %40 : vector<1x16xf32> to vector<128x16xf32>
    %42 = arith.mulf %39, %41 : vector<128x16xf32>
    %c0_17 = arith.constant 0 : index
    %c0_18 = arith.constant 0 : index
    %43 = vector.load %arg7[%c0_17, %c0_18] : memref<1x16xf32, #tpu.memory_space<vmem>>, vector<1x16xf32>
    %44 = vector.broadcast %43 : vector<1x16xf32> to vector<128x16xf32>
    %45 = arith.addf %42, %44 : vector<128x16xf32>
    %cst_19 = arith.constant 0.000000e+00 : f32
    %46 = vector.broadcast %cst_19 : f32 to vector<128x16xf32>
    %47 = arith.maximumf %45, %46 : vector<128x16xf32>
    %48 = arith.truncf %47 : vector<128x16xf32> to vector<128x16xbf16>
    %c0_20 = arith.constant 0 : index
    %c0_21 = arith.constant 0 : index
    %49 = vector.load %arg8[%c0_20, %c0_21] : memref<16x64xbf16, #tpu.memory_space<vmem>>, vector<16x64xbf16>
    %cst_22 = arith.constant dense<0.000000e+00> : vector<128x64xf32>
    %50 = tpu.matmul %48, %49, %cst_22 {dimension_numbers = #tpu.dot_dimension_numbers<[1], [0], [0], [1], [0, 0, 1, 1], [], []>} : vector<128x16xbf16>, vector<16x64xbf16>, vector<128x64xf32> -> vector<128x64xf32>
    %c0_23 = arith.constant 0 : index
    %c0_24 = arith.constant 0 : index
    %51 = vector.load %arg9[%c0_23, %c0_24] : memref<1x64xf32, #tpu.memory_space<vmem>>, vector<1x64xf32>
    %52 = vector.broadcast %51 : vector<1x64xf32> to vector<128x64xf32>
    %53 = arith.mulf %50, %52 : vector<128x64xf32>
    %c0_25 = arith.constant 0 : index
    %c0_26 = arith.constant 0 : index
    %54 = vector.load %arg10[%c0_25, %c0_26] : memref<1x64xf32, #tpu.memory_space<vmem>>, vector<1x64xf32>
    %55 = vector.broadcast %54 : vector<1x64xf32> to vector<128x64xf32>
    %56 = arith.addf %53, %55 : vector<128x64xf32>
    %57 = vector.shape_cast %56 : vector<128x64xf32> to vector<2x64x64xf32>
    %cst_27 = arith.constant dense<0.000000e+00> : vector<2x64xf32>
    %58 = vector.multi_reduction <add>, %57, %cst_27 [1] : vector<2x64x64xf32> to vector<2x64xf32>
    %cst_28 = arith.constant 6.400000e+01 : f32
    %59 = vector.broadcast %cst_28 : f32 to vector<2x64xf32>
    %60 = arith.divf %58, %59 : vector<2x64xf32>
    %cst_29 = arith.constant dense<0xFF800000> : vector<2x64xf32>
    %61 = vector.multi_reduction <maximumf>, %57, %cst_29 [1] : vector<2x64x64xf32> to vector<2x64xf32>
    %62 = tpu.concatenate %60, %61 in 0 : vector<2x64xf32>, vector<2x64xf32> -> vector<4x64xf32>
    %63 = arith.truncf %62 : vector<4x64xf32> to vector<4x64xbf16>
    %c0_30 = arith.constant 0 : index
    %c0_31 = arith.constant 0 : index
    %64 = vector.load %arg11[%c0_30, %c0_31] : memref<64x4xbf16, #tpu.memory_space<vmem>>, vector<64x4xbf16>
    %cst_32 = arith.constant dense<0.000000e+00> : vector<4x4xf32>
    %65 = tpu.matmul %63, %64, %cst_32 {dimension_numbers = #tpu.dot_dimension_numbers<[1], [0], [0], [1], [0, 0, 1, 1], [], []>} : vector<4x64xbf16>, vector<64x4xbf16>, vector<4x4xf32> -> vector<4x4xf32>
    %cst_33 = arith.constant 0.000000e+00 : f32
    %66 = vector.broadcast %cst_33 : f32 to vector<4x4xf32>
    %67 = arith.maximumf %65, %66 : vector<4x4xf32>
    %68 = arith.truncf %67 : vector<4x4xf32> to vector<4x4xbf16>
    %c0_34 = arith.constant 0 : index
    %c0_35 = arith.constant 0 : index
    %69 = vector.load %arg12[%c0_34, %c0_35] : memref<4x64xbf16, #tpu.memory_space<vmem>>, vector<4x64xbf16>
    %cst_36 = arith.constant dense<0.000000e+00> : vector<4x64xf32>
    %70 = tpu.matmul %68, %69, %cst_36 {dimension_numbers = #tpu.dot_dimension_numbers<[1], [0], [0], [1], [0, 0, 1, 1], [], []>} : vector<4x4xbf16>, vector<4x64xbf16>, vector<4x64xf32> -> vector<4x64xf32>
    %71 = vector.extract_strided_slice %70 {offsets = [0, 0], sizes = [2, 64], strides = [1, 1]} : vector<4x64xf32> to vector<2x64xf32>
    %72 = vector.extract_strided_slice %70 {offsets = [2, 0], sizes = [2, 64], strides = [1, 1]} : vector<4x64xf32> to vector<2x64xf32>
    %73 = arith.addf %71, %72 : vector<2x64xf32>
    %74 = arith.negf %73 : vector<2x64xf32>
    %75 = math.exp %74 : vector<2x64xf32>
    %cst_37 = arith.constant 1.000000e+00 : f32
    %76 = vector.broadcast %cst_37 : f32 to vector<2x64xf32>
    %77 = arith.addf %76, %75 : vector<2x64xf32>
    %78 = arith.divf %76, %77 : vector<2x64xf32>
    %79 = vector.shape_cast %78 : vector<2x64xf32> to vector<2x1x64xf32>
    %80 = vector.broadcast %79 : vector<2x1x64xf32> to vector<2x64x64xf32>
    %81 = arith.mulf %57, %80 : vector<2x64x64xf32>
    %82 = vector.shape_cast %81 : vector<2x64x64xf32> to vector<128x64xf32>
    %cst_38 = arith.constant dense<0.000000e+00> : vector<128xf32>
    %83 = vector.multi_reduction <add>, %82, %cst_38 [1] : vector<128x64xf32> to vector<128xf32>
    %84 = vector.shape_cast %83 : vector<128xf32> to vector<128x1xf32>
    %cst_39 = arith.constant 6.400000e+01 : f32
    %85 = vector.broadcast %cst_39 : f32 to vector<128x1xf32>
    %86 = arith.divf %84, %85 : vector<128x1xf32>
    %cst_40 = arith.constant dense<0xFF800000> : vector<128xf32>
    %87 = vector.multi_reduction <maximumf>, %82, %cst_40 [1] : vector<128x64xf32> to vector<128xf32>
    %88 = vector.shape_cast %87 : vector<128xf32> to vector<128x1xf32>
    %89 = tpu.concatenate %86, %88 in 1 : vector<128x1xf32>, vector<128x1xf32> -> vector<128x2xf32>
    %90 = vector.shape_cast %89 : vector<128x2xf32> to vector<2x8x8x2xf32>
    %cst_41 = arith.constant 0.000000e+00 : f32
    %91 = vector.broadcast %cst_41 : f32 to vector<2x3x8x2xf32>
    %92 = tpu.concatenate %91, %90, %91 in 1 : vector<2x3x8x2xf32>, vector<2x8x8x2xf32>, vector<2x3x8x2xf32> -> vector<2x14x8x2xf32>
    %cst_42 = arith.constant 0.000000e+00 : f32
    %93 = vector.broadcast %cst_42 : f32 to vector<2x14x3x2xf32>
    %94 = tpu.concatenate %93, %92, %93 in 2 : vector<2x14x3x2xf32>, vector<2x14x8x2xf32>, vector<2x14x3x2xf32> -> vector<2x14x14x2xf32>
    %95 = vector.extract_strided_slice %94 {offsets = [0, 0, 0, 0], sizes = [2, 8, 8, 2], strides = [1, 1, 1, 1]} : vector<2x14x14x2xf32> to vector<2x8x8x2xf32>
    %96 = vector.shape_cast %95 : vector<2x8x8x2xf32> to vector<128x2xf32>
    %97 = vector.extract_strided_slice %94 {offsets = [0, 0, 1, 0], sizes = [2, 8, 8, 2], strides = [1, 1, 1, 1]} : vector<2x14x14x2xf32> to vector<2x8x8x2xf32>
    %98 = vector.shape_cast %97 : vector<2x8x8x2xf32> to vector<128x2xf32>
    %99 = vector.extract_strided_slice %94 {offsets = [0, 0, 2, 0], sizes = [2, 8, 8, 2], strides = [1, 1, 1, 1]} : vector<2x14x14x2xf32> to vector<2x8x8x2xf32>
    %100 = vector.shape_cast %99 : vector<2x8x8x2xf32> to vector<128x2xf32>
    %101 = vector.extract_strided_slice %94 {offsets = [0, 0, 3, 0], sizes = [2, 8, 8, 2], strides = [1, 1, 1, 1]} : vector<2x14x14x2xf32> to vector<2x8x8x2xf32>
    %102 = vector.shape_cast %101 : vector<2x8x8x2xf32> to vector<128x2xf32>
    %103 = vector.extract_strided_slice %94 {offsets = [0, 0, 4, 0], sizes = [2, 8, 8, 2], strides = [1, 1, 1, 1]} : vector<2x14x14x2xf32> to vector<2x8x8x2xf32>
    %104 = vector.shape_cast %103 : vector<2x8x8x2xf32> to vector<128x2xf32>
    %105 = vector.extract_strided_slice %94 {offsets = [0, 0, 5, 0], sizes = [2, 8, 8, 2], strides = [1, 1, 1, 1]} : vector<2x14x14x2xf32> to vector<2x8x8x2xf32>
    %106 = vector.shape_cast %105 : vector<2x8x8x2xf32> to vector<128x2xf32>
    %107 = vector.extract_strided_slice %94 {offsets = [0, 0, 6, 0], sizes = [2, 8, 8, 2], strides = [1, 1, 1, 1]} : vector<2x14x14x2xf32> to vector<2x8x8x2xf32>
    %108 = vector.shape_cast %107 : vector<2x8x8x2xf32> to vector<128x2xf32>
    %109 = vector.extract_strided_slice %94 {offsets = [0, 1, 0, 0], sizes = [2, 8, 8, 2], strides = [1, 1, 1, 1]} : vector<2x14x14x2xf32> to vector<2x8x8x2xf32>
    %110 = vector.shape_cast %109 : vector<2x8x8x2xf32> to vector<128x2xf32>
    %111 = vector.extract_strided_slice %94 {offsets = [0, 1, 1, 0], sizes = [2, 8, 8, 2], strides = [1, 1, 1, 1]} : vector<2x14x14x2xf32> to vector<2x8x8x2xf32>
    %112 = vector.shape_cast %111 : vector<2x8x8x2xf32> to vector<128x2xf32>
    %113 = vector.extract_strided_slice %94 {offsets = [0, 1, 2, 0], sizes = [2, 8, 8, 2], strides = [1, 1, 1, 1]} : vector<2x14x14x2xf32> to vector<2x8x8x2xf32>
    %114 = vector.shape_cast %113 : vector<2x8x8x2xf32> to vector<128x2xf32>
    %115 = vector.extract_strided_slice %94 {offsets = [0, 1, 3, 0], sizes = [2, 8, 8, 2], strides = [1, 1, 1, 1]} : vector<2x14x14x2xf32> to vector<2x8x8x2xf32>
    %116 = vector.shape_cast %115 : vector<2x8x8x2xf32> to vector<128x2xf32>
    %117 = vector.extract_strided_slice %94 {offsets = [0, 1, 4, 0], sizes = [2, 8, 8, 2], strides = [1, 1, 1, 1]} : vector<2x14x14x2xf32> to vector<2x8x8x2xf32>
    %118 = vector.shape_cast %117 : vector<2x8x8x2xf32> to vector<128x2xf32>
    %119 = vector.extract_strided_slice %94 {offsets = [0, 1, 5, 0], sizes = [2, 8, 8, 2], strides = [1, 1, 1, 1]} : vector<2x14x14x2xf32> to vector<2x8x8x2xf32>
    %120 = vector.shape_cast %119 : vector<2x8x8x2xf32> to vector<128x2xf32>
    %121 = vector.extract_strided_slice %94 {offsets = [0, 1, 6, 0], sizes = [2, 8, 8, 2], strides = [1, 1, 1, 1]} : vector<2x14x14x2xf32> to vector<2x8x8x2xf32>
    %122 = vector.shape_cast %121 : vector<2x8x8x2xf32> to vector<128x2xf32>
    %123 = vector.extract_strided_slice %94 {offsets = [0, 2, 0, 0], sizes = [2, 8, 8, 2], strides = [1, 1, 1, 1]} : vector<2x14x14x2xf32> to vector<2x8x8x2xf32>
    %124 = vector.shape_cast %123 : vector<2x8x8x2xf32> to vector<128x2xf32>
    %125 = vector.extract_strided_slice %94 {offsets = [0, 2, 1, 0], sizes = [2, 8, 8, 2], strides = [1, 1, 1, 1]} : vector<2x14x14x2xf32> to vector<2x8x8x2xf32>
    %126 = vector.shape_cast %125 : vector<2x8x8x2xf32> to vector<128x2xf32>
    %127 = vector.extract_strided_slice %94 {offsets = [0, 2, 2, 0], sizes = [2, 8, 8, 2], strides = [1, 1, 1, 1]} : vector<2x14x14x2xf32> to vector<2x8x8x2xf32>
    %128 = vector.shape_cast %127 : vector<2x8x8x2xf32> to vector<128x2xf32>
    %129 = vector.extract_strided_slice %94 {offsets = [0, 2, 3, 0], sizes = [2, 8, 8, 2], strides = [1, 1, 1, 1]} : vector<2x14x14x2xf32> to vector<2x8x8x2xf32>
    %130 = vector.shape_cast %129 : vector<2x8x8x2xf32> to vector<128x2xf32>
    %131 = vector.extract_strided_slice %94 {offsets = [0, 2, 4, 0], sizes = [2, 8, 8, 2], strides = [1, 1, 1, 1]} : vector<2x14x14x2xf32> to vector<2x8x8x2xf32>
    %132 = vector.shape_cast %131 : vector<2x8x8x2xf32> to vector<128x2xf32>
    %133 = vector.extract_strided_slice %94 {offsets = [0, 2, 5, 0], sizes = [2, 8, 8, 2], strides = [1, 1, 1, 1]} : vector<2x14x14x2xf32> to vector<2x8x8x2xf32>
    %134 = vector.shape_cast %133 : vector<2x8x8x2xf32> to vector<128x2xf32>
    %135 = vector.extract_strided_slice %94 {offsets = [0, 2, 6, 0], sizes = [2, 8, 8, 2], strides = [1, 1, 1, 1]} : vector<2x14x14x2xf32> to vector<2x8x8x2xf32>
    %136 = vector.shape_cast %135 : vector<2x8x8x2xf32> to vector<128x2xf32>
    %137 = vector.extract_strided_slice %94 {offsets = [0, 3, 0, 0], sizes = [2, 8, 8, 2], strides = [1, 1, 1, 1]} : vector<2x14x14x2xf32> to vector<2x8x8x2xf32>
    %138 = vector.shape_cast %137 : vector<2x8x8x2xf32> to vector<128x2xf32>
    %139 = vector.extract_strided_slice %94 {offsets = [0, 3, 1, 0], sizes = [2, 8, 8, 2], strides = [1, 1, 1, 1]} : vector<2x14x14x2xf32> to vector<2x8x8x2xf32>
    %140 = vector.shape_cast %139 : vector<2x8x8x2xf32> to vector<128x2xf32>
    %141 = vector.extract_strided_slice %94 {offsets = [0, 3, 2, 0], sizes = [2, 8, 8, 2], strides = [1, 1, 1, 1]} : vector<2x14x14x2xf32> to vector<2x8x8x2xf32>
    %142 = vector.shape_cast %141 : vector<2x8x8x2xf32> to vector<128x2xf32>
    %143 = vector.extract_strided_slice %94 {offsets = [0, 3, 3, 0], sizes = [2, 8, 8, 2], strides = [1, 1, 1, 1]} : vector<2x14x14x2xf32> to vector<2x8x8x2xf32>
    %144 = vector.shape_cast %143 : vector<2x8x8x2xf32> to vector<128x2xf32>
    %145 = vector.extract_strided_slice %94 {offsets = [0, 3, 4, 0], sizes = [2, 8, 8, 2], strides = [1, 1, 1, 1]} : vector<2x14x14x2xf32> to vector<2x8x8x2xf32>
    %146 = vector.shape_cast %145 : vector<2x8x8x2xf32> to vector<128x2xf32>
    %147 = vector.extract_strided_slice %94 {offsets = [0, 3, 5, 0], sizes = [2, 8, 8, 2], strides = [1, 1, 1, 1]} : vector<2x14x14x2xf32> to vector<2x8x8x2xf32>
    %148 = vector.shape_cast %147 : vector<2x8x8x2xf32> to vector<128x2xf32>
    %149 = vector.extract_strided_slice %94 {offsets = [0, 3, 6, 0], sizes = [2, 8, 8, 2], strides = [1, 1, 1, 1]} : vector<2x14x14x2xf32> to vector<2x8x8x2xf32>
    %150 = vector.shape_cast %149 : vector<2x8x8x2xf32> to vector<128x2xf32>
    %151 = vector.extract_strided_slice %94 {offsets = [0, 4, 0, 0], sizes = [2, 8, 8, 2], strides = [1, 1, 1, 1]} : vector<2x14x14x2xf32> to vector<2x8x8x2xf32>
    %152 = vector.shape_cast %151 : vector<2x8x8x2xf32> to vector<128x2xf32>
    %153 = vector.extract_strided_slice %94 {offsets = [0, 4, 1, 0], sizes = [2, 8, 8, 2], strides = [1, 1, 1, 1]} : vector<2x14x14x2xf32> to vector<2x8x8x2xf32>
    %154 = vector.shape_cast %153 : vector<2x8x8x2xf32> to vector<128x2xf32>
    %155 = vector.extract_strided_slice %94 {offsets = [0, 4, 2, 0], sizes = [2, 8, 8, 2], strides = [1, 1, 1, 1]} : vector<2x14x14x2xf32> to vector<2x8x8x2xf32>
    %156 = vector.shape_cast %155 : vector<2x8x8x2xf32> to vector<128x2xf32>
    %157 = vector.extract_strided_slice %94 {offsets = [0, 4, 3, 0], sizes = [2, 8, 8, 2], strides = [1, 1, 1, 1]} : vector<2x14x14x2xf32> to vector<2x8x8x2xf32>
    %158 = vector.shape_cast %157 : vector<2x8x8x2xf32> to vector<128x2xf32>
    %159 = vector.extract_strided_slice %94 {offsets = [0, 4, 4, 0], sizes = [2, 8, 8, 2], strides = [1, 1, 1, 1]} : vector<2x14x14x2xf32> to vector<2x8x8x2xf32>
    %160 = vector.shape_cast %159 : vector<2x8x8x2xf32> to vector<128x2xf32>
    %161 = vector.extract_strided_slice %94 {offsets = [0, 4, 5, 0], sizes = [2, 8, 8, 2], strides = [1, 1, 1, 1]} : vector<2x14x14x2xf32> to vector<2x8x8x2xf32>
    %162 = vector.shape_cast %161 : vector<2x8x8x2xf32> to vector<128x2xf32>
    %163 = vector.extract_strided_slice %94 {offsets = [0, 4, 6, 0], sizes = [2, 8, 8, 2], strides = [1, 1, 1, 1]} : vector<2x14x14x2xf32> to vector<2x8x8x2xf32>
    %164 = vector.shape_cast %163 : vector<2x8x8x2xf32> to vector<128x2xf32>
    %165 = vector.extract_strided_slice %94 {offsets = [0, 5, 0, 0], sizes = [2, 8, 8, 2], strides = [1, 1, 1, 1]} : vector<2x14x14x2xf32> to vector<2x8x8x2xf32>
    %166 = vector.shape_cast %165 : vector<2x8x8x2xf32> to vector<128x2xf32>
    %167 = vector.extract_strided_slice %94 {offsets = [0, 5, 1, 0], sizes = [2, 8, 8, 2], strides = [1, 1, 1, 1]} : vector<2x14x14x2xf32> to vector<2x8x8x2xf32>
    %168 = vector.shape_cast %167 : vector<2x8x8x2xf32> to vector<128x2xf32>
    %169 = vector.extract_strided_slice %94 {offsets = [0, 5, 2, 0], sizes = [2, 8, 8, 2], strides = [1, 1, 1, 1]} : vector<2x14x14x2xf32> to vector<2x8x8x2xf32>
    %170 = vector.shape_cast %169 : vector<2x8x8x2xf32> to vector<128x2xf32>
    %171 = vector.extract_strided_slice %94 {offsets = [0, 5, 3, 0], sizes = [2, 8, 8, 2], strides = [1, 1, 1, 1]} : vector<2x14x14x2xf32> to vector<2x8x8x2xf32>
    %172 = vector.shape_cast %171 : vector<2x8x8x2xf32> to vector<128x2xf32>
    %173 = vector.extract_strided_slice %94 {offsets = [0, 5, 4, 0], sizes = [2, 8, 8, 2], strides = [1, 1, 1, 1]} : vector<2x14x14x2xf32> to vector<2x8x8x2xf32>
    %174 = vector.shape_cast %173 : vector<2x8x8x2xf32> to vector<128x2xf32>
    %175 = vector.extract_strided_slice %94 {offsets = [0, 5, 5, 0], sizes = [2, 8, 8, 2], strides = [1, 1, 1, 1]} : vector<2x14x14x2xf32> to vector<2x8x8x2xf32>
    %176 = vector.shape_cast %175 : vector<2x8x8x2xf32> to vector<128x2xf32>
    %177 = vector.extract_strided_slice %94 {offsets = [0, 5, 6, 0], sizes = [2, 8, 8, 2], strides = [1, 1, 1, 1]} : vector<2x14x14x2xf32> to vector<2x8x8x2xf32>
    %178 = vector.shape_cast %177 : vector<2x8x8x2xf32> to vector<128x2xf32>
    %179 = vector.extract_strided_slice %94 {offsets = [0, 6, 0, 0], sizes = [2, 8, 8, 2], strides = [1, 1, 1, 1]} : vector<2x14x14x2xf32> to vector<2x8x8x2xf32>
    %180 = vector.shape_cast %179 : vector<2x8x8x2xf32> to vector<128x2xf32>
    %181 = vector.extract_strided_slice %94 {offsets = [0, 6, 1, 0], sizes = [2, 8, 8, 2], strides = [1, 1, 1, 1]} : vector<2x14x14x2xf32> to vector<2x8x8x2xf32>
    %182 = vector.shape_cast %181 : vector<2x8x8x2xf32> to vector<128x2xf32>
    %183 = vector.extract_strided_slice %94 {offsets = [0, 6, 2, 0], sizes = [2, 8, 8, 2], strides = [1, 1, 1, 1]} : vector<2x14x14x2xf32> to vector<2x8x8x2xf32>
    %184 = vector.shape_cast %183 : vector<2x8x8x2xf32> to vector<128x2xf32>
    %185 = vector.extract_strided_slice %94 {offsets = [0, 6, 3, 0], sizes = [2, 8, 8, 2], strides = [1, 1, 1, 1]} : vector<2x14x14x2xf32> to vector<2x8x8x2xf32>
    %186 = vector.shape_cast %185 : vector<2x8x8x2xf32> to vector<128x2xf32>
    %187 = vector.extract_strided_slice %94 {offsets = [0, 6, 4, 0], sizes = [2, 8, 8, 2], strides = [1, 1, 1, 1]} : vector<2x14x14x2xf32> to vector<2x8x8x2xf32>
    %188 = vector.shape_cast %187 : vector<2x8x8x2xf32> to vector<128x2xf32>
    %189 = vector.extract_strided_slice %94 {offsets = [0, 6, 5, 0], sizes = [2, 8, 8, 2], strides = [1, 1, 1, 1]} : vector<2x14x14x2xf32> to vector<2x8x8x2xf32>
    %190 = vector.shape_cast %189 : vector<2x8x8x2xf32> to vector<128x2xf32>
    %191 = vector.extract_strided_slice %94 {offsets = [0, 6, 6, 0], sizes = [2, 8, 8, 2], strides = [1, 1, 1, 1]} : vector<2x14x14x2xf32> to vector<2x8x8x2xf32>
    %192 = vector.shape_cast %191 : vector<2x8x8x2xf32> to vector<128x2xf32>
    %193 = tpu.concatenate %96, %98, %100, %102, %104, %106, %108, %110, %112, %114, %116, %118, %120, %122, %124, %126 in 1 : vector<128x2xf32>, vector<128x2xf32>, vector<128x2xf32>, vector<128x2xf32>, vector<128x2xf32>, vector<128x2xf32>, vector<128x2xf32>, vector<128x2xf32>, vector<128x2xf32>, vector<128x2xf32>, vector<128x2xf32>, vector<128x2xf32>, vector<128x2xf32>, vector<128x2xf32>, vector<128x2xf32>, vector<128x2xf32> -> vector<128x32xf32>
    %194 = tpu.concatenate %128, %130, %132, %134, %136, %138, %140, %142, %144, %146, %148, %150, %152, %154, %156, %158 in 1 : vector<128x2xf32>, vector<128x2xf32>, vector<128x2xf32>, vector<128x2xf32>, vector<128x2xf32>, vector<128x2xf32>, vector<128x2xf32>, vector<128x2xf32>, vector<128x2xf32>, vector<128x2xf32>, vector<128x2xf32>, vector<128x2xf32>, vector<128x2xf32>, vector<128x2xf32>, vector<128x2xf32>, vector<128x2xf32> -> vector<128x32xf32>
    %195 = tpu.concatenate %160, %162, %164, %166, %168, %170, %172, %174, %176, %178, %180, %182, %184, %186, %188, %190 in 1 : vector<128x2xf32>, vector<128x2xf32>, vector<128x2xf32>, vector<128x2xf32>, vector<128x2xf32>, vector<128x2xf32>, vector<128x2xf32>, vector<128x2xf32>, vector<128x2xf32>, vector<128x2xf32>, vector<128x2xf32>, vector<128x2xf32>, vector<128x2xf32>, vector<128x2xf32>, vector<128x2xf32>, vector<128x2xf32> -> vector<128x32xf32>
    %196 = tpu.concatenate %193, %194, %195, %192 in 1 : vector<128x32xf32>, vector<128x32xf32>, vector<128x32xf32>, vector<128x2xf32> -> vector<128x98xf32>
    %197 = arith.truncf %196 : vector<128x98xf32> to vector<128x98xbf16>
    %c0_43 = arith.constant 0 : index
    %c0_44 = arith.constant 0 : index
    %198 = vector.load %arg13[%c0_43, %c0_44] : memref<98x64xbf16, #tpu.memory_space<vmem>>, vector<98x64xbf16>
    %cst_45 = arith.constant dense<0.000000e+00> : vector<128x64xf32>
    %199 = tpu.matmul %197, %198, %cst_45 {dimension_numbers = #tpu.dot_dimension_numbers<[1], [0], [0], [1], [0, 0, 1, 1], [], []>} : vector<128x98xbf16>, vector<98x64xbf16>, vector<128x64xf32> -> vector<128x64xf32>
    %200 = arith.negf %199 : vector<128x64xf32>
    %201 = math.exp %200 : vector<128x64xf32>
    %cst_46 = arith.constant 1.000000e+00 : f32
    %202 = vector.broadcast %cst_46 : f32 to vector<128x64xf32>
    %203 = arith.addf %202, %201 : vector<128x64xf32>
    %204 = arith.divf %202, %203 : vector<128x64xf32>
    %205 = arith.mulf %82, %204 : vector<128x64xf32>
    %206 = arith.addf %205, %1 : vector<128x64xf32>
    %cst_47 = arith.constant 0.000000e+00 : f32
    %207 = vector.broadcast %cst_47 : f32 to vector<128x64xf32>
    %208 = arith.maximumf %206, %207 : vector<128x64xf32>
    %209 = vector.shape_cast %208 : vector<128x64xf32> to vector<2x8x8x64xf32>
    %c0_48 = arith.constant 0 : index
    %c0_49 = arith.constant 0 : index
    %c0_50 = arith.constant 0 : index
    %c0_51 = arith.constant 0 : index
    %210 = vector.load %arg14[%c0_48, %c0_49, %c0_50, %c0_51] : memref<2x8x8x64xf32, #tpu.memory_space<vmem>>, vector<2x8x8x64xf32>
    tpu.vector_store %arg14[%c0_48, %c0_49, %c0_50, %c0_51], %209 {strides = array<i32>} : memref<2x8x8x64xf32, #tpu.memory_space<vmem>>, vector<2x8x8x64xf32>,
    return
  }
  func.func @transform_0(%arg0: i32) -> (i32, i32, i32, i32) {
    %c0_i32 = arith.constant 0 : i32
    %c0_i32_0 = arith.constant 0 : i32
    %c0_i32_1 = arith.constant 0 : i32
    %c0_i32_2 = arith.constant 0 : i32
    return %arg0, %c0_i32, %c0_i32_0, %c0_i32_1 : i32, i32, i32, i32
  }
  func.func @transform_1(%arg0: i32) -> (i32, i32) {
    %c0_i32 = arith.constant 0 : i32
    %c0_i32_0 = arith.constant 0 : i32
    %c0_i32_1 = arith.constant 0 : i32
    return %c0_i32, %c0_i32_0 : i32, i32
  }
  func.func @transform_2(%arg0: i32) -> (i32, i32) {
    %c0_i32 = arith.constant 0 : i32
    %c0_i32_0 = arith.constant 0 : i32
    %c0_i32_1 = arith.constant 0 : i32
    return %c0_i32, %c0_i32_0 : i32, i32
  }
  func.func @transform_3(%arg0: i32) -> (i32, i32) {
    %c0_i32 = arith.constant 0 : i32
    %c0_i32_0 = arith.constant 0 : i32
    %c0_i32_1 = arith.constant 0 : i32
    return %c0_i32, %c0_i32_0 : i32, i32
  }
  func.func @transform_4(%arg0: i32) -> (i32, i32) {
    %c0_i32 = arith.constant 0 : i32
    %c0_i32_0 = arith.constant 0 : i32
    %c0_i32_1 = arith.constant 0 : i32
    return %c0_i32, %c0_i32_0 : i32, i32
  }
  func.func @transform_5(%arg0: i32) -> (i32, i32) {
    %c0_i32 = arith.constant 0 : i32
    %c0_i32_0 = arith.constant 0 : i32
    %c0_i32_1 = arith.constant 0 : i32
    return %c0_i32, %c0_i32_0 : i32, i32
  }
  func.func @transform_6(%arg0: i32) -> (i32, i32) {
    %c0_i32 = arith.constant 0 : i32
    %c0_i32_0 = arith.constant 0 : i32
    %c0_i32_1 = arith.constant 0 : i32
    return %c0_i32, %c0_i32_0 : i32, i32
  }
  func.func @transform_7(%arg0: i32) -> (i32, i32) {
    %c0_i32 = arith.constant 0 : i32
    %c0_i32_0 = arith.constant 0 : i32
    %c0_i32_1 = arith.constant 0 : i32
    return %c0_i32, %c0_i32_0 : i32, i32
  }
  func.func @transform_8(%arg0: i32) -> (i32, i32) {
    %c0_i32 = arith.constant 0 : i32
    %c0_i32_0 = arith.constant 0 : i32
    %c0_i32_1 = arith.constant 0 : i32
    return %c0_i32, %c0_i32_0 : i32, i32
  }
  func.func @transform_9(%arg0: i32) -> (i32, i32) {
    %c0_i32 = arith.constant 0 : i32
    %c0_i32_0 = arith.constant 0 : i32
    %c0_i32_1 = arith.constant 0 : i32
    return %c0_i32, %c0_i32_0 : i32, i32
  }
  func.func @transform_10(%arg0: i32) -> (i32, i32) {
    %c0_i32 = arith.constant 0 : i32
    %c0_i32_0 = arith.constant 0 : i32
    %c0_i32_1 = arith.constant 0 : i32
    return %c0_i32, %c0_i32_0 : i32, i32
  }
  func.func @transform_11(%arg0: i32) -> (i32, i32) {
    %c0_i32 = arith.constant 0 : i32
    %c0_i32_0 = arith.constant 0 : i32
    %c0_i32_1 = arith.constant 0 : i32
    return %c0_i32, %c0_i32_0 : i32, i32
  }
  func.func @transform_12(%arg0: i32) -> (i32, i32) {
    %c0_i32 = arith.constant 0 : i32
    %c0_i32_0 = arith.constant 0 : i32
    %c0_i32_1 = arith.constant 0 : i32
    return %c0_i32, %c0_i32_0 : i32, i32
  }
  func.func @transform_13(%arg0: i32) -> (i32, i32, i32, i32) {
    %c0_i32 = arith.constant 0 : i32
    %c0_i32_0 = arith.constant 0 : i32
    %c0_i32_1 = arith.constant 0 : i32
    %c0_i32_2 = arith.constant 0 : i32
    return %arg0, %c0_i32, %c0_i32_0, %c0_i32_1 : i32, i32, i32, i32
  }
}

</mosaic_0001>

<bundles_post_ra>
// kernel: cs_bottleneck_pallas.1
= control target key start
LH: loop header
LB: loop body
LE: loop exit
PB: predicated region body
PF: predicated region fallthrough
CT: control target
= control target key end

     0   :  { %vm13566_vm0 = vcmask 523264   ;;  %s13131_s0 = inlined_call_operand.vmem [shape: f32[2,8,8,64], index: 0, kind: input, shape index: {}]   ;;  %s13132_s1 = inlined_call_operand.vmem [shape: bf16[64,16], index: 1, kind: input, shape index: {}]   ;;  %s13133_s2 = inlined_call_operand.vmem [shape: f32[1,16], index: 2, kind: input, shape index: {}]   ;;  %s13134_s3 = inlined_call_operand.vmem [shape: f32[1,16], index: 3, kind: input, shape index: {}]   ;;  %s13135_s4 = inlined_call_operand.vmem [shape: bf16[144,16], index: 4, kind: input, shape index: {}]   ;;  %s13136_s5 = inlined_call_operand.vmem [shape: f32[1,16], index: 5, kind: input, shape index: {}]   ;;  %s13137_s6 = inlined_call_operand.vmem [shape: f32[1,16], index: 6, kind: input, shape index: {}]   ;;  %s13138_s7 = inlined_call_operand.vmem [shape: bf16[16,64], index: 7, kind: input, shape index: {}]   ;;  %s13139_s8 = inlined_call_operand.vmem [shape: f32[1,64], index: 8, kind: input, shape index: {}]   ;;  %s13140_s9 = inlined_call_operand.vmem [shape: f32[1,64], index: 9, kind: input, shape index: {}]   ;;  %s13141_s10 = inlined_call_operand.vmem [shape: bf16[64,4], index: 10, kind: input, shape index: {}]   ;;  %s13142_s11 = inlined_call_operand.vmem [shape: bf16[4,64], index: 11, kind: input, shape index: {}]   ;;  %s13143_s12 = inlined_call_operand.vmem [shape: bf16[98,64], index: 12, kind: input, shape index: {}]   ;;  %s13144_s13 = inlined_call_operand.hbm [shape: f32[2,8,8,64], index: 13, kind: output, shape index: {}]  }
   0x1   :  { %v7450_v0 = vld [vmem:[%s13132_s1] sm:$0xff]   ;;  %v7451_v1 = vld [vmem:[%s13132_s1 + $0x8] sm:$0xff]   ;;  %v7452_v2 = vld [vmem:[%s13132_s1 + $0x10] sm:$0xff]  }
   0x2   :  { %5459 = vmatprep.subr.bf16.mxu0 %v7450_v0  ;;  %v46_v3 = vld [vmem:[%s13131_s0] sm:$0xff]  ;;  %v47_v4 = vld [vmem:[%s13131_s0 + $0x8] sm:$0xff]  ;;  %v7453_v6 = vld [vmem:[%s13132_s1 + $0x18] sm:$0xff]  }
   0x3   :  { %5460 = vmatpush3.bf16.msra.mxu0 %v7450_v0  ;;  %v62_v5 = vpack.c.bf16 %v47_v4, %v46_v3  ;;  %v48_v7 = vld [vmem:[%s13131_s0 + $0x10] sm:$0xff]  ;;  %v49_v8 = vld [vmem:[%s13131_s0 + $0x18] sm:$0xff]  ;;  %v50_v9 = vld [vmem:[%s13131_s0 + $0x20] sm:$0xff] }
   0x4   :  { %5461 = vmatprep.subr.bf16.mxu0 %v7451_v1  ;;  %v51_v10 = vld [vmem:[%s13131_s0 + $0x28] sm:$0xff]  ;;  %v63_v11 = vpack.c.bf16 %v49_v8, %v48_v7  ;;  %v52_v13 = vld [vmem:[%s13131_s0 + $0x30] sm:$0xff]  ;;  %v53_v14 = vld [vmem:[%s13131_s0 + $0x38] sm:$0xff] }
   0x5   :  { %5467 = vmatprep.mubr.msk.bf16.mxu0 %vm13566_vm0, %v62_v5  ;;  %v64_v12 = vpack.c.bf16 %v51_v10, %v50_v9  ;;  %v54_v15 = vld [vmem:[%s13131_s0 + $0x40] sm:$0xff]  ;;  %v55_v16 = vld [vmem:[%s13131_s0 + $0x48] sm:$0xff]  ;;  %v65_v17 = vpack.c.bf16 %v53_v14, %v52_v13 }
   0x6   :  { %v66_v18 = vpack.c.bf16 %v55_v16, %v54_v15 }
   0x7   :  { %5462 = vmatpush3.bf16.msra.mxu0 %v7451_v1 }
   0x8   :  { %5463 = vmatprep.subr.bf16.mxu0 %v7452_v2 }
   0xb   :  { %5464 = vmatpush3.bf16.msra.mxu0 %v7452_v2 }
   0xc   :  { %5465 = vmatprep.subr.bf16.mxu0 %v7453_v6 }
   0xf   :  { %5466 = vmatpush3.bf16.msra.mxu0 %v7453_v6 }
  0x12   :  { %5468 = vmatmul.mubr.msk.bf16.vlgmr.msra.gmra.mrb[0].mxu0 %vm13566_vm0, %v63_v11 }
  0x13   :  { %5471 = vmatprep.mubr.msk.bf16.mxu0 %vm13566_vm0, %v64_v12 }
  0x14   :  { %18 = vsyncpa [#allocation3], 0  ;;  %v56_v19 = vld [vmem:[%s13131_s0 + $0x50] sm:$0xff]  ;;  %v57_v20 = vld [vmem:[%s13131_s0 + $0x58] sm:$0xff]  ;;  %v7583_v29 = vmov 0.0   ;;  %vm337_vm1 = vcmask 1040384  }
  0x15   :  { %v58_v21 = vld [vmem:[%s13131_s0 + $0x60] sm:$0xff]  ;;  %v59_v22 = vld [vmem:[%s13131_s0 + $0x68] sm:$0xff]  ;;  %v67_v23 = vpack.c.bf16 %v57_v20, %v56_v19  ;;  %v60_v25 = vld [vmem:[%s13131_s0 + $0x70] sm:$0xff]  ;;  %v303_v30 = vrot.slane %v7583_v29, 7  ;;  %v7584_v38 = vmov 0   ;;  %vm402_vm2 = vcmask 1046528  }
  0x16   :  { %v68_v24 = vpack.c.bf16 %v59_v22, %v58_v21  ;;  %v61_v26 = vld [vmem:[%s13131_s0 + $0x78] sm:$0xff]  ;;  %v7751_v28 = vld [vmem:[%s13133_s2] ss:$0 sm:$0xff]  ;;  %1077 = vmatprep.subr.bf16.mxu0 %v7584_v38  ;;  %5549 = vmatprep.subr.bf16.mxu1 %v7584_v38  ;;  %v7455_v48 = vld [vmem:[%s13135_s4 + $0x8] sm:$0xff]   ;;  %vm448_vm3 = vcmask 1045504   ;;  %vm13594_vm4 = vcmask 130048  }
  0x17   :  { %v69_v27 = vpack.c.bf16 %v61_v26, %v60_v25  ;;  %v7757_v32 = vld [vmem:[%s13134_s3] ss:$0 sm:$0xff]  ;;  %v7769_v42 = vsel %vm337_vm1, 0.0, %v303_v30  ;;  %v7772_v43 = vsel %vm337_vm1, %v303_v30, 0.0  ;;  %v7456_v2 = vld [vmem:[%s13135_s4 + $0x10] sm:$0xff]   ;;  %s7585_s20 = smov 48  }
  0x18   :  { %v7454_v35 = vld [vmem:[%s13135_s4] sm:$0xff]   ;;  %v403_v50 = vrot.slane %v7769_v42, 1  ;;  %v404_v51 = vrot.slane %v7772_v43, 1  ;;  %v449_v0 = vrot.slane %v7769_v42, 2  ;;  %v450_v1 = vrot.slane %v7772_v43, 2  ;;  %s7586_s23 = smov 64  }
  0x19   :  { %1078 = vmatpush1.bf16.msra.mxu0 %v7454_v35  ;;  %5558 = vmatpush1.bf16.msra.mxu1 %v7454_v35  ;;  %s7587_s26 = smov 96   ;;  %s7588_s27 = smov 80   ;;  %vm13567_vm5 = vcmask 261120   ;;  %vm881_vm6 = vcmask 392192   ;;  %vm914_vm7 = vcmask 654336   ;;  %vm13565_vm8 = vcmask 785408  }
  0x1a   :  { %5472 = vmatmul.mubr.msk.bf16.gmra.mrb[4].mxu0 %vm13566_vm0, %v65_v17  ;;  %1079 = vmatprep.subr.bf16.mxu0 %v7584_v38  ;;  %v7793_v63 = vsel %vm402_vm2, %v403_v50, %v404_v51  ;;  %s7589_s29 = smov 16   ;;  %s7590_s30 = smov 32   ;;  %vm948_vm9 = vcmask 916480   ;;  %vm7592_vm10 = vmmov 0   ;;  %vm1508_vm11 = vcmask 1041409  }
  0x1b   :  { %5475 = vmatprep.mubr.msk.bf16.mxu0 %vm13566_vm0, %v66_v18  ;;  %5550 = vmatprep.subr.bf16.mxu1 %v7584_v38  ;;  %vm1513_vm12 = vcmask 1043459   ;;  %vm1516_vm13 = vcmask 1041408   ;;  %vm1597_vm14 = vcmask 31744   ;;  %vm1815_vm15 = vcmask 7168   ;;  %s7595_s2 = smov 28   ;;  %s7596_s3 = smov 10  }
  0x1c   :  { %s7598_s18 = smov 6   ;;  %s7599_s19 = smov 20  }
  0x1d   :  { %1080 = vmatpush1.bf16.msra.mxu0 %v7455_v48  ;;  %5559 = vmatpush1.bf16.msra.mxu1 %v7455_v48  ;;  %s7601_s21 = smov 4   ;;  %s7602_s22 = smov 8  }
  0x1e   :  { %1081 = vmatprep.subr.bf16.mxu0 %v7584_v38  ;;  %5551 = vmatprep.subr.bf16.mxu1 %v7584_v38  ;;  %s7603_s24 = smov 12   ;;  %s7607_s25 = smov 30  }
  0x21   :  { %1082 = vmatpush1.bf16.msra.mxu0 %v7456_v2  ;;  %5560 = vmatpush1.bf16.msra.mxu1 %v7456_v2 }
  0x22   :  { %5476 = vmatmul.mubr.msk.bf16.gmra.mrb[8].mxu0 %vm13566_vm0, %v67_v23  ;;  %1083 = vmatprep.subr.bf16.mxu0 %v7584_v38 }
  0x23   :  { %5479 = vmatprep.mubr.msk.bf16.mxu0 %vm13566_vm0, %v68_v24  ;;  %5552 = vmatprep.subr.bf16.mxu1 %v7584_v38 }
  0x2a   :  { %5480 = vmatmul.mubr.msk.bf16.gmra.mrb[12].mxu0 %vm13566_vm0, %v69_v27 }
  0xe5   :  { %v5469_v31 = vpop.f32.mrb[0].mxu0 }
  0xe6   :  { %v233_v33 = vmul.f32 %v5469_v31, %v7751_v28  ;;  %v161_v34 = vpop.f32.mrb[1].mxu0 }
  0xe7   :  { %v231_v36 = vmul.f32 %v7751_v28, %v161_v34  ;;  %v5470_v37 = vpop.f32.mrb[2].mxu0 }
  0xe8   :  { %v256_v39 = vadd.f32 %v7757_v32, %v233_v33  ;;  %v234_v40 = vmul.f32 %v5470_v37, %v7751_v28  ;;  %v164_v41 = vpop.f32.mrb[3].mxu0 }
  0xe9   :  { %v254_v44 = vadd.f32 %v7757_v32, %v231_v36  ;;  %v232_v45 = vmul.f32 %v7751_v28, %v164_v41  ;;  %v7850_v41 = vsel %vm448_vm3, %v449_v0, %v450_v1  ;;  %v7458_v0 = vld [vmem:[%s13135_s4 + $0x20] sm:$0xff]  }
  0xea   :  { %v272_v46 = vmax.f32 %v256_v39, 0.0  ;;  %v257_v47 = vadd.f32 %v7757_v32, %v234_v40 }
  0xeb   :  { %v255_v49 = vadd.f32 %v7757_v32, %v232_v45  ;;  %v270_v53 = vmax.f32 %v254_v44, 0.0  ;;  %v7457_v44 = vld [vmem:[%s13135_s4 + $0x18] sm:$0xff]  }
  0xec   :  { %v306_v52 = vrot.slane %v272_v46, 7  ;;  %v273_v54 = vmax.f32 %v257_v47, 0.0  ;;  %1084 = vmatpush1.bf16.msra.mxu0 %v7457_v44  ;;  %5561 = vmatpush1.bf16.msra.mxu1 %v7457_v44 }
  0xed   :  { %v271_v55 = vmax.f32 %v255_v49, 0.0  ;;  %v5473_v56 = vpop.f32.mrb[4].mxu0  ;;  %v304_v4 = vrot.slane %v270_v53, 7  ;;  %1085 = vmatprep.subr.bf16.mxu0 %v7584_v38  ;;  %5553 = vmatprep.subr.bf16.mxu1 %v7584_v38 }
  0xee   :  { %v7788_v57 = vsel %vm337_vm1, 0.0, %v306_v52  ;;  %v358_v58 = vsel %vm337_vm1, %v306_v52, 0.0  ;;  %v307_v59 = vrot.slane %v273_v54, 7  ;;  %v237_v60 = vmul.f32 %v5473_v56, %v7751_v28  ;;  %v177_v61 = vpop.f32.mrb[5].mxu0 }
  0xef   :  { %v5474_v62 = vpop.f32.mrb[6].mxu0  ;;  %v413_v3 = vrot.slane %v358_v58, 1  ;;  %v458_v8 = vrot.slane %v7788_v57, 2  ;;  %v459_v9 = vrot.slane %v358_v58, 2  ;;  %v305_v10 = vrot.slane %v271_v55, 7 }
  0xf0   :  { %v7801_v5 = vsel %vm337_vm1, 0.0, %v307_v59  ;;  %v7804_v6 = vsel %vm337_vm1, %v307_v59, 0.0  ;;  %v180_v7 = vpop.f32.mrb[7].mxu0  ;;  %v260_v11 = vadd.f32 %v7757_v32, %v237_v60  ;;  %v235_v13 = vmul.f32 %v7751_v28, %v177_v61  ;;  %1086 = vmatpush1.bf16.msra.mxu0 %v7458_v0  ;;  %5562 = vmatpush1.bf16.msra.mxu1 %v7458_v0 }
  0xf1   :  { %v416_v12 = vrot.slane %v7804_v6, 1  ;;  %v5595_v14 = vpack.i.bf16 %v7801_v5, %v7788_v57  ;;  %v238_v15 = vmul.f32 %v5474_v62, %v7751_v28  ;;  %v7816_v16 = vsel %vm337_vm1, 0.0, %v305_v10  ;;  %1087 = vmatprep.subr.bf16.mxu0 %v7584_v38  ;;  %5554 = vmatprep.subr.bf16.mxu1 %v7584_v38 }
  0xf2   :  { %v7819_v17 = vsel %vm337_vm1, %v305_v10, 0.0  ;;  %v276_v18 = vmax.f32 %v260_v11, 0.0  ;;  %v412_v19 = vrot.slane %v7788_v57, 1  ;;  %v455_v20 = vrot.slane %v7816_v16, 2 }
  0xf3   :  { %v456_v21 = vrot.slane %v7819_v17, 2  ;;  %v258_v22 = vadd.f32 %v7757_v32, %v235_v13  ;;  %5596 = vrot.lane.b32.xlu1 %v5595_v14, %s7585_s20  ;;  %v7827_v23 = vsel %vm337_vm1, 0.0, %v304_v4  ;;  %v7830_v24 = vsel %vm337_vm1, %v304_v4, 0.0 }
  0xf4   :  { %v310_v25 = vrot.slane %v276_v18, 7  ;;  %v5600_v26 = vpack.i.bf16 %v7816_v16, %v7827_v23  ;;  %v261_v27 = vadd.f32 %v7757_v32, %v238_v15  ;;  %v415_v33 = vrot.slane %v7801_v5, 1 }
  0xf5   :  { %v7835_v30 = vpop.f32.mrb[8].mxu0  ;;  %v274_v31 = vmax.f32 %v258_v22, 0.0  ;;  %v236_v34 = vmul.f32 %v7751_v28, %v180_v7  ;;  %v7840_v35 = vsel %vm448_vm3, %v455_v20, %v456_v21  ;;  %v462_v37 = vrot.slane %v7804_v6, 2 }
  0xf6   :  { %v7842_v36 = vpop.f32.mrb[9].mxu0  ;;  %5601 = vrot.lane.b32.xlu0 %v5600_v26, %s7585_s20  ;;  %v277_v39 = vmax.f32 %v261_v27, 0.0  ;;  %v7847_v40 = vsel %vm402_vm2, %v412_v19, %v413_v3  ;;  %v7858_v45 = vsel %vm337_vm1, %v310_v25, 0.0  ;;  %v7861_v47 = vsel %vm402_vm2, %v415_v33, %v416_v12 }
  0xf7   :  { %v7852_v43 = vpop.f32.mrb[10].mxu0  ;;  %v308_v46 = vrot.slane %v274_v31, 7  ;;  %v7864_v48 = vsel %vm448_vm3, %v458_v8, %v459_v9  ;;  %v407_v50 = vrot.slane %v7830_v24, 1  ;;  %v5620_v51 = vpack.i.bf16 %v7861_v47, %v7847_v40 }
  0xf8   :  { %v7866_v49 = vpop.f32.mrb[11].mxu0  ;;  %v259_v52 = vadd.f32 %v7757_v32, %v236_v34  ;;  %v966_v53 = vpack.c.bf16 %v7864_v48, %v7840_v35  ;;  %v453_v54 = vrot.slane %v7830_v24, 2  ;;  %v410_v55 = vrot.slane %v7819_v17, 1 }
  0xf9   :  { %v5605_v56 = vpack.i.bf16 %v7788_v57, %v7816_v16  ;;  %v461_v58 = vrot.slane %v7801_v5, 2  ;;  %v7882_v59 = vsel %vm337_vm1, 0.0, %v310_v25  ;;  %v425_v60 = vrot.slane %v7858_v45, 1  ;;  %5621 = vrot.lane.b32.xlu1 %v5620_v51, %s7586_s23 }
  0xfa   :  { %v7886_v61 = vsel %vm337_vm1, %v308_v46, 0.0  ;;  %v311_v62 = vrot.slane %v277_v39, 7  ;;  %5357 = vmatprep.mubr.msk.bf16.mxu0 %vm13594_vm4, %v966_v53  ;;  %v471_v1 = vrot.slane %v7858_v45, 2  ;;  %v7895_v2 = vsel %vm337_vm1, 0.0, %v308_v46  ;;  %v7459_v39 = vld [vmem:[%s13135_s4 + $0x28] sm:$0xff]  }
  0xfb   :  { %v275_v3 = vmax.f32 %v259_v52, 0.0  ;;  %5606 = vrot.lane.b32.xlu0 %v5605_v56, %s7587_s26  ;;  %v7899_v4 = vsel %vm448_vm3, %v461_v58, %v462_v37  ;;  %v406_v7 = vrot.slane %v7827_v23, 1  ;;  %v5635_v8 = vpack.i.bf16 %v7864_v48, %v7840_v35  ;;  %1088 = vmatpush1.bf16.msra.mxu0 %v7459_v39  ;;  %v7460_v58 = vld [vmem:[%s13135_s4 + $0x30] sm:$0xff]  }
  0xfc   :  { %v5625_v6 = vpack.i.bf16 %v7899_v4, %v7864_v48  ;;  %v452_v9 = vrot.slane %v7827_v23, 2  ;;  %v419_v11 = vrot.slane %v7886_v61, 1  ;;  %v409_v13 = vrot.slane %v7816_v16, 1  ;;  %5563 = vmatpush1.bf16.msra.mxu1 %v7459_v39  ;;  %1089 = vmatprep.subr.bf16.mxu0 %v7584_v38 }
  0xfd   :  { %v5481_v10 = vpop.f32.mrb[12].mxu0  ;;  %v309_v12 = vrot.slane %v275_v3, 7  ;;  %v470_v14 = vrot.slane %v7882_v59, 2  ;;  %v465_v17 = vrot.slane %v7886_v61, 2  ;;  %v7914_v18 = vsel %vm337_vm1, 0.0, %v311_v62  ;;  %5555 = vmatprep.subr.bf16.mxu1 %v7584_v38 }
  0xfe   :  { %v209_v15 = vpop.f32.mrb[13].mxu0  ;;  %v7917_v19 = vsel %vm337_vm1, %v311_v62, 0.0  ;;  %5626 = vrot.lane.b32.xlu1 %v5625_v6, %s7588_s27  ;;  %v7921_v20 = vsel %vm402_vm2, %v406_v7, %v407_v50  ;;  %v7934_v26 = vsel %vm448_vm3, %v452_v9, %v453_v54  ;;  %v5655_v33 = vpack.i.bf16 %v7895_v2, %v7801_v5 }
  0xff   :  { %v7923_v21 = vpop.f32.mrb[14].mxu0  ;;  %v7926_v22 = vsel %vm337_vm1, 0.0, %v309_v12  ;;  %v7929_v24 = vsel %vm337_vm1, %v309_v12, 0.0  ;;  %v5610_v25 = vpack.i.bf16 %v7921_v20, %v7793_v63  ;;  %v7942_v34 = vsel %vm402_vm2, %v409_v13, %v410_v55  ;;  %1090 = vmatpush1.bf16.msra.mxu0 %v7460_v58  ;;  %v7461_v12 = vld [vmem:[%s13135_s4 + $0x38] sm:$0xff]  }
 0x100   :  { %v7936_v27 = vpop.f32.mrb[15].mxu0  ;;  %v468_v31 = vrot.slane %v7929_v24, 2  ;;  %v467_v37 = vrot.slane %v7926_v22, 2  ;;  %v7951_v44 = vpack.i.bf16 %v7847_v40, %v7942_v34  ;;  %v7954_v46 = vsel %vm448_vm3, %v470_v14, %v471_v1  ;;  %5564 = vmatpush1.bf16.msra.mxu1 %v7460_v58  ;;  %1091 = vmatprep.subr.bf16.mxu0 %v7584_v38 }
 0x101   :  { %5611 = vrot.lane.b32.xlu0 %v5610_v25, %s7589_s29  ;;  %v5640_v48 = vpack.i.bf16 %v7942_v34, %v7921_v20  ;;  %v5645_v50 = vpack.i.bf16 %v7840_v35, %v7934_v26  ;;  %v5615_v51 = vpack.i.bf16 %v7934_v26, %v7850_v41  ;;  %v241_v40 = vmul.f32 %v7835_v30, %v7751_v28 }
 0x102   :  { %5636 = vrot.lane.b32.xlu1 %v5635_v8, %s7590_s30  ;;  %v7964_v52 = vsel %vm448_vm3, %v467_v37, %v468_v31  ;;  %v239_v54 = vmul.f32 %v7751_v28, %v7842_v36  ;;  %v242_v55 = vmul.f32 %v7852_v43, %v7751_v28  ;;  %v418_v56 = vrot.slane %v7895_v2, 1  ;;  %5556 = vmatprep.subr.bf16.mxu1 %v7584_v38 }
 0x103   :  { %v970_v53 = vpack.c.bf16 %v7954_v46, %v7964_v52  ;;  %v5660_v30 = vpack.i.bf16 %v7914_v18, %v7882_v59  ;;  %v264_v61 = vadd.f32 %v7757_v32, %v241_v40  ;;  %v240_v62 = vmul.f32 %v7751_v28, %v7866_v49  ;;  %1092 = vmatpush1.bf16.msra.mxu0 %v7461_v12 }
 0x104   :  { %v245_v36 = vmul.f32 %v5481_v10, %v7751_v28  ;;  %v262_v43 = vadd.f32 %v7757_v32, %v239_v54  ;;  %v265_v0 = vadd.f32 %v7757_v32, %v242_v55  ;;  %v7990_v1 = vsel %vm402_vm2, %v418_v56, %v419_v11  ;;  %5565 = vmatpush1.bf16.msra.mxu1 %v7461_v12 }
 0x105   :  { %5616 = vrot.lane.b32.xlu0 %v5615_v51, %s7590_s30  ;;  %5359 = vmatprep.mubr.msk.bf16.mxu1 %vm13594_vm4, %v970_v53  ;;  %v464_v3 = vrot.slane %v7895_v2, 2  ;;  %v280_v49 = vmax.f32 %v264_v61, 0.0  ;;  %v7996_v6 = vpack.i.bf16 %v7990_v1, %v7861_v47  ;;  %v263_v7 = vadd.f32 %v7757_v32, %v240_v62 }
 0x106   :  { %5656 = vrot.lane.b32.xlu1 %v5655_v33, %s7587_s26  ;;  %v268_v8 = vadd.f32 %v7757_v32, %v245_v36  ;;  %v278_v9 = vmax.f32 %v262_v43, 0.0  ;;  %v281_v10 = vmax.f32 %v265_v0, 0.0  ;;  %v243_v11 = vmul.f32 %v7751_v28, %v209_v15  ;;  %1093 = vmatprep.subr.bf16.mxu0 %v7584_v38 }
 0x107   :  { %v314_v13 = vrot.slane %v280_v49, 7  ;;  %v279_v14 = vmax.f32 %v263_v7, 0.0  ;;  %v8006_v25 = vsel %vm448_vm3, %v464_v3, %v465_v17  ;;  %v499_v39 = vrot.slane %v7917_v19, 1  ;;  %5557 = vmatprep.subr.bf16.mxu1 %v7584_v38 }
 0x108   :  { %v284_v47 = vmax.f32 %v268_v8, 0.0  ;;  %v312_v15 = vrot.slane %v278_v9, 7  ;;  %v315_v31 = vrot.slane %v281_v10, 7  ;;  %v266_v33 = vadd.f32 %v7757_v32, %v243_v11 }
 0x109   :  { %5631 = vrot.lane.b32.xlu0 %v7951_v44, %s7589_s29  ;;  %v5685_v37 = vpack.i.bf16 %v8006_v25, %v7899_v4  ;;  %v505_v51 = vrot.slane %v7917_v19, 2  ;;  %v8019_v17 = vsel %vm337_vm1, %v314_v13, 0.0  ;;  %v313_v40 = vrot.slane %v279_v14, 7  ;;  %v7462_v19 = vld [vmem:[%s13135_s4 + $0x40] sm:$0xff]   ;;  %s7591_s4 = smov 112  }
 0x10a   :  { %5661 = vrot.lane.b32.xlu1 %v5660_v30, %s7585_s20  ;;  %v422_v53 = vrot.slane %v7929_v24, 1  ;;  %v5665_v54 = vpack.i.bf16 %v7769_v42, %v7914_v18  ;;  %v5675_v55 = vpack.i.bf16 %v7882_v59, %v7926_v22  ;;  %v8027_v56 = vsel %vm337_vm1, %v312_v15, 0.0  ;;  %1094 = vmatpush1.bf16.msra.mxu0 %v7462_v19 }
 0x10b   :  { %v8033_v58 = vsel %vm337_vm1, 0.0, %v314_v13  ;;  %v8036_v24 = vsel %vm337_vm1, %v315_v31, 0.0  ;;  %v5670_v30 = vpack.i.bf16 %v7926_v22, %v7895_v2  ;;  %v318_v61 = vrot.slane %v284_v47, 7  ;;  %5566 = vmatpush1.bf16.msra.mxu1 %v7462_v19 }
 0x10c   :  { %v434_v62 = vrot.slane %v8019_v17, 1  ;;  %v480_v36 = vrot.slane %v8019_v17, 2  ;;  %v8049_v43 = vsel %vm337_vm1, 0.0, %v312_v15  ;;  %v428_v0 = vrot.slane %v8027_v56, 1 }
 0x10d   :  { %5641 = vrot.lane.b32.xlu0 %v5640_v48, %s7586_s23  ;;  %v474_v3 = vrot.slane %v8027_v56, 2  ;;  %v8055_v38 = vsel %vm337_vm1, 0.0, %v315_v31  ;;  %v437_v49 = vrot.slane %v8036_v24, 1  ;;  %v365_v20 = vsel %vm337_vm1, %v313_v40, 0.0 }
 0x10e   :  { %5666 = vrot.lane.b32.xlu1 %v5665_v54, %s7587_s26  ;;  %v282_v34 = vmax.f32 %v266_v33, 0.0  ;;  %v424_v48 = vrot.slane %v7882_v59, 1  ;;  %v498_v7 = vrot.slane %v7914_v18, 1  ;;  %v5725_v8 = vpack.i.bf16 %v7964_v52, %v8006_v25 }
 0x10f   :  { %v483_v9 = vrot.slane %v8036_v24, 2  ;;  %v8065_v10 = vsel %vm337_vm1, 0.0, %v313_v40  ;;  %v504_v11 = vrot.slane %v7914_v18, 2  ;;  %v421_v12 = vrot.slane %v7926_v22, 1 }
 0x110   :  { %v316_v13 = vrot.slane %v282_v34, 7  ;;  %v426_v14 = vsel %vm402_vm2, %v424_v48, %v425_v60  ;;  %v8077_v47 = vsel %vm402_vm2, %v498_v7, %v499_v39  ;;  %v5715_v15 = vpack.i.bf16 %v7954_v46, %v7964_v52 }
 0x111   :  { %5646 = vrot.lane.b32.xlu0 %v5645_v50, %s7588_s27  ;;  %v431_v18 = vrot.slane %v365_v20, 1  ;;  %v5695_v31 = vpack.i.bf16 %v8077_v47, %v426_v14  ;;  %v8084_v33 = vsel %vm448_vm3, %v504_v11, %v505_v51  ;;  %v8087_v35 = vsel %vm402_vm2, %v421_v12, %v422_v53 }
 0x112   :  { %5676 = vrot.lane.b32.xlu1 %v5675_v55, %s7587_s26  ;;  %v477_v45 = vrot.slane %v365_v20, 2  ;;  %v8090_v60 = vsel %vm337_vm1, 0.0, %v318_v61  ;;  %v5700_v26 = vpack.i.bf16 %v8084_v33, %v7954_v46  ;;  %v972_v50 = vpack.c.bf16 %v7850_v41, %v8084_v33 }
 0x113   :  { %v370_v39 = vsel %vm337_vm1, %v318_v61, 0.0  ;;  %v8098_v40 = vsel %vm337_vm1, 0.0, %v316_v13  ;;  %v8101_v51 = vpack.i.bf16 %v426_v14, %v8087_v35  ;;  %v433_v53 = vrot.slane %v8033_v58, 1 }
 0x114   :  { %v436_v54 = vrot.slane %v8055_v38, 1  ;;  %v5720_v55 = vpack.i.bf16 %v8087_v35, %v7990_v1  ;;  %v427_v56 = vrot.slane %v8049_v43, 1  ;;  %v368_v19 = vsel %vm337_vm1, %v316_v13, 0.0 }
 0x115   :  { %5651 = vrot.lane.b32.xlu0 %v7951_v44, %s7591_s4  ;;  %v430_v24 = vrot.slane %v8065_v10, 1  ;;  %v473_v61 = vrot.slane %v8049_v43, 2  ;;  %v476_v44 = vrot.slane %v8065_v10, 2  ;;  %v8117_v20 = vsel %vm402_vm2, %v433_v53, %v434_v62 }
 0x116   :  { %5681 = vrot.lane.b32.xlu1 %v7996_v6, %s7589_s29  ;;  %v8120_v34 = vsel %vm402_vm2, %v436_v54, %v437_v49  ;;  %v429_v48 = vsel %vm402_vm2, %v427_v56, %v428_v0  ;;  %v246_v7 = vmul.f32 %v7923_v21, %v7751_v28  ;;  %v244_v14 = vmul.f32 %v7751_v28, %v7936_v27 }
 0x117   :  { %v8127_v11 = vpack.i.bf16 %v8120_v34, %v8117_v20  ;;  %v8130_v12 = vsel %vm402_vm2, %v430_v24, %v431_v18  ;;  %v475_v13 = vsel %vm448_vm3, %v473_v61, %v474_v3  ;;  %v8134_v62 = vsel %vm448_vm3, %v476_v44, %v477_v45 }
 0x118   :  { %v8138_v49 = vpack.i.bf16 %v8130_v12, %v429_v48  ;;  %v8141_v0 = vpack.i.bf16 %v8134_v62, %v475_v13  ;;  %v269_v21 = vadd.f32 %v7757_v32, %v246_v7  ;;  %v479_v3 = vrot.slane %v8033_v58, 2 }
 0x119   :  { %5671 = vrot.lane.b32.xlu0 %v5670_v30, %s7585_s20  ;;  %v482_v18 = vrot.slane %v8055_v38, 2  ;;  %v440_v45 = vrot.slane %v368_v19, 1  ;;  %v5790_v53 = vpack.i.bf16 %v8117_v20, %v8130_v12  ;;  %v267_v54 = vadd.f32 %v7757_v32, %v244_v14 }
 0x11a   :  { %5691 = vrot.lane.b32.xlu1 %v7996_v6, %s7591_s4  ;;  %v285_v30 = vmax.f32 %v269_v21, 0.0  ;;  %v8156_v56 = vsel %vm448_vm3, %v479_v3, %v480_v36  ;;  %v445_v28 = vrot.slane %v8090_v60, 1  ;;  %v446_v32 = vrot.slane %v370_v39, 1 }
 0x11b   :  { %v8159_v6 = vsel %vm448_vm3, %v482_v18, %v483_v9  ;;  %v283_v17 = vmax.f32 %v267_v54, 0.0  ;;  %v491_v36 = vrot.slane %v8090_v60, 2  ;;  %v492_v61 = vrot.slane %v370_v39, 2 }
 0x11c   :  { %v319_v27 = vrot.slane %v285_v30, 7  ;;  %v5755_v24 = vpack.i.bf16 %v8159_v6, %v8156_v56  ;;  %v486_v9 = vrot.slane %v368_v19, 2  ;;  %v439_v7 = vrot.slane %v8098_v40, 1 }
 0x11d   :  { %5686 = vrot.lane.b32.xlu0 %v5685_v37, %s7590_s30  ;;  %v317_v21 = vrot.slane %v283_v17, 7  ;;  %v485_v14 = vrot.slane %v8098_v40, 2  ;;  %v8184_v39 = vsel %vm448_vm3, %v491_v36, %v492_v61  ;;  %v5795_v46 = vpack.i.bf16 %v8098_v40, %v8055_v38 }
 0x11e   :  { %5696 = vrot.lane.b32.xlu1 %v5695_v31, %s7586_s23  ;;  %v8171_v44 = vsel %vm337_vm1, 0.0, %v319_v27  ;;  %v371_v48 = vsel %vm337_vm1, %v319_v27, 0.0  ;;  %v8181_v31 = vsel %vm402_vm2, %v445_v28, %v446_v32  ;;  %v441_v19 = vsel %vm402_vm2, %v439_v7, %v440_v45 }
 0x11f   :  { %v502_v37 = vrot.slane %v371_v48, 1  ;;  %v508_v13 = vrot.slane %v371_v48, 2  ;;  %v507_v3 = vrot.slane %v8171_v44, 2  ;;  %v8190_v18 = vsel %vm337_vm1, 0.0, %v317_v21 }
 0x120   :  { %v369_v30 = vsel %vm337_vm1, %v317_v21, 0.0  ;;  %v5810_v54 = vpack.i.bf16 %v441_v19, %v8120_v34  ;;  %v5705_v28 = vpack.i.bf16 %v7793_v63, %v8077_v47  ;;  %v488_v45 = vrot.slane %v8190_v18, 2 }
 0x121   :  { %5726 = vrot.lane.b32.xlu0 %v5725_v8, %s7588_s27  ;;  %v501_v8 = vrot.slane %v8171_v44, 1  ;;  %v443_v27 = vrot.slane %v369_v30, 1  ;;  %v489_v32 = vrot.slane %v369_v30, 2  ;;  %v442_v17 = vrot.slane %v8190_v18, 1 }
 0x122   :  { %5701 = vrot.lane.b32.xlu1 %v5700_v26, %s7588_s27  ;;  %v8200_v26 = vsel %vm448_vm3, %v485_v14, %v486_v9  ;;  %v8203_v36 = vsel %vm448_vm3, %v507_v3, %v508_v13  ;;  %v5740_v13 = vpack.i.bf16 %v8065_v10, %v8049_v43  ;;  %v968_v3 = vpack.c.bf16 %v8006_v25, %v7899_v4 }
 0x123   :  { %v503_v61 = vsel %vm402_vm2, %v501_v8, %v502_v37  ;;  %v8209_v34 = vsel %vm448_vm3, %v488_v45, %v489_v32  ;;  %v5850_v63 = vpack.i.bf16 %v8203_v36, %v8184_v39  ;;  %v980_v47 = vpack.c.bf16 %v7850_v41, %v8203_v36 }
 0x124   :  { %v5845_v9 = vpack.i.bf16 %v503_v61, %v8181_v31  ;;  %v978_v48 = vpack.c.bf16 %v8184_v39, %v8209_v34  ;;  %v444_v7 = vsel %vm402_vm2, %v442_v17, %v443_v27  ;;  %v5820_v37 = vpack.i.bf16 %v8209_v34, %v8200_v26 }
 0x125   :  { %5731 = vrot.lane.b32.xlu0 %v8101_v51, %s7591_s4  ;;  %v5815_v21 = vpack.i.bf16 %v444_v7, %v441_v19  ;;  %v5840_v14 = vpack.i.bf16 %v8181_v31, %v444_v7  ;;  %v974_v30 = vpack.c.bf16 %v8156_v56, %v8134_v62  ;;  %v976_v8 = vpack.c.bf16 %v8200_v26, %v8159_v6 }
 0x126   :  { %5706 = vrot.lane.b32.xlu1 %v5705_v28, %s7591_s4  ;;  %v5745_v28 = vpack.i.bf16 %v8033_v58, %v8065_v10  ;;  %v5800_v52 = vpack.i.bf16 %v8190_v18, %v8098_v40  ;;  %v5805_v1 = vpack.i.bf16 %v8090_v60, %v8190_v18 }
 0x129   :  { %5741 = vrot.lane.b32.xlu0 %v5740_v13, %s7585_s20 }
 0x12a   :  { %5711 = vrot.lane.b32.xlu1 %v8101_v51, %s7589_s29  ;;  %v5735_v51 = vpack.i.bf16 %v8055_v38, %v8033_v58 }
 0x12d   :  { %5746 = vrot.lane.b32.xlu0 %v5745_v28, %s7587_s26 }
 0x12e   :  { %5716 = vrot.lane.b32.xlu1 %v5715_v15, %s7590_s30  ;;  %v5830_v15 = vpack.i.bf16 %v8171_v44, %v8090_v60 }
 0x131   :  { %5761 = vrot.lane.b32.xlu0 %v8127_v11, %s7586_s23 }
 0x132   :  { %5721 = vrot.lane.b32.xlu1 %v5720_v55, %s7586_s23 }
 0x135   :  { %5771 = vrot.lane.b32.xlu0 %v8138_v49, %s7589_s29 }
 0x136   :  { %5736 = vrot.lane.b32.xlu1 %v5735_v51, %s7585_s20 }
 0x139   :  { %5776 = vrot.lane.b32.xlu0 %v8141_v0, %s7590_s30 }
 0x13a   :  { %5751 = vrot.lane.b32.xlu1 %v8127_v11, %s7589_s29 }
 0x13d   :  { %5781 = vrot.lane.b32.xlu0 %v8138_v49, %s7586_s23 }
 0x13e   :  { %5756 = vrot.lane.b32.xlu1 %v5755_v24, %s7590_s30 }
 0x141   :  { %5786 = vrot.lane.b32.xlu0 %v8141_v0, %s7588_s27 }
 0x142   :  { %5766 = vrot.lane.b32.xlu1 %v5755_v24, %s7588_s27 }
 0x145   :  { %5791 = vrot.lane.b32.xlu0 %v5790_v53, %s7591_s4 }
 0x146   :  { %553 = vrot.lane.b32.xlu1 %v8181_v31, %s7589_s29 }
 0x149   :  { %5796 = vrot.lane.b32.xlu0 %v5795_v46, %s7587_s26 }
 0x14a   :  { %598 = vrot.lane.b32.xlu1 %v8184_v39, %s7590_s30 }
 0x14d   :  { %5801 = vrot.lane.b32.xlu0 %v5800_v52, %s7585_s20 }
 0x14e   :  { %5806 = vrot.lane.b32.xlu1 %v5805_v1, %s7587_s26 }
 0x151   :  { %5816 = vrot.lane.b32.xlu0 %v5815_v21, %s7589_s29 }
 0x152   :  { %5811 = vrot.lane.b32.xlu1 %v5810_v54, %s7591_s4 }
 0x155   :  { %5821 = vrot.lane.b32.xlu0 %v5820_v37, %s7590_s30 }
 0x156   :  { %5826 = vrot.lane.b32.xlu1 %v5815_v21, %s7586_s23 }
 0x159   :  { %5836 = vrot.lane.b32.xlu0 %v5820_v37, %s7588_s27 }
 0x15a   :  { %5831 = vrot.lane.b32.xlu1 %v5830_v15, %s7585_s20  ;;  %s7600_s20 = smov 2  }
 0x15d   :  { %5841 = vrot.lane.b32.xlu0 %v5840_v14, %s7591_s4 }
 0x15e   :  { %5851 = vrot.lane.b32.xlu1 %v5850_v63, %s7588_s27 }
 0x161   :  { %5846 = vrot.lane.b32.xlu0 %v5845_v9, %s7586_s23 }
 0x162   :  { %832 = vrot.lane.b32.xlu1 %v503_v61, %s7591_s4  ;;  %s7597_s4 = smov 24  }
 0x165   :  { %787 = vrot.lane.b32.xlu0 %v8171_v44, %s7587_s26  ;;  %v5597_v35 = vpop.permute.xlu1 %5596 }
 0x166   :  { %v5599_v15 = vunpack.i.h.bf16 %v5597_v35 }
 0x168   :  { %v5602_v55 = vpop.permute.xlu0 %5601 }
 0x169   :  { %v5604_v52 = vunpack.i.h.bf16 %v5602_v55 }
 0x16b   :  { %v5622_v20 = vpop.permute.xlu1 %5621 }
 0x16d   :  { %v8293_v11 = vpop.permute.xlu0 %5606 }
 0x170   :  { %v8295_v12 = vpop.permute.xlu1 %5626 }
 0x173   :  { %v5612_v49 = vpop.permute.xlu0 %5611 }
 0x174   :  { %v5637_v0 = vpop.permute.xlu1 %5636  ;;  %v5614_v19 = vunpack.i.h.bf16 %v5612_v49  ;;  %v5613_v54 = vunpack.i.l.bf16 %v5612_v49  ;;  %v5598_v49 = vunpack.i.l.bf16 %v5597_v35  ;;  %v5624_v35 = vunpack.i.h.bf16 %v5622_v20 }
 0x175   :  { %v5639_v13 = vunpack.i.h.bf16 %v5637_v0  ;;  %v5638_v21 = vunpack.i.l.bf16 %v5637_v0 }
 0x176   :  { %v851_v7 = vsel %vm13594_vm4, %v7827_v23, %v5614_v19  ;;  %v850_v37 = vsel %vm13594_vm4, %v7769_v42, %v5613_v54 }
 0x177   :  { %v5617_v53 = vpop.permute.xlu0 %5616 }
 0x178   :  { %v8297_v24 = vpop.permute.xlu1 %5656  ;;  %v5619_v44 = vunpack.i.h.bf16 %v5617_v53  ;;  %v5618_v17 = vunpack.i.l.bf16 %v5617_v53 }
 0x17a   :  { %v8312_v28 = vsel %vm13567_vm5, %v850_v37, %v5618_v17  ;;  %v867_v51 = vsel %vm13567_vm5, %v851_v7, %v5619_v44  ;;  %v5623_v17 = vunpack.i.l.bf16 %v5622_v20  ;;  %v5608_v7 = vunpack.i.l.bf16 %v8293_v11 }
 0x17b   :  { %v5632_v31 = vpop.permute.xlu0 %5631  ;;  %v883_v53 = vsel %vm881_vm6, %v867_v51, %v5604_v52  ;;  %v5629_v20 = vunpack.i.h.bf16 %v8295_v12  ;;  %v5628_v52 = vunpack.i.l.bf16 %v8295_v12 }
 0x17c   :  { %v5634_v27 = vunpack.i.h.bf16 %v5632_v31  ;;  %v5633_v32 = vunpack.i.l.bf16 %v5632_v31  ;;  %v8299_v45 = vpop.permute.xlu1 %5661 }
 0x17e   :  { %v853_v61 = vsel %vm13594_vm4, %v7788_v57, %v5634_v27  ;;  %v852_v63 = vsel %vm13594_vm4, %v7816_v16, %v5633_v32  ;;  %v5603_v16 = vunpack.i.l.bf16 %v5602_v55 }
 0x17f   :  { %v5642_v9 = vpop.permute.xlu0 %5641  ;;  %v869_v1 = vsel %vm13567_vm5, %v853_v61, %v5639_v13  ;;  %v868_v23 = vsel %vm13567_vm5, %v852_v63, %v5638_v21 }
 0x180   :  { %v8309_v14 = vpop.permute.xlu1 %5666  ;;  %v5644_v57 = vunpack.i.h.bf16 %v5642_v9  ;;  %v5643_v46 = vunpack.i.l.bf16 %v5642_v9  ;;  %v882_v0 = vsel %vm881_vm6, %v8312_v28, %v5603_v16  ;;  %v885_v27 = vsel %vm881_vm6, %v869_v1, %v5599_v15 }
 0x181   :  { %v884_v55 = vsel %vm881_vm6, %v868_v23, %v5598_v49  ;;  %v5609_v9 = vunpack.i.h.bf16 %v8293_v11 }
 0x182   :  { %v899_v32 = vsel %vm13566_vm0, %v883_v53, %v5644_v57  ;;  %v898_v44 = vsel %vm13566_vm0, %v882_v0, %v5643_v46  ;;  %v900_v57 = vsel %vm13566_vm0, %v884_v55, %v5623_v17  ;;  %v901_v46 = vsel %vm13566_vm0, %v885_v27, %v5624_v35 }
 0x183   :  { %v5647_v42 = vpop.permute.xlu0 %5646  ;;  %v918_v0 = vsel %vm914_vm7, %v901_v46, %v5629_v20  ;;  %v5659_v53 = vunpack.i.h.bf16 %v8297_v24 }
 0x184   :  { %v5649_v31 = vunpack.i.h.bf16 %v5647_v42  ;;  %v5648_v19 = vunpack.i.l.bf16 %v5647_v42  ;;  %v8320_v54 = vpop.permute.xlu1 %5676  ;;  %v917_v42 = vsel %vm914_vm7, %v900_v57, %v5628_v52 }
 0x186   :  { %v915_v61 = vsel %vm914_vm7, %v898_v44, %v5648_v19  ;;  %v916_v63 = vsel %vm914_vm7, %v899_v32, %v5649_v31  ;;  %v5658_v31 = vunpack.i.l.bf16 %v8297_v24  ;;  %v935_v32 = vsel %vm13565_vm8, %v918_v0, %v5659_v53 }
 0x187   :  { %v5652_v37 = vpop.permute.xlu0 %5651  ;;  %v932_v16 = vsel %vm13565_vm8, %v915_v61, %v5608_v7  ;;  %v933_v1 = vsel %vm13565_vm8, %v916_v63, %v5609_v9 }
 0x188   :  { %v5654_v13 = vunpack.i.h.bf16 %v5652_v37  ;;  %v5653_v21 = vunpack.i.l.bf16 %v5652_v37  ;;  %v5682_v51 = vpop.permute.xlu1 %5681  ;;  %v934_v55 = vsel %vm13565_vm8, %v917_v42, %v5658_v31 }
 0x18a   :  { %v949_v11 = vsel %vm948_vm9, %v932_v16, %v5653_v21  ;;  %v950_v23 = vsel %vm948_vm9, %v933_v1, %v5654_v13  ;;  %v5683_v13 = vunpack.i.l.bf16 %v5682_v51  ;;  %v5664_v16 = vunpack.i.h.bf16 %v8299_v45 }
 0x18b   :  { %v965_v15 = vpack.c.bf16 %v950_v23, %v949_v11  ;;  %v5672_v49 = vpop.permute.xlu0 %5671  ;;  %v5663_v1 = vunpack.i.l.bf16 %v8299_v45  ;;  %v5679_v11 = vunpack.i.h.bf16 %v8320_v54  ;;  %v5678_v23 = vunpack.i.l.bf16 %v8320_v54 }
 0x18c   :  { %v5692_v19 = vpop.permute.xlu1 %5691  ;;  %v5674_v54 = vunpack.i.h.bf16 %v5672_v49 }
 0x18d   :  { %1110 = vmatmul.mubr.bf16.vlgmr.msra.gmra.mrb[16].mxu0 %v965_v15  ;;  %v5694_v12 = vunpack.i.h.bf16 %v5692_v19  ;;  %v5693_v27 = vunpack.i.l.bf16 %v5692_v19 }
 0x18e   :  { %5358 = vmatprep.mubr.msk.bf16.mxu0 %vm13594_vm4, %v968_v3  ;;  %v5684_v3 = vunpack.i.h.bf16 %v5682_v51  ;;  %v854_v51 = vsel %vm13594_vm4, %v7801_v5, %v5683_v13 }
 0x18f   :  { %v5687_v44 = vpop.permute.xlu0 %5686  ;;  %v951_v35 = vsel %vm948_vm9, %v934_v55, %v5693_v27  ;;  %v952_v17 = vsel %vm948_vm9, %v935_v32, %v5694_v12  ;;  %v5673_v27 = vunpack.i.l.bf16 %v5672_v49 }
 0x190   :  { %v5697_v61 = vpop.permute.xlu1 %5696  ;;  %v967_v24 = vpack.c.bf16 %v952_v17, %v951_v35  ;;  %v5689_v21 = vunpack.i.h.bf16 %v5687_v44  ;;  %v5688_v57 = vunpack.i.l.bf16 %v5687_v44  ;;  %v855_v42 = vsel %vm13594_vm4, %v7895_v2, %v5684_v3 }
 0x191   :  { %v5699_v5 = vunpack.i.h.bf16 %v5697_v61  ;;  %v5698_v44 = vunpack.i.l.bf16 %v5697_v61 }
 0x192   :  { %v871_v31 = vsel %vm13567_vm5, %v855_v42, %v5689_v21  ;;  %v870_v19 = vsel %vm13567_vm5, %v854_v51, %v5688_v57 }
 0x193   :  { %v5727_v63 = vpop.permute.xlu0 %5726 }
 0x194   :  { %v5702_v9 = vpop.permute.xlu1 %5701  ;;  %v5729_v49 = vunpack.i.h.bf16 %v5727_v63  ;;  %v5728_v13 = vunpack.i.l.bf16 %v5727_v63 }
 0x195   :  { %1118 = vmatmul.mubr.bf16.gmra.mrb[20].mxu0 %v967_v24  ;;  %v5704_v21 = vunpack.i.h.bf16 %v5702_v9  ;;  %v5703_v57 = vunpack.i.l.bf16 %v5702_v9 }
 0x197   :  { %v5732_v7 = vpop.permute.xlu0 %5731 }
 0x198   :  { %v8350_v37 = vpop.permute.xlu1 %5706  ;;  %v5733_v42 = vunpack.i.l.bf16 %v5732_v7 }
 0x19b   :  { %v8352_v4 = vpop.permute.xlu0 %5741 }
 0x19c   :  { %v5712_v25 = vpop.permute.xlu1 %5711 }
 0x19d   :  { %v5714_v46 = vunpack.i.h.bf16 %v5712_v25  ;;  %v5713_v20 = vunpack.i.l.bf16 %v5712_v25  ;;  %v887_v25 = vsel %vm881_vm6, %v871_v31, %v5674_v54  ;;  %v5668_v54 = vunpack.i.l.bf16 %v8309_v14 }
 0x19f   :  { %v8354_v52 = vpop.permute.xlu0 %5746  ;;  %v857_v45 = vsel %vm13594_vm4, %v7882_v59, %v5714_v46  ;;  %v856_v12 = vsel %vm13594_vm4, %v7926_v22, %v5713_v20  ;;  %v886_v59 = vsel %vm881_vm6, %v870_v19, %v5673_v27 }
 0x1a0   :  { %v5717_v15 = vpop.permute.xlu1 %5716 }
 0x1a1   :  { %v5719_v0 = vunpack.i.h.bf16 %v5717_v15  ;;  %v5718_v53 = vunpack.i.l.bf16 %v5717_v15  ;;  %v5734_v15 = vunpack.i.h.bf16 %v5732_v7  ;;  %v5669_v7 = vunpack.i.h.bf16 %v8309_v14  ;;  %v8523_v14 = vld [vmem:[%s13136_s5] ss:$0 sm:$0xff]  ;;  %s7604_s5 = smov 18  }
 0x1a3   :  { %v872_v55 = vsel %vm13567_vm5, %v856_v12, %v5718_v53  ;;  %v873_v2 = vsel %vm13567_vm5, %v857_v45, %v5719_v0  ;;  %v8372_v32 = vpop.permute.xlu0 %5761 }
 0x1a4   :  { %v888_v35 = vsel %vm881_vm6, %v872_v55, %v5663_v1  ;;  %v889_v17 = vsel %vm881_vm6, %v873_v2, %v5664_v16  ;;  %v5722_v24 = vpop.permute.xlu1 %5721 }
 0x1a5   :  { %v5724_v22 = vunpack.i.h.bf16 %v5722_v24  ;;  %v5723_v3 = vunpack.i.l.bf16 %v5722_v24  ;;  %v904_v1 = vsel %vm13566_vm0, %v888_v35, %v5698_v44  ;;  %v905_v16 = vsel %vm13566_vm0, %v889_v17, %v5699_v5 }
 0x1a6   :  { %v921_v45 = vsel %vm914_vm7, %v904_v1, %v5703_v57  ;;  %v922_v12 = vsel %vm914_vm7, %v905_v16, %v5704_v21  ;;  %v5709_v35 = vunpack.i.h.bf16 %v8350_v37  ;;  %v5708_v17 = vunpack.i.l.bf16 %v8350_v37  ;;  %v8528_v37 = vld [vmem:[%s13137_s6] ss:$0 sm:$0xff]  ;;  %s7605_s6 = smov 22  }
 0x1a7   :  { %v903_v46 = vsel %vm13566_vm0, %v887_v25, %v5724_v22  ;;  %v902_v20 = vsel %vm13566_vm0, %v886_v59, %v5723_v3  ;;  %v8380_v61 = vpop.permute.xlu0 %5771  ;;  %v939_v44 = vsel %vm13565_vm8, %v922_v12, %v5669_v7  ;;  %v5743_v59 = vunpack.i.l.bf16 %v8352_v4 }
 0x1a8   :  { %v8384_v51 = vpop.permute.xlu1 %5736  ;;  %v919_v0 = vsel %vm914_vm7, %v902_v20, %v5728_v13  ;;  %v920_v63 = vsel %vm914_vm7, %v903_v46, %v5729_v49  ;;  %v5773_v2 = vunpack.i.l.bf16 %v8380_v61  ;;  %v956_v49 = vsel %vm948_vm9, %v939_v44, %v5709_v35 }
 0x1a9   :  { %v936_v9 = vsel %vm13565_vm8, %v919_v0, %v5678_v23  ;;  %v937_v53 = vsel %vm13565_vm8, %v920_v63, %v5679_v11  ;;  %v938_v11 = vsel %vm13565_vm8, %v921_v45, %v5668_v54  ;;  %v890_v20 = vsel %vm881_vm6, %v8312_v28, %v5743_v59 }
 0x1aa   :  { %v953_v31 = vsel %vm948_vm9, %v936_v9, %v5733_v42  ;;  %v954_v19 = vsel %vm948_vm9, %v937_v53, %v5734_v15  ;;  %v858_v25 = vsel %vm13594_vm4, %v8049_v43, %v5773_v2  ;;  %v955_v3 = vsel %vm948_vm9, %v938_v11, %v5708_v17 }
 0x1ab   :  { %v5777_v27 = vpop.permute.xlu0 %5776  ;;  %v969_v55 = vpack.c.bf16 %v954_v19, %v953_v31  ;;  %v971_v46 = vpack.c.bf16 %v956_v49, %v955_v3  ;;  %v5749_v28 = vunpack.i.h.bf16 %v8354_v52  ;;  %v5774_v19 = vunpack.i.h.bf16 %v8380_v61 }
 0x1ac   :  { %v8397_v5 = vpop.permute.xlu1 %5751  ;;  %v5778_v23 = vunpack.i.l.bf16 %v5777_v27  ;;  %v5779_v2 = vunpack.i.h.bf16 %v5777_v27  ;;  %v5739_v27 = vunpack.i.h.bf16 %v8384_v51 }
 0x1ad   :  { %1126 = vmatmul.mubr.bf16.vlgmr.msra.gmra.mrb[0].mxu1 %v969_v55  ;;  %v5753_v53 = vunpack.i.l.bf16 %v8397_v5  ;;  %v859_v44 = vsel %vm13594_vm4, %v8065_v10, %v5774_v19  ;;  %v5764_v10 = vunpack.i.h.bf16 %v8372_v32  ;;  %v5754_v6 = vunpack.i.h.bf16 %v8397_v5 }
 0x1ae   :  { %5360 = vmatprep.mubr.msk.bf16.mxu1 %vm13594_vm4, %v972_v50  ;;  %v874_v13 = vsel %vm13567_vm5, %v858_v25, %v5778_v23  ;;  %v5744_v50 = vunpack.i.h.bf16 %v8352_v4  ;;  %v5748_v4 = vunpack.i.l.bf16 %v8354_v52  ;;  %v875_v59 = vsel %vm13567_vm5, %v859_v44, %v5779_v2 }
 0x1af   :  { %v5782_v24 = vpop.permute.xlu0 %5781  ;;  %v860_v23 = vsel %vm13594_vm4, %v8033_v58, %v5753_v53  ;;  %v5738_v25 = vunpack.i.l.bf16 %v8384_v51  ;;  %v861_v5 = vsel %vm13594_vm4, %v8055_v38, %v5754_v6 }
 0x1b0   :  { %v8412_v22 = vpop.permute.xlu1 %5756  ;;  %v5784_v21 = vunpack.i.h.bf16 %v5782_v24  ;;  %v5783_v33 = vunpack.i.l.bf16 %v5782_v24  ;;  %v891_v43 = vsel %vm881_vm6, %v874_v13, %v5744_v50 }
 0x1b1   :  { %v5758_v45 = vunpack.i.l.bf16 %v8412_v22  ;;  %v892_v49 = vsel %vm881_vm6, %v875_v59, %v5738_v25 }
 0x1b2   :  { %v906_v42 = vsel %vm13566_vm0, %v890_v20, %v5783_v33  ;;  %v907_v0 = vsel %vm13566_vm0, %v891_v43, %v5784_v21  ;;  %v5763_v33 = vunpack.i.l.bf16 %v8372_v32  ;;  %v5759_v20 = vunpack.i.h.bf16 %v8412_v22 }
 0x1b3   :  { %v5787_v57 = vpop.permute.xlu0 %5786  ;;  %v876_v17 = vsel %vm13567_vm5, %v860_v23, %v5758_v45 }
 0x1b4   :  { %v5789_v1 = vunpack.i.h.bf16 %v5787_v57  ;;  %v5788_v16 = vunpack.i.l.bf16 %v5787_v57  ;;  %v5767_v15 = vpop.permute.xlu1 %5766  ;;  %v893_v58 = vsel %vm881_vm6, %v876_v17, %v5739_v27  ;;  %v908_v26 = vsel %vm13566_vm0, %v892_v49, %v5763_v33 }
 0x1b5   :  { %1134 = vmatmul.mubr.bf16.gmra.mrb[4].mxu1 %v971_v46  ;;  %v5768_v13 = vunpack.i.l.bf16 %v5767_v15  ;;  %v5769_v50 = vunpack.i.h.bf16 %v5767_v15  ;;  %v909_v57 = vsel %vm13566_vm0, %v893_v58, %v5764_v10  ;;  %v877_v53 = vsel %vm13567_vm5, %v861_v5, %v5759_v20 }
 0x1b6   :  { %v923_v63 = vsel %vm914_vm7, %v906_v42, %v5788_v16  ;;  %v924_v9 = vsel %vm914_vm7, %v907_v0, %v5789_v1  ;;  %5361 = vmatprep.mubr.msk.bf16.mxu1 %vm13594_vm4, %v974_v30 }
 0x1b7   :  { %v5792_v31 = vpop.permute.xlu0 %5791  ;;  %v940_v62 = vsel %vm13565_vm8, %v923_v63, %v5748_v4  ;;  %v941_v56 = vsel %vm13565_vm8, %v924_v9, %v5749_v28  ;;  %v925_v43 = vsel %vm914_vm7, %v908_v26, %v5768_v13  ;;  %v926_v16 = vsel %vm914_vm7, %v909_v57, %v5769_v50 }
 0x1b8   :  { %v5794_v12 = vunpack.i.h.bf16 %v5792_v31  ;;  %v5793_v54 = vunpack.i.l.bf16 %v5792_v31  ;;  %v8436_v55 = vpop.permute.xlu1 %553 }
 0x1ba   :  { %v957_v30 = vsel %vm948_vm9, %v940_v62, %v5793_v54  ;;  %v958_v52 = vsel %vm948_vm9, %v941_v56, %v5794_v12 }
 0x1bb   :  { %v5797_v11 = vpop.permute.xlu0 %5796  ;;  %v973_v61 = vpack.c.bf16 %v958_v52, %v957_v30 }
 0x1bc   :  { %v8447_v24 = vpop.permute.xlu1 %598  ;;  %v5799_v51 = vunpack.i.h.bf16 %v5797_v11  ;;  %v5798_v46 = vunpack.i.l.bf16 %v5797_v11 }
 0x1bd   :  { %1142 = vmatmul.mubr.bf16.gmra.mrb[8].mxu1 %v973_v61 }
 0x1be   :  { %5362 = vmatprep.mubr.msk.bf16.mxu1 %vm13594_vm4, %v976_v8  ;;  %v942_v63 = vsel %vm13565_vm8, %v925_v43, %v5798_v46  ;;  %v943_v9 = vsel %vm13565_vm8, %v926_v16, %v5799_v51 }
 0x1bf   :  { %v5802_v3 = vpop.permute.xlu0 %5801 }
 0x1c0   :  { %v5807_v21 = vpop.permute.xlu1 %5806  ;;  %v5803_v15 = vunpack.i.l.bf16 %v5802_v3  ;;  %v5804_v12 = vunpack.i.h.bf16 %v5802_v3 }
 0x1c1   :  { %v5809_v59 = vunpack.i.h.bf16 %v5807_v21  ;;  %v5808_v25 = vunpack.i.l.bf16 %v5807_v21  ;;  %v864_v21 = vsel %vm13594_vm4, %v8090_v60, %v8436_v55 }
 0x1c2   :  { %v894_v56 = vsel %vm881_vm6, %v877_v53, %v5803_v15 }
 0x1c3   :  { %v5817_v8 = vpop.permute.xlu0 %5816 }
 0x1c4   :  { %v5812_v1 = vpop.permute.xlu1 %5811  ;;  %v5818_v42 = vunpack.i.l.bf16 %v5817_v8  ;;  %v5819_v58 = vunpack.i.h.bf16 %v5817_v8  ;;  %v880_v8 = vsel %vm13567_vm5, %v864_v21, %v8447_v24 }
 0x1c5   :  { %v5814_v0 = vunpack.i.h.bf16 %v5812_v1  ;;  %v5813_v32 = vunpack.i.l.bf16 %v5812_v1 }
 0x1c6   :  { %v862_v54 = vsel %vm13594_vm4, %v8098_v40, %v5818_v42  ;;  %v863_v46 = vsel %vm13594_vm4, %v8190_v18, %v5819_v58 }
 0x1c7   :  { %v5822_v28 = vpop.permute.xlu0 %5821  ;;  %v959_v4 = vsel %vm948_vm9, %v942_v63, %v5813_v32  ;;  %v960_v22 = vsel %vm948_vm9, %v943_v9, %v5814_v0 }
 0x1c8   :  { %v5823_v31 = vunpack.i.l.bf16 %v5822_v28  ;;  %v5827_v19 = vpop.permute.xlu1 %5826  ;;  %v975_v45 = vpack.c.bf16 %v960_v22, %v959_v4  ;;  %v5824_v10 = vunpack.i.h.bf16 %v5822_v28 }
 0x1c9   :  { %v5829_v2 = vunpack.i.h.bf16 %v5827_v19  ;;  %v5828_v62 = vunpack.i.l.bf16 %v5827_v19 }
 0x1ca   :  { %v878_v38 = vsel %vm13567_vm5, %v862_v54, %v5823_v31  ;;  %1150 = vmatmul.mubr.bf16.gmra.mrb[12].mxu1 %v975_v45  ;;  %v879_v20 = vsel %vm13567_vm5, %v863_v46, %v5824_v10  ;;  %vm13589_vm5 = vcmask 244736  }
 0x1cb   :  { %v895_v30 = vsel %vm881_vm6, %v878_v38, %v5804_v12  ;;  %v910_v52 = vsel %vm13566_vm0, %v894_v56, %v5828_v62  ;;  %v5837_v23 = vpop.permute.xlu0 %5836  ;;  %5363 = vmatprep.mubr.msk.bf16.mxu1 %vm13594_vm4, %v978_v48 }
 0x1cc   :  { %v911_v11 = vsel %vm13566_vm0, %v895_v30, %v5829_v2  ;;  %v5839_v40 = vunpack.i.h.bf16 %v5837_v23  ;;  %v5838_v61 = vunpack.i.l.bf16 %v5837_v23  ;;  %v5832_v44 = vpop.permute.xlu1 %5831 }
 0x1cd   :  { %v5834_v33 = vunpack.i.h.bf16 %v5832_v44  ;;  %v5833_v39 = vunpack.i.l.bf16 %v5832_v44 }
 0x1ce   :  { %v927_v17 = vsel %vm914_vm7, %v910_v52, %v5838_v61  ;;  %v928_v27 = vsel %vm914_vm7, %v911_v11, %v5839_v40 }
 0x1cf   :  { %v5842_v3 = vpop.permute.xlu0 %5841  ;;  %v944_v34 = vsel %vm13565_vm8, %v927_v17, %v5808_v25  ;;  %v945_v48 = vsel %vm13565_vm8, %v928_v27, %v5809_v59  ;;  %v897_v16 = vsel %vm881_vm6, %v880_v8, %v5834_v33  ;;  %v896_v42 = vsel %vm881_vm6, %v879_v20, %v5833_v39 }
 0x1d0   :  { %v5844_v49 = vunpack.i.h.bf16 %v5842_v3  ;;  %v5843_v13 = vunpack.i.l.bf16 %v5842_v3  ;;  %v5852_v50 = vpop.permute.xlu1 %5851  ;;  %vm1882_vm6 = vcmask 1042432  }
 0x1d1   :  { %v5854_v0 = vunpack.i.h.bf16 %v5852_v50  ;;  %v5853_v32 = vunpack.i.l.bf16 %v5852_v50 }
 0x1d2   :  { %v961_v57 = vsel %vm948_vm9, %v944_v34, %v5843_v13  ;;  %v962_v51 = vsel %vm948_vm9, %v945_v48, %v5844_v49 }
 0x1d3   :  { %v5847_v6 = vpop.permute.xlu0 %5846  ;;  %v977_v26 = vpack.c.bf16 %v962_v51, %v961_v57 }
 0x1d4   :  { %v5849_v43 = vunpack.i.h.bf16 %v5847_v6  ;;  %v5848_v1 = vunpack.i.l.bf16 %v5847_v6  ;;  %v833_v63 = vpop.permute.xlu1 %832 }
 0x1d5   :  { %1158 = vmatmul.mubr.bf16.gmra.mrb[16].mxu1 %v977_v26 }
 0x1d6   :  { %v913_v60 = vsel %vm13566_vm0, %v897_v16, %v5849_v43  ;;  %5364 = vmatprep.mubr.msk.bf16.mxu1 %vm13594_vm4, %v980_v47  ;;  %v912_v18 = vsel %vm13566_vm0, %v896_v42, %v5848_v1  ;;  %v7463_v47 = vld [vmem:[%s13138_s7] sm:$0xff]   ;;  %s7606_s7 = smov 26  }
 0x1d7   :  { %v788_v55 = vpop.permute.xlu0 %787  ;;  %v929_v24 = vsel %vm914_vm7, %v912_v18, %v5853_v32  ;;  %v930_v15 = vsel %vm914_vm7, %v913_v60, %v5854_v0  ;;  %5483 = vmatprep.subr.bf16.mxu0 %v7463_v47  ;;  %vm2005_vm7 = vcmask 1044480  }
 0x1d8   :  { %v946_v9 = vsel %vm13565_vm8, %v929_v24, %v788_v55  ;;  %v947_v5 = vsel %vm13565_vm8, %v930_v15, %v5669_v7  ;;  %5484 = vmatpush3.bf16.msra.mxu0 %v7463_v47  ;;  %vm13588_vm8 = vcmask 211968  }
 0x1d9   :  { %v963_v28 = vsel %vm948_vm9, %v946_v9, %v833_v63  ;;  %v964_v41 = vsel %vm948_vm9, %v947_v5, %v5709_v35  ;;  %5501 = vmatprep.subr.bf16.mxu0 %v7583_v29  ;;  %vm2039_vm9 = vcmask 1043456  }
 0x1da   :  { %v979_v36 = vpack.c.bf16 %v964_v41, %v963_v28 }
 0x1dd   :  { %1166 = vmatmul.mubr.bf16.gmra.mrb[20].mxu1 %v979_v36 }
 0x260   :  { %v1111_v7 = vpop.f32.mrb[16].mxu0 }
 0x261   :  { %v1181_v35 = vmul.f32 %v8523_v14, %v1111_v7  ;;  %v1113_v4 = vpop.f32.mrb[17].mxu0 }
 0x262   :  { %v1114_v22 = vpop.f32.mrb[18].mxu0 }
 0x263   :  { %v1204_v53 = vadd.f32 %v8528_v37, %v1181_v35  ;;  %v1182_v31 = vmul.f32 %v8523_v14, %v1114_v22  ;;  %v1116_v19 = vpop.f32.mrb[19].mxu0 }
 0x265   :  { %v1205_v45 = vadd.f32 %v8528_v37, %v1182_v31  ;;  %v1220_v12 = vmax.f32 %v1204_v53, 0.0 }
 0x267   :  { %v1221_v54 = vmax.f32 %v1205_v45, 0.0 }
 0x268   :  { %v1119_v2 = vpop.f32.mrb[20].mxu0 }
 0x269   :  { %v1236_v62 = vpack.c.bf16 %v1221_v54, %v1220_v12  ;;  %v1183_v56 = vmul.f32 %v8523_v14, %v1119_v2  ;;  %v1121_v38 = vpop.f32.mrb[21].mxu0 }
 0x26a   :  { %v1122_v30 = vpop.f32.mrb[22].mxu0 }
 0x26b   :  { %v1206_v52 = vadd.f32 %v8528_v37, %v1183_v56  ;;  %v1184_v23 = vmul.f32 %v8523_v14, %v1122_v30  ;;  %v1124_v11 = vpop.f32.mrb[23].mxu0  ;;  %5485 = vmatprep.mubr.msk.bf16.mxu0 %vm13594_vm4, %v1236_v62 }
 0x26d   :  { %v1207_v40 = vadd.f32 %v8528_v37, %v1184_v23  ;;  %v1222_v61 = vmax.f32 %v1206_v52, 0.0 }
 0x26f   :  { %v1223_v44 = vmax.f32 %v1207_v40, 0.0 }
 0x271   :  { %v1237_v17 = vpack.c.bf16 %v1223_v44, %v1222_v61 }
 0x273   :  { %5486 = vmatmul.mubr.msk.bf16.vlgmr.msra.gmra.mrb[24].mxu0 %vm13594_vm4, %v1237_v17 }
 0x280   :  { %v1127_v27 = vpop.f32.mrb[0].mxu1 }
 0x281   :  { %v1185_v59 = vmul.f32 %v8523_v14, %v1127_v27  ;;  %v1129_v25 = vpop.f32.mrb[1].mxu1 }
 0x282   :  { %v1130_v58 = vpop.f32.mrb[2].mxu1 }
 0x283   :  { %v1208_v3 = vadd.f32 %v8528_v37, %v1185_v59  ;;  %v1186_v10 = vmul.f32 %v8523_v14, %v1130_v58  ;;  %v1132_v49 = vpop.f32.mrb[3].mxu1 }
 0x284   :  { %v7467_v49 = vld [vmem:[%s13141_s10 + $0x18] sm:$0xff]  }
 0x285   :  { %v1209_v13 = vadd.f32 %v8528_v37, %v1186_v10  ;;  %v1224_v33 = vmax.f32 %v1208_v3, 0.0  ;;  %v7464_v10 = vld [vmem:[%s13141_s10] sm:$0xff]  }
 0x286   :  { %5502 = vmatpush3.bf16.msra.mxu0 %v7464_v10 }
 0x287   :  { %v1225_v39 = vmax.f32 %v1209_v13, 0.0  ;;  %5503 = vmatprep.subr.bf16.mxu0 %v7583_v29 }
 0x288   :  { %v1135_v34 = vpop.f32.mrb[4].mxu1 }
 0x289   :  { %v1238_v48 = vpack.c.bf16 %v1225_v39, %v1224_v33  ;;  %v1187_v50 = vmul.f32 %v8523_v14, %v1135_v34  ;;  %v1137_v57 = vpop.f32.mrb[5].mxu1 }
 0x28a   :  { %v1138_v51 = vpop.f32.mrb[6].mxu1 }
 0x28b   :  { %v1210_v21 = vadd.f32 %v8528_v37, %v1187_v50  ;;  %v1188_v46 = vmul.f32 %v8523_v14, %v1138_v51  ;;  %v1140_v6 = vpop.f32.mrb[7].mxu1  ;;  %5489 = vmatprep.mubr.msk.bf16.mxu0 %vm13594_vm4, %v1238_v48 }
 0x28d   :  { %v1211_v26 = vadd.f32 %v8528_v37, %v1188_v46  ;;  %v1226_v8 = vmax.f32 %v1210_v21, 0.0  ;;  %v8591_v21 = vld [vmem:[%s13139_s8] ss:$0 sm:$0xff] }
 0x28f   :  { %v1227_v20 = vmax.f32 %v1211_v26, 0.0  ;;  %v8598_v26 = vld [vmem:[%s13140_s9] ss:$0 sm:$0xff] }
 0x290   :  { %v1143_v43 = vpop.f32.mrb[8].mxu1 }
 0x291   :  { %v1239_v1 = vpack.c.bf16 %v1227_v20, %v1226_v8  ;;  %v1189_v16 = vmul.f32 %v8523_v14, %v1143_v43  ;;  %v1145_v42 = vpop.f32.mrb[9].mxu1 }
 0x292   :  { %v1146_v0 = vpop.f32.mrb[10].mxu1 }
 0x293   :  { %v1212_v32 = vadd.f32 %v8528_v37, %v1189_v16  ;;  %v1190_v60 = vmul.f32 %v8523_v14, %v1146_v0  ;;  %v1148_v18 = vpop.f32.mrb[11].mxu1  ;;  %5490 = vmatmul.mubr.msk.bf16.gmra.mrb[28].mxu0 %vm13594_vm4, %v1239_v1 }
 0x295   :  { %v1213_v55 = vadd.f32 %v8528_v37, %v1190_v60  ;;  %v1228_v24 = vmax.f32 %v1212_v32, 0.0 }
 0x297   :  { %v1229_v15 = vmax.f32 %v1213_v55, 0.0 }
 0x299   :  { %v1240_v63 = vpack.c.bf16 %v1229_v15, %v1228_v24 }
 0x29b   :  { %5493 = vmatprep.mubr.msk.bf16.mxu0 %vm13594_vm4, %v1240_v63 }
 0x29d   :  { %v1151_v9 = vpop.f32.mrb[12].mxu1 }
 0x29e   :  { %v1191_v5 = vmul.f32 %v8523_v14, %v1151_v9  ;;  %v1153_v28 = vpop.f32.mrb[13].mxu1 }
 0x29f   :  { %v1154_v41 = vpop.f32.mrb[14].mxu1 }
 0x2a0   :  { %v1214_v36 = vadd.f32 %v8528_v37, %v1191_v5  ;;  %v1192_v47 = vmul.f32 %v8523_v14, %v1154_v41  ;;  %v1156_v7 = vpop.f32.mrb[15].mxu1 }
 0x2a2   :  { %v1215_v35 = vadd.f32 %v8528_v37, %v1192_v47  ;;  %v1230_v4 = vmax.f32 %v1214_v36, 0.0 }
 0x2a4   :  { %v1231_v22 = vmax.f32 %v1215_v35, 0.0 }
 0x2a6   :  { %v1241_v53 = vpack.c.bf16 %v1231_v22, %v1230_v4 }
 0x2a8   :  { %v1159_v31 = vpop.f32.mrb[16].mxu1  ;;  %5494 = vmatmul.mubr.msk.bf16.gmra.mrb[32].mxu0 %vm13594_vm4, %v1241_v53 }
 0x2a9   :  { %v1193_v19 = vmul.f32 %v8523_v14, %v1159_v31  ;;  %v1161_v45 = vpop.f32.mrb[17].mxu1 }
 0x2aa   :  { %v1162_v12 = vpop.f32.mrb[18].mxu1 }
 0x2ab   :  { %v1216_v54 = vadd.f32 %v8528_v37, %v1193_v19  ;;  %v1194_v2 = vmul.f32 %v8523_v14, %v1162_v12  ;;  %v1164_v62 = vpop.f32.mrb[19].mxu1 }
 0x2ad   :  { %v1217_v56 = vadd.f32 %v8528_v37, %v1194_v2  ;;  %v1232_v38 = vmax.f32 %v1216_v54, 0.0 }
 0x2af   :  { %v1233_v30 = vmax.f32 %v1217_v56, 0.0 }
 0x2b0   :  { %v1167_v52 = vpop.f32.mrb[20].mxu1 }
 0x2b1   :  { %v1242_v23 = vpack.c.bf16 %v1233_v30, %v1232_v38  ;;  %v1195_v11 = vmul.f32 %v8523_v14, %v1167_v52  ;;  %v1169_v40 = vpop.f32.mrb[21].mxu1 }
 0x2b2   :  { %v1170_v61 = vpop.f32.mrb[22].mxu1 }
 0x2b3   :  { %v1218_v44 = vadd.f32 %v8528_v37, %v1195_v11  ;;  %v1196_v17 = vmul.f32 %v8523_v14, %v1170_v61  ;;  %v1172_v27 = vpop.f32.mrb[23].mxu1  ;;  %5497 = vmatprep.mubr.msk.bf16.mxu0 %vm13594_vm4, %v1242_v23  ;;  %v7465_v14 = vld [vmem:[%s13141_s10 + $0x8] sm:$0xff]  }
 0x2b4   :  { %5504 = vmatpush3.bf16.msra.mxu0 %v7465_v14 }
 0x2b5   :  { %v1219_v59 = vadd.f32 %v8528_v37, %v1196_v17  ;;  %v1234_v25 = vmax.f32 %v1218_v44, 0.0  ;;  %v7466_v37 = vld [vmem:[%s13141_s10 + $0x10] sm:$0xff]   ;;  %5505 = vmatprep.subr.bf16.mxu0 %v7583_v29 }
 0x2b7   :  { %v1235_v58 = vmax.f32 %v1219_v59, 0.0 }
 0x2b8   :  { %5506 = vmatpush3.bf16.msra.mxu0 %v7466_v37 }
 0x2b9   :  { %v1243_v3 = vpack.c.bf16 %v1235_v58, %v1234_v25  ;;  %5507 = vmatprep.subr.bf16.mxu0 %v7583_v29 }
 0x2bb   :  { %5498 = vmatmul.mubr.msk.bf16.gmra.mrb[36].mxu0 %vm13594_vm4, %v1243_v3 }
 0x2bc   :  { %5509 = vmatprep.mubr.msk.bf16.mxu0 %vm7592_vm10, %v7583_v29  ;;  %5508 = vmatpush3.bf16.msra.mxu0 %v7467_v49 }
 0x2bd   :  { %5513 = vmatprep.subr.bf16.mxu0 %v7583_v29 }
 0x346   :  { %v5487_v13 = vpop.f32.mrb[24].mxu0 }
 0x347   :  { %v1310_v33 = vpop.f32.mrb[25].mxu0  ;;  %v1382_v20 = vmul.f32 %v5487_v13, %v8591_v21 }
 0x348   :  { %v5488_v39 = vpop.f32.mrb[26].mxu0  ;;  %v1380_v6 = vmul.f32 %v8591_v21, %v1310_v33 }
 0x349   :  { %v1313_v34 = vpop.f32.mrb[27].mxu0  ;;  %v8610_v16 = vadd.f32 %v8598_v26, %v1382_v20  ;;  %v1383_v0 = vmul.f32 %v5488_v39, %v8591_v21 }
 0x34a   :  { %v1381_v46 = vmul.f32 %v8591_v21, %v1313_v34  ;;  %v8605_v43 = vadd.f32 %v8598_v26, %v1380_v6 }
 0x34b   :  { %v1422_v18 = vsel %vm13566_vm0, %v8610_v16, 0.0  ;;  %v8619_v55 = vadd.f32 %v8598_v26, %v1383_v0  ;;  %v1466_v2 = vsel %vm13566_vm0, %v8610_v16, -inf }
 0x34c   :  { %v8601_v8 = vadd.f32 %v8598_v26, %v1381_v46  ;;  %v1419_v42 = vsel %vm13566_vm0, %v8605_v43, 0.0  ;;  %v1464_v62 = vsel %vm13566_vm0, %v8605_v43, -inf }
 0x34d   :  { %v1424_v41 = vsel %vm13566_vm0, %v8619_v55, 0.0  ;;  %v1468_v53 = vsel %vm13566_vm0, %v8619_v55, -inf  ;;  %v1467_v17 = vmax.f32 %v1464_v62, %v1466_v2 }
 0x34e   :  { %v1420_v1 = vsel %vm13566_vm0, %v8601_v8, 0.0  ;;  %v1465_v19 = vsel %vm13566_vm0, %v8601_v8, -inf }
 0x34f   :  { %v1421_v60 = vadd.f32 %v1420_v1, %v1419_v42  ;;  %v1469_v52 = vmax.f32 %v1465_v19, %v1468_v53 }
 0x351   :  { %v1423_v63 = vadd.f32 %v1422_v18, %v1421_v60 }
 0x353   :  { %v1425_v35 = vadd.f32 %v1424_v41, %v1423_v63 }
 0x366   :  { %v5491_v48 = vpop.f32.mrb[28].mxu0 }
 0x367   :  { %v1326_v50 = vpop.f32.mrb[29].mxu0  ;;  %v1386_v4 = vmul.f32 %v5491_v48, %v8591_v21 }
 0x368   :  { %v5492_v57 = vpop.f32.mrb[30].mxu0  ;;  %v1384_v32 = vmul.f32 %v8591_v21, %v1326_v50 }
 0x369   :  { %v1329_v51 = vpop.f32.mrb[31].mxu0  ;;  %v1387_v45 = vmul.f32 %v5492_v57, %v8591_v21  ;;  %v8647_v56 = vadd.f32 %v8598_v26, %v1386_v4 }
 0x36a   :  { %v8622_v24 = vadd.f32 %v8598_v26, %v1384_v32  ;;  %v1385_v15 = vmul.f32 %v8591_v21, %v1329_v51 }
 0x36b   :  { %v8657_v40 = vadd.f32 %v8598_v26, %v1387_v45  ;;  %v1430_v59 = vsel %vm13566_vm0, %v8647_v56, 0.0  ;;  %v1474_v39 = vsel %vm13566_vm0, %v8647_v56, -inf }
 0x36c   :  { %v1426_v36 = vsel %vm13566_vm0, %v8622_v24, 0.0  ;;  %v8630_v47 = vadd.f32 %v8598_v26, %v1385_v15  ;;  %v1470_v11 = vsel %vm13566_vm0, %v8622_v24, -inf }
 0x36d   :  { %v1427_v31 = vadd.f32 %v1426_v36, %v1425_v35  ;;  %v1471_v58 = vmax.f32 %v1467_v17, %v1470_v11  ;;  %v1476_v14 = vsel %vm13566_vm0, %v8657_v40, -inf  ;;  %v1432_v34 = vsel %vm13566_vm0, %v8657_v40, 0.0 }
 0x36e   :  { %v1428_v12 = vsel %vm13566_vm0, %v8630_v47, 0.0  ;;  %v1472_v38 = vsel %vm13566_vm0, %v8630_v47, -inf }
 0x36f   :  { %v1429_v23 = vadd.f32 %v1428_v12, %v1427_v31  ;;  %v1473_v27 = vmax.f32 %v1469_v52, %v1472_v38  ;;  %v1475_v48 = vmax.f32 %v1471_v58, %v1474_v39 }
 0x371   :  { %v1431_v3 = vadd.f32 %v1430_v59, %v1429_v23  ;;  %v1477_v13 = vmax.f32 %v1473_v27, %v1476_v14 }
 0x373   :  { %v1433_v50 = vadd.f32 %v1432_v34, %v1431_v3  ;;  %v1478_v6 = vmax.f32 %v1475_v48, %v1477_v13 }
 0x375   :  { %v1434_v15 = vrot.slane %v1433_v50, 4  ;;  %v1479_v35 = vrot.slane %v1478_v6, 4 }
 0x37b   :  { %v5495_v9 = vpop.f32.mrb[32].mxu0 }
 0x37c   :  { %v1342_v5 = vpop.f32.mrb[33].mxu0  ;;  %v1390_v61 = vmul.f32 %v5495_v9, %v8591_v21 }
 0x37d   :  { %v5496_v28 = vpop.f32.mrb[34].mxu0  ;;  %v1388_v54 = vmul.f32 %v8591_v21, %v1342_v5 }
 0x37e   :  { %v1345_v7 = vpop.f32.mrb[35].mxu0  ;;  %v1391_v10 = vmul.f32 %v5496_v28, %v8591_v21  ;;  %v8671_v37 = vadd.f32 %v8598_v26, %v1390_v61  ;;  %v1480_v61 = vmax.f32 %v1478_v6, %v1479_v35 }
 0x37f   :  { %v1389_v22 = vmul.f32 %v8591_v21, %v1345_v7  ;;  %v8661_v44 = vadd.f32 %v8598_v26, %v1388_v54  ;;  %v1435_v54 = vadd.f32 %v1434_v15, %v1433_v50 }
 0x380   :  { %v8680_v57 = vadd.f32 %v8598_v26, %v1391_v10  ;;  %v1443_v51 = vsel %vm13566_vm0, %v8671_v37, 0.0  ;;  %v1487_v0 = vsel %vm13566_vm0, %v8671_v37, -inf }
 0x381   :  { %v8652_v30 = vadd.f32 %v8598_v26, %v1389_v22  ;;  %v1440_v49 = vsel %vm13566_vm0, %v8661_v44, 0.0  ;;  %v1485_v32 = vsel %vm13566_vm0, %v8661_v44, -inf  ;;  %v1436_v59 = vrot.slane %v1435_v54, 2 }
 0x382   :  { %v1445_v63 = vsel %vm13566_vm0, %v8680_v57, 0.0  ;;  %v1489_v28 = vsel %vm13566_vm0, %v8680_v57, -inf  ;;  %v1488_v4 = vmax.f32 %v1485_v32, %v1487_v0 }
 0x383   :  { %v1441_v25 = vsel %vm13566_vm0, %v8652_v30, 0.0  ;;  %v1486_v41 = vsel %vm13566_vm0, %v8652_v30, -inf  ;;  %v1437_v13 = vadd.f32 %v1436_v59, %v1435_v54 }
 0x384   :  { %v1442_v33 = vadd.f32 %v1441_v25, %v1440_v49 }
 0x386   :  { %v1444_v20 = vadd.f32 %v1443_v51, %v1442_v33  ;;  %v1481_v33 = vrot.slane %v1480_v61, 2  ;;  %v1438_v51 = vrot.slane %v1437_v13, 1 }
 0x388   :  { %v1446_v53 = vadd.f32 %v1445_v63, %v1444_v20  ;;  %v1439_v0 = vadd.f32 %v1438_v51, %v1437_v13 }
 0x38e   :  { %v5499_v46 = vpop.f32.mrb[36].mxu0 }
 0x38f   :  { %v1394_v1 = vmul.f32 %v5499_v46, %v8591_v21  ;;  %v1358_v42 = vpop.f32.mrb[37].mxu0  ;;  %v1482_v46 = vmax.f32 %v1480_v61, %v1481_v33 }
 0x390   :  { %v1392_v60 = vmul.f32 %v8591_v21, %v1358_v42  ;;  %v5500_v18 = vpop.f32.mrb[38].mxu0 }
 0x391   :  { %v1395_v9 = vmul.f32 %v5500_v18, %v8591_v21  ;;  %v1361_v5 = vpop.f32.mrb[39].mxu0  ;;  %v8702_v22 = vadd.f32 %v8598_v26, %v1394_v1  ;;  %v1483_v32 = vrot.slane %v1482_v46, 1 }
 0x392   :  { %v8698_v36 = vadd.f32 %v8598_v26, %v1392_v60  ;;  %v1393_v7 = vmul.f32 %v8591_v21, %v1361_v5  ;;  %v1490_v21 = vmax.f32 %v1486_v41, %v1489_v28  ;;  %v1596_v41 = vld [vmem:[%s13142_s11] sm:$0x3]  ;;  %s7594_s11 = smov 14  }
 0x393   :  { %v8709_v45 = vadd.f32 %v8598_v26, %v1395_v9  ;;  %v1451_v17 = vsel %vm13566_vm0, %v8702_v22, 0.0  ;;  %v1462_v9 = vmul.f32 0.015625, %v1439_v0  ;;  %v1484_v5 = vmax.f32 %v1482_v46, %v1483_v32 }
 0x394   :  { %v1447_v31 = vsel %vm13566_vm0, %v8698_v36, 0.0  ;;  %v1491_v19 = vsel %vm13566_vm0, %v8698_v36, -inf  ;;  %v8712_v12 = vadd.f32 %v8598_v26, %v1393_v7  ;;  %v1495_v26 = vsel %vm13566_vm0, %v8702_v22, -inf }
 0x395   :  { %v1448_v2 = vadd.f32 %v1447_v31, %v1446_v53  ;;  %v1492_v62 = vmax.f32 %v1488_v4, %v1491_v19  ;;  %v1497_v27 = vsel %vm13566_vm0, %v8709_v45, -inf  ;;  %v1453_v10 = vsel %vm13566_vm0, %v8709_v45, 0.0 }
 0x396   :  { %v1449_v38 = vsel %vm13566_vm0, %v8712_v12, 0.0  ;;  %v1493_v52 = vsel %vm13566_vm0, %v8712_v12, -inf  ;;  %v1602_v31 = vsel %vm1516_vm13, %v1596_v41, 0 }
 0x397   :  { %v1450_v23 = vadd.f32 %v1449_v38, %v1448_v2  ;;  %v1494_v11 = vmax.f32 %v1490_v21, %v1493_v52  ;;  %v1496_v25 = vmax.f32 %v1492_v62, %v1495_v26 }
 0x399   :  { %v1452_v58 = vadd.f32 %v1451_v17, %v1450_v23  ;;  %v1498_v3 = vmax.f32 %v1494_v11, %v1497_v27 }
 0x39b   :  { %v1454_v14 = vadd.f32 %v1453_v10, %v1452_v58  ;;  %v1499_v49 = vmax.f32 %v1496_v25, %v1498_v3  ;;  %v7593_v58 = vmov 1966171168   ;;  %v1658_v10 = vlaneseq }
 0x39c   :  { %v1656_v3 = vunpack.c.l.s4 %v7593_v58 }
 0x39d   :  { %v1455_v39 = vrot.slane %v1454_v14, 4  ;;  %v1500_v34 = vrot.slane %v1499_v49, 4 }
 0x39f   :  { %v1456_v48 = vadd.f32 %v1455_v39, %v1454_v14  ;;  %v1501_v50 = vmax.f32 %v1499_v49, %v1500_v34  ;;  %v1657_v14 = vunpack.c.0.s8 %v1656_v3  ;;  %v1659_v49 = vshrl.u32 %v1658_v10, 7 }
 0x3a1   :  { %v1457_v6 = vrot.slane %v1456_v48, 2  ;;  %v1502_v20 = vrot.slane %v1501_v50, 2  ;;  %v1660_v13 = vsub.s32 %v1657_v14, %v1659_v49  ;;  %v1679_v34 = vsub.s32 0, %v1659_v49 }
 0x3a3   :  { %v1458_v1 = vadd.f32 %v1457_v6, %v1456_v48  ;;  %v1503_v42 = vmax.f32 %v1501_v50, %v1502_v20 }
 0x3a5   :  { %v1459_v60 = vrot.slane %v1458_v1, 1  ;;  %v1504_v18 = vrot.slane %v1503_v42, 1 }
 0x3a7   :  { %v1460_v15 = vadd.f32 %v1459_v60, %v1458_v1  ;;  %v1505_v63 = vmax.f32 %v1503_v42, %v1504_v18 }
 0x3a9   :  { %v1463_v28 = vmul.f32 0.015625, %v1460_v15  ;;  %v1514_v35 = vsel %vm1513_vm12, %v1505_v63, %v1484_v5  ;;  %vm13596_vm12 = vcmask 97280  }
 0x3ab   :  { %v1509_v7 = vsel %vm1508_vm11, %v1463_v28, %v1462_v9  ;;  %vm2897_vm11 = vcmask 80896  }
 0x3ac   :  { %v1517_v4 = vsel %vm1516_vm13, %v1509_v7, %v1514_v35 }
 0x3ad   :  { %v1518_v53 = vpack.c.bf16 %v1517_v4, %v1517_v4 }
 0x3af   :  { %5510 = vmatmul.mubr.msk.bf16.vlgmr.msra.gmra.mrb[40].mxu0 %vm13566_vm0, %v1518_v53 }
 0x3b0   :  { %5514 = vmatpush3.bf16.msra.mxu0 %v1602_v31  ;;  %5515 = vmatprep.mubr.msk.bf16.mxu0 %vm7592_vm10, %v7583_v29  ;;  %vm2885_vm10 = vcmask 64512  }
 0x482   :  { %v1588_v19 = vpop.f32.mrb[40].mxu0 }
 0x483   :  { %v1594_v54 = vmax.f32 %v1588_v19, 0.0  ;;  %v5511_v21 = vpop.f32.mrb[41].mxu0 }
 0x484   :  { %v1591_v2 = vpop.f32.mrb[42].mxu0 }
 0x485   :  { %v1595_v62 = vpack.c.bf16 %v1594_v54, %v1594_v54  ;;  %v5512_v38 = vpop.f32.mrb[43].mxu0 }
 0x487   :  { %5516 = vmatmul.mubr.msk.bf16.vlgmr.msra.gmra.mrb[44].mxu0 %vm1597_vm14, %v1595_v62 }
 0x55a   :  { %v1638_v52 = vpop.f32.mrb[44].mxu0 }
 0x55b   :  { %v1645_v23 = vrot.slane %v1638_v52, 2  ;;  %v5517_v11 = vpop.f32.mrb[45].mxu0 }
 0x55c   :  { %v1641_v61 = vpop.f32.mrb[46].mxu0 }
 0x55d   :  { %v1647_v17 = vadd.f32 %v1645_v23, %v1638_v52  ;;  %v5518_v26 = vpop.f32.mrb[47].mxu0 }
 0x55f   :  { %v5384_v27 = vmul.f32 -1.442695, %v1647_v17 }
 0x561   :  { %7475 = vpow2.f32 %v5384_v27 }
 0x56b   :  { %v7476_v59 = vpop.eup %7475 }
 0x56c   :  { %v1651_v25 = vadd.f32 1.0, %v7476_v59 }
 0x56e   :  { %7477 = vrcp.f32 %v1651_v25 }
 0x578   :  { %v7478_v33 = vpop.eup %7477 }
 0x579   :  { %v1661_v39 = vrot.slane %v7478_v33, %v1660_v13 }
 0x57b   :  { %v1669_v48 = vrot.slane %v1661_v39, %v1660_v13  ;;  %v1662_v18 = vcombine.high %v1661_v39, %v1661_v39 }
 0x57d   :  { %v1680_v50 = vrot.slane %v1669_v48, %v1679_v34  ;;  %v1676_v63 = vrot.slane %v1662_v18, %v1660_v13 }
 0x57f   :  { %v8736_v51 = vmul.f32 %v1680_v50, %v8601_v8  ;;  %v8739_v46 = vmul.f32 %v1680_v50, %v8605_v43  ;;  %v8746_v1 = vmul.f32 %v1680_v50, %v8622_v24  ;;  %v8749_v42 = vmul.f32 %v1680_v50, %v8610_v16 }
 0x580   :  { %v8756_v0 = vmul.f32 %v1680_v50, %v8647_v56  ;;  %v8759_v32 = vmul.f32 %v1680_v50, %v8619_v55  ;;  %v8766_v60 = vmul.f32 %v1680_v50, %v8630_v47  ;;  %v8773_v15 = vmul.f32 %v1680_v50, %v8657_v40 }
 0x581   :  { %13597 = vst [vmem:[#allocation5_spill] sm:$0xff] %v8736_v51  ;;  %13598 = vst [vmem:[#allocation6_spill] sm:$0xff] %v8739_v46  ;;  %v1706_v6 = vsel %vm13566_vm0, %v8736_v51, 0.0  ;;  %v1703_v20 = vsel %vm13566_vm0, %v8739_v46, 0.0  ;;  %v1715_v8 = vsel %vm13566_vm0, %v8746_v1, 0.0  ;;  %v1709_v43 = vsel %vm13566_vm0, %v8749_v42, 0.0 }
 0x582   :  { %13599 = vst [vmem:[#allocation7_spill] sm:$0xff] %v8746_v1  ;;  %13600 = vst [vmem:[#allocation8_spill] sm:$0xff] %v8749_v42  ;;  %1707 = vadd.xlane.f32.xlu1 %v1706_v6  ;;  %1704 = vadd.xlane.f32.xlu0 %v1703_v20  ;;  %v1721_v16 = vsel %vm13566_vm0, %v8756_v0, 0.0  ;;  %v1712_v24 = vsel %vm13566_vm0, %v8759_v32, 0.0  ;;  %v1767_v56 = vsel %vm13566_vm0, %v8739_v46, -inf  ;;  %v1718_v55 = vsel %vm13566_vm0, %v8766_v60, 0.0 }
 0x583   :  { %13601 = vst [vmem:[#allocation9_spill] sm:$0xff] %v8756_v0  ;;  %13602 = vst [vmem:[#allocation10_spill] sm:$0xff] %v8759_v32  ;;  %v1773_v9 = vsel %vm13566_vm0, %v8749_v42, -inf  ;;  %v1724_v47 = vsel %vm13566_vm0, %v8773_v15, 0.0  ;;  %v1684_v5 = vrot.slane %v1676_v63, %v1679_v34  ;;  %v1779_v28 = vsel %vm13566_vm0, %v8746_v1, -inf }
 0x584   :  { %13603 = vst [vmem:[#allocation11_spill] sm:$0xff] %v8766_v60  ;;  %13604 = vst [vmem:[#allocation12_spill] sm:$0xff] %v8773_v15  ;;  %v1770_v41 = vsel %vm13566_vm0, %v8736_v51, -inf  ;;  %v1785_v40 = vsel %vm13566_vm0, %v8756_v0, -inf  ;;  %v1776_v7 = vsel %vm13566_vm0, %v8759_v32, -inf  ;;  %v1782_v4 = vsel %vm13566_vm0, %v8766_v60, -inf }
 0x585   :  { %v8788_v35 = vmul.f32 %v1684_v5, %v8661_v44  ;;  %v8795_v31 = vmul.f32 %v1684_v5, %v8671_v37  ;;  %v1788_v19 = vsel %vm13566_vm0, %v8773_v15, -inf  ;;  %v8802_v54 = vmul.f32 %v1684_v5, %v8652_v30 }
 0x586   :  { %1716 = vadd.xlane.f32.xlu1 %v1715_v8  ;;  %1710 = vadd.xlane.f32.xlu0 %v1709_v43  ;;  %v8805_v21 = vmul.f32 %v1684_v5, %v8698_v36  ;;  %v8812_v62 = vmul.f32 %v1684_v5, %v8680_v57  ;;  %v8815_v38 = vmul.f32 %v1684_v5, %v8702_v22  ;;  %v8848_v34 = vrot.slane %v7583_v29, 5 }
 0x587   :  { %13605 = vst [vmem:[#allocation13_spill] sm:$0xff] %v8788_v35  ;;  %v1727_v53 = vsel %vm13566_vm0, %v8788_v35, 0.0  ;;  %13606 = vst [vmem:[#allocation14_spill] sm:$0xff] %v8795_v31  ;;  %v1733_v44 = vsel %vm13566_vm0, %v8795_v31, 0.0  ;;  %v1730_v37 = vsel %vm13566_vm0, %v8802_v54, 0.0  ;;  %v8822_v52 = vmul.f32 %v1684_v5, %v8712_v12 }
 0x588   :  { %13607 = vst [vmem:[#allocation15_spill] sm:$0xff] %v8802_v54  ;;  %13608 = vst [vmem:[#allocation16_spill] sm:$0xff] %v8805_v21  ;;  %v1739_v2 = vsel %vm13566_vm0, %v8805_v21, 0.0  ;;  %v1736_v30 = vsel %vm13566_vm0, %v8812_v62, 0.0  ;;  %v1745_v36 = vsel %vm13566_vm0, %v8815_v38, 0.0  ;;  %v1791_v22 = vsel %vm13566_vm0, %v8788_v35, -inf }
 0x589   :  { %13609 = vst [vmem:[#allocation17_spill] sm:$0xff] %v8812_v62  ;;  %13610 = vst [vmem:[#allocation18_spill] sm:$0xff] %v8815_v38  ;;  %v1742_v57 = vsel %vm13566_vm0, %v8822_v52, 0.0  ;;  %v8829_v23 = vmul.f32 %v1684_v5, %v8709_v45  ;;  %v1797_v12 = vsel %vm13566_vm0, %v8795_v31, -inf  ;;  %v1794_v61 = vsel %vm13566_vm0, %v8802_v54, -inf }
 0x58a   :  { %1722 = vadd.xlane.f32.xlu1 %v1721_v16  ;;  %1713 = vadd.xlane.f32.xlu0 %v1712_v24  ;;  %13611 = vst [vmem:[#allocation19_spill] sm:$0xff] %v8822_v52  ;;  %v1803_v17 = vsel %vm13566_vm0, %v8805_v21, -inf  ;;  %v1800_v45 = vsel %vm13566_vm0, %v8812_v62, -inf  ;;  %v1809_v26 = vsel %vm13566_vm0, %v8815_v38, -inf  ;;  %v1806_v27 = vsel %vm13566_vm0, %v8822_v52, -inf }
 0x58b   :  { %13612 = vst [vmem:[#allocation20_spill] sm:$0xff] %v8829_v23  ;;  %v1748_v11 = vsel %vm13566_vm0, %v8829_v23, 0.0  ;;  %v1812_v59 = vsel %vm13566_vm0, %v8829_v23, -inf  ;;  %v8861_v43 = vsel %vm1882_vm6, 0.0, %v8848_v34  ;;  %vm13587_vm0 = vcmask 228352  }
 0x58c   :  { %13614 = vst [vmem:[#allocation22_spill] sm:$0xff] %v8861_v43 }
 0x58e   :  { %1768 = vmax.xlane.f32.xlu1 %v1767_v56  ;;  %1719 = vadd.xlane.f32.xlu0 %v1718_v55 }
 0x592   :  { %1774 = vmax.xlane.f32.xlu1 %v1773_v9  ;;  %1725 = vadd.xlane.f32.xlu0 %v1724_v47 }
 0x596   :  { %1780 = vmax.xlane.f32.xlu1 %v1779_v28  ;;  %1771 = vmax.xlane.f32.xlu0 %v1770_v41 }
 0x59a   :  { %1786 = vmax.xlane.f32.xlu1 %v1785_v40  ;;  %1777 = vmax.xlane.f32.xlu0 %v1776_v7 }
 0x59e   :  { %1783 = vmax.xlane.f32.xlu0 %v1782_v4  ;;  %1728 = vadd.xlane.f32.xlu1 %v1727_v53 }
 0x5a2   :  { %1789 = vmax.xlane.f32.xlu0 %v1788_v19  ;;  %1734 = vadd.xlane.f32.xlu1 %v1733_v44 }
 0x5a6   :  { %1731 = vadd.xlane.f32.xlu0 %v1730_v37  ;;  %1740 = vadd.xlane.f32.xlu1 %v1739_v2 }
 0x5aa   :  { %1737 = vadd.xlane.f32.xlu0 %v1736_v30  ;;  %1746 = vadd.xlane.f32.xlu1 %v1745_v36 }
 0x5ae   :  { %1743 = vadd.xlane.f32.xlu0 %v1742_v57  ;;  %1792 = vmax.xlane.f32.xlu1 %v1791_v22 }
 0x5b2   :  { %1749 = vadd.xlane.f32.xlu0 %v1748_v11  ;;  %1798 = vmax.xlane.f32.xlu1 %v1797_v12 }
 0x5b6   :  { %1795 = vmax.xlane.f32.xlu0 %v1794_v61  ;;  %1804 = vmax.xlane.f32.xlu1 %v1803_v17 }
 0x5ba   :  { %1801 = vmax.xlane.f32.xlu0 %v1800_v45  ;;  %1810 = vmax.xlane.f32.xlu1 %v1809_v26 }
 0x5be   :  { %1807 = vmax.xlane.f32.xlu0 %v1806_v27 }
 0x5c2   :  { %1813 = vmax.xlane.f32.xlu0 %v1812_v59 }
 0x60f   :  { %v1708_v25 = vpop.xlane.xlu1 %1707  ;;  %v1705_v58 = vpop.xlane.xlu0 %1704 }
 0x610   :  { %v1751_v13 = vmul.f32 0.015625, %v1705_v58  ;;  %v1752_v16 = vmul.f32 0.015625, %v1708_v25 }
 0x613   :  { %v1717_v3 = vpop.xlane.xlu1 %1716  ;;  %v1711_v10 = vpop.xlane.xlu0 %1710 }
 0x614   :  { %v1753_v56 = vmul.f32 0.015625, %v1711_v10  ;;  %v1755_v37 = vmul.f32 0.015625, %v1717_v3 }
 0x617   :  { %v1723_v14 = vpop.xlane.xlu1 %1722  ;;  %v1714_v49 = vpop.xlane.xlu0 %1713 }
 0x618   :  { %v1754_v53 = vmul.f32 0.015625, %v1714_v49  ;;  %v1757_v26 = vmul.f32 0.015625, %v1723_v14 }
 0x61b   :  { %v1769_v33 = vpop.xlane.xlu1 %1768  ;;  %v1720_v39 = vpop.xlane.xlu0 %1719 }
 0x61c   :  { %v8851_v48 = vsel %vm1815_vm15, %v1751_v13, %v1769_v33  ;;  %v1756_v12 = vmul.f32 0.015625, %v1720_v39 }
 0x61d   :  { %v1849_v50 = vrot.slane %v8851_v48, 5 }
 0x61f   :  { %v8857_v6 = vsel %vm1882_vm6, 0.0, %v1849_v50  ;;  %v1775_v20 = vpop.xlane.xlu1 %1774  ;;  %v1726_v8 = vpop.xlane.xlu0 %1725 }
 0x620   :  { %13613 = vst [vmem:[#allocation21_spill] sm:$0xff] %v8857_v6  ;;  %v5855_v29 = vpack.i.bf16 %v8857_v6, %v8861_v43  ;;  %v8870_v63 = vsel %vm1815_vm15, %v1753_v56, %v1775_v20  ;;  %v1758_v13 = vmul.f32 0.015625, %v1726_v8  ;;  %v2043_v38 = vrot.slane %v8857_v6, 4 }
 0x621   :  { %v13149_v28 = vrot.slane %v8870_v63, 5 }
 0x622   :  { %5856 = vrot.lane.b32.xlu0 %v5855_v29, %s7594_s11 }
 0x623   :  { %v1781_v24 = vpop.xlane.xlu1 %1780  ;;  %v1772_v18 = vpop.xlane.xlu0 %1771  ;;  %v8884_v4 = vsel %vm1882_vm6, 0.0, %v13149_v28 }
 0x624   :  { %v8867_v55 = vsel %vm1815_vm15, %v1752_v16, %v1772_v18  ;;  %13616 = vst [vmem:[#allocation24_spill] sm:$0xff] %v8884_v4  ;;  %v8893_v36 = vsel %vm1815_vm15, %v1755_v37, %v1781_v24 }
 0x625   :  { %v13148_v5 = vrot.slane %v8867_v55, 5  ;;  %v13150_v11 = vrot.slane %v8893_v36, 5  ;;  %v13644_v32 = vrot.slane %v8867_v55, 5 }
 0x627   :  { %v1787_v9 = vpop.xlane.xlu1 %1786  ;;  %v1778_v47 = vpop.xlane.xlu0 %1777  ;;  %v8877_v40 = vsel %vm1882_vm6, 0.0, %v13148_v5  ;;  %v8911_v59 = vsel %vm1882_vm6, 0.0, %v13150_v11  ;;  %v2106_v11 = vrot.slane %v8861_v43, 6  ;;  %v9158_v46 = vsel %vm1882_vm6, %v13644_v32, 0.0 }
 0x628   :  { %13615 = vst [vmem:[#allocation23_spill] sm:$0xff] %v8877_v40  ;;  %v5860_v19 = vpack.i.bf16 %v8884_v4, %v8877_v40  ;;  %v8889_v2 = vsel %vm1815_vm15, %v1754_v53, %v1778_v47  ;;  %13618 = vst [vmem:[#allocation26_spill] sm:$0xff] %v8911_v59  ;;  %v8914_v25 = vsel %vm1815_vm15, %v1757_v26, %v1787_v9  ;;  %v1954_v54 = vrot.slane %v8911_v59, 1 }
 0x629   :  { %v13152_v22 = vrot.slane %v8889_v2, 5  ;;  %v13147_v14 = vrot.slane %v8914_v25, 5  ;;  %13645 = vst [vmem:[#allocation46_spill] sm:$0xff] %v9158_v46 }
 0x62a   :  { %5861 = vrot.lane.b32.xlu1 %v5860_v19, %s7594_s11 }
 0x62b   :  { %v1784_v41 = vpop.xlane.xlu0 %1783  ;;  %v8879_v7 = vpop.xlane.xlu1 %1728  ;;  %v8901_v17 = vsel %vm1882_vm6, 0.0, %v13152_v22  ;;  %v9003_v22 = vsel %vm1882_vm6, %v1849_v50, 0.0 }
 0x62c   :  { %13617 = vst [vmem:[#allocation25_spill] sm:$0xff] %v8901_v17  ;;  %v8906_v27 = vsel %vm1815_vm15, %v1756_v12, %v1784_v41  ;;  %v5865_v58 = vpack.i.bf16 %v8911_v59, %v8901_v17  ;;  %v5905_v56 = vpack.i.bf16 %v8901_v17, %v8884_v4 }
 0x62d   :  { %v13146_v10 = vrot.slane %v8906_v27, 5 }
 0x62e   :  { %5871 = vrot.lane.b32.xlu1 %v5855_v29, %s7595_s2  ;;  %5866 = vrot.lane.b32.xlu0 %v5865_v58, %s7594_s11  ;;  %v8941_v29 = vsel %vm1882_vm6, 0.0, %v13147_v14 }
 0x62f   :  { %v1790_v44 = vpop.xlane.xlu0 %1789  ;;  %v1735_v30 = vpop.xlane.xlu1 %1734  ;;  %v8929_v33 = vsel %vm1882_vm6, 0.0, %v13146_v10  ;;  %13619 = vst [vmem:[#allocation27_spill] sm:$0xff] %v8941_v29  ;;  %v2073_v10 = vrot.slane %v8861_v43, 5 }
 0x630   :  { %v8934_v20 = vsel %vm1815_vm15, %v1758_v13, %v1790_v44  ;;  %v5885_v8 = vpack.i.bf16 %v8941_v29, %v8929_v33  ;;  %v1761_v53 = vmul.f32 0.015625, %v1735_v30  ;;  %v1900_v30 = vsel %vm1882_vm6, %v8848_v34, 0.0 }
 0x631   :  { %v13145_v16 = vrot.slane %v8934_v20, 5  ;;  %v1759_v13 = vmul.f32 0.015625, %v8879_v7  ;;  %v2007_v34 = vrot.slane %v1900_v30, 3  ;;  %v2040_v7 = vrot.slane %v8861_v43, 4 }
 0x632   :  { %5881 = vrot.lane.b32.xlu1 %v5865_v58, %s7595_s2  ;;  %5876 = vrot.lane.b32.xlu0 %v5860_v19, %s7595_s2  ;;  %v1940_v14 = vrot.slane %v1900_v30, 1 }
 0x633   :  { %v1732_v57 = vpop.xlane.xlu0 %1731  ;;  %v8903_v45 = vpop.xlane.xlu1 %1740  ;;  %v8953_v9 = vsel %vm1882_vm6, 0.0, %v13145_v16 }
 0x634   :  { %13620 = vst [vmem:[#allocation28_spill] sm:$0xff] %v8953_v9  ;;  %v1760_v47 = vmul.f32 0.015625, %v1732_v57  ;;  %v5915_v44 = vpack.i.bf16 %v8953_v9, %v8941_v29  ;;  %v1763_v16 = vmul.f32 0.015625, %v8903_v45 }
 0x636   :  { %5891 = vrot.lane.b32.xlu1 %v5860_v19, %s7596_s3  ;;  %5886 = vrot.lane.b32.xlu0 %v5885_v8, %s7595_s2  ;;  %v5910_v19 = vpack.i.bf16 %v8929_v33, %v8911_v59 }
 0x637   :  { %v1738_v61 = vpop.xlane.xlu0 %1737  ;;  %v8924_v49 = vpop.xlane.xlu1 %1746 }
 0x638   :  { %v1762_v26 = vmul.f32 0.015625, %v1738_v61  ;;  %v1765_v1 = vmul.f32 0.015625, %v8924_v49 }
 0x63a   :  { %5901 = vrot.lane.b32.xlu1 %v5885_v8, %s7596_s3  ;;  %5896 = vrot.lane.b32.xlu0 %v5865_v58, %s7596_s3 }
 0x63b   :  { %v8918_v3 = vpop.xlane.xlu0 %1743  ;;  %v1793_v24 = vpop.xlane.xlu1 %1792 }
 0x63e   :  { %5906 = vrot.lane.b32.xlu1 %v5905_v56, %s7597_s4  ;;  %5911 = vrot.lane.b32.xlu0 %v5910_v19, %s7597_s4 }
 0x63f   :  { %v8931_v39 = vpop.xlane.xlu0 %1749  ;;  %v1799_v41 = vpop.xlane.xlu1 %1798 }
 0x640   :  { %v8966_v57 = vsel %vm1815_vm15, %v1761_v53, %v1799_v41  ;;  %v2006_v41 = vrot.slane %v8861_v43, 3  ;;  %v8980_v53 = vsel %vm1815_vm15, %v1759_v13, %v1793_v24  ;;  %v2074_v24 = vrot.slane %v1900_v30, 5 }
 0x641   :  { %v13153_v61 = vrot.slane %v8966_v57, 5  ;;  %v1939_v13 = vrot.slane %v8861_v43, 1 }
 0x642   :  { %5916 = vrot.lane.b32.xlu1 %v5915_v44, %s7597_s4  ;;  %5926 = vrot.lane.b32.xlu0 %v5910_v19, %s7598_s18  ;;  %v9021_v50 = vsel %vm2005_vm7, %v2006_v41, %v2007_v34  ;;  %v9030_v52 = vsel %vm1882_vm6, %v2073_v10, %v2074_v24  ;;  %v13631_v41 = vrot.slane %v8980_v53, 5  ;;  %v2085_v10 = vrot.slane %v8901_v17, 5 }
 0x643   :  { %v1796_v18 = vpop.xlane.xlu0 %1795  ;;  %v1805_v28 = vpop.xlane.xlu1 %1804  ;;  %13626 = vst [vmem:[#allocation33_spill] sm:$0xff] %v9021_v50  ;;  %13628 = vst [vmem:[#allocation35_spill] sm:$0xff] %v9030_v52  ;;  %v9033_v23 = vsel %vm402_vm2, %v1939_v13, %v1940_v14 }
 0x644   :  { %v8962_v37 = vsel %vm1815_vm15, %v1760_v47, %v1796_v18  ;;  %v1972_v18 = vrot.slane %v8861_v43, 2  ;;  %v1973_v47 = vrot.slane %v1900_v30, 2  ;;  %13629 = vst [vmem:[#allocation36_spill] sm:$0xff] %v9033_v23  ;;  %v9044_v34 = vsel %vm1882_vm6, 0.0, %v13631_v41 }
 0x645   :  { %v13151_v58 = vrot.slane %v8962_v37, 5  ;;  %13632 = vst [vmem:[#allocation37_spill] sm:$0xff] %v9044_v34  ;;  %v1764_v41 = vmul.f32 0.015625, %v8918_v3 }
 0x646   :  { %5921 = vrot.lane.b32.xlu1 %v5905_v56, %s7598_s18  ;;  %v8997_v56 = vsel %vm1882_vm6, 0.0, %v13153_v61  ;;  %5936 = vrot.lane.b32.xlu0 %v5915_v44, %s7598_s18  ;;  %v9018_v48 = vsel %vm448_vm3, %v1972_v18, %v1973_v47  ;;  %v13630_v18 = vrot.slane %v8889_v2, 5 }
 0x647   :  { %v1802_v12 = vpop.xlane.xlu0 %1801  ;;  %13622 = vst [vmem:[#allocation30_spill] sm:$0xff] %v8997_v56  ;;  %13625 = vst [vmem:[#allocation32_spill] sm:$0xff] %v9018_v48 }
 0x648   :  { %v8974_v8 = vsel %vm1815_vm15, %v1762_v26, %v1802_v12  ;;  %v2041_v12 = vrot.slane %v1900_v30, 4  ;;  %v8988_v26 = vsel %vm1882_vm6, 0.0, %v13151_v58  ;;  %v2107_v58 = vrot.slane %v1900_v30, 6 }
 0x649   :  { %13621 = vst [vmem:[#allocation29_spill] sm:$0xff] %v8988_v26  ;;  %v9010_v61 = vpack.i.bf16 %v8997_v56, %v8988_v26  ;;  %v13623_v5 = vrot.slane %v8974_v8, 5  ;;  %v9039_v47 = vsel %vm1882_vm6, %v13630_v18, 0.0  ;;  %v2018_v18 = vrot.slane %v8901_v17, 3 }
 0x64a   :  { %5931 = vrot.lane.b32.xlu1 %v5910_v19, %s7599_s19  ;;  %v9024_v45 = vsel %vm2039_vm9, %v2040_v7, %v2041_v12  ;;  %v9027_v19 = vsel %vm1815_vm15, %v1763_v16, %v1805_v28  ;;  %v9047_v28 = vsel %vm1516_vm13, %v2106_v11, %v2107_v58  ;;  %v13634_v58 = vrot.slane %v8893_v36, 5 }
 0x64b   :  { %v9015_v30 = vsel %vm1882_vm6, 0.0, %v13623_v5  ;;  %13627 = vst [vmem:[#allocation34_spill] sm:$0xff] %v9024_v45  ;;  %13633 = vst [vmem:[#allocation38_spill] sm:$0xff] %v9047_v28  ;;  %5951 = vrot.lane.b32.xlu0 %v9010_v61, %s7594_s11  ;;  %v1808_v13 = vpop.xlane.xlu0 %1807  ;;  %v5945_v5 = vpack.i.bf16 %v9044_v34, %v8929_v33  ;;  %v13635_v7 = vrot.slane %v8870_v63, 5  ;;  %v2021_v36 = vrot.slane %v8911_v59, 3 }
 0x64c   :  { %13624 = vst [vmem:[#allocation31_spill] sm:$0xff] %v9015_v30  ;;  %v9057_v2 = vpack.i.bf16 %v9015_v30, %v8997_v56  ;;  %v9064_v12 = vsel %vm1882_vm6, %v13634_v58, 0.0  ;;  %v1975_v58 = vrot.slane %v8857_v6, 2  ;;  %v2009_v16 = vrot.slane %v8857_v6, 3 }
 0x64d   :  { %v9075_v11 = vsel %vm1882_vm6, %v13635_v7, 0.0  ;;  %v2022_v14 = vrot.slane %v9064_v12, 3  ;;  %v2086_v3 = vrot.slane %v9039_v47, 5  ;;  %v9084_v24 = vsel %vm1815_vm15, %v1764_v41, %v1808_v13 }
 0x64e   :  { %5941 = vrot.lane.b32.xlu1 %v5915_v44, %s7599_s19  ;;  %v2019_v44 = vrot.slane %v9039_v47, 3  ;;  %13636 = vst [vmem:[#allocation39_spill] sm:$0xff] %v9084_v24  ;;  %v2088_v63 = vrot.slane %v8911_v59, 5  ;;  %v13637_v7 = vrot.slane %v9027_v19, 5  ;;  %v2089_v62 = vrot.slane %v9064_v12, 5 }
 0x64f   :  { %5966 = vrot.lane.b32.xlu0 %v9057_v2, %s7595_s2  ;;  %v5975_v41 = vpack.i.bf16 %v9044_v34, %v8953_v9  ;;  %v13166_v31 = vrot.slane %v9084_v24, 5  ;;  %v9117_v15 = vsel %vm1882_vm6, %v2085_v10, %v2086_v3  ;;  %v1987_v3 = vrot.slane %v8911_v59, 2  ;;  %v1814_v42 = vpop.xlane.xlu0 %1813 }
 0x650   :  { %v9093_v21 = vsel %vm1882_vm6, 0.0, %v13637_v7  ;;  %v9099_v13 = vsel %vm2005_vm7, %v2018_v18, %v2019_v44  ;;  %v9114_v44 = vsel %vm2005_vm7, %v2021_v36, %v2022_v14  ;;  %13640 = vst [vmem:[#allocation42_spill] sm:$0xff] %v9117_v15  ;;  %v1955_v14 = vrot.slane %v9064_v12, 1  ;;  %v1811_v7 = vpop.xlane.xlu1 %1810 }
 0x651   :  { %13638 = vst [vmem:[#allocation40_spill] sm:$0xff] %v9093_v21  ;;  %13639 = vst [vmem:[#allocation41_spill] sm:$0xff] %v9099_v13  ;;  %v9127_v18 = vpack.i.bf16 %v9114_v44, %v9099_v13  ;;  %v9131_v10 = vsel %vm1882_vm6, %v2088_v63, %v2089_v62  ;;  %v5960_v36 = vpack.i.bf16 %v8988_v26, %v9044_v34  ;;  %v9140_v35 = vsel %vm1882_vm6, 0.0, %v13166_v31 }
 0x652   :  { %5946 = vrot.lane.b32.xlu1 %v5945_v5, %s7594_s11  ;;  %v9105_v5 = vpack.i.bf16 %v9093_v21, %v9015_v30  ;;  %13641 = vst [vmem:[#allocation43_spill] sm:$0xff] %v9131_v10  ;;  %13642 = vst [vmem:[#allocation44_spill] sm:$0xff] %v9140_v35  ;;  %v9144_v60 = vpack.i.bf16 %v9131_v10, %v9117_v15  ;;  %v2055_v62 = vrot.slane %v8911_v59, 4  ;;  %v2056_v63 = vrot.slane %v9064_v12, 4 }
 0x653   :  { %5976 = vrot.lane.b32.xlu0 %v5975_v41, %s7596_s3  ;;  %v1988_v41 = vrot.slane %v9064_v12, 2  ;;  %v2121_v31 = vrot.slane %v8911_v59, 6  ;;  %v2122_v51 = vrot.slane %v9064_v12, 6  ;;  %v13646_v15 = vrot.slane %v9003_v22, 2 }
 0x654   :  { %13643 = vst [vmem:[#allocation45_spill] sm:$0xff] %v9144_v60  ;;  %v1766_v13 = vmul.f32 0.015625, %v8931_v39  ;;  %v5995_v0 = vpack.i.bf16 %v8988_v26, %v8861_v43  ;;  %v9173_v55 = vpack.i.bf16 %v9140_v35, %v9093_v21  ;;  %v9176_v32 = vsel %vm402_vm2, %v1954_v54, %v1955_v14 }
 0x655   :  { %v9163_v49 = vsel %vm448_vm3, %v1975_v58, %v13646_v15  ;;  %v9179_v12 = vsel %vm448_vm3, %v1987_v3, %v1988_v41  ;;  %v13650_v15 = vrot.slane %v9003_v22, 3  ;;  %v1946_v59 = vrot.slane %v9158_v46, 1 }
 0x656   :  { %5956 = vrot.lane.b32.xlu1 %v9105_v5, %s7594_s11  ;;  %13647 = vst [vmem:[#allocation47_spill] sm:$0xff] %v9163_v49  ;;  %13649 = vst [vmem:[#allocation49_spill] sm:$0xff] %v9179_v12  ;;  %v13655_v54 = vrot.slane %v8914_v25, 5  ;;  %v9201_v3 = vsel %vm1815_vm15, %v1766_v13, %v1814_v42  ;;  %v2113_v13 = vrot.slane %v9158_v46, 6  ;;  %v2143_v41 = vrot.slane %v8929_v33, 1 }
 0x657   :  { %5986 = vrot.lane.b32.xlu0 %v9105_v5, %s7596_s3  ;;  %v9184_v39 = vsel %vm2005_vm7, %v2009_v16, %v13650_v15  ;;  %13657 = vst [vmem:[#allocation54_spill] sm:$0xff] %v9201_v3  ;;  %v1985_v16 = vrot.slane %v9039_v47, 2  ;;  %v6020_v15 = vpack.i.bf16 %v9015_v30, %v8861_v43  ;;  %v1945_v24 = vrot.slane %v8877_v40, 1 }
 0x658   :  { %13651 = vst [vmem:[#allocation50_spill] sm:$0xff] %v9184_v39  ;;  %v9198_v14 = vsel %vm1882_vm6, %v13655_v54, 0.0  ;;  %v1952_v54 = vrot.slane %v9039_v47, 1  ;;  %v13705_v10 = vrot.slane %v9003_v22, 5 }
 0x659   :  { %13656 = vst [vmem:[#allocation53_spill] sm:$0xff] %v9198_v14  ;;  %v9272_v23 = vsel %vm402_vm2, %v1945_v24, %v1946_v59  ;;  %v13668_v24 = vrot.slane %v9075_v11, 1 }
 0x65a   :  { %5961 = vrot.lane.b32.xlu1 %v5960_v36, %s7595_s2  ;;  %v9167_v36 = vsel %vm1815_vm15, %v1765_v1, %v1811_v7  ;;  %v13652_v1 = vrot.slane %v9003_v22, 4  ;;  %v9192_v7 = vsel %vm2039_vm9, %v2055_v62, %v2056_v63  ;;  %v13659_v63 = vrot.slane %v8906_v27, 5  ;;  %13663 = vst [vmem:[#allocation58_spill] sm:$0xff] %v9272_v23 }
 0x65b   :  { %13648 = vst [vmem:[#allocation48_spill] sm:$0xff] %v9167_v36  ;;  %13654 = vst [vmem:[#allocation52_spill] sm:$0xff] %v9192_v7  ;;  %5996 = vrot.lane.b32.xlu0 %v5995_v0, %s7597_s4  ;;  %v13175_v25 = vrot.slane %v9167_v36, 5  ;;  %v1984_v62 = vrot.slane %v8901_v17, 2  ;;  %v2112_v0 = vrot.slane %v8877_v40, 6  ;;  %v2109_v36 = vrot.slane %v8857_v6, 6 }
 0x65c   :  { %v9189_v58 = vsel %vm2039_vm9, %v2043_v38, %v13652_v1  ;;  %v9207_v38 = vsel %vm1516_vm13, %v2121_v31, %v2122_v51  ;;  %v9216_v42 = vsel %vm1882_vm6, %v13659_v63, 0.0  ;;  %v2184_v51 = vrot.slane %v9198_v14, 1 }
 0x65d   :  { %13653 = vst [vmem:[#allocation51_spill] sm:$0xff] %v9189_v58  ;;  %13658 = vst [vmem:[#allocation55_spill] sm:$0xff] %v9207_v38  ;;  %v1951_v1 = vrot.slane %v8901_v17, 1  ;;  %v2144_v27 = vrot.slane %v9216_v42, 1  ;;  %v9234_v63 = vsel %vm1882_vm6, 0.0, %v13175_v25  ;;  %v13660_v38 = vrot.slane %v9201_v3, 5 }
 0x65e   :  { %5971 = vrot.lane.b32.xlu1 %v9173_v55, %s7595_s2  ;;  %v9243_v31 = vpack.i.bf16 %v9234_v63, %v9140_v35  ;;  %v2156_v28 = vrot.slane %v9216_v42, 3  ;;  %v2162_v60 = vrot.slane %v9216_v42, 4  ;;  %v2183_v35 = vrot.slane %v8941_v29, 1 }
 0x65f   :  { %6006 = vrot.lane.b32.xlu0 %v9173_v55, %s7597_s4  ;;  %v9249_v25 = vsel %vm1882_vm6, 0.0, %v13660_v38  ;;  %v2168_v3 = vrot.slane %v9216_v42, 5  ;;  %v2174_v38 = vrot.slane %v9216_v42, 6  ;;  %v9262_v46 = vsel %vm1516_vm13, %v2112_v0, %v2113_v13 }
 0x660   :  { %13661 = vst [vmem:[#allocation56_spill] sm:$0xff] %v9249_v25  ;;  %v9265_v26 = vsel %vm402_vm2, %v2143_v41, %v2144_v27  ;;  %v6040_v34 = vpack.i.bf16 %v9249_v25, %v9234_v63  ;;  %v2161_v40 = vrot.slane %v8929_v33, 4  ;;  %v13664_v7 = vrot.slane %v9003_v22, 6 }
 0x661   :  { %13662 = vst [vmem:[#allocation57_spill] sm:$0xff] %v9265_v26  ;;  %v2155_v41 = vrot.slane %v8929_v33, 3  ;;  %v2053_v13 = vrot.slane %v9039_v47, 4  ;;  %v2150_v27 = vrot.slane %v9216_v42, 2  ;;  %vm13593_vm15 = vcmask 146432  }
 0x662   :  { %5981 = vrot.lane.b32.xlu1 %v9010_v61, %s7596_s3  ;;  %v2052_v61 = vrot.slane %v8901_v17, 4  ;;  %v9277_v6 = vsel %vm1516_vm13, %v2109_v36, %v13664_v7  ;;  %v13669_v36 = vrot.slane %v8884_v4, 1 }
 0x663   :  { %6021 = vrot.lane.b32.xlu0 %v6020_v15, %s7599_s19  ;;  %v2185_v15 = vsel %vm402_vm2, %v2183_v35, %v2184_v51  ;;  %13665 = vst [vmem:[#allocation59_spill] sm:$0xff] %v9277_v6  ;;  %v9289_v35 = vsel %vm2039_vm9, %v2161_v40, %v2162_v60  ;;  %v9301_v42 = vsel %vm2005_vm7, %v2155_v41, %v2156_v28  ;;  %v2173_v51 = vrot.slane %v8929_v33, 6 }
 0x664   :  { %v9280_v0 = vpack.i.bf16 %v2185_v15, %v9265_v26  ;;  %13667 = vst [vmem:[#allocation61_spill] sm:$0xff] %v9289_v35  ;;  %v9298_v7 = vsel %vm402_vm2, %v13669_v36, %v13668_v24  ;;  %13671 = vst [vmem:[#allocation63_spill] sm:$0xff] %v9301_v42  ;;  %v13672_v60 = vrot.slane %v8934_v20, 5  ;;  %v9316_v24 = vpack.i.bf16 %v9301_v42, %v9114_v44 }
 0x665   :  { %13670 = vst [vmem:[#allocation62_spill] sm:$0xff] %v9298_v7  ;;  %v9312_v59 = vpack.i.bf16 %v9298_v7, %v9272_v23  ;;  %v2118_v28 = vrot.slane %v8901_v17, 6  ;;  %v2119_v41 = vrot.slane %v9039_v47, 6  ;;  %v9321_v36 = vsel %vm1516_vm13, %v2173_v51, %v2174_v38 }
 0x666   :  { %5991 = vrot.lane.b32.xlu1 %v9243_v31, %s7596_s3  ;;  %13666 = vst [vmem:[#allocation60_spill] sm:$0xff] %v9280_v0  ;;  %v9308_v40 = vsel %vm1882_vm6, %v13672_v60, 0.0  ;;  %13674 = vst [vmem:[#allocation65_spill] sm:$0xff] %v9316_v24  ;;  %v2223_v60 = vrot.slane %v9198_v14, 5  ;;  %v2149_v17 = vrot.slane %v8929_v33, 2  ;;  %v9334_v47 = vsel %vm448_vm3, %v1984_v62, %v1985_v16 }
 0x667   :  { %6041 = vrot.lane.b32.xlu0 %v6040_v34, %s7599_s19  ;;  %13673 = vst [vmem:[#allocation64_spill] sm:$0xff] %v9308_v40  ;;  %13675 = vst [vmem:[#allocation66_spill] sm:$0xff] %v9321_v36  ;;  %v2239_v38 = vrot.slane %v9308_v40, 1  ;;  %v9355_v16 = vsel %vm2039_vm9, %v2052_v61, %v2053_v13  ;;  %v2210_v62 = vrot.slane %v8941_v29, 3  ;;  %v2263_v23 = vrot.slane %v9308_v40, 5 }
 0x668   :  { %13676 = vst [vmem:[#allocation67_spill] sm:$0xff] %v9334_v47  ;;  %v9349_v44 = vsel %vm448_vm3, %v2149_v17, %v2150_v27  ;;  %13680 = vst [vmem:[#allocation70_spill] sm:$0xff] %v9355_v16  ;;  %v2238_v17 = vrot.slane %v8953_v9, 1  ;;  %v13682_v61 = vrot.slane %v9198_v14, 3  ;;  %v2222_v27 = vrot.slane %v8941_v29, 5 }
 0x669   :  { %13678 = vst [vmem:[#allocation68_spill] sm:$0xff] %v9349_v44  ;;  %v13704_v44 = vld [vmem:[#allocation36_spill] sm:$0xff]  ;;  %v2133_v36 = vrot.slane %v9015_v30, 6 }
 0x66a   :  { %6001 = vrot.lane.b32.xlu1 %v9057_v2, %s7597_s4  ;;  %v2167_v2 = vrot.slane %v8929_v33, 5  ;;  %v9352_v33 = vsel %vm402_vm2, %v1951_v1, %v1952_v54  ;;  %v9371_v54 = vpack.i.bf16 %v9179_v12, %v9334_v47  ;;  %v9376_v13 = vsel %vm2005_vm7, %v2210_v62, %v13682_v61 }
 0x66b   :  { %6051 = vrot.lane.b32.xlu0 %v9312_v59, %s7600_s20  ;;  %13679 = vst [vmem:[#allocation69_spill] sm:$0xff] %v9352_v33  ;;  %v9393_v62 = vsel %vm1882_vm6, %v2222_v27, %v2223_v60  ;;  %v13687_v61 = vrot.slane %v9027_v19, 5  ;;  %v13690_v60 = vrot.slane %v8966_v57, 5  ;;  %v2262_v27 = vrot.slane %v8953_v9, 5 }
 0x66c   :  { %v9324_v20 = vsel %vm1882_vm6, %v2167_v2, %v2168_v3  ;;  %v13677_v3 = vrot.slane %v8980_v53, 5  ;;  %v9344_v2 = vpack.i.bf16 %v9163_v49, %v9018_v48  ;;  %v9358_v53 = vsel %vm1516_vm13, %v2118_v28, %v2119_v41  ;;  %13686 = vst [vmem:[#allocation75_spill] sm:$0xff] %v9393_v62 }
 0x66d   :  { %13681 = vst [vmem:[#allocation71_spill] sm:$0xff] %v9358_v53  ;;  %v9381_v28 = vpack.i.bf16 %v9376_v13, %v9301_v42  ;;  %v9384_v41 = vsel %vm402_vm2, %v2238_v17, %v2239_v38  ;;  %v9398_v47 = vsel %vm1882_vm6, %v13687_v61, 0.0  ;;  %v9406_v38 = vpack.i.bf16 %v9393_v62, %v9324_v20 }
 0x66e   :  { %6011 = vrot.lane.b32.xlu1 %v6040_v34, %s7597_s4  ;;  %v9340_v51 = vsel %vm1882_vm6, %v13677_v3, 0.0  ;;  %v6015_v34 = vpack.i.bf16 %v8997_v56, %v8861_v43  ;;  %v2251_v3 = vrot.slane %v9308_v40, 3  ;;  %13684 = vst [vmem:[#allocation73_spill] sm:$0xff] %v9384_v41  ;;  %v9390_v48 = vpack.i.bf16 %v9384_v41, %v2185_v15  ;;  %13688 = vst [vmem:[#allocation76_spill] sm:$0xff] %v9398_v47 }
 0x66f   :  { %6061 = vrot.lane.b32.xlu0 %v9344_v2, %s7601_s21  ;;  %13683 = vst [vmem:[#allocation72_spill] sm:$0xff] %v9381_v28  ;;  %13689 = vst [vmem:[#allocation77_spill] sm:$0xff] %v9406_v38  ;;  %v9414_v19 = vsel %vm1882_vm6, %v13690_v60, 0.0  ;;  %v13693_v61 = vrot.slane %v8962_v37, 5  ;;  %v9431_v57 = vpack.i.bf16 %v9184_v39, %v9021_v50  ;;  %v9435_v60 = vsel %vm1882_vm6, %v2262_v27, %v2263_v23  ;;  %v13699_v38 = vld [vmem:[#allocation21_spill] sm:$0xff] }
 0x670   :  { %13685 = vst [vmem:[#allocation74_spill] sm:$0xff] %v9390_v48  ;;  %13691 = vst [vmem:[#allocation78_spill] sm:$0xff] %v9414_v19  ;;  %v1964_v17 = vrot.slane %v9414_v19, 1  ;;  %v2031_v1 = vrot.slane %v9414_v19, 3  ;;  %v2098_v37 = vrot.slane %v9414_v19, 5  ;;  %v2036_v27 = vrot.slane %v9093_v21, 3 }
 0x671   :  { %v9426_v43 = vsel %vm1882_vm6, %v13693_v61, 0.0  ;;  %13694 = vst [vmem:[#allocation80_spill] sm:$0xff] %v9435_v60  ;;  %v9446_v61 = vpack.i.bf16 %v9030_v52, %v9435_v60  ;;  %v2037_v40 = vrot.slane %v9398_v47, 3  ;;  %v13700_v50 = vrot.slane %v13699_v38, 1  ;;  %v13811_v60 = vld [vmem:[#allocation61_spill] sm:$0xff] }
 0x672   :  { %6016 = vrot.lane.b32.xlu1 %v6015_v34, %s7598_s18  ;;  %v2250_v34 = vrot.slane %v8953_v9, 3  ;;  %v1961_v23 = vrot.slane %v9426_v43, 1  ;;  %v2104_v28 = vrot.slane %v9398_v47, 5  ;;  %v13706_v35 = vrot.slane %v13699_v38, 5 }
 0x673   :  { %6071 = vrot.lane.b32.xlu0 %v9371_v54, %s7601_s21  ;;  %13695 = vst [vmem:[#allocation81_spill] sm:$0xff] %v9446_v61  ;;  %v1966_v61 = vrot.slane %v9015_v30, 1  ;;  %v2097_v38 = vrot.slane %v8997_v56, 5 }
 0x674   :  { %v9409_v15 = vsel %vm2005_vm7, %v2250_v34, %v2251_v3  ;;  %v1969_v3 = vrot.slane %v9093_v21, 1  ;;  %v1970_v34 = vrot.slane %v9398_v47, 1 }
 0x676   :  { %6026 = vrot.lane.b32.xlu1 %v9105_v5, %s7598_s18  ;;  %v9421_v5 = vpack.i.bf16 %v9265_v26, %v9176_v32  ;;  %v9460_v12 = vsel %vm402_vm2, %v1969_v3, %v1970_v34  ;;  %v9476_v3 = vpack.i.bf16 %v9189_v58, %v9024_v45  ;;  %v13698_v34 = vrot.slane %v9003_v22, 1  ;;  %v13703_v45 = vld [vmem:[#allocation52_spill] sm:$0xff] }
 0x677   :  { %6076 = vrot.lane.b32.xlu0 %v9431_v57, %s7598_s18  ;;  %v9500_v29 = vpack.i.bf16 %v13703_v45, %v9355_v16  ;;  %v13713_v45 = vld [vmem:[#allocation46_spill] sm:$0xff] }
 0x678   :  { %13692 = vst [vmem:[#allocation79_spill] sm:$0xff] %v9421_v5  ;;  %v13696_v5 = vrot.slane %v8974_v8, 5  ;;  %v2033_v8 = vrot.slane %v9015_v30, 3  ;;  %v9483_v7 = vsel %vm402_vm2, %v13700_v50, %v13698_v34  ;;  %v13714_v24 = vrot.slane %v13713_v45, 2 }
 0x679   :  { %13701 = vst [vmem:[#allocation83_spill] sm:$0xff] %v9483_v7  ;;  %v9504_v14 = vpack.i.bf16 %v9483_v7, %v13704_v44 }
 0x67a   :  { %6031 = vrot.lane.b32.xlu1 %v9243_v31, %s7598_s18  ;;  %v9454_v9 = vsel %vm1882_vm6, %v13696_v5, 0.0  ;;  %v9472_v31 = vsel %vm2005_vm7, %v2036_v27, %v2037_v40  ;;  %v2100_v40 = vrot.slane %v9015_v30, 5  ;;  %v9541_v30 = vpack.i.bf16 %v9176_v32, %v9352_v33 }
 0x67b   :  { %13697 = vst [vmem:[#allocation82_spill] sm:$0xff] %v9454_v9  ;;  %v1967_v48 = vrot.slane %v9454_v9, 1  ;;  %6086 = vrot.lane.b32.xlu0 %v9127_v18, %s7598_s18  ;;  %v2034_v5 = vrot.slane %v9454_v9, 3  ;;  %v2101_v27 = vrot.slane %v9454_v9, 5  ;;  %v2134_v44 = vrot.slane %v9454_v9, 6 }
 0x67d   :  { %v9495_v50 = vsel %vm402_vm2, %v1966_v61, %v1967_v48  ;;  %v2035_v34 = vsel %vm2005_vm7, %v2033_v8, %v2034_v5  ;;  %v13708_v48 = vld [vmem:[#allocation23_spill] sm:$0xff]  ;;  %v9519_v5 = vsel %vm1882_vm6, %v2100_v40, %v2101_v27  ;;  %v13712_v40 = vld [vmem:[#allocation29_spill] sm:$0xff]  ;;  %v9564_v33 = vsel %vm1516_vm13, %v2133_v36, %v2134_v44 }
 0x67e   :  { %6036 = vrot.lane.b32.xlu1 %v9173_v55, %s7599_s19  ;;  %v1963_v55 = vrot.slane %v8997_v56, 1  ;;  %13702 = vst [vmem:[#allocation84_spill] sm:$0xff] %v9495_v50  ;;  %v1978_v61 = vrot.slane %v13708_v48, 2  ;;  %v1960_v27 = vrot.slane %v13712_v40, 1  ;;  %v2015_v44 = vrot.slane %v8884_v4, 3 }
 0x67f   :  { %6091 = vrot.lane.b32.xlu0 %v9476_v3, %s7602_s22 }
 0x680   :  { %v9516_v8 = vsel %vm402_vm2, %v1963_v55, %v1964_v17  ;;  %v13711_v17 = vld [vmem:[#allocation37_spill] sm:$0xff]  ;;  %v9550_v58 = vsel %vm448_vm3, %v1978_v61, %v13714_v24  ;;  %v9561_v32 = vsel %vm402_vm2, %v1960_v27, %v1961_v23  ;;  %v13720_v23 = vrot.slane %v9075_v11, 2 }
 0x681   :  { %13709 = vst [vmem:[#allocation86_spill] sm:$0xff] %v9516_v8  ;;  %v9528_v22 = vpack.i.bf16 %v9495_v50, %v9516_v8  ;;  %v1957_v55 = vrot.slane %v13711_v17, 1  ;;  %13715 = vst [vmem:[#allocation46_spill] sm:$0xff] %v9550_v58  ;;  %v2024_v26 = vrot.slane %v13711_v17, 3 }
 0x682   :  { %4096 = vrot.lane.b32.xlu1 %v9249_v25, %s7598_s18  ;;  %v9512_v25 = vsel %vm1882_vm6, %v13706_v35, %v13705_v10  ;;  %v2030_v10 = vrot.slane %v8997_v56, 3  ;;  %v1981_v35 = vrot.slane %v8884_v4, 2  ;;  %13718 = vst [vmem:[#allocation89_spill] sm:$0xff] %v9561_v32 }
 0x683   :  { %13707 = vst [vmem:[#allocation85_spill] sm:$0xff] %v9512_v25  ;;  %6101 = vrot.lane.b32.xlu0 %v9500_v29, %s7602_s22  ;;  %13710 = vst [vmem:[#allocation87_spill] sm:$0xff] %v9528_v22  ;;  %v9537_v9 = vpack.i.bf16 %v9512_v25, %v9030_v52  ;;  %v2012_v22 = vrot.slane %v13708_v48, 3  ;;  %v13717_v25 = vrot.slane %v9340_v51, 1  ;;  %v2079_v52 = vrot.slane %v13708_v48, 5 }
 0x684   :  { %v9545_v16 = vsel %vm2005_vm7, %v2030_v10, %v2031_v1  ;;  %v9575_v1 = vsel %vm1882_vm6, %v2097_v38, %v2098_v37  ;;  %v9581_v36 = vsel %vm448_vm3, %v1981_v35, %v13720_v23  ;;  %v2046_v37 = vrot.slane %v13708_v48, 4  ;;  %v13744_v48 = vld [vmem:[#allocation39_spill] sm:$0xff] }
 0x685   :  { %v9553_v39 = vpack.i.bf16 %v2035_v34, %v9545_v16  ;;  %v9558_v0 = vsel %vm402_vm2, %v1957_v55, %v13717_v25  ;;  %v2130_v25 = vrot.slane %v8997_v56, 6  ;;  %13721 = vst [vmem:[#allocation91_spill] sm:$0xff] %v9581_v36  ;;  %v9586_v61 = vpack.i.bf16 %v9519_v5, %v9575_v1 }
 0x686   :  { %6046 = vrot.lane.b32.xlu1 %v9504_v14, %s7600_s20  ;;  %v9572_v24 = vpack.i.bf16 %v9561_v32, %v9558_v0  ;;  %v2137_v55 = vrot.slane %v9398_v47, 6  ;;  %v9593_v38 = vpack.i.bf16 %v9581_v36, %v9550_v58  ;;  %v13723_v35 = vrot.slane %v9414_v19, 6 }
 0x687   :  { %13716 = vst [vmem:[#allocation88_spill] sm:$0xff] %v9553_v39  ;;  %6106 = vrot.lane.b32.xlu0 %v9537_v9, %s7596_s3  ;;  %13722 = vst [vmem:[#allocation92_spill] sm:$0xff] %v9586_v61  ;;  %v13724_v23 = vrot.slane %v13713_v45, 3  ;;  %v9609_v10 = vpack.i.bf16 %v9460_v12, %v9495_v50  ;;  %v2128_v47 = vrot.slane %v9426_v43, 6  ;;  %v13727_v39 = vrot.slane %v9093_v21, 5  ;;  %v13730_v50 = vld [vmem:[#allocation38_spill] sm:$0xff] }
 0x688   :  { %13719 = vst [vmem:[#allocation90_spill] sm:$0xff] %v9572_v24  ;;  %v2132_v27 = vsel %vm1516_vm13, %v2130_v25, %v13723_v35  ;;  %v13729_v35 = vld [vmem:[#allocation45_spill] sm:$0xff]  ;;  %v13748_v58 = vrot.slane %v9340_v51, 5 }
 0x689   :  { %v9602_v24 = vsel %vm2005_vm7, %v2012_v22, %v13724_v23  ;;  %v9605_v61 = vpack.i.bf16 %v9564_v33, %v2132_v27  ;;  %13726 = vst [vmem:[#allocation94_spill] sm:$0xff] %v9609_v10  ;;  %v9616_v25 = vsel %vm1882_vm6, %v13727_v39, %v2104_v28  ;;  %v2049_v22 = vrot.slane %v8884_v4, 4 }
 0x68a   :  { %6056 = vrot.lane.b32.xlu1 %v9541_v30, %s7600_s20  ;;  %13728 = vst [vmem:[#allocation95_spill] sm:$0xff] %v9616_v25  ;;  %v2027_v23 = vrot.slane %v13712_v40, 3  ;;  %v9626_v10 = vpack.i.bf16 %v9277_v6, %v13730_v50  ;;  %v13733_v39 = vrot.slane %v9340_v51, 3  ;;  %v13734_v50 = vrot.slane %v13713_v45, 4 }
 0x68b   :  { %13725 = vst [vmem:[#allocation93_spill] sm:$0xff] %v9605_v61  ;;  %6116 = vrot.lane.b32.xlu0 %v13729_v35, %s7596_s3  ;;  %v13731_v61 = vrot.slane %v9075_v11, 3  ;;  %v2127_v35 = vrot.slane %v13712_v40, 6 }
 0x68c   :  { %v9636_v28 = vsel %vm2005_vm7, %v2024_v26, %v13733_v39  ;;  %v9647_v6 = vsel %vm2039_vm9, %v2046_v37, %v13734_v50  ;;  %v13737_v39 = vrot.slane %v9093_v21, 6  ;;  %v9665_v50 = vpack.i.bf16 %v9472_v31, %v2035_v34  ;;  %v13742_v34 = vld [vmem:[#allocation48_spill] sm:$0xff]  ;;  %v13746_v21 = vld [vmem:[#allocation55_spill] sm:$0xff] }
 0x68d   :  { %v9631_v56 = vsel %vm2005_vm7, %v2015_v44, %v13731_v61  ;;  %13735 = vst [vmem:[#allocation97_spill] sm:$0xff] %v9647_v6  ;;  %v13736_v44 = vrot.slane %v9426_v43, 3  ;;  %v13740_v37 = vrot.slane %v9075_v11, 4  ;;  %v13743_v26 = vrot.slane %v13742_v34, 5 }
 0x68e   :  { %6066 = vrot.lane.b32.xlu1 %v9593_v38, %s7601_s21  ;;  %13732 = vst [vmem:[#allocation96_spill] sm:$0xff] %v9631_v56  ;;  %v9642_v36 = vpack.i.bf16 %v9631_v56, %v9602_v24  ;;  %v9659_v19 = vsel %vm1516_vm13, %v13737_v39, %v2137_v55  ;;  %13739 = vst [vmem:[#allocation99_spill] sm:$0xff] %v9665_v50  ;;  %v2094_v39 = vrot.slane %v13712_v40, 5  ;;  %v13745_v50 = vrot.slane %v13744_v48, 5 }
 0x68f   :  { %v9652_v61 = vsel %vm2005_vm7, %v2027_v23, %v13736_v44  ;;  %13738 = vst [vmem:[#allocation98_spill] sm:$0xff] %v9659_v19  ;;  %6121 = vrot.lane.b32.xlu0 %v9626_v10, %s7603_s24  ;;  %v9674_v55 = vsel %vm2039_vm9, %v2049_v22, %v13740_v37  ;;  %v2082_v23 = vrot.slane %v8884_v4, 5  ;;  %v2091_v44 = vrot.slane %v13711_v17, 5 }
 0x690   :  { %13741 = vst [vmem:[#allocation100_spill] sm:$0xff] %v9674_v55  ;;  %v9682_v56 = vsel %vm1882_vm6, %v13743_v26, 0.0  ;;  %v9687_v42 = vsel %vm1882_vm6, %v13745_v50, 0.0  ;;  %v9691_v22 = vpack.i.bf16 %v13746_v21, %v9358_v53  ;;  %v9695_v37 = vpack.i.bf16 %v9674_v55, %v9647_v6 }
 0x691   :  { %v9700_v34 = vsel %vm1882_vm6, %v2091_v44, %v13748_v58  ;;  %v13749_v26 = vrot.slane %v9426_v43, 5  ;;  %v2124_v50 = vrot.slane %v13711_v17, 6  ;;  %v13750_v53 = vrot.slane %v13713_v45, 5 }
 0x692   :  { %6081 = vrot.lane.b32.xlu1 %v9642_v36, %s7598_s18  ;;  %13747 = vst [vmem:[#allocation48_spill] sm:$0xff] %v9691_v22  ;;  %v13751_v45 = vrot.slane %v9075_v11, 5  ;;  %v9736_v58 = vsel %vm1516_vm13, %v2127_v35, %v2128_v47  ;;  %v9742_v55 = vpack.i.bf16 %v9616_v25, %v9519_v5  ;;  %v2147_v5 = vrot.slane %v9687_v42, 1 }
 0x693   :  { %v9705_v48 = vsel %vm1882_vm6, %v2094_v39, %v13749_v26  ;;  %v9712_v21 = vsel %vm1882_vm6, %v2079_v52, %v13750_v53  ;;  %6131 = vrot.lane.b32.xlu0 %v9691_v22, %s7603_s24  ;;  %v2115_v53 = vrot.slane %v8884_v4, 6  ;;  %v13753_v39 = vrot.slane %v9340_v51, 6 }
 0x694   :  { %v9727_v52 = vsel %vm1882_vm6, %v2082_v23, %v13751_v45  ;;  %13754 = vst [vmem:[#allocation101_spill] sm:$0xff] %v9742_v55  ;;  %v9746_v23 = vpack.i.bf16 %v9516_v8, %v9561_v32  ;;  %v9749_v45 = vpack.i.bf16 %v2132_v27, %v9736_v58  ;;  %v2177_v4 = vrot.slane %v9687_v42, 6 }
 0x695   :  { %13752 = vst [vmem:[#allocation39_spill] sm:$0xff] %v9727_v52  ;;  %v9733_v26 = vsel %vm1516_vm13, %v2124_v50, %v13753_v39  ;;  %v2187_v50 = vrot.slane %v9682_v56, 1  ;;  %v13757_v39 = vld [vmem:[#allocation44_spill] sm:$0xff]  ;;  %v9756_v35 = vpack.i.bf16 %v9727_v52, %v9712_v21  ;;  %v2186_v27 = vrot.slane %v9234_v63, 1 }
 0x696   :  { %6096 = vrot.lane.b32.xlu1 %v9695_v37, %s7602_s22  ;;  %13755 = vst [vmem:[#allocation102_spill] sm:$0xff] %v9746_v23  ;;  %13756 = vst [vmem:[#allocation103_spill] sm:$0xff] %v9749_v45  ;;  %v6135_v47 = vpack.i.bf16 %v9163_v49, %v13757_v39  ;;  %v9768_v49 = vpack.i.bf16 %v9545_v16, %v9652_v61  ;;  %v2146_v45 = vrot.slane %v13757_v39, 1  ;;  %v2232_v16 = vrot.slane %v9682_v56, 6 }
 0x697   :  { %v9784_v23 = vsel %vm402_vm2, %v2186_v27, %v2187_v50  ;;  %v2158_v7 = vrot.slane %v13757_v39, 3  ;;  %v2213_v8 = vrot.slane %v9234_v63, 3 }
 0x698   :  { %6136 = vrot.lane.b32.xlu0 %v6135_v47, %s7594_s11  ;;  %13759 = vst [vmem:[#allocation104_spill] sm:$0xff] %v9768_v49  ;;  %v2176_v47 = vrot.slane %v13757_v39, 6  ;;  %v9801_v50 = vsel %vm402_vm2, %v2146_v45, %v2147_v5  ;;  %v9808_v49 = vpop.permute.xlu0 %5856  ;;  %v2214_v5 = vrot.slane %v9682_v56, 3 }
 0x699   :  { %13765 = vst [vmem:[#allocation109_spill] sm:$0xff] %v9808_v49 }
 0x69a   :  { %6111 = vrot.lane.b32.xlu1 %v9756_v35, %s7596_s3  ;;  %v9804_v27 = vsel %vm1516_vm13, %v2176_v47, %v2177_v4  ;;  %v2171_v47 = vrot.slane %v9687_v42, 5 }
 0x69b   :  { %13764 = vst [vmem:[#allocation108_spill] sm:$0xff] %v9804_v27 }
 0x69c   :  { %v9758_v44 = vpop.permute.xlu1 %5861  ;;  %6146 = vrot.lane.b32.xlu0 %v9312_v59, %s7589_s29 }
 0x69d   :  { %13758 = vst [vmem:[#allocation44_spill] sm:$0xff] %v9758_v44  ;;  %v13760_v44 = vrot.slane %v9075_v11, 6  ;;  %v2159_v11 = vrot.slane %v9687_v42, 3 }
 0x69f   :  { %v9775_v32 = vsel %vm1516_vm13, %v2115_v53, %v13760_v44  ;;  %v9798_v53 = vpack.i.bf16 %v9575_v1, %v9705_v48  ;;  %v2231_v1 = vrot.slane %v9234_v63, 6  ;;  %v9841_v41 = vsel %vm2005_vm7, %v2158_v7, %v2159_v11 }
 0x6a0   :  { %13761 = vst [vmem:[#allocation105_spill] sm:$0xff] %v9775_v32  ;;  %v9781_v55 = vpack.i.bf16 %v9775_v32, %v9262_v46  ;;  %v9794_v44 = vpop.permute.xlu1 %5871  ;;  %6156 = vrot.lane.b32.xlu0 %v9344_v2, %s7604_s5  ;;  %v9836_v49 = vpop.permute.xlu0 %5866  ;;  %v2225_v11 = vrot.slane %v9234_v63, 5 }
 0x6a1   :  { %13762 = vst [vmem:[#allocation106_spill] sm:$0xff] %v9794_v44  ;;  %13763 = vst [vmem:[#allocation107_spill] sm:$0xff] %v9798_v53  ;;  %v9813_v44 = vpack.i.bf16 %v9659_v19, %v9564_v33  ;;  %v9824_v4 = vsel %vm1516_vm13, %v2231_v1, %v2232_v16  ;;  %v9828_v33 = vpack.i.bf16 %v9801_v50, %v9460_v12  ;;  %v2170_v16 = vrot.slane %v13757_v39, 5 }
 0x6a2   :  { %6126 = vrot.lane.b32.xlu1 %v9781_v55, %s7603_s24  ;;  %13767 = vst [vmem:[#allocation111_spill] sm:$0xff] %v9824_v4  ;;  %v9833_v45 = vpack.i.bf16 %v9824_v4, %v9804_v27  ;;  %13770 = vst [vmem:[#allocation114_spill] sm:$0xff] %v9836_v49  ;;  %v2226_v1 = vrot.slane %v9682_v56, 5  ;;  %v9850_v4 = vsel %vm2005_vm7, %v2213_v8, %v2214_v5 }
 0x6a3   :  { %13766 = vst [vmem:[#allocation110_spill] sm:$0xff] %v9813_v44  ;;  %13768 = vst [vmem:[#allocation112_spill] sm:$0xff] %v9828_v33  ;;  %v9854_v49 = vpack.i.bf16 %v9850_v4, %v9841_v41 }
 0x6a4   :  { %13769 = vst [vmem:[#allocation113_spill] sm:$0xff] %v9833_v45  ;;  %v9838_v2 = vpop.permute.xlu1 %5881  ;;  %6166 = vrot.lane.b32.xlu0 %v9371_v54, %s7604_s5  ;;  %13772 = vst [vmem:[#allocation116_spill] sm:$0xff] %v9850_v4  ;;  %v9864_v45 = vsel %vm1882_vm6, %v2170_v16, %v2171_v47  ;;  %v9871_v8 = vsel %vm1882_vm6, %v2225_v11, %v2226_v1  ;;  %v9883_v47 = vpack.i.bf16 %v9784_v23, %v9801_v50 }
 0x6a5   :  { %13771 = vst [vmem:[#allocation115_spill] sm:$0xff] %v9838_v2  ;;  %13773 = vst [vmem:[#allocation117_spill] sm:$0xff] %v9854_v49  ;;  %v9859_v2 = vpop.permute.xlu0 %5876  ;;  %v9875_v5 = vpack.i.bf16 %v9871_v8, %v9864_v45  ;;  %v9917_v16 = vpack.i.bf16 %v9841_v41, %v9472_v31 }
 0x6a6   :  { %6141 = vrot.lane.b32.xlu1 %v9504_v14, %s7589_s29  ;;  %13774 = vst [vmem:[#allocation118_spill] sm:$0xff] %v9859_v2  ;;  %13776 = vst [vmem:[#allocation120_spill] sm:$0xff] %v9864_v45  ;;  %v13878_v45 = vld [vmem:[#allocation81_spill] sm:$0xff] }
 0x6a7   :  { %13777 = vst [vmem:[#allocation121_spill] sm:$0xff] %v9871_v8  ;;  %13778 = vst [vmem:[#allocation122_spill] sm:$0xff] %v9875_v5 }
 0x6a8   :  { %v9861_v33 = vpop.permute.xlu1 %5891  ;;  %6176 = vrot.lane.b32.xlu0 %v9642_v36, %s7599_s19  ;;  %13781 = vst [vmem:[#allocation125_spill] sm:$0xff] %v9883_v47  ;;  %13788 = vst [vmem:[#allocation132_spill] sm:$0xff] %v9917_v16 }
 0x6a9   :  { %13775 = vst [vmem:[#allocation119_spill] sm:$0xff] %v9861_v33  ;;  %v9877_v7 = vpop.permute.xlu0 %5886  ;;  %v13810_v33 = vld [vmem:[#allocation52_spill] sm:$0xff] }
 0x6aa   :  { %6151 = vrot.lane.b32.xlu1 %v9541_v30, %s7589_s29  ;;  %13779 = vst [vmem:[#allocation123_spill] sm:$0xff] %v9877_v7  ;;  %v6280_v47 = vpack.i.bf16 %v13811_v60, %v13810_v33 }
 0x6ac   :  { %v9879_v2 = vpop.permute.xlu1 %5901  ;;  %6186 = vrot.lane.b32.xlu0 %v9476_v3, %s7605_s6 }
 0x6ad   :  { %13780 = vst [vmem:[#allocation124_spill] sm:$0xff] %v9879_v2  ;;  %v9891_v1 = vpop.permute.xlu0 %5896 }
 0x6ae   :  { %6161 = vrot.lane.b32.xlu1 %v9593_v38, %s7604_s5  ;;  %13782 = vst [vmem:[#allocation126_spill] sm:$0xff] %v9891_v1  ;;  %v13804_v1 = vld [vmem:[#allocation50_spill] sm:$0xff] }
 0x6b0   :  { %v9893_v11 = vpop.permute.xlu1 %5906  ;;  %6196 = vrot.lane.b32.xlu0 %v9500_v29, %s7605_s6 }
 0x6b1   :  { %13783 = vst [vmem:[#allocation127_spill] sm:$0xff] %v9893_v11  ;;  %v9899_v7 = vpop.permute.xlu0 %5911 }
 0x6b2   :  { %6171 = vrot.lane.b32.xlu1 %v9431_v57, %s7599_s19  ;;  %13784 = vst [vmem:[#allocation128_spill] sm:$0xff] %v9899_v7 }
 0x6b4   :  { %v9901_v8 = vpop.permute.xlu1 %5916  ;;  %6206 = vrot.lane.b32.xlu0 %v9756_v35, %s7597_s4 }
 0x6b5   :  { %13785 = vst [vmem:[#allocation129_spill] sm:$0xff] %v9901_v8  ;;  %v9907_v57 = vpop.permute.xlu0 %5926 }
 0x6b6   :  { %6181 = vrot.lane.b32.xlu1 %v9127_v18, %s7599_s19  ;;  %13786 = vst [vmem:[#allocation130_spill] sm:$0xff] %v9907_v57 }
 0x6b8   :  { %v9909_v3 = vpop.permute.xlu1 %5921  ;;  %6216 = vrot.lane.b32.xlu0 %v9626_v10, %s7606_s7  ;;  %v13793_v10 = vld [vmem:[#allocation46_spill] sm:$0xff] }
 0x6b9   :  { %13787 = vst [vmem:[#allocation131_spill] sm:$0xff] %v9909_v3  ;;  %v9919_v4 = vpop.permute.xlu0 %5936  ;;  %v13791_v3 = vld [vmem:[#allocation45_spill] sm:$0xff]  ;;  %v6230_v7 = vpack.i.bf16 %v13793_v10, %v9234_v63 }
 0x6ba   :  { %6191 = vrot.lane.b32.xlu1 %v9695_v37, %s7605_s6  ;;  %13789 = vst [vmem:[#allocation133_spill] sm:$0xff] %v9919_v4 }
 0x6bc   :  { %v9921_v8 = vpop.permute.xlu1 %5931  ;;  %6226 = vrot.lane.b32.xlu0 %v9691_v22, %s7606_s7 }
 0x6bd   :  { %13790 = vst [vmem:[#allocation134_spill] sm:$0xff] %v9921_v8  ;;  %v9927_v57 = vpop.permute.xlu0 %5951 }
 0x6be   :  { %6201 = vrot.lane.b32.xlu1 %v9537_v9, %s7597_s4  ;;  %13792 = vst [vmem:[#allocation45_spill] sm:$0xff] %v9927_v57  ;;  %v13799_v57 = vld [vmem:[#allocation60_spill] sm:$0xff] }
 0x6c0   :  { %v9931_v9 = vpop.permute.xlu1 %5941  ;;  %6231 = vrot.lane.b32.xlu0 %v6230_v7, %s7595_s2 }
 0x6c1   :  { %13794 = vst [vmem:[#allocation135_spill] sm:$0xff] %v9931_v9  ;;  %v9940_v4 = vpop.permute.xlu0 %5966 }
 0x6c2   :  { %6211 = vrot.lane.b32.xlu1 %v13791_v3, %s7597_s4  ;;  %13795 = vst [vmem:[#allocation136_spill] sm:$0xff] %v9940_v4  ;;  %v13801_v4 = vld [vmem:[#allocation96_spill] sm:$0xff] }
 0x6c4   :  { %v9942_v11 = vpop.permute.xlu1 %5946  ;;  %6241 = vrot.lane.b32.xlu0 %v9312_v59, %s7607_s25 }
 0x6c5   :  { %13796 = vst [vmem:[#allocation137_spill] sm:$0xff] %v9942_v11  ;;  %v9948_v16 = vpop.permute.xlu0 %5976  ;;  %v13802_v11 = vld [vmem:[#allocation41_spill] sm:$0xff] }
 0x6c6   :  { %6221 = vrot.lane.b32.xlu1 %v9781_v55, %s7606_s7  ;;  %13797 = vst [vmem:[#allocation138_spill] sm:$0xff] %v9948_v16  ;;  %v9960_v10 = vpack.i.bf16 %v13802_v11, %v13801_v4  ;;  %v13806_v16 = vld [vmem:[#allocation51_spill] sm:$0xff]  ;;  %v13808_v11 = vld [vmem:[#allocation65_spill] sm:$0xff]  ;;  %v13814_v4 = vld [vmem:[#allocation70_spill] sm:$0xff] }
 0x6c7   :  { %v6270_v2 = vpack.i.bf16 %v9647_v6, %v13806_v16 }
 0x6c8   :  { %v9950_v7 = vpop.permute.xlu1 %5956  ;;  %6251 = vrot.lane.b32.xlu0 %v13799_v57, %s7607_s25 }
 0x6c9   :  { %13798 = vst [vmem:[#allocation139_spill] sm:$0xff] %v9950_v7  ;;  %v9956_v8 = vpop.permute.xlu0 %5986 }
 0x6ca   :  { %6236 = vrot.lane.b32.xlu1 %v9504_v14, %s7607_s25  ;;  %13800 = vst [vmem:[#allocation60_spill] sm:$0xff] %v9956_v8  ;;  %v6255_v14 = vpack.i.bf16 %v9602_v24, %v13804_v1 }
 0x6cc   :  { %v9962_v9 = vpop.permute.xlu1 %5961  ;;  %6261 = vrot.lane.b32.xlu0 %v9960_v10, %s7600_s20 }
 0x6cd   :  { %13803 = vst [vmem:[#allocation41_spill] sm:$0xff] %v9962_v9  ;;  %v9969_v7 = vpop.permute.xlu0 %5996 }
 0x6ce   :  { %6246 = vrot.lane.b32.xlu1 %v9541_v30, %s7607_s25  ;;  %13805 = vst [vmem:[#allocation50_spill] sm:$0xff] %v9969_v7 }
 0x6d0   :  { %v9973_v8 = vpop.permute.xlu1 %5971  ;;  %6271 = vrot.lane.b32.xlu0 %v6270_v2, %s7601_s21  ;;  %v13816_v2 = vld [vmem:[#allocation42_spill] sm:$0xff] }
 0x6d1   :  { %13807 = vst [vmem:[#allocation51_spill] sm:$0xff] %v9973_v8  ;;  %v9978_v9 = vpop.permute.xlu0 %6006  ;;  %v6290_v6 = vpack.i.bf16 %v13816_v2, %v9727_v52  ;;  %v13823_v2 = vld [vmem:[#allocation43_spill] sm:$0xff] }
 0x6d2   :  { %6256 = vrot.lane.b32.xlu1 %v6255_v14, %s7600_s20  ;;  %13809 = vst [vmem:[#allocation65_spill] sm:$0xff] %v9978_v9  ;;  %v13813_v14 = vld [vmem:[#allocation100_spill] sm:$0xff]  ;;  %v13818_v9 = vld [vmem:[#allocation85_spill] sm:$0xff]  ;;  %v13832_v52 = vld [vmem:[#allocation91_spill] sm:$0xff] }
 0x6d3   :  { %v6275_v7 = vpack.i.bf16 %v13814_v4, %v13813_v14  ;;  %v6285_v44 = vpack.i.bf16 %v9712_v21, %v13818_v9  ;;  %v13826_v21 = vld [vmem:[#allocation55_spill] sm:$0xff] }
 0x6d4   :  { %v9982_v5 = vpop.permute.xlu1 %5981  ;;  %6281 = vrot.lane.b32.xlu0 %v6280_v47, %s7601_s21  ;;  %v13821_v47 = vld [vmem:[#allocation59_spill] sm:$0xff] }
 0x6d5   :  { %13812 = vst [vmem:[#allocation140_spill] sm:$0xff] %v9982_v5  ;;  %v9988_v8 = vpop.permute.xlu0 %6021 }
 0x6d6   :  { %6266 = vrot.lane.b32.xlu1 %v13808_v11, %s7600_s20  ;;  %13815 = vst [vmem:[#allocation141_spill] sm:$0xff] %v9988_v8  ;;  %v13824_v8 = vpack.i.bf16 %v9324_v20, %v13823_v2 }
 0x6d8   :  { %v9992_v49 = vpop.permute.xlu1 %5991  ;;  %6291 = vrot.lane.b32.xlu0 %v6290_v6, %s7598_s18  ;;  %v13827_v6 = vld [vmem:[#allocation66_spill] sm:$0xff] }
 0x6d9   :  { %13817 = vst [vmem:[#allocation42_spill] sm:$0xff] %v9992_v49  ;;  %v9998_v33 = vpop.permute.xlu0 %6041  ;;  %v6310_v5 = vpack.i.bf16 %v13827_v6, %v13826_v21 }
 0x6da   :  { %6276 = vrot.lane.b32.xlu1 %v6275_v7, %s7601_s21  ;;  %13819 = vst [vmem:[#allocation85_spill] sm:$0xff] %v9998_v33  ;;  %v13822_v7 = vpack.i.bf16 %v9262_v46, %v13821_v47  ;;  %v13829_v33 = vld [vmem:[#allocation71_spill] sm:$0xff] }
 0x6dc   :  { %v10000_v4 = vpop.permute.xlu1 %6001  ;;  %6301 = vrot.lane.b32.xlu0 %v13822_v7, %s7602_s22  ;;  %v13831_v7 = vld [vmem:[#allocation56_spill] sm:$0xff] }
 0x6dd   :  { %13820 = vst [vmem:[#allocation142_spill] sm:$0xff] %v10000_v4  ;;  %v10010_v49 = vpop.permute.xlu0 %6051  ;;  %v6305_v4 = vpack.i.bf16 %v13829_v33, %v9775_v32  ;;  %v6315_v2 = vpack.i.bf16 %v13832_v52, %v13831_v7 }
 0x6de   :  { %6286 = vrot.lane.b32.xlu1 %v6285_v44, %s7598_s18  ;;  %13825 = vst [vmem:[#allocation59_spill] sm:$0xff] %v10010_v49 }
 0x6e0   :  { %v10014_v44 = vpop.permute.xlu1 %6011  ;;  %6311 = vrot.lane.b32.xlu0 %v6310_v5, %s7602_s22  ;;  %v13837_v5 = vld [vmem:[#allocation27_spill] sm:$0xff] }
 0x6e1   :  { %13828 = vst [vmem:[#allocation43_spill] sm:$0xff] %v10014_v44  ;;  %v10020_v46 = vpop.permute.xlu0 %6061  ;;  %v13854_v44 = vld [vmem:[#allocation69_spill] sm:$0xff] }
 0x6e2   :  { %6296 = vrot.lane.b32.xlu1 %v13824_v8, %s7598_s18  ;;  %13830 = vst [vmem:[#allocation55_spill] sm:$0xff] %v10020_v46  ;;  %v2189_v46 = vrot.slane %v13837_v5, 2 }
 0x6e4   :  { %v10024_v8 = vpop.permute.xlu1 %6016  ;;  %6316 = vrot.lane.b32.xlu0 %v6315_v2, %s7596_s3 }
 0x6e5   :  { %13833 = vst [vmem:[#allocation71_spill] sm:$0xff] %v10024_v8  ;;  %v10029_v21 = vpop.permute.xlu0 %6071 }
 0x6e6   :  { %6306 = vrot.lane.b32.xlu1 %v6305_v4, %s7602_s22  ;;  %13834 = vst [vmem:[#allocation143_spill] sm:$0xff] %v10029_v21  ;;  %v13836_v4 = vld [vmem:[#allocation53_spill] sm:$0xff]  ;;  %v13843_v21 = vld [vmem:[#allocation68_spill] sm:$0xff] }
 0x6e7   :  { %v2190_v33 = vrot.slane %v13836_v4, 2 }
 0x6e8   :  { %v10031_v49 = vpop.permute.xlu1 %6026  ;;  %6326 = vrot.lane.b32.xlu0 %v9541_v30, %s7603_s24 }
 0x6e9   :  { %13835 = vst [vmem:[#allocation144_spill] sm:$0xff] %v10031_v49  ;;  %v10039_v8 = vpop.permute.xlu0 %6076 }
 0x6ea   :  { %6321 = vrot.lane.b32.xlu1 %v9312_v59, %s7603_s24  ;;  %13838 = vst [vmem:[#allocation53_spill] sm:$0xff] %v10039_v8  ;;  %v10048_v59 = vsel %vm448_vm3, %v2189_v46, %v2190_v33 }
 0x6eb   :  { %13840 = vst [vmem:[#allocation145_spill] sm:$0xff] %v10048_v59  ;;  %v10056_v49 = vpack.i.bf16 %v10048_v59, %v13843_v21 }
 0x6ec   :  { %v10041_v2 = vpop.permute.xlu1 %6031  ;;  %6341 = vrot.lane.b32.xlu0 %v9371_v54, %s7594_s11 }
 0x6ed   :  { %13839 = vst [vmem:[#allocation27_spill] sm:$0xff] %v10041_v2  ;;  %v10050_v30 = vpop.permute.xlu0 %6086 }
 0x6ee   :  { %6331 = vrot.lane.b32.xlu1 %v13799_v57, %s7603_s24  ;;  %13841 = vst [vmem:[#allocation146_spill] sm:$0xff] %v10050_v30  ;;  %v13848_v30 = vld [vmem:[#allocation72_spill] sm:$0xff] }
 0x6f0   :  { %v10052_v57 = vpop.permute.xlu1 %6036  ;;  %6356 = vrot.lane.b32.xlu0 %v9127_v18, %s7589_s29 }
 0x6f1   :  { %13842 = vst [vmem:[#allocation147_spill] sm:$0xff] %v10052_v57  ;;  %v10062_v2 = vpop.permute.xlu0 %6091  ;;  %v2217_v57 = vrot.slane %v13836_v4, 4 }
 0x6f2   :  { %6336 = vrot.lane.b32.xlu1 %v9593_v38, %s7594_s11  ;;  %13844 = vst [vmem:[#allocation68_spill] sm:$0xff] %v10062_v2 }
 0x6f4   :  { %v10064_v38 = vpop.permute.xlu1 %4096  ;;  %6371 = vrot.lane.b32.xlu0 %v9500_v29, %s7604_s5 }
 0x6f5   :  { %13845 = vst [vmem:[#allocation148_spill] sm:$0xff] %v10064_v38  ;;  %v10070_v46 = vpop.permute.xlu0 %6101  ;;  %v2216_v38 = vrot.slane %v13837_v5, 4 }
 0x6f6   :  { %6346 = vrot.lane.b32.xlu1 %v10056_v49, %s7594_s11  ;;  %13846 = vst [vmem:[#allocation149_spill] sm:$0xff] %v10070_v46 }
 0x6f8   :  { %v10072_v33 = vpop.permute.xlu1 %6046  ;;  %6386 = vrot.lane.b32.xlu0 %v13791_v3, %s7599_s19 }
 0x6f9   :  { %13847 = vst [vmem:[#allocation150_spill] sm:$0xff] %v10072_v33  ;;  %v10080_v2 = vpop.permute.xlu0 %6106  ;;  %v13853_v33 = vld [vmem:[#allocation62_spill] sm:$0xff] }
 0x6fa   :  { %6351 = vrot.lane.b32.xlu1 %v9642_v36, %s7589_s29  ;;  %13849 = vst [vmem:[#allocation72_spill] sm:$0xff] %v10080_v2  ;;  %v10089_v36 = vsel %vm2039_vm9, %v2216_v38, %v2217_v57  ;;  %v10095_v32 = vpack.i.bf16 %v13854_v44, %v13853_v33  ;;  %v13858_v38 = vld [vmem:[#allocation74_spill] sm:$0xff]  ;;  %v13862_v44 = vld [vmem:[#allocation77_spill] sm:$0xff] }
 0x6fb   :  { %13851 = vst [vmem:[#allocation152_spill] sm:$0xff] %v10089_v36 }
 0x6fc   :  { %v10082_v8 = vpop.permute.xlu1 %6056  ;;  %6401 = vrot.lane.b32.xlu0 %v9691_v22, %s7605_s6 }
 0x6fd   :  { %13850 = vst [vmem:[#allocation151_spill] sm:$0xff] %v10082_v8  ;;  %v10091_v46 = vpop.permute.xlu0 %6116  ;;  %v10101_v8 = vpack.i.bf16 %v10089_v36, %v13811_v60 }
 0x6fe   :  { %6361 = vrot.lane.b32.xlu1 %v13848_v30, %s7589_s29  ;;  %13852 = vst [vmem:[#allocation153_spill] sm:$0xff] %v10091_v46  ;;  %v13860_v46 = vld [vmem:[#allocation49_spill] sm:$0xff] }
 0x700   :  { %v10097_v14 = vpop.permute.xlu1 %6066  ;;  %6411 = vrot.lane.b32.xlu0 %v10095_v32, %s7606_s7 }
 0x701   :  { %13855 = vst [vmem:[#allocation62_spill] sm:$0xff] %v10097_v14  ;;  %v6430_v14 = vpack.i.bf16 %v13843_v21, %v13860_v46 }
 0x702   :  { %6366 = vrot.lane.b32.xlu1 %v9695_v37, %s7604_s5  ;;  %v10107_v37 = vpop.permute.xlu0 %6121 }
 0x703   :  { %13856 = vst [vmem:[#allocation154_spill] sm:$0xff] %v10107_v37  ;;  %v2228_v37 = vrot.slane %v13837_v5, 6  ;;  %v13869_v5 = vpack.i.bf16 %v9409_v15, %v9376_v13 }
 0x704   :  { %v10109_v57 = vpop.permute.xlu1 %6081  ;;  %6421 = vrot.lane.b32.xlu0 %v13858_v38, %s7606_s7 }
 0x705   :  { %13857 = vst [vmem:[#allocation155_spill] sm:$0xff] %v10109_v57  ;;  %v2229_v57 = vrot.slane %v13836_v4, 6 }
 0x706   :  { %6376 = vrot.lane.b32.xlu1 %v10101_v8, %s7604_s5  ;;  %v10115_v33 = vpop.permute.xlu0 %6131 }
 0x707   :  { %13859 = vst [vmem:[#allocation74_spill] sm:$0xff] %v10115_v33  ;;  %v10135_v33 = vsel %vm1516_vm13, %v2228_v37, %v2229_v57  ;;  %v13872_v57 = vld [vmem:[#allocation64_spill] sm:$0xff] }
 0x708   :  { %v10119_v2 = vpop.permute.xlu1 %6096  ;;  %6431 = vrot.lane.b32.xlu0 %v6430_v14, %s7595_s2  ;;  %13865 = vst [vmem:[#allocation158_spill] sm:$0xff] %v10135_v33  ;;  %v10143_v4 = vpack.i.bf16 %v10135_v33, %v13827_v6  ;;  %v13877_v33 = vld [vmem:[#allocation67_spill] sm:$0xff] }
 0x709   :  { %13861 = vst [vmem:[#allocation156_spill] sm:$0xff] %v10119_v2  ;;  %v6425_v62 = vpack.i.bf16 %v13877_v33, %v13832_v52 }
 0x70a   :  { %6381 = vrot.lane.b32.xlu1 %v9756_v35, %s7599_s19  ;;  %v10126_v36 = vpop.permute.xlu0 %6136  ;;  %13868 = vst [vmem:[#allocation161_spill] sm:$0xff] %v10143_v4 }
 0x70b   :  { %13863 = vst [vmem:[#allocation77_spill] sm:$0xff] %v10126_v36  ;;  %v13874_v36 = vld [vmem:[#allocation79_spill] sm:$0xff] }
 0x70c   :  { %v10128_v7 = vpop.permute.xlu1 %6111  ;;  %6441 = vrot.lane.b32.xlu0 %v9960_v10, %s7607_s25 }
 0x70d   :  { %13864 = vst [vmem:[#allocation157_spill] sm:$0xff] %v10128_v7  ;;  %v2245_v7 = vrot.slane %v13872_v57, 2 }
 0x70e   :  { %6391 = vrot.lane.b32.xlu1 %v13862_v44, %s7599_s19  ;;  %v10137_v14 = vpop.permute.xlu0 %6146 }
 0x70f   :  { %13866 = vst [vmem:[#allocation159_spill] sm:$0xff] %v10137_v14  ;;  %v13873_v14 = vld [vmem:[#allocation28_spill] sm:$0xff] }
 0x710   :  { %6451 = vrot.lane.b32.xlu0 %v13869_v5, %s7607_s25 }
 0x712   :  { %6396 = vrot.lane.b32.xlu1 %v9781_v55, %s7605_s6  ;;  %v10151_v10 = vpop.permute.xlu0 %6156 }
 0x713   :  { %13870 = vst [vmem:[#allocation162_spill] sm:$0xff] %v10151_v10  ;;  %v2269_v10 = vrot.slane %v13872_v57, 6 }
 0x714   :  { %v10139_v2 = vpop.permute.xlu1 %6126  ;;  %6461 = vrot.lane.b32.xlu0 %v13791_v3, %s7600_s20 }
 0x715   :  { %13867 = vst [vmem:[#allocation160_spill] sm:$0xff] %v10139_v2  ;;  %v2244_v2 = vrot.slane %v13873_v14, 2 }
 0x716   :  { %6406 = vrot.lane.b32.xlu1 %v10143_v4, %s7605_s6  ;;  %v10161_v46 = vpop.permute.xlu0 %6166 }
 0x717   :  { %13875 = vst [vmem:[#allocation64_spill] sm:$0xff] %v10161_v46  ;;  %v10170_v6 = vsel %vm448_vm3, %v2244_v2, %v2245_v7  ;;  %v13882_v2 = vld [vmem:[#allocation38_spill] sm:$0xff] }
 0x718   :  { %v10153_v37 = vpop.permute.xlu1 %6141  ;;  %6471 = vrot.lane.b32.xlu0 %v13878_v45, %s7600_s20 }
 0x719   :  { %13871 = vst [vmem:[#allocation163_spill] sm:$0xff] %v10153_v37  ;;  %v2268_v37 = vrot.slane %v13873_v14, 6 }
 0x71a   :  { %6416 = vrot.lane.b32.xlu1 %v13874_v36, %s7606_s7  ;;  %v10175_v53 = vpop.permute.xlu0 %6176 }
 0x71b   :  { %13879 = vst [vmem:[#allocation79_spill] sm:$0xff] %v10175_v53  ;;  %v10182_v52 = vsel %vm1516_vm13, %v2268_v37, %v2269_v10 }
 0x71c   :  { %v10163_v5 = vpop.permute.xlu1 %6151  ;;  %6481 = vrot.lane.b32.xlu0 %v9691_v22, %s7601_s21 }
 0x71d   :  { %13876 = vst [vmem:[#allocation28_spill] sm:$0xff] %v10163_v5  ;;  %v6435_v5 = vpack.i.bf16 %v10170_v6, %v10048_v59 }
 0x71e   :  { %6426 = vrot.lane.b32.xlu1 %v6425_v62, %s7595_s2  ;;  %v10187_v7 = vpop.permute.xlu0 %6186  ;;  %v10191_v62 = vpack.i.bf16 %v13882_v2, %v10182_v52 }
 0x71f   :  { %13881 = vst [vmem:[#allocation164_spill] sm:$0xff] %v10187_v7 }
 0x720   :  { %v10177_v46 = vpop.permute.xlu1 %6161  ;;  %13883 = vst [vmem:[#allocation38_spill] sm:$0xff] %v10191_v62  ;;  %6491 = vrot.lane.b32.xlu0 %v10191_v62, %s7601_s21 }
 0x721   :  { %13880 = vst [vmem:[#allocation81_spill] sm:$0xff] %v10177_v46 }
 0x722   :  { %6436 = vrot.lane.b32.xlu1 %v6435_v5, %s7595_s2  ;;  %v10199_v10 = vpop.permute.xlu0 %6196 }
 0x723   :  { %13885 = vst [vmem:[#allocation166_spill] sm:$0xff] %v10199_v10 }
 0x724   :  { %v10193_v53 = vpop.permute.xlu1 %6171  ;;  %6501 = vrot.lane.b32.xlu0 %v13874_v36, %s7602_s22 }
 0x725   :  { %13884 = vst [vmem:[#allocation165_spill] sm:$0xff] %v10193_v53 }
 0x726   :  { %6446 = vrot.lane.b32.xlu1 %v13808_v11, %s7607_s25  ;;  %v10207_v5 = vpop.permute.xlu0 %6206 }
 0x727   :  { %13887 = vst [vmem:[#allocation168_spill] sm:$0xff] %v10207_v5 }
 0x728   :  { %v10201_v37 = vpop.permute.xlu1 %6181  ;;  %6511 = vrot.lane.b32.xlu0 %v10056_v49, %s7596_s3 }
 0x729   :  { %13886 = vst [vmem:[#allocation167_spill] sm:$0xff] %v10201_v37 }
 0x72a   :  { %6456 = vrot.lane.b32.xlu1 %v9756_v35, %s7600_s20  ;;  %v10215_v11 = vpop.permute.xlu0 %6216 }
 0x72b   :  { %13889 = vst [vmem:[#allocation170_spill] sm:$0xff] %v10215_v11 }
 0x72c   :  { %v10209_v7 = vpop.permute.xlu1 %6191  ;;  %6521 = vrot.lane.b32.xlu0 %v13848_v30, %s7603_s24 }
 0x72d   :  { %13888 = vst [vmem:[#allocation169_spill] sm:$0xff] %v10209_v7 }
 0x72e   :  { %6466 = vrot.lane.b32.xlu1 %v13862_v44, %s7600_s20  ;;  %v10223_v35 = vpop.permute.xlu0 %6226 }
 0x72f   :  { %13891 = vst [vmem:[#allocation172_spill] sm:$0xff] %v10223_v35 }
 0x730   :  { %v10217_v10 = vpop.permute.xlu1 %6201  ;;  %6531 = vrot.lane.b32.xlu0 %v10101_v8, %s7594_s11 }
 0x731   :  { %13890 = vst [vmem:[#allocation171_spill] sm:$0xff] %v10217_v10 }
 0x732   :  { %6476 = vrot.lane.b32.xlu1 %v9781_v55, %s7601_s21  ;;  %v10231_v5 = vpop.permute.xlu0 %6231 }
 0x733   :  { %13893 = vst [vmem:[#allocation174_spill] sm:$0xff] %v10231_v5 }
 0x734   :  { %v10225_v37 = vpop.permute.xlu1 %6211  ;;  %6541 = vrot.lane.b32.xlu0 %v13862_v44, %s7589_s29 }
 0x735   :  { %13892 = vst [vmem:[#allocation173_spill] sm:$0xff] %v10225_v37 }
 0x736   :  { %6486 = vrot.lane.b32.xlu1 %v10143_v4, %s7601_s21  ;;  %v10239_v55 = vpop.permute.xlu0 %6241 }
 0x737   :  { %13895 = vst [vmem:[#allocation176_spill] sm:$0xff] %v10239_v55 }
 0x738   :  { %v10233_v11 = vpop.permute.xlu1 %6221  ;;  %6551 = vrot.lane.b32.xlu0 %v10143_v4, %s7604_s5  ;;  %v2256_v4 = vrot.slane %v13873_v14, 4 }
 0x739   :  { %13894 = vst [vmem:[#allocation175_spill] sm:$0xff] %v10233_v11 }
 0x73a   :  { %6496 = vrot.lane.b32.xlu1 %v10095_v32, %s7602_s22  ;;  %v10247_v37 = vpop.permute.xlu0 %6251 }
 0x73b   :  { %13897 = vst [vmem:[#allocation178_spill] sm:$0xff] %v10247_v37 }
 0x73c   :  { %v10241_v35 = vpop.permute.xlu1 %6236  ;;  %6556 = vrot.lane.b32.xlu0 %v13874_v36, %s7605_s6 }
 0x73d   :  { %13896 = vst [vmem:[#allocation177_spill] sm:$0xff] %v10241_v35 }
 0x73e   :  { %6506 = vrot.lane.b32.xlu1 %v9371_v54, %s7596_s3  ;;  %v10255_v32 = vpop.permute.xlu0 %6261 }
 0x740   :  { %v10249_v10 = vpop.permute.xlu1 %6246  ;;  %6561 = vrot.lane.b32.xlu0 %v13858_v38, %s7602_s22 }
 0x741   :  { %13898 = vst [vmem:[#allocation179_spill] sm:$0xff] %v10249_v10  ;;  %v13901_v10 = vld [vmem:[#allocation32_spill] sm:$0xff] }
 0x742   :  { %6516 = vrot.lane.b32.xlu1 %v9127_v18, %s7603_s24  ;;  %v10263_v35 = vpop.permute.xlu0 %6271  ;;  %v6575_v11 = vpack.i.bf16 %v13901_v10, %v10170_v6 }
 0x743   :  { %13899 = vst [vmem:[#allocation180_spill] sm:$0xff] %v10263_v35 }
 0x744   :  { %v10257_v55 = vpop.permute.xlu1 %6256  ;;  %6571 = vrot.lane.b32.xlu0 %v9371_v54, %s7597_s4  ;;  %v2257_v54 = vrot.slane %v13872_v57, 4 }
 0x746   :  { %6526 = vrot.lane.b32.xlu1 %v9500_v29, %s7594_s11  ;;  %v10271_v36 = vpop.permute.xlu0 %6281 }
 0x747   :  { %13900 = vst [vmem:[#allocation181_spill] sm:$0xff] %v10271_v36 }
 0x748   :  { %v10265_v37 = vpop.permute.xlu1 %6266  ;;  %6576 = vrot.lane.b32.xlu0 %v6575_v11, %s7596_s3 }
 0x74a   :  { %6536 = vrot.lane.b32.xlu1 %v13791_v3, %s7589_s29  ;;  %v10280_v53 = vpop.permute.xlu0 %6291 }
 0x74b   :  { %13903 = vst [vmem:[#allocation182_spill] sm:$0xff] %v10280_v53 }
 0x74c   :  { %v10275_v7 = vpop.permute.xlu1 %6276  ;;  %6586 = vrot.lane.b32.xlu0 %v9127_v18, %s7606_s7  ;;  %v13909_v18 = vld [vmem:[#allocation34_spill] sm:$0xff] }
 0x74d   :  { %13902 = vst [vmem:[#allocation32_spill] sm:$0xff] %v10275_v7  ;;  %v13942_v7 = vld [vmem:[#allocation76_spill] sm:$0xff] }
 0x74e   :  { %6546 = vrot.lane.b32.xlu1 %v9691_v22, %s7604_s5  ;;  %v10290_v59 = vpop.permute.xlu0 %6301  ;;  %v10295_v22 = vsel %vm2039_vm9, %v2256_v4, %v2257_v54  ;;  %v2003_v36 = vrot.slane %v13942_v7, 2 }
 0x74f   :  { %13905 = vst [vmem:[#allocation184_spill] sm:$0xff] %v10290_v59  ;;  %13907 = vst [vmem:[#allocation186_spill] sm:$0xff] %v10295_v22  ;;  %v6605_v57 = vpack.i.bf16 %v13909_v18, %v10295_v22 }
 0x750   :  { %v10282_v46 = vpop.permute.xlu1 %6286  ;;  %6596 = vrot.lane.b32.xlu0 %v13848_v30, %s7606_s7 }
 0x751   :  { %13904 = vst [vmem:[#allocation183_spill] sm:$0xff] %v10282_v46 }
 0x752   :  { %6566 = vrot.lane.b32.xlu1 %v13858_v38, %s7605_s6  ;;  %v10301_v14 = vpop.permute.xlu0 %6311  ;;  %v13911_v38 = vld [vmem:[#allocation33_spill] sm:$0xff] }
 0x753   :  { %13908 = vst [vmem:[#allocation187_spill] sm:$0xff] %v10301_v14  ;;  %v6590_v59 = vpack.i.bf16 %v13911_v38, %v9409_v15 }
 0x754   :  { %v10292_v5 = vpop.permute.xlu1 %6296  ;;  %6606 = vrot.lane.b32.xlu0 %v6605_v57, %s7594_s11 }
 0x755   :  { %13906 = vst [vmem:[#allocation185_spill] sm:$0xff] %v10292_v5 }
 0x756   :  { %6581 = vrot.lane.b32.xlu1 %v10056_v49, %s7597_s4  ;;  %v10311_v4 = vpop.permute.xlu0 %6316 }
 0x757   :  { %13912 = vst [vmem:[#allocation33_spill] sm:$0xff] %v10311_v4 }
 0x758   :  { %v10305_v53 = vpop.permute.xlu1 %6306  ;;  %6616 = vrot.lane.b32.xlu0 %v13791_v3, %s7607_s25 }
 0x759   :  { %13910 = vst [vmem:[#allocation188_spill] sm:$0xff] %v10305_v53 }
 0x75a   :  { %6591 = vrot.lane.b32.xlu1 %v6590_v59, %s7603_s24  ;;  %v10319_v49 = vpop.permute.xlu0 %6326 }
 0x75b   :  { %13914 = vst [vmem:[#allocation190_spill] sm:$0xff] %v10319_v49 }
 0x75c   :  { %v10313_v30 = vpop.permute.xlu1 %6321  ;;  %6626 = vrot.lane.b32.xlu0 %v13862_v44, %s7607_s25 }
 0x75d   :  { %13913 = vst [vmem:[#allocation189_spill] sm:$0xff] %v10313_v30  ;;  %v13921_v30 = vld [vmem:[#allocation82_spill] sm:$0xff] }
 0x75e   :  { %6601 = vrot.lane.b32.xlu1 %v9500_v29, %s7595_s2  ;;  %v10327_v53 = vpop.permute.xlu0 %6341  ;;  %v2000_v44 = vrot.slane %v13921_v30, 2 }
 0x75f   :  { %13916 = vst [vmem:[#allocation192_spill] sm:$0xff] %v10327_v53 }
 0x760   :  { %v10321_v54 = vpop.permute.xlu1 %6331  ;;  %6641 = vrot.lane.b32.xlu0 %v6590_v59, %s7606_s7  ;;  %v13923_v59 = vld [vmem:[#allocation30_spill] sm:$0xff] }
 0x761   :  { %13915 = vst [vmem:[#allocation191_spill] sm:$0xff] %v10321_v54  ;;  %v13920_v54 = vld [vmem:[#allocation31_spill] sm:$0xff]  ;;  %v1996_v53 = vrot.slane %v13923_v59, 2 }
 0x762   :  { %6611 = vrot.lane.b32.xlu1 %v10101_v8, %s7595_s2  ;;  %v10334_v29 = vpop.permute.xlu0 %6356  ;;  %v1999_v49 = vrot.slane %v13920_v54, 2  ;;  %v13922_v8 = vld [vmem:[#allocation78_spill] sm:$0xff] }
 0x763   :  { %13918 = vst [vmem:[#allocation194_spill] sm:$0xff] %v10334_v29  ;;  %v13927_v29 = vld [vmem:[#allocation87_spill] sm:$0xff] }
 0x764   :  { %v10329_v4 = vpop.permute.xlu1 %6336  ;;  %6651 = vrot.lane.b32.xlu0 %v13878_v45, %s7607_s25 }
 0x765   :  { %13917 = vst [vmem:[#allocation193_spill] sm:$0xff] %v10329_v4  ;;  %v1997_v4 = vrot.slane %v13922_v8, 2 }
 0x766   :  { %6621 = vrot.lane.b32.xlu1 %v13878_v45, %s7589_s29  ;;  %v10346_v14 = vpop.permute.xlu0 %6371 }
 0x767   :  { %13924 = vst [vmem:[#allocation82_spill] sm:$0xff] %v10346_v14  ;;  %v10357_v45 = vsel %vm448_vm3, %v1996_v53, %v1997_v4  ;;  %v2065_v53 = vrot.slane %v13922_v8, 4  ;;  %v1991_v8 = vrot.slane %v9340_v51, 2 }
 0x768   :  { %v10336_v3 = vpop.permute.xlu1 %6346  ;;  %6661 = vrot.lane.b32.xlu0 %v13927_v29, %s7600_s20  ;;  %13928 = vst [vmem:[#allocation87_spill] sm:$0xff] %v10357_v45 }
 0x769   :  { %13919 = vst [vmem:[#allocation195_spill] sm:$0xff] %v10336_v3  ;;  %v10351_v3 = vsel %vm448_vm3, %v1999_v49, %v2000_v44  ;;  %v2068_v49 = vrot.slane %v13921_v30, 4  ;;  %v1993_v30 = vrot.slane %v13712_v40, 2 }
 0x76a   :  { %6631 = vrot.lane.b32.xlu1 %v10191_v62, %s7604_s5  ;;  %13926 = vst [vmem:[#allocation196_spill] sm:$0xff] %v10351_v3  ;;  %v10359_v62 = vpop.permute.xlu0 %6386  ;;  %v10363_v33 = vpack.i.bf16 %v10351_v3, %v10357_v45 }
 0x76b   :  { %13929 = vst [vmem:[#allocation197_spill] sm:$0xff] %v10359_v62  ;;  %v1994_v62 = vrot.slane %v9426_v43, 2 }
 0x76c   :  { %v10348_v5 = vpop.permute.xlu1 %6351  ;;  %13930 = vst [vmem:[#allocation198_spill] sm:$0xff] %v10363_v33  ;;  %6676 = vrot.lane.b32.xlu0 %v10363_v33, %s7601_s21  ;;  %v6665_v33 = vpack.i.bf16 %v13911_v38, %v9460_v12 }
 0x76d   :  { %13925 = vst [vmem:[#allocation78_spill] sm:$0xff] %v10348_v5  ;;  %v2067_v5 = vrot.slane %v13920_v54, 4  ;;  %v13935_v54 = vld [vmem:[#allocation88_spill] sm:$0xff] }
 0x76e   :  { %6636 = vrot.lane.b32.xlu1 %v6575_v11, %s7597_s4  ;;  %v2064_v11 = vrot.slane %v13923_v59, 4  ;;  %v10374_v4 = vpop.permute.xlu0 %6401 }
 0x76f   :  { %13932 = vst [vmem:[#allocation200_spill] sm:$0xff] %v10374_v4 }
 0x770   :  { %v10365_v14 = vpop.permute.xlu1 %6361  ;;  %6691 = vrot.lane.b32.xlu0 %v13935_v54, %s7598_s18  ;;  %v10389_v59 = vsel %vm2039_vm9, %v2064_v11, %v2065_v53  ;;  %v13941_v54 = vld [vmem:[#allocation40_spill] sm:$0xff]  ;;  %v10405_v53 = vsel %vm448_vm3, %v1993_v30, %v1994_v62 }
 0x771   :  { %13931 = vst [vmem:[#allocation199_spill] sm:$0xff] %v10365_v14  ;;  %v10380_v14 = vsel %vm2039_vm9, %v2067_v5, %v2068_v49  ;;  %v2002_v46 = vrot.slane %v13941_v54, 2  ;;  %13943 = vst [vmem:[#allocation76_spill] sm:$0xff] %v10405_v53  ;;  %v13947_v62 = vld [vmem:[#allocation92_spill] sm:$0xff] }
 0x772   :  { %6646 = vrot.lane.b32.xlu1 %v6605_v57, %s7595_s2  ;;  %13934 = vst [vmem:[#allocation202_spill] sm:$0xff] %v10380_v14  ;;  %v13936_v57 = vld [vmem:[#allocation90_spill] sm:$0xff]  ;;  %v10392_v4 = vpop.permute.xlu0 %6411  ;;  %v10396_v5 = vpack.i.bf16 %v10380_v14, %v10389_v59 }
 0x773   :  { %13937 = vst [vmem:[#allocation90_spill] sm:$0xff] %v10389_v59  ;;  %13938 = vst [vmem:[#allocation203_spill] sm:$0xff] %v10392_v4  ;;  %v10420_v35 = vsel %vm448_vm3, %v2002_v46, %v2003_v36  ;;  %v2062_v36 = vrot.slane %v9426_v43, 4 }
 0x774   :  { %v10376_v44 = vpop.permute.xlu1 %6366  ;;  %13939 = vst [vmem:[#allocation204_spill] sm:$0xff] %v10396_v5  ;;  %6706 = vrot.lane.b32.xlu0 %v10396_v5, %s7602_s22  ;;  %13946 = vst [vmem:[#allocation208_spill] sm:$0xff] %v10420_v35 }
 0x775   :  { %13933 = vst [vmem:[#allocation201_spill] sm:$0xff] %v10376_v44  ;;  %v1990_v44 = vrot.slane %v13711_v17, 2 }
 0x776   :  { %6656 = vrot.lane.b32.xlu1 %v13936_v57, %s7600_s20  ;;  %v10413_v4 = vpop.permute.xlu0 %6421 }
 0x777   :  { %v10411_v11 = vsel %vm448_vm3, %v1990_v44, %v1991_v8  ;;  %13945 = vst [vmem:[#allocation207_spill] sm:$0xff] %v10413_v4  ;;  %v6680_v44 = vpack.i.bf16 %v13909_v18, %v10420_v35  ;;  %v13949_v8 = vld [vmem:[#allocation93_spill] sm:$0xff]  ;;  %v13954_v18 = vpack.i.bf16 %v9652_v61, %v9636_v28 }
 0x778   :  { %v10398_v49 = vpop.permute.xlu1 %6376  ;;  %13944 = vst [vmem:[#allocation206_spill] sm:$0xff] %v10411_v11  ;;  %v6670_v12 = vpack.i.bf16 %v10405_v53, %v10411_v11  ;;  %6721 = vrot.lane.b32.xlu0 %v13947_v62, %s7596_s3  ;;  %v13952_v62 = vld [vmem:[#allocation57_spill] sm:$0xff] }
 0x779   :  { %13940 = vst [vmem:[#allocation205_spill] sm:$0xff] %v10398_v49 }
 0x77a   :  { %6666 = vrot.lane.b32.xlu1 %v6665_v33, %s7600_s20  ;;  %v10425_v30 = vpop.permute.xlu0 %6431 }
 0x77b   :  { %13948 = vst [vmem:[#allocation209_spill] sm:$0xff] %v10425_v30  ;;  %v13953_v30 = vpack.i.bf16 %v9558_v0, %v13952_v62  ;;  %v2153_v62 = vrot.slane %v9687_v42, 2 }
 0x77c   :  { %v10415_v49 = vpop.permute.xlu1 %6381  ;;  %6736 = vrot.lane.b32.xlu0 %v13949_v8, %s7603_s24  ;;  %v2058_v8 = vrot.slane %v13711_v17, 4 }
 0x77e   :  { %6671 = vrot.lane.b32.xlu1 %v6670_v12, %s7601_s21  ;;  %v10434_v5 = vpop.permute.xlu0 %6441  ;;  %v2061_v12 = vrot.slane %v13712_v40, 4  ;;  %v2071_v40 = vrot.slane %v13942_v7, 4  ;;  %v10474_v7 = vpack.i.bf16 %v10357_v45, %v10405_v53  ;;  %v2164_v45 = vrot.slane %v13757_v39, 4 }
 0x77f   :  { %13950 = vst [vmem:[#allocation210_spill] sm:$0xff] %v10434_v5  ;;  %v2070_v5 = vrot.slane %v13941_v54, 4 }
 0x780   :  { %v10427_v33 = vpop.permute.xlu1 %6391  ;;  %6746 = vrot.lane.b32.xlu0 %v13953_v30, %s7589_s29  ;;  %v2152_v30 = vrot.slane %v13757_v39, 2 }
 0x782   :  { %6681 = vrot.lane.b32.xlu1 %v6680_v44, %s7601_s21  ;;  %v2059_v44 = vrot.slane %v9340_v51, 4  ;;  %v10451_v4 = vpop.permute.xlu0 %6451  ;;  %v13959_v51 = vld [vmem:[#allocation35_spill] sm:$0xff] }
 0x783   :  { %13955 = vst [vmem:[#allocation57_spill] sm:$0xff] %v10451_v4  ;;  %v13960_v54 = vpack.i.bf16 %v13959_v51, %v9472_v31  ;;  %v10484_v31 = vsel %vm448_vm3, %v2152_v30, %v2153_v62  ;;  %v13965_v62 = vld [vmem:[#allocation63_spill] sm:$0xff] }
 0x784   :  { %v10436_v46 = vpop.permute.xlu1 %6396  ;;  %v10468_v17 = vsel %vm2039_vm9, %v2058_v8, %v2059_v44  ;;  %13962 = vst [vmem:[#allocation35_spill] sm:$0xff] %v10484_v31  ;;  %v6780_v8 = vpack.i.bf16 %v13806_v16, %v10484_v31  ;;  %v13966_v30 = vpack.i.bf16 %v9636_v28, %v13965_v62  ;;  %v13967_v16 = vpack.i.bf16 %v9705_v48, %v9700_v34 }
 0x785   :  { %13951 = vst [vmem:[#allocation211_spill] sm:$0xff] %v10436_v46  ;;  %v10459_v46 = vsel %vm2039_vm9, %v2061_v12, %v2062_v36  ;;  %v10481_v12 = vsel %vm2039_vm9, %v2070_v5, %v2071_v40 }
 0x786   :  { %6686 = vrot.lane.b32.xlu1 %v13954_v18, %s7598_s18  ;;  %13957 = vst [vmem:[#allocation213_spill] sm:$0xff] %v10459_v46  ;;  %v13958_v18 = vld [vmem:[#allocation94_spill] sm:$0xff]  ;;  %v10470_v4 = vpop.permute.xlu0 %6461  ;;  %v6700_v36 = vpack.i.bf16 %v10459_v46, %v10468_v17  ;;  %v6710_v51 = vpack.i.bf16 %v13882_v2, %v10481_v12  ;;  %v10526_v48 = vpack.i.bf16 %v10389_v59, %v10459_v46 }
 0x787   :  { %6756 = vrot.lane.b32.xlu0 %v13958_v18, %s7589_s29  ;;  %13961 = vst [vmem:[#allocation94_spill] sm:$0xff] %v10481_v12 }
 0x788   :  { %v10453_v43 = vpop.permute.xlu1 %6406 }
 0x789   :  { %13956 = vst [vmem:[#allocation212_spill] sm:$0xff] %v10453_v43 }
 0x78a   :  { %6696 = vrot.lane.b32.xlu1 %v13960_v54, %s7598_s18  ;;  %v10489_v54 = vpop.permute.xlu0 %6471 }
 0x78b   :  { %6771 = vrot.lane.b32.xlu0 %v10474_v7, %s7604_s5  ;;  %13963 = vst [vmem:[#allocation214_spill] sm:$0xff] %v10489_v54  ;;  %v2165_v54 = vrot.slane %v9687_v42, 4  ;;  %v13972_v42 = vpack.i.bf16 %v9736_v58, %v9733_v26  ;;  %v13978_v58 = vpack.i.bf16 %v9700_v34, %v9324_v20  ;;  %v6765_v20 = vpack.i.bf16 %v10411_v11, %v13843_v21 }
 0x78c   :  { %v10476_v43 = vpop.permute.xlu1 %6416 }
 0x78e   :  { %6701 = vrot.lane.b32.xlu1 %v6700_v36, %s7602_s22  ;;  %v10499_v40 = vpop.permute.xlu0 %6481 }
 0x78f   :  { %6781 = vrot.lane.b32.xlu0 %v6780_v8, %s7604_s5  ;;  %v13969_v8 = vld [vmem:[#allocation21_spill] sm:$0xff] }
 0x790   :  { %v10493_v44 = vpop.permute.xlu1 %6426 }
 0x792   :  { %6711 = vrot.lane.b32.xlu1 %v6710_v51, %s7602_s22  ;;  %v10511_v36 = vpop.permute.xlu0 %6491  ;;  %v6725_v51 = vpack.i.bf16 %v13969_v8, %v9616_v25 }
 0x793   :  { %6786 = vrot.lane.b32.xlu0 %v13966_v30, %s7599_s19  ;;  %13968 = vst [vmem:[#allocation63_spill] sm:$0xff] %v10511_v36 }
 0x794   :  { %v10501_v5 = vpop.permute.xlu1 %6436 }
 0x795   :  { %13964 = vst [vmem:[#allocation215_spill] sm:$0xff] %v10501_v5  ;;  %v13970_v5 = vld [vmem:[#allocation99_spill] sm:$0xff] }
 0x796   :  { %6716 = vrot.lane.b32.xlu1 %v13967_v16, %s7596_s3  ;;  %v10522_v62 = vpop.permute.xlu0 %6501  ;;  %v10531_v16 = vsel %vm2039_vm9, %v2164_v45, %v2165_v54  ;;  %v13974_v45 = vld [vmem:[#allocation83_spill] sm:$0xff] }
 0x797   :  { %6796 = vrot.lane.b32.xlu0 %v13970_v5, %s7599_s19  ;;  %13971 = vst [vmem:[#allocation216_spill] sm:$0xff] %v10531_v16  ;;  %v13975_v54 = vpack.i.bf16 %v13974_v45, %v9659_v19  ;;  %v6760_v45 = vpack.i.bf16 %v13804_v1, %v9801_v50  ;;  %v13987_v50 = vld [vmem:[#allocation58_spill] sm:$0xff] }
 0x798   :  { %v10513_v2 = vpop.permute.xlu1 %6446  ;;  %v6860_v1 = vpack.i.bf16 %v13987_v50, %v9804_v27 }
 0x79a   :  { %6726 = vrot.lane.b32.xlu1 %v6725_v51, %s7596_s3  ;;  %v10539_v39 = vpop.permute.xlu0 %6511  ;;  %v6820_v51 = vpack.i.bf16 %v13821_v47, %v10531_v16  ;;  %v13979_v47 = vld [vmem:[#allocation102_spill] sm:$0xff] }
 0x79b   :  { %6811 = vrot.lane.b32.xlu0 %v10526_v48, %s7605_s6  ;;  %13973 = vst [vmem:[#allocation217_spill] sm:$0xff] %v10539_v39 }
 0x79c   :  { %v10528_v30 = vpop.permute.xlu1 %6456 }
 0x79e   :  { %6731 = vrot.lane.b32.xlu1 %v13972_v42, %s7603_s24  ;;  %v10550_v46 = vpop.permute.xlu0 %6521 }
 0x79f   :  { %6821 = vrot.lane.b32.xlu0 %v6820_v51, %s7605_s6  ;;  %13976 = vst [vmem:[#allocation83_spill] sm:$0xff] %v10550_v46 }
 0x7a0   :  { %v10543_v59 = vpop.permute.xlu1 %6466 }
 0x7a2   :  { %6741 = vrot.lane.b32.xlu1 %v13975_v54, %s7603_s24  ;;  %v10560_v42 = vpop.permute.xlu0 %6531  ;;  %v13982_v54 = vld [vmem:[#allocation101_spill] sm:$0xff] }
 0x7a3   :  { %6826 = vrot.lane.b32.xlu0 %v13978_v58, %s7597_s4  ;;  %13980 = vst [vmem:[#allocation102_spill] sm:$0xff] %v10560_v42  ;;  %v13985_v58 = vld [vmem:[#allocation103_spill] sm:$0xff] }
 0x7a4   :  { %v10552_v8 = vpop.permute.xlu1 %6476 }
 0x7a5   :  { %13977 = vst [vmem:[#allocation218_spill] sm:$0xff] %v10552_v8  ;;  %v14039_v8 = vld [vmem:[#allocation152_spill] sm:$0xff] }
 0x7a6   :  { %6751 = vrot.lane.b32.xlu1 %v13979_v47, %s7589_s29  ;;  %v10569_v36 = vpop.permute.xlu0 %6541 }
 0x7a7   :  { %6836 = vrot.lane.b32.xlu0 %v13982_v54, %s7597_s4  ;;  %13983 = vst [vmem:[#allocation101_spill] sm:$0xff] %v10569_v36 }
 0x7a8   :  { %v10562_v51 = vpop.permute.xlu1 %6486 }
 0x7a9   :  { %13981 = vst [vmem:[#allocation219_spill] sm:$0xff] %v10562_v51 }
 0x7aa   :  { %6761 = vrot.lane.b32.xlu1 %v6760_v45, %s7589_s29  ;;  %v10578_v19 = vpop.permute.xlu0 %6551  ;;  %v10586_v45 = vpack.i.bf16 %v10420_v35, %v10351_v3  ;;  %v13995_v3 = vpack.i.bf16 %v9602_v24, %v9784_v23 }
 0x7ab   :  { %6851 = vrot.lane.b32.xlu0 %v13985_v58, %s7606_s7  ;;  %13986 = vst [vmem:[#allocation103_spill] sm:$0xff] %v10578_v19  ;;  %v14014_v19 = vld [vmem:[#allocation75_spill] sm:$0xff] }
 0x7ac   :  { %v10571_v25 = vpop.permute.xlu1 %6496  ;;  %13989 = vst [vmem:[#allocation221_spill] sm:$0xff] %v10586_v45 }
 0x7ad   :  { %13984 = vst [vmem:[#allocation220_spill] sm:$0xff] %v10571_v25 }
 0x7ae   :  { %6766 = vrot.lane.b32.xlu1 %v6765_v20, %s7604_s5  ;;  %v10591_v36 = vpop.permute.xlu0 %6556  ;;  %v13992_v20 = vld [vmem:[#allocation104_spill] sm:$0xff] }
 0x7af   :  { %6861 = vrot.lane.b32.xlu0 %v6860_v1, %s7606_s7  ;;  %13990 = vst [vmem:[#allocation222_spill] sm:$0xff] %v10591_v36  ;;  %v6800_v1 = vpack.i.bf16 %v13818_v9, %v9841_v41  ;;  %v10627_v9 = vpack.i.bf16 %v10481_v12, %v10380_v14 }
 0x7b0   :  { %v10582_v42 = vpop.permute.xlu1 %6506 }
 0x7b1   :  { %13988 = vst [vmem:[#allocation58_spill] sm:$0xff] %v10582_v42  ;;  %v6805_v42 = vpack.i.bf16 %v10468_v17, %v13811_v60  ;;  %14001 = vst [vmem:[#allocation229_spill] sm:$0xff] %v10627_v9  ;;  %v14015_v60 = vpack.i.bf16 %v9700_v34, %v14014_v19 }
 0x7b2   :  { %6776 = vrot.lane.b32.xlu1 %v10586_v45, %s7604_s5  ;;  %v10599_v50 = vpop.permute.xlu0 %6561 }
 0x7b3   :  { %6871 = vrot.lane.b32.xlu0 %v13927_v29, %s7607_s25  ;;  %13993 = vst [vmem:[#allocation104_spill] sm:$0xff] %v10599_v50 }
 0x7b4   :  { %v10593_v25 = vpop.permute.xlu1 %6516 }
 0x7b5   :  { %13991 = vst [vmem:[#allocation223_spill] sm:$0xff] %v10593_v25 }
 0x7b6   :  { %6791 = vrot.lane.b32.xlu1 %v13992_v20, %s7599_s19  ;;  %v10610_v36 = vpop.permute.xlu0 %6571 }
 0x7b7   :  { %6881 = vrot.lane.b32.xlu0 %v13995_v3, %s7607_s25  ;;  %13996 = vst [vmem:[#allocation225_spill] sm:$0xff] %v10610_v36  ;;  %v2220_v3 = vrot.slane %v9682_v56, 4 }
 0x7b8   :  { %v10601_v27 = vpop.permute.xlu1 %6526 }
 0x7b9   :  { %13994 = vst [vmem:[#allocation224_spill] sm:$0xff] %v10601_v27  ;;  %v13998_v27 = vpack.i.bf16 %v9636_v28, %v9376_v13  ;;  %v2219_v13 = vrot.slane %v9234_v63, 4 }
 0x7ba   :  { %6801 = vrot.lane.b32.xlu1 %v6800_v1, %s7599_s19  ;;  %v10621_v41 = vpop.permute.xlu0 %6576  ;;  %v14004_v1 = vld [vmem:[#allocation107_spill] sm:$0xff] }
 0x7bb   :  { %6886 = vrot.lane.b32.xlu0 %v13998_v27, %s7600_s20  ;;  %13999 = vst [vmem:[#allocation227_spill] sm:$0xff] %v10621_v41  ;;  %v10644_v14 = vsel %vm2039_vm9, %v2219_v13, %v2220_v3  ;;  %v14013_v13 = vld [vmem:[#allocation66_spill] sm:$0xff] }
 0x7bc   :  { %v10612_v25 = vpop.permute.xlu1 %6536  ;;  %14005 = vst [vmem:[#allocation107_spill] sm:$0xff] %v10644_v14  ;;  %v10650_v36 = vpack.i.bf16 %v10644_v14, %v10531_v16  ;;  %v14117_v14 = vld [vmem:[#allocation181_spill] sm:$0xff] }
 0x7bd   :  { %13997 = vst [vmem:[#allocation226_spill] sm:$0xff] %v10612_v25  ;;  %v14010_v25 = vld [vmem:[#allocation23_spill] sm:$0xff] }
 0x7be   :  { %6806 = vrot.lane.b32.xlu1 %v6805_v42, %s7605_s6  ;;  %v10635_v27 = vpop.permute.xlu0 %6586  ;;  %14007 = vst [vmem:[#allocation233_spill] sm:$0xff] %v10650_v36 }
 0x7bf   :  { %6896 = vrot.lane.b32.xlu0 %v13970_v5, %s7600_s20  ;;  %14002 = vst [vmem:[#allocation230_spill] sm:$0xff] %v10635_v27  ;;  %v14009_v27 = vld [vmem:[#allocation120_spill] sm:$0xff] }
 0x7c0   :  { %v10623_v24 = vpop.permute.xlu1 %6546 }
 0x7c1   :  { %14000 = vst [vmem:[#allocation228_spill] sm:$0xff] %v10623_v24 }
 0x7c2   :  { %6816 = vrot.lane.b32.xlu1 %v10627_v9, %s7605_s6  ;;  %v10646_v41 = vpop.permute.xlu0 %6596 }
 0x7c3   :  { %6911 = vrot.lane.b32.xlu0 %v10526_v48, %s7601_s21  ;;  %14006 = vst [vmem:[#allocation232_spill] sm:$0xff] %v10646_v41  ;;  %v6845_v41 = vpack.i.bf16 %v9733_v26, %v14013_v13 }
 0x7c4   :  { %v10637_v42 = vpop.permute.xlu1 %6566 }
 0x7c5   :  { %14003 = vst [vmem:[#allocation231_spill] sm:$0xff] %v10637_v42  ;;  %v6840_v42 = vpack.i.bf16 %v14010_v25, %v14009_v27 }
 0x7c6   :  { %6831 = vrot.lane.b32.xlu1 %v14004_v1, %s7597_s4  ;;  %v10659_v50 = vpop.permute.xlu0 %6606 }
 0x7c7   :  { %6921 = vrot.lane.b32.xlu0 %v10650_v36, %s7601_s21  ;;  %14011 = vst [vmem:[#allocation235_spill] sm:$0xff] %v10659_v50 }
 0x7c8   :  { %v10652_v24 = vpop.permute.xlu1 %6581 }
 0x7c9   :  { %14008 = vst [vmem:[#allocation234_spill] sm:$0xff] %v10652_v24 }
 0x7ca   :  { %6841 = vrot.lane.b32.xlu1 %v6840_v42, %s7597_s4  ;;  %v10670_v25 = vpop.permute.xlu0 %6616  ;;  %v14018_v42 = vld [vmem:[#allocation110_spill] sm:$0xff] }
 0x7cb   :  { %6926 = vrot.lane.b32.xlu0 %v14015_v60, %s7598_s18  ;;  %14016 = vst [vmem:[#allocation66_spill] sm:$0xff] %v10670_v25 }
 0x7cc   :  { %v10661_v3 = vpop.permute.xlu1 %6591 }
 0x7cd   :  { %14012 = vst [vmem:[#allocation236_spill] sm:$0xff] %v10661_v3 }
 0x7ce   :  { %6846 = vrot.lane.b32.xlu1 %v6845_v41, %s7606_s7  ;;  %v10678_v50 = vpop.permute.xlu0 %6626  ;;  %v14023_v41 = vld [vmem:[#allocation54_spill] sm:$0xff] }
 0x7cf   :  { %6936 = vrot.lane.b32.xlu0 %v13982_v54, %s7598_s18  ;;  %14019 = vst [vmem:[#allocation237_spill] sm:$0xff] %v10678_v50  ;;  %v14024_v3 = vrot.slane %v14023_v41, 5  ;;  %v14030_v41 = vld [vmem:[#allocation73_spill] sm:$0xff] }
 0x7d0   :  { %v10672_v24 = vpop.permute.xlu1 %6601 }
 0x7d1   :  { %14017 = vst [vmem:[#allocation75_spill] sm:$0xff] %v10672_v24  ;;  %v10693_v25 = vsel %vm1882_vm6, %v14024_v3, 0.0  ;;  %v14025_v24 = vld [vmem:[#allocation113_spill] sm:$0xff] }
 0x7d2   :  { %6856 = vrot.lane.b32.xlu1 %v14018_v42, %s7606_s7  ;;  %v10686_v19 = vpop.permute.xlu0 %6641 }
 0x7d3   :  { %6951 = vrot.lane.b32.xlu0 %v13985_v58, %s7602_s22  ;;  %14021 = vst [vmem:[#allocation239_spill] sm:$0xff] %v10686_v19  ;;  %v14029_v19 = vld [vmem:[#allocation56_spill] sm:$0xff] }
 0x7d4   :  { %v10680_v13 = vpop.permute.xlu1 %6611  ;;  %v2241_v46 = vrot.slane %v14029_v19, 1 }
 0x7d5   :  { %14020 = vst [vmem:[#allocation238_spill] sm:$0xff] %v10680_v13  ;;  %v14026_v13 = vld [vmem:[#allocation112_spill] sm:$0xff] }
 0x7d6   :  { %6866 = vrot.lane.b32.xlu1 %v13936_v57, %s7607_s25  ;;  %v10699_v50 = vpop.permute.xlu0 %6651  ;;  %v2242_v57 = vrot.slane %v10693_v25, 1 }
 0x7d7   :  { %6961 = vrot.lane.b32.xlu0 %v14025_v24, %s7602_s22  ;;  %14027 = vst [vmem:[#allocation54_spill] sm:$0xff] %v10699_v50 }
 0x7d8   :  { %v10688_v60 = vpop.permute.xlu1 %6621  ;;  %v10716_v50 = vsel %vm402_vm2, %v2241_v46, %v2242_v57  ;;  %v6990_v57 = vpack.i.bf16 %v10411_v11, %v10170_v6  ;;  %vm2850_vm2 = vcmask 15360  }
 0x7d9   :  { %14022 = vst [vmem:[#allocation240_spill] sm:$0xff] %v10688_v60  ;;  %v14031_v60 = vpack.i.bf16 %v9558_v0, %v14030_v41  ;;  %14034 = vst [vmem:[#allocation242_spill] sm:$0xff] %v10716_v50  ;;  %v14037_v0 = vld [vmem:[#allocation96_spill] sm:$0xff] }
 0x7da   :  { %6876 = vrot.lane.b32.xlu1 %v14026_v13, %s7607_s25  ;;  %v10711_v3 = vpop.permute.xlu0 %6661 }
 0x7db   :  { %6966 = vrot.lane.b32.xlu0 %v14031_v60, %s7603_s24  ;;  %14032 = vst [vmem:[#allocation56_spill] sm:$0xff] %v10711_v3  ;;  %v6985_v60 = vpack.i.bf16 %v14037_v0, %v10716_v50  ;;  %v6905_v3 = vpack.i.bf16 %v10468_v17, %v14039_v8  ;;  %v2247_v0 = vrot.slane %v14029_v19, 2 }
 0x7dc   :  { %v10701_v27 = vpop.permute.xlu1 %6631 }
 0x7dd   :  { %14028 = vst [vmem:[#allocation241_spill] sm:$0xff] %v10701_v27  ;;  %v14035_v27 = vld [vmem:[#allocation117_spill] sm:$0xff] }
 0x7de   :  { %6891 = vrot.lane.b32.xlu1 %v13992_v20, %s7600_s20  ;;  %v10722_v39 = vpop.permute.xlu0 %6676 }
 0x7df   :  { %6976 = vrot.lane.b32.xlu0 %v13958_v18, %s7603_s24  ;;  %14036 = vst [vmem:[#allocation243_spill] sm:$0xff] %v10722_v39  ;;  %v2248_v39 = vrot.slane %v10693_v25, 2 }
 0x7e0   :  { %v10713_v51 = vpop.permute.xlu1 %6636 }
 0x7e1   :  { %14033 = vst [vmem:[#allocation73_spill] sm:$0xff] %v10713_v51 }
 0x7e2   :  { %6901 = vrot.lane.b32.xlu1 %v14035_v27, %s7600_s20  ;;  %v10732_v46 = vpop.permute.xlu0 %6691 }
 0x7e3   :  { %6986 = vrot.lane.b32.xlu0 %v6985_v60, %s7603_s24  ;;  %14040 = vst [vmem:[#allocation244_spill] sm:$0xff] %v10732_v46 }
 0x7e4   :  { %v10726_v41 = vpop.permute.xlu1 %6646 }
 0x7e5   :  { %14038 = vst [vmem:[#allocation96_spill] sm:$0xff] %v10726_v41 }
 0x7e6   :  { %6906 = vrot.lane.b32.xlu1 %v6905_v3, %s7601_s21  ;;  %v10743_v41 = vpop.permute.xlu0 %6706  ;;  %v10748_v3 = vsel %vm448_vm3, %v2247_v0, %v2248_v39 }
 0x7e7   :  { %6991 = vrot.lane.b32.xlu0 %v6990_v57, %s7594_s11  ;;  %14042 = vst [vmem:[#allocation246_spill] sm:$0xff] %v10743_v41  ;;  %14044 = vst [vmem:[#allocation248_spill] sm:$0xff] %v10748_v3  ;;  %v14046_v57 = vld [vmem:[#allocation100_spill] sm:$0xff]  ;;  %v14048_v41 = vld [vmem:[#allocation122_spill] sm:$0xff] }
 0x7e8   :  { %v10736_v51 = vpop.permute.xlu1 %6656 }
 0x7e9   :  { %14041 = vst [vmem:[#allocation245_spill] sm:$0xff] %v10736_v51  ;;  %v7010_v51 = vpack.i.bf16 %v14046_v57, %v10748_v3 }
 0x7ea   :  { %6916 = vrot.lane.b32.xlu1 %v10627_v9, %s7601_s21  ;;  %v10754_v6 = vpop.permute.xlu0 %6721 }
 0x7eb   :  { %7001 = vrot.lane.b32.xlu0 %v10586_v45, %s7594_s11  ;;  %14045 = vst [vmem:[#allocation249_spill] sm:$0xff] %v10754_v6  ;;  %v14051_v45 = vld [vmem:[#allocation158_spill] sm:$0xff]  ;;  %v2253_v6 = vrot.slane %v14029_v19, 3 }
 0x7ec   :  { %v10745_v60 = vpop.permute.xlu1 %6666  ;;  %v6945_v11 = vpack.i.bf16 %v9733_v26, %v14051_v45 }
 0x7ed   :  { %14043 = vst [vmem:[#allocation247_spill] sm:$0xff] %v10745_v60  ;;  %v2254_v60 = vrot.slane %v10693_v25, 3 }
 0x7ee   :  { %6931 = vrot.lane.b32.xlu1 %v14004_v1, %s7598_s18  ;;  %v10763_v39 = vpop.permute.xlu0 %6736 }
 0x7ef   :  { %7011 = vrot.lane.b32.xlu0 %v7010_v51, %s7594_s11  ;;  %14049 = vst [vmem:[#allocation122_spill] sm:$0xff] %v10763_v39  ;;  %v10781_v39 = vsel %vm2005_vm7, %v2253_v6, %v2254_v60  ;;  %v7040_v60 = vpack.i.bf16 %v10468_v17, %v10295_v22  ;;  %vm13591_vm7 = vcmask 179200  }
 0x7f0   :  { %v10758_v46 = vpop.permute.xlu1 %6671  ;;  %14055 = vst [vmem:[#allocation253_spill] sm:$0xff] %v10781_v39 }
 0x7f1   :  { %14047 = vst [vmem:[#allocation250_spill] sm:$0xff] %v10758_v46  ;;  %v14052_v46 = vpack.i.bf16 %v9636_v28, %v9409_v15  ;;  %v14057_v15 = vld [vmem:[#allocation39_spill] sm:$0xff] }
 0x7f2   :  { %6941 = vrot.lane.b32.xlu1 %v14048_v41, %s7598_s18  ;;  %v10776_v51 = vpop.permute.xlu0 %6746  ;;  %v7035_v28 = vpack.i.bf16 %v14057_v15, %v10781_v39  ;;  %v14061_v15 = vld [vmem:[#allocation125_spill] sm:$0xff] }
 0x7f3   :  { %7016 = vrot.lane.b32.xlu0 %v14052_v46, %s7589_s29  ;;  %14053 = vst [vmem:[#allocation158_spill] sm:$0xff] %v10776_v51 }
 0x7f4   :  { %v10765_v0 = vpop.permute.xlu1 %6681 }
 0x7f5   :  { %14050 = vst [vmem:[#allocation251_spill] sm:$0xff] %v10765_v0 }
 0x7f6   :  { %6946 = vrot.lane.b32.xlu1 %v6945_v11, %s7602_s22 }
 0x7f7   :  { %7026 = vrot.lane.b32.xlu0 %v13970_v5, %s7589_s29  ;;  %v14076_v5 = vld [vmem:[#allocation119_spill] sm:$0xff] }
 0x7f8   :  { %v10778_v8 = vpop.permute.xlu1 %6686 }
 0x7f9   :  { %14054 = vst [vmem:[#allocation252_spill] sm:$0xff] %v10778_v8  ;;  %v10787_v45 = vpop.permute.xlu0 %6756  ;;  %v2260_v8 = vrot.slane %v10693_v25, 4 }
 0x7fa   :  { %6956 = vrot.lane.b32.xlu1 %v14018_v42, %s7602_s22  ;;  %14056 = vst [vmem:[#allocation254_spill] sm:$0xff] %v10787_v45  ;;  %v2259_v45 = vrot.slane %v14029_v19, 4 }
 0x7fb   :  { %7036 = vrot.lane.b32.xlu0 %v7035_v28, %s7589_s29  ;;  %v2193_v28 = vrot.slane %v9682_v56, 2  ;;  %v14067_v56 = vld [vmem:[#allocation105_spill] sm:$0xff] }
 0x7fc   :  { %v10791_v46 = vpop.permute.xlu1 %6696  ;;  %v10814_v17 = vsel %vm2039_vm9, %v2259_v45, %v2260_v8  ;;  %vm13590_vm9 = vcmask 195584  }
 0x7fd   :  { %14058 = vst [vmem:[#allocation39_spill] sm:$0xff] %v10791_v46  ;;  %v10796_v11 = vpop.permute.xlu0 %6771  ;;  %14064 = vst [vmem:[#allocation259_spill] sm:$0xff] %v10814_v17 }
 0x7fe   :  { %6971 = vrot.lane.b32.xlu1 %v13979_v47, %s7603_s24  ;;  %14059 = vst [vmem:[#allocation255_spill] sm:$0xff] %v10796_v11  ;;  %v2192_v47 = vrot.slane %v9234_v63, 2  ;;  %v7060_v63 = vpack.i.bf16 %v14067_v56, %v10814_v17  ;;  %v14072_v56 = vld [vmem:[#allocation80_spill] sm:$0xff]  ;;  %v6269_v17 = vunpack.i.h.bf16 %v10265_v37 }
 0x7ff   :  { %7041 = vrot.lane.b32.xlu0 %v7040_v60, %s7604_s5 }
 0x800   :  { %v10800_v6 = vpop.permute.xlu1 %6701  ;;  %v10821_v60 = vsel %vm448_vm3, %v2192_v47, %v2193_v28  ;;  %v2266_v28 = vrot.slane %v10693_v25, 5  ;;  %v2265_v47 = vrot.slane %v14029_v19, 5  ;;  %vm2873_vm3 = vcmask 48128  }
 0x801   :  { %14060 = vst [vmem:[#allocation256_spill] sm:$0xff] %v10800_v6  ;;  %v10809_v51 = vpop.permute.xlu0 %6781  ;;  %14065 = vst [vmem:[#allocation260_spill] sm:$0xff] %v10821_v60  ;;  %v10831_v8 = vpack.i.bf16 %v10821_v60, %v10484_v31 }
 0x802   :  { %6981 = vrot.lane.b32.xlu1 %v14061_v15, %s7603_s24  ;;  %14062 = vst [vmem:[#allocation257_spill] sm:$0xff] %v10809_v51 }
 0x803   :  { %7051 = vrot.lane.b32.xlu0 %v10627_v9, %s7604_s5  ;;  %14069 = vst [vmem:[#allocation262_spill] sm:$0xff] %v10831_v8  ;;  %v10855_v9 = vsel %vm1882_vm6, %v2265_v47, %v2266_v28  ;;  %v14089_v28 = vld [vmem:[#allocation89_spill] sm:$0xff]  ;;  %v14090_v47 = vld [vmem:[#allocation130_spill] sm:$0xff]  ;;  %vm13592_vm6 = vcmask 162816  }
 0x804   :  { %v10811_v11 = vpop.permute.xlu1 %6711 }
 0x805   :  { %14063 = vst [vmem:[#allocation258_spill] sm:$0xff] %v10811_v11  ;;  %v10823_v6 = vpop.permute.xlu0 %6786 }
 0x806   :  { %6996 = vrot.lane.b32.xlu1 %v10474_v7, %s7594_s11  ;;  %14066 = vst [vmem:[#allocation261_spill] sm:$0xff] %v10823_v6 }
 0x807   :  { %7061 = vrot.lane.b32.xlu0 %v7060_v63, %s7604_s5  ;;  %v2272_v63 = vrot.slane %v10693_v25, 6  ;;  %v14077_v25 = vld [vmem:[#allocation124_spill] sm:$0xff] }
 0x808   :  { %v10827_v22 = vpop.permute.xlu1 %6716 }
 0x809   :  { %14068 = vst [vmem:[#allocation105_spill] sm:$0xff] %v10827_v22  ;;  %v10836_v7 = vpop.permute.xlu0 %6796  ;;  %v14073_v22 = vpack.i.bf16 %v9700_v34, %v14072_v56  ;;  %v14088_v34 = vld [vmem:[#allocation36_spill] sm:$0xff] }
 0x80a   :  { %7006 = vrot.lane.b32.xlu1 %v10831_v8, %s7594_s11  ;;  %14070 = vst [vmem:[#allocation263_spill] sm:$0xff] %v10836_v7  ;;  %v2271_v7 = vrot.slane %v14029_v19, 6  ;;  %v14078_v19 = vld [vmem:[#allocation126_spill] sm:$0xff]  ;;  %v14080_v8 = vld [vmem:[#allocation25_spill] sm:$0xff] }
 0x80b   :  { %7066 = vrot.lane.b32.xlu0 %v14073_v22, %s7599_s19  ;;  %v14083_v22 = vld [vmem:[#allocation127_spill] sm:$0xff] }
 0x80c   :  { %v10838_v45 = vpop.permute.xlu1 %6726 }
 0x80d   :  { %14071 = vst [vmem:[#allocation264_spill] sm:$0xff] %v10838_v45  ;;  %v10849_v6 = vpop.permute.xlu0 %6811  ;;  %v7085_v45 = vpack.i.bf16 %v14080_v8, %v10855_v9  ;;  %v14114_v8 = vld [vmem:[#allocation47_spill] sm:$0xff] }
 0x80e   :  { %7021 = vrot.lane.b32.xlu1 %v13992_v20, %s7589_s29  ;;  %14074 = vst [vmem:[#allocation80_spill] sm:$0xff] %v10849_v6  ;;  %v7090_v20 = vpack.i.bf16 %v9733_v26, %v10182_v52  ;;  %v10882_v52 = vpack.i.bf16 %v10716_v50, %v9784_v23  ;;  %v14085_v26 = vld [vmem:[#allocation128_spill] sm:$0xff]  ;;  %v14123_v50 = vld [vmem:[#allocation91_spill] sm:$0xff] }
 0x80f   :  { %7076 = vrot.lane.b32.xlu0 %v13982_v54, %s7599_s19 }
 0x810   :  { %v10851_v51 = vpop.permute.xlu1 %6731  ;;  %14084 = vst [vmem:[#allocation127_spill] sm:$0xff] %v10882_v52 }
 0x811   :  { %14075 = vst [vmem:[#allocation265_spill] sm:$0xff] %v10851_v51  ;;  %v10869_v56 = vpop.permute.xlu0 %6821  ;;  %v10876_v51 = vsel %vm1516_vm13, %v2271_v7, %v2272_v63  ;;  %v14087_v7 = vld [vmem:[#allocation69_spill] sm:$0xff]  ;;  %vm13595_vm13 = vcmask 113664  }
 0x812   :  { %7031 = vrot.lane.b32.xlu1 %v14035_v27, %s7589_s29  ;;  %14079 = vst [vmem:[#allocation119_spill] sm:$0xff] %v10869_v56  ;;  %14082 = vst [vmem:[#allocation126_spill] sm:$0xff] %v10876_v51  ;;  %v14086_v56 = vld [vmem:[#allocation129_spill] sm:$0xff]  ;;  %v7110_v63 = vpack.i.bf16 %v14087_v7, %v10876_v51  ;;  %v10897_v27 = vpack.i.bf16 %v10484_v31, %v10420_v35  ;;  %v14094_v7 = vld [vmem:[#allocation116_spill] sm:$0xff]  ;;  %v10915_v35 = vpack.i.bf16 %v10748_v3, %v10821_v60 }
 0x813   :  { %7086 = vrot.lane.b32.xlu0 %v7085_v45, %s7599_s19  ;;  %v10910_v23 = vpack.i.bf16 %v10781_v39, %v14094_v7  ;;  %v14098_v7 = vld [vmem:[#allocation84_spill] sm:$0xff]  ;;  %v14113_v60 = vld [vmem:[#allocation46_spill] sm:$0xff]  ;;  %v6283_v31 = vunpack.i.l.bf16 %v14117_v14 }
 0x814   :  { %v10873_v6 = vpop.permute.xlu1 %6741 }
 0x815   :  { %14081 = vst [vmem:[#allocation124_spill] sm:$0xff] %v10873_v6  ;;  %14095 = vst [vmem:[#allocation69_spill] sm:$0xff] %v10910_v23  ;;  %v6259_v6 = vunpack.i.h.bf16 %v10257_v55 }
 0x816   :  { %7046 = vrot.lane.b32.xlu1 %v10526_v48, %s7604_s5  ;;  %v10904_v48 = vpop.permute.xlu0 %6826 }
 0x817   :  { %14092 = vst [vmem:[#allocation128_spill] sm:$0xff] %v10904_v48  ;;  %7091 = vrot.lane.b32.xlu0 %v7090_v20, %s7605_s6  ;;  %v6258_v48 = vunpack.i.l.bf16 %v10257_v55  ;;  %v6268_v55 = vunpack.i.l.bf16 %v10265_v37  ;;  %v3748_v37 = vsel %vm2850_vm2, %v14113_v60, %v6259_v6  ;;  %v3752_v6 = vsel %vm2850_vm2, %v13843_v21, %v6269_v17  ;;  %v14120_v60 = vld [vmem:[#allocation49_spill] sm:$0xff] }
 0x818   :  { %v10906_v46 = vpop.permute.xlu1 %6751 }
 0x819   :  { %14093 = vst [vmem:[#allocation129_spill] sm:$0xff] %v10906_v46  ;;  %v6284_v46 = vunpack.i.h.bf16 %v14117_v14 }
 0x81a   :  { %7056 = vrot.lane.b32.xlu1 %v10650_v36, %s7604_s5  ;;  %v10930_v39 = vpop.permute.xlu0 %6836  ;;  %v6264_v36 = vunpack.i.h.bf16 %v10255_v32 }
 0x81b   :  { %14100 = vst [vmem:[#allocation36_spill] sm:$0xff] %v10930_v39  ;;  %7101 = vrot.lane.b32.xlu0 %v14018_v42, %s7605_s6  ;;  %v14112_v39 = vld [vmem:[#allocation180_spill] sm:$0xff] }
 0x81c   :  { %v10932_v11 = vpop.permute.xlu1 %6761  ;;  %v6273_v0 = vunpack.i.l.bf16 %v14112_v39 }
 0x81d   :  { %14101 = vst [vmem:[#allocation89_spill] sm:$0xff] %v10932_v11 }
 0x81e   :  { %7071 = vrot.lane.b32.xlu1 %v14004_v1, %s7599_s19  ;;  %v10951_v12 = vpop.permute.xlu0 %6851 }
 0x81f   :  { %14106 = vst [vmem:[#allocation130_spill] sm:$0xff] %v10951_v12  ;;  %7111 = vrot.lane.b32.xlu0 %v7110_v63, %s7605_s6  ;;  %v6263_v12 = vunpack.i.l.bf16 %v10255_v32  ;;  %v3747_v63 = vsel %vm2850_vm2, %v14114_v8, %v6258_v48  ;;  %v14118_v32 = vld [vmem:[#allocation32_spill] sm:$0xff]  ;;  %v3751_v8 = vsel %vm2850_vm2, %v14120_v60, %v6268_v55  ;;  %v14121_v48 = vld [vmem:[#allocation183_spill] sm:$0xff]  ;;  %v14124_v60 = vld [vmem:[#allocation185_spill] sm:$0xff] }
 0x820   :  { %v10953_v16 = vpop.permute.xlu1 %6766  ;;  %v6279_v51 = vunpack.i.h.bf16 %v14118_v32  ;;  %v6278_v45 = vunpack.i.l.bf16 %v14118_v32  ;;  %v6289_v21 = vunpack.i.h.bf16 %v14121_v48  ;;  %v3762_v17 = vsel %vm1597_vm14, %v3747_v63, %v6273_v0 }
 0x821   :  { %14107 = vst [vmem:[#allocation116_spill] sm:$0xff] %v10953_v16  ;;  %v6274_v16 = vunpack.i.h.bf16 %v14112_v39  ;;  %v3749_v57 = vsel %vm2850_vm2, %v14123_v50, %v6263_v12  ;;  %v6298_v3 = vunpack.i.l.bf16 %v14124_v60  ;;  %v3766_v12 = vsel %vm1597_vm14, %v3751_v8, %v6283_v31 }
 0x822   :  { %7081 = vrot.lane.b32.xlu1 %v14048_v41, %s7599_s19  ;;  %v10976_v20 = vpop.permute.xlu0 %6861  ;;  %v3767_v50 = vsel %vm1597_vm14, %v3752_v6, %v6284_v46 }
 0x823   :  { %14115 = vst [vmem:[#allocation84_spill] sm:$0xff] %v10976_v20  ;;  %v6288_v20 = vunpack.i.l.bf16 %v14121_v48  ;;  %7121 = vrot.lane.b32.xlu0 %v13927_v29, %s7606_s7  ;;  %v3763_v55 = vsel %vm1597_vm14, %v3748_v37, %v6274_v16  ;;  %v6299_v29 = vunpack.i.h.bf16 %v14124_v60  ;;  %v14127_v48 = vld [vmem:[#allocation182_spill] sm:$0xff]  ;;  %v14128_v37 = vld [vmem:[#allocation184_spill] sm:$0xff]  ;;  %v3781_v6 = vsel %vm2873_vm3, %v3766_v12, %v6298_v3 }
 0x824   :  { %v10978_v11 = vpop.permute.xlu1 %6776  ;;  %v6294_v0 = vunpack.i.h.bf16 %v14127_v48  ;;  %v6293_v16 = vunpack.i.l.bf16 %v14127_v48  ;;  %v6303_v63 = vunpack.i.l.bf16 %v14128_v37  ;;  %v3778_v31 = vsel %vm2873_vm3, %v3763_v55, %v6289_v21 }
 0x825   :  { %14116 = vst [vmem:[#allocation180_spill] sm:$0xff] %v10978_v11  ;;  %v14122_v11 = vld [vmem:[#allocation67_spill] sm:$0xff]  ;;  %v3777_v60 = vsel %vm2873_vm3, %v3762_v17, %v6288_v20  ;;  %v3782_v8 = vsel %vm2873_vm3, %v3767_v50, %v6299_v29  ;;  %v14130_v20 = vld [vmem:[#allocation188_spill] sm:$0xff] }
 0x826   :  { %7096 = vrot.lane.b32.xlu1 %v13985_v58, %s7605_s6  ;;  %v3750_v32 = vsel %vm2850_vm2, %v14122_v11, %v6264_v36  ;;  %v11004_v15 = vpop.permute.xlu0 %6871  ;;  %v3764_v11 = vsel %vm1597_vm14, %v3749_v57, %v6278_v45  ;;  %v6304_v57 = vunpack.i.h.bf16 %v14128_v37  ;;  %v6308_v17 = vunpack.i.l.bf16 %v14130_v20 }
 0x827   :  { %14125 = vst [vmem:[#allocation46_spill] sm:$0xff] %v11004_v15  ;;  %v3765_v36 = vsel %vm1597_vm14, %v3750_v32, %v6279_v51  ;;  %7131 = vrot.lane.b32.xlu0 %v10882_v52, %s7606_s7  ;;  %v14129_v51 = vld [vmem:[#allocation187_spill] sm:$0xff]  ;;  %v6309_v32 = vunpack.i.h.bf16 %v14130_v20  ;;  %v3792_v52 = vsel %vm2885_vm10, %v3777_v60, %v6303_v63  ;;  %v3779_v20 = vsel %vm2873_vm3, %v3764_v11, %v6293_v16  ;;  %v14139_v60 = vld [vmem:[#allocation189_spill] sm:$0xff] }
 0x828   :  { %v11006_v14 = vpop.permute.xlu1 %6791  ;;  %v6314_v46 = vunpack.i.h.bf16 %v14129_v51  ;;  %v6313_v45 = vunpack.i.l.bf16 %v14129_v51  ;;  %v14138_v37 = vpack.i.bf16 %v14089_v28, %v14088_v34  ;;  %v3793_v21 = vsel %vm2885_vm10, %v3778_v31, %v6304_v57 }
 0x829   :  { %14126 = vst [vmem:[#allocation47_spill] sm:$0xff] %v11006_v14  ;;  %v3780_v63 = vsel %vm2873_vm3, %v3765_v36, %v6294_v0  ;;  %v3794_v11 = vsel %vm2885_vm10, %v3779_v20, %v6308_v17  ;;  %v6324_v50 = vunpack.i.h.bf16 %v14139_v60  ;;  %v14143_v0 = vld [vmem:[#allocation191_spill] sm:$0xff] }
 0x82a   :  { %7106 = vrot.lane.b32.xlu1 %v14025_v24, %s7605_s6  ;;  %v11028_v48 = vpop.permute.xlu0 %6881  ;;  %v3796_v51 = vsel %vm2885_vm10, %v3781_v6, %v6313_v45  ;;  %v3797_v39 = vsel %vm2885_vm10, %v3782_v8, %v6314_v46  ;;  %v3795_v16 = vsel %vm2885_vm10, %v3780_v63, %v6309_v32  ;;  %v14142_v46 = vunpack.i.l.bf16 %v14076_v5  ;;  %v14145_v32 = vld [vmem:[#allocation192_spill] sm:$0xff] }
 0x82b   :  { %14131 = vst [vmem:[#allocation181_spill] sm:$0xff] %v11028_v48  ;;  %v14137_v48 = vpack.i.bf16 %v10405_v53, %v13901_v10  ;;  %v6333_v45 = vunpack.i.l.bf16 %v14143_v0  ;;  %v14144_v6 = vunpack.i.h.bf16 %v14076_v5  ;;  %v6344_v17 = vunpack.i.h.bf16 %v14145_v32 }
 0x82c   :  { %v11030_v15 = vpop.permute.xlu1 %6801  ;;  %v3807_v36 = vsel %vm2897_vm11, %v3792_v52, %v14142_v46  ;;  %v6343_v20 = vunpack.i.l.bf16 %v14145_v32  ;;  %v6334_v63 = vunpack.i.h.bf16 %v14143_v0  ;;  %v14146_v52 = vunpack.i.l.bf16 %v14078_v19  ;;  %v14150_v32 = vld [vmem:[#allocation33_spill] sm:$0xff] }
 0x82d   :  { %14132 = vst [vmem:[#allocation32_spill] sm:$0xff] %v11030_v15  ;;  %7136 = vrot.lane.b32.xlu0 %v14137_v48, %s7595_s2  ;;  %v6323_v48 = vunpack.i.l.bf16 %v14139_v60  ;;  %v3808_v8 = vsel %vm2897_vm11, %v3793_v21, %v14144_v6  ;;  %v14147_v5 = vunpack.i.h.bf16 %v14078_v19  ;;  %v14149_v0 = vunpack.i.h.bf16 %v14077_v25 }
 0x82e   :  { %7116 = vrot.lane.b32.xlu1 %v14138_v37, %s7606_s7  ;;  %v11056_v12 = vpop.permute.xlu0 %6886  ;;  %v14141_v37 = vld [vmem:[#allocation190_spill] sm:$0xff]  ;;  %v3809_v60 = vsel %vm2897_vm11, %v3794_v11, %v14146_v52  ;;  %v3824_v55 = vsel %vm13596_vm12, %v3808_v8, %v6324_v50  ;;  %v14151_v11 = vld [vmem:[#allocation193_spill] sm:$0xff] }
 0x82f   :  { %v6329_v57 = vunpack.i.h.bf16 %v14141_v37  ;;  %v6328_v31 = vunpack.i.l.bf16 %v14141_v37  ;;  %v3810_v21 = vsel %vm2897_vm11, %v3795_v16, %v14147_v5  ;;  %v14148_v37 = vunpack.i.l.bf16 %v14077_v25 }
 0x830   :  { %v11058_v28 = vpop.permute.xlu1 %6806  ;;  %v3812_v6 = vsel %vm2897_vm11, %v3797_v39, %v14149_v0  ;;  %v3823_v14 = vsel %vm13596_vm12, %v3807_v36, %v6323_v48  ;;  %v6338_v52 = vunpack.i.l.bf16 %v14151_v11  ;;  %v6339_v5 = vunpack.i.h.bf16 %v14151_v11  ;;  %v14153_v36 = vld [vmem:[#allocation194_spill] sm:$0xff]  ;;  %v14154_v0 = vld [vmem:[#allocation88_spill] sm:$0xff] }
 0x831   :  { %14140 = vst [vmem:[#allocation49_spill] sm:$0xff] %v11058_v28  ;;  %7146 = vrot.lane.b32.xlu0 %v10897_v27, %s7595_s2  ;;  %v3811_v46 = vsel %vm2897_vm11, %v3796_v51, %v14148_v37  ;;  %v3825_v51 = vsel %vm13596_vm12, %v3809_v60, %v6328_v31  ;;  %v3826_v25 = vsel %vm13596_vm12, %v3810_v21, %v6329_v57  ;;  %v6358_v8 = vunpack.i.l.bf16 %v14153_v36  ;;  %v14155_v28 = vld [vmem:[#allocation198_spill] sm:$0xff]  ;;  %v14157_v60 = vld [vmem:[#allocation195_spill] sm:$0xff] }
 0x832   :  { %7126 = vrot.lane.b32.xlu1 %v14026_v13, %s7606_s7  ;;  %v11092_v19 = vpop.permute.xlu0 %6896  ;;  %v3827_v39 = vsel %vm13596_vm12, %v3811_v46, %v6333_v45  ;;  %v3841_v37 = vsel %vm13595_vm13, %v3825_v51, %v6343_v20  ;;  %v3842_v48 = vsel %vm13595_vm13, %v3826_v25, %v6344_v17  ;;  %v3828_v50 = vsel %vm13596_vm12, %v3812_v6, %v6334_v63  ;;  %v14156_v31 = vld [vmem:[#allocation82_spill] sm:$0xff] }
 0x833   :  { %v6359_v57 = vunpack.i.h.bf16 %v14153_v36  ;;  %v6373_v45 = vunpack.i.l.bf16 %v14156_v31  ;;  %v6349_v21 = vunpack.i.h.bf16 %v14157_v60  ;;  %v6348_v20 = vunpack.i.l.bf16 %v14157_v60  ;;  %v14158_v46 = vld [vmem:[#allocation78_spill] sm:$0xff]  ;;  %v14162_v60 = vld [vmem:[#allocation199_spill] sm:$0xff] }
 0x834   :  { %v11094_v16 = vpop.permute.xlu1 %6816  ;;  %v3839_v17 = vsel %vm13595_vm13, %v3823_v14, %v6338_v52  ;;  %v6374_v63 = vunpack.i.h.bf16 %v14156_v31  ;;  %v6354_v6 = vunpack.i.h.bf16 %v14158_v46  ;;  %v6353_v11 = vunpack.i.l.bf16 %v14158_v46  ;;  %v14163_v52 = vld [vmem:[#allocation200_spill] sm:$0xff] }
 0x835   :  { %14152 = vst [vmem:[#allocation183_spill] sm:$0xff] %v11094_v16  ;;  %7161 = vrot.lane.b32.xlu0 %v14154_v0, %s7607_s25  ;;  %v3840_v36 = vsel %vm13595_vm13, %v3824_v55, %v6339_v5  ;;  %v14161_v16 = vld [vmem:[#allocation197_spill] sm:$0xff]  ;;  %v6363_v3 = vunpack.i.l.bf16 %v14162_v60  ;;  %v3857_v14 = vsel %vm13594_vm4, %v3841_v37, %v6358_v8  ;;  %v6404_v31 = vunpack.i.h.bf16 %v14163_v52 }
 0x836   :  { %7141 = vrot.lane.b32.xlu1 %v14155_v28, %s7595_s2  ;;  %v11116_v51 = vpop.permute.xlu0 %6911  ;;  %v6389_v29 = vunpack.i.h.bf16 %v14161_v16  ;;  %v6388_v15 = vunpack.i.l.bf16 %v14161_v16  ;;  %v6403_v13 = vunpack.i.l.bf16 %v14163_v52  ;;  %v6364_v46 = vunpack.i.h.bf16 %v14162_v60 }
 0x837   :  { %14159 = vst [vmem:[#allocation67_spill] sm:$0xff] %v11116_v51  ;;  %v3858_v55 = vsel %vm13594_vm4, %v3842_v48, %v6359_v57  ;;  %v3873_v16 = vsel %vm13593_vm15, %v3857_v14, %v6373_v45  ;;  %v3843_v5 = vsel %vm13595_vm13, %v3827_v39, %v6348_v20  ;;  %v3844_v37 = vsel %vm13595_vm13, %v3828_v50, %v6349_v21 }
 0x838   :  { %v11118_v25 = vpop.permute.xlu1 %6831  ;;  %v3874_v8 = vsel %vm13593_vm15, %v3858_v55, %v6374_v63  ;;  %v3855_v52 = vsel %vm13594_vm4, %v3839_v17, %v6353_v11  ;;  %v3856_v60 = vsel %vm13594_vm4, %v3840_v36, %v6354_v6  ;;  %v3889_v48 = vsel %vm13592_vm6, %v3873_v16, %v6388_v15  ;;  %v14168_v36 = vld [vmem:[#allocation211_spill] sm:$0xff]  ;;  %v14170_v16 = vld [vmem:[#allocation212_spill] sm:$0xff] }
 0x839   :  { %14160 = vst [vmem:[#allocation91_spill] sm:$0xff] %v11118_v25  ;;  %7171 = vrot.lane.b32.xlu0 %v10910_v23, %s7607_s25  ;;  %v14164_v25 = vld [vmem:[#allocation201_spill] sm:$0xff]  ;;  %v3890_v57 = vsel %vm13592_vm6, %v3874_v8, %v6389_v29  ;;  %v3859_v39 = vsel %vm13594_vm4, %v3843_v5, %v6363_v3  ;;  %v3905_v21 = vsel %vm13591_vm7, %v3889_v48, %v6403_v13  ;;  %v6384_v6 = vunpack.i.h.bf16 %v10415_v49 }
 0x83a   :  { %7151 = vrot.lane.b32.xlu1 %v10915_v35, %s7595_s2  ;;  %v6368_v51 = vunpack.i.l.bf16 %v14164_v25  ;;  %v11140_v23 = vpop.permute.xlu0 %6921  ;;  %v6369_v50 = vunpack.i.h.bf16 %v14164_v25  ;;  %v3906_v20 = vsel %vm13591_vm7, %v3890_v57, %v6404_v31  ;;  %v3860_v17 = vsel %vm13594_vm4, %v3844_v37, %v6364_v46  ;;  %v14167_v29 = vld [vmem:[#allocation205_spill] sm:$0xff]  ;;  %v14172_v37 = vld [vmem:[#allocation203_spill] sm:$0xff] }
 0x83b   :  { %v14166_v15 = vpack.i.bf16 %v9652_v61, %v13911_v38  ;;  %v6379_v3 = vunpack.i.h.bf16 %v14167_v29  ;;  %v6378_v63 = vunpack.i.l.bf16 %v14167_v29  ;;  %v6383_v13 = vunpack.i.l.bf16 %v10415_v49 }
 0x83c   :  { %v11142_v53 = vpop.permute.xlu1 %6841  ;;  %v3871_v11 = vsel %vm13593_vm15, %v3855_v52, %v6368_v51  ;;  %v6393_v25 = vunpack.i.l.bf16 %v10427_v33  ;;  %v6399_v14 = vunpack.i.h.bf16 %v14168_v36  ;;  %v6398_v31 = vunpack.i.l.bf16 %v14168_v36  ;;  %v14175_v36 = vld [vmem:[#allocation207_spill] sm:$0xff] }
 0x83d   :  { %14165 = vst [vmem:[#allocation185_spill] sm:$0xff] %v11142_v53  ;;  %7181 = vrot.lane.b32.xlu0 %v13982_v54, %s7600_s20  ;;  %v3872_v38 = vsel %vm13593_vm15, %v3856_v60, %v6369_v50  ;;  %v6394_v55 = vunpack.i.h.bf16 %v10427_v33  ;;  %v6408_v5 = vunpack.i.l.bf16 %v14170_v16  ;;  %v14171_v49 = vunpack.i.l.bf16 %v14085_v26  ;;  %v14174_v33 = vld [vmem:[#allocation132_spill] sm:$0xff] }
 0x83e   :  { %7156 = vrot.lane.b32.xlu1 %v14166_v15, %s7607_s25  ;;  %v11166_v46 = vpop.permute.xlu0 %6926  ;;  %v6414_v8 = vunpack.i.h.bf16 %v14172_v37  ;;  %v6413_v52 = vunpack.i.l.bf16 %v14172_v37  ;;  %v6409_v48 = vunpack.i.h.bf16 %v14170_v16  ;;  %v14173_v57 = vunpack.i.h.bf16 %v14085_v26 }
 0x83f   :  { %v3921_v51 = vsel %vm13590_vm9, %v3905_v21, %v14171_v49  ;;  %v3875_v60 = vsel %vm13593_vm15, %v3859_v39, %v6378_v63  ;;  %v3876_v50 = vsel %vm13593_vm15, %v3860_v17, %v6379_v3  ;;  %v3887_v21 = vsel %vm13592_vm6, %v3871_v11, %v6383_v13 }
 0x840   :  { %v11168_v61 = vpop.permute.xlu1 %6846  ;;  %v3922_v15 = vsel %vm13590_vm9, %v3906_v20, %v14173_v57  ;;  %v3888_v29 = vsel %vm13592_vm6, %v3872_v38, %v6384_v6  ;;  %v6424_v16 = vunpack.i.h.bf16 %v14175_v36  ;;  %v3891_v26 = vsel %vm13592_vm6, %v3875_v60, %v6393_v25  ;;  %v14177_v6 = vld [vmem:[#allocation209_spill] sm:$0xff] }
 0x841   :  { %14169 = vst [vmem:[#allocation182_spill] sm:$0xff] %v11168_v61  ;;  %4010 = vrot.lane.b32.xlu0 %v10855_v9, %s7600_s20  ;;  %v3903_v20 = vsel %vm13591_vm7, %v3887_v21, %v6398_v31  ;;  %v3904_v49 = vsel %vm13591_vm7, %v3888_v29, %v6399_v14  ;;  %v6423_v39 = vunpack.i.l.bf16 %v14175_v36  ;;  %v3892_v17 = vsel %vm13592_vm6, %v3876_v50, %v6394_v55  ;;  %v14178_v31 = vld [vmem:[#allocation210_spill] sm:$0xff]  ;;  %v14181_v21 = vld [vmem:[#allocation57_spill] sm:$0xff]  ;;  %v14237_v61 = vld [vmem:[#allocation216_spill] sm:$0xff] }
 0x842   :  { %7166 = vrot.lane.b32.xlu1 %v14174_v33, %s7607_s25  ;;  %v11194_v37 = vpop.permute.xlu0 %6936  ;;  %v3907_v3 = vsel %vm13591_vm7, %v3891_v26, %v6408_v5  ;;  %v6418_v63 = vunpack.i.l.bf16 %v10476_v43  ;;  %v6434_v13 = vunpack.i.h.bf16 %v14177_v6  ;;  %v6433_v11 = vunpack.i.l.bf16 %v14177_v6 }
 0x843   :  { %v3908_v25 = vsel %vm13591_vm7, %v3892_v17, %v6409_v48  ;;  %v6419_v14 = vunpack.i.h.bf16 %v10476_v43  ;;  %v14179_v5 = vunpack.i.l.bf16 %v14083_v22  ;;  %v14180_v50 = vunpack.i.h.bf16 %v14083_v22 }
 0x844   :  { %v11196_v57 = vpop.permute.xlu1 %6856  ;;  %v6464_v29 = vunpack.i.h.bf16 %v10470_v4  ;;  %v6463_v36 = vunpack.i.l.bf16 %v10470_v4  ;;  %v6484_v45 = vunpack.i.h.bf16 %v10499_v40 }
 0x845   :  { %14176 = vst [vmem:[#allocation184_spill] sm:$0xff] %v11196_v57  ;;  %7196 = vrot.lane.b32.xlu0 %v14018_v42, %s7601_s21  ;;  %v3919_v60 = vsel %vm13590_vm9, %v3903_v20, %v14179_v5  ;;  %v3920_v48 = vsel %vm13590_vm9, %v3904_v49, %v14180_v50  ;;  %v14184_v20 = vunpack.i.h.bf16 %v14086_v56  ;;  %v3937_v49 = vsel %vm13588_vm8, %v3921_v51, %v6418_v63 }
 0x846   :  { %7176 = vrot.lane.b32.xlu1 %v14004_v1, %s7600_s20  ;;  %v14182_v1 = vunpack.i.l.bf16 %v14086_v56  ;;  %v11224_v17 = vpop.permute.xlu0 %6951  ;;  %v6483_v5 = vunpack.i.l.bf16 %v10499_v40  ;;  %v6428_v50 = vunpack.i.l.bf16 %v10493_v44  ;;  %v3938_v4 = vsel %vm13588_vm8, %v3922_v15, %v6419_v14  ;;  %v14188_v14 = vld [vmem:[#allocation70_spill] sm:$0xff] }
 0x847   :  { %v3924_v22 = vsel %vm13590_vm9, %v3908_v25, %v14184_v20  ;;  %v14186_v56 = vpack.i.bf16 %v14098_v7, %v14088_v34  ;;  %v6453_v51 = vunpack.i.l.bf16 %v14181_v21  ;;  %v3935_v63 = vsel %vm13588_vm8, %v3919_v60, %v6413_v52  ;;  %v14187_v25 = vld [vmem:[#allocation52_spill] sm:$0xff] }
 0x848   :  { %v3923_v26 = vsel %vm13590_vm9, %v3907_v3, %v14182_v1  ;;  %v11226_v6 = vpop.permute.xlu1 %6866  ;;  %v6429_v3 = vunpack.i.h.bf16 %v10493_v44  ;;  %v14185_v1 = vld [vmem:[#allocation215_spill] sm:$0xff]  ;;  %v3936_v15 = vsel %vm13588_vm8, %v3920_v48, %v6414_v8  ;;  %v4546_v44 = vsel %vm2850_vm2, %v14187_v25, %v6464_v29 }
 0x849   :  { %14183 = vst [vmem:[#allocation187_spill] sm:$0xff] %v11226_v6  ;;  %v6438_v43 = vunpack.i.l.bf16 %v14185_v1  ;;  %7206 = vrot.lane.b32.xlu0 %v14186_v56, %s7605_s6  ;;  %v6439_v40 = vunpack.i.h.bf16 %v14185_v1  ;;  %v4545_v20 = vsel %vm2850_vm2, %v14188_v14, %v6463_v36  ;;  %v3939_v7 = vsel %vm13588_vm8, %v3923_v26, %v6423_v39  ;;  %v14195_v25 = vld [vmem:[#allocation219_spill] sm:$0xff] }
 0x84a   :  { %7186 = vrot.lane.b32.xlu1 %v14048_v41, %s7600_s20  ;;  %v3940_v56 = vsel %vm13588_vm8, %v3924_v22, %v6424_v16  ;;  %v11254_v55 = vpop.permute.xlu0 %6961  ;;  %v4560_v52 = vsel %vm1597_vm14, %v4545_v20, %v6483_v5  ;;  %v11260_v8 = vsel %vm13587_vm0, %v3935_v63, %v6428_v50  ;;  %v3953_v60 = vsel %vm13587_vm0, %v3937_v49, %v6433_v11  ;;  %v14196_v20 = vld [vmem:[#allocation125_spill] sm:$0xff]  ;;  %v14231_v6 = vld [vmem:[#allocation135_spill] sm:$0xff] }
 0x84b   :  { %v3954_v48 = vsel %vm13587_vm0, %v3938_v4, %v6434_v13  ;;  %v4561_v29 = vsel %vm1597_vm14, %v4546_v44, %v6484_v45  ;;  %v11266_v36 = vsel %vm13587_vm0, %v3936_v15, %v6429_v3  ;;  %v11269_v16 = vsel %vm13587_vm0, %v3939_v7, %v6438_v43  ;;  %v14192_v3 = vld [vmem:[#allocation218_spill] sm:$0xff] }
 0x84c   :  { %v11256_v38 = vpop.permute.xlu1 %6876  ;;  %v6448_v39 = vunpack.i.l.bf16 %v10513_v2  ;;  %v11277_v11 = vsel %vm13587_vm0, %v3940_v56, %v6439_v40  ;;  %v6504_v13 = vunpack.i.h.bf16 %v10522_v62  ;;  %v6503_v45 = vunpack.i.l.bf16 %v10522_v62 }
 0x84d   :  { %14189 = vst [vmem:[#allocation188_spill] sm:$0xff] %v11256_v38  ;;  %7211 = vrot.lane.b32.xlu0 %v13958_v18, %s7602_s22  ;;  %v6449_v26 = vunpack.i.h.bf16 %v10513_v2  ;;  %v14190_v43 = vunpack.i.l.bf16 %v14090_v47  ;;  %v6459_v49 = vunpack.i.h.bf16 %v10528_v30  ;;  %v6458_v18 = vunpack.i.l.bf16 %v10528_v30  ;;  %v14194_v30 = vld [vmem:[#allocation217_spill] sm:$0xff] }
 0x84e   :  { %7191 = vrot.lane.b32.xlu1 %v13985_v58, %s7601_s21  ;;  %v6469_v5 = vunpack.i.h.bf16 %v10543_v59  ;;  %v11288_v58 = vpop.permute.xlu0 %6966  ;;  %v14191_v4 = vunpack.i.h.bf16 %v14090_v47  ;;  %v6468_v2 = vunpack.i.l.bf16 %v10543_v59  ;;  %v6479_v1 = vunpack.i.h.bf16 %v14192_v3  ;;  %v14197_v47 = vld [vmem:[#allocation86_spill] sm:$0xff] }
 0x84f   :  { %v4575_v22 = vsel %vm2873_vm3, %v4560_v52, %v14190_v43  ;;  %v6478_v63 = vunpack.i.l.bf16 %v14192_v3  ;;  %v11299_v15 = vsel %vm13589_vm5, %v3953_v60, %v6448_v39  ;;  %v6513_v40 = vunpack.i.l.bf16 %v14194_v30  ;;  %v14200_v60 = vld [vmem:[#allocation83_spill] sm:$0xff]  ;;  %v14201_v39 = vld [vmem:[#allocation100_spill] sm:$0xff] }
 0x850   :  { %v11290_v50 = vpop.permute.xlu1 %6891  ;;  %v4576_v62 = vsel %vm2873_vm3, %v4561_v29, %v14191_v4  ;;  %14193 = vst [vmem:[#allocation189_spill] sm:$0xff] %v11299_v15  ;;  %v6489_v44 = vunpack.i.h.bf16 %v14195_v25  ;;  %v6488_v14 = vunpack.i.l.bf16 %v14195_v25  ;;  %v14198_v59 = vpack.i.bf16 %v14197_v47, %v14088_v34  ;;  %v14202_v4 = vld [vmem:[#allocation97_spill] sm:$0xff]  ;;  %v14203_v25 = vld [vmem:[#allocation152_spill] sm:$0xff]  ;;  %v14204_v34 = vld [vmem:[#allocation102_spill] sm:$0xff] }
 0x851   :  { %7216 = vrot.lane.b32.xlu0 %v14196_v20, %s7602_s22  ;;  %v4590_v7 = vsel %vm2885_vm10, %v4575_v22, %v6503_v45  ;;  %v4591_v56 = vsel %vm2885_vm10, %v4576_v62, %v6504_v13  ;;  %v11313_v52 = vsel %vm13589_vm5, %v3954_v48, %v6449_v26  ;;  %v6523_v29 = vunpack.i.l.bf16 %v14200_v60  ;;  %v14205_v13 = vld [vmem:[#allocation61_spill] sm:$0xff] }
 0x852   :  { %7201 = vrot.lane.b32.xlu1 %v14198_v59, %s7602_s22  ;;  %14199 = vst [vmem:[#allocation190_spill] sm:$0xff] %v11313_v52  ;;  %v4544_v43 = vsel %vm2850_vm2, %v14201_v39, %v6459_v49  ;;  %v4543_v3 = vsel %vm2850_vm2, %v14202_v4, %v6458_v18  ;;  %v4548_v20 = vsel %vm2850_vm2, %v14203_v25, %v6469_v5  ;;  %v6533_v47 = vunpack.i.l.bf16 %v14204_v34  ;;  %v11323_v59 = vpop.permute.xlu0 %6976  ;;  %v14206_v49 = vld [vmem:[#allocation220_spill] sm:$0xff] }
 0x853   :  { %v4547_v48 = vsel %vm2850_vm2, %v14205_v13, %v6468_v2  ;;  %v4558_v26 = vsel %vm1597_vm14, %v4543_v3, %v6478_v63  ;;  %v4559_v22 = vsel %vm1597_vm14, %v4544_v43, %v6479_v1  ;;  %v6498_v62 = vunpack.i.l.bf16 %v14206_v49  ;;  %v14207_v63 = vld [vmem:[#allocation101_spill] sm:$0xff]  ;;  %v14226_v2 = vld [vmem:[#allocation92_spill] sm:$0xff] }
 0x854   :  { %v11325_v45 = vpop.permute.xlu1 %6901  ;;  %v6514_v18 = vunpack.i.h.bf16 %v14194_v30  ;;  %v4606_v39 = vsel %vm2897_vm11, %v4591_v56, %v6513_v40  ;;  %v4562_v5 = vsel %vm1597_vm14, %v4547_v48, %v6488_v14  ;;  %v4563_v4 = vsel %vm1597_vm14, %v4548_v20, %v6489_v44  ;;  %v14208_v56 = vld [vmem:[#allocation131_spill] sm:$0xff] }
 0x855   :  { %7231 = vrot.lane.b32.xlu0 %v14154_v0, %s7603_s24  ;;  %v4621_v1 = vsel %vm13596_vm12, %v4606_v39, %v6523_v29  ;;  %v6543_v43 = vunpack.i.l.bf16 %v14207_v63  ;;  %v6499_v30 = vunpack.i.h.bf16 %v14206_v49  ;;  %v14209_v44 = vunpack.i.l.bf16 %v14208_v56  ;;  %v14211_v29 = vld [vmem:[#allocation103_spill] sm:$0xff]  ;;  %v14212_v49 = vld [vmem:[#allocation133_spill] sm:$0xff] }
 0x856   :  { %7221 = vrot.lane.b32.xlu1 %v14155_v28, %s7596_s3  ;;  %v4636_v14 = vsel %vm13595_vm13, %v4621_v1, %v6533_v47  ;;  %v14210_v0 = vunpack.i.h.bf16 %v14208_v56  ;;  %v11352_v25 = vpop.permute.xlu0 %6986  ;;  %v6553_v13 = vunpack.i.l.bf16 %v14211_v29  ;;  %v14213_v39 = vunpack.i.l.bf16 %v14212_v49  ;;  %v14221_v56 = vld [vmem:[#allocation223_spill] sm:$0xff] }
 0x857   :  { %v4573_v3 = vsel %vm2873_vm3, %v4558_v26, %v14209_v44  ;;  %v14214_v1 = vunpack.i.h.bf16 %v14212_v49  ;;  %v14215_v44 = vld [vmem:[#allocation104_spill] sm:$0xff]  ;;  %v6519_v40 = vunpack.i.h.bf16 %v14221_v56 }
 0x858   :  { %v4574_v28 = vsel %vm2873_vm3, %v4559_v22, %v14210_v0  ;;  %v11354_v20 = vpop.permute.xlu1 %6906  ;;  %v4588_v48 = vsel %vm2885_vm10, %v4573_v3, %v6498_v62  ;;  %v4577_v47 = vsel %vm2873_vm3, %v4562_v5, %v14213_v39  ;;  %v6563_v22 = vunpack.i.l.bf16 %v14215_v44 }
 0x859   :  { %v4578_v26 = vsel %vm2873_vm3, %v4563_v4, %v14214_v1  ;;  %7236 = vrot.lane.b32.xlu0 %v14174_v33, %s7603_s24  ;;  %v14216_v62 = vunpack.i.h.bf16 %v14178_v31  ;;  %v14218_v5 = vunpack.i.l.bf16 %v14178_v31  ;;  %v4651_v0 = vsel %vm13594_vm4, %v4636_v14, %v6543_v43  ;;  %v14220_v33 = vld [vmem:[#allocation58_spill] sm:$0xff]  ;;  %v14223_v14 = vld [vmem:[#allocation224_spill] sm:$0xff] }
 0x85a   :  { %7226 = vrot.lane.b32.xlu1 %v10897_v27, %s7596_s3  ;;  %v4589_v49 = vsel %vm2885_vm10, %v4574_v28, %v6499_v30  ;;  %v6509_v39 = vunpack.i.h.bf16 %v14220_v33  ;;  %v6508_v27 = vunpack.i.l.bf16 %v14220_v33  ;;  %v14222_v31 = vunpack.i.h.bf16 %v14150_v32 }
 0x85b   :  { %v11374_v3 = vsel %vm13589_vm5, %v11266_v36, %v14216_v62  ;;  %v11380_v4 = vsel %vm13589_vm5, %v11260_v8, %v14218_v5  ;;  %v6518_v36 = vunpack.i.l.bf16 %v14221_v56  ;;  %v11394_v8 = vpop.permute.xlu0 %6991  ;;  %v4666_v30 = vsel %vm13593_vm15, %v4651_v0, %v6553_v13  ;;  %v14227_v13 = vld [vmem:[#allocation204_spill] sm:$0xff] }
 0x85c   :  { %14217 = vst [vmem:[#allocation191_spill] sm:$0xff] %v11374_v3  ;;  %14219 = vst [vmem:[#allocation192_spill] sm:$0xff] %v11380_v4  ;;  %v11392_v62 = vsel %vm2897_vm11, %v4588_v48, %v14222_v31  ;;  %v11396_v43 = vpop.permute.xlu1 %6916  ;;  %v6529_v28 = vunpack.i.h.bf16 %v14223_v14  ;;  %v6528_v5 = vunpack.i.l.bf16 %v14223_v14  ;;  %v11405_v56 = vsel %vm13589_vm5, %v11269_v16, %v6453_v51  ;;  %v14225_v48 = vld [vmem:[#allocation226_spill] sm:$0xff] }
 0x85d   :  { %14224 = vst [vmem:[#allocation33_spill] sm:$0xff] %v11405_v56  ;;  %v4592_v33 = vsel %vm2885_vm10, %v4577_v47, %v6563_v22  ;;  %v6539_v31 = vunpack.i.h.bf16 %v14225_v48  ;;  %v6538_v1 = vunpack.i.l.bf16 %v14225_v48  ;;  %7251 = vrot.lane.b32.xlu0 %v14226_v2, %s7589_s29  ;;  %v14228_v0 = vunpack.i.h.bf16 %v14181_v21  ;;  %v14230_v47 = vld [vmem:[#allocation228_spill] sm:$0xff] }
 0x85e   :  { %7241 = vrot.lane.b32.xlu1 %v14227_v13, %s7594_s11  ;;  %v4605_v51 = vsel %vm2897_vm11, %v4590_v7, %v6509_v39  ;;  %v4604_v16 = vsel %vm2897_vm11, %v4589_v49, %v6508_v27  ;;  %v6549_v22 = vunpack.i.h.bf16 %v14230_v47  ;;  %v6548_v48 = vunpack.i.l.bf16 %v14230_v47  ;;  %v14233_v27 = vld [vmem:[#allocation247_spill] sm:$0xff]  ;;  %v14234_v47 = vld [vmem:[#allocation222_spill] sm:$0xff] }
 0x85f   :  { %v11418_v14 = vsel %vm13589_vm5, %v11277_v11, %v14228_v0  ;;  %v6564_v38 = vunpack.i.h.bf16 %v14215_v44  ;;  %v4619_v2 = vsel %vm13596_vm12, %v4604_v16, %v6518_v36  ;;  %v4620_v13 = vsel %vm13596_vm12, %v4605_v51, %v6519_v40  ;;  %v11430_v11 = vpop.permute.xlu0 %7001  ;;  %v14235_v16 = vld [vmem:[#allocation251_spill] sm:$0xff] }
 0x860   :  { %14229 = vst [vmem:[#allocation193_spill] sm:$0xff] %v11418_v14  ;;  %v14232_v21 = vunpack.i.l.bf16 %v14231_v6  ;;  %v11432_v0 = vpop.permute.xlu1 %6931  ;;  %v4607_v7 = vsel %vm2897_vm11, %v4592_v33, %v6514_v18  ;;  %v4634_v49 = vsel %vm13595_vm13, %v4619_v2, %v6528_v5  ;;  %v4635_v39 = vsel %vm13595_vm13, %v4620_v13, %v6529_v28  ;;  %v14238_v18 = vld [vmem:[#allocation94_spill] sm:$0xff]  ;;  %v14240_v13 = vld [vmem:[#allocation39_spill] sm:$0xff] }
 0x861   :  { %v6669_v44 = vunpack.i.h.bf16 %v14233_v27  ;;  %v6559_v36 = vunpack.i.h.bf16 %v14234_v47  ;;  %v4649_v40 = vsel %vm13594_vm4, %v4634_v49, %v6538_v1  ;;  %v4650_v51 = vsel %vm13594_vm4, %v4635_v39, %v6539_v31  ;;  %v14242_v39 = vld [vmem:[#allocation258_spill] sm:$0xff] }
 0x862   :  { %v4681_v57 = vsel %vm13592_vm6, %v4666_v30, %v14232_v21  ;;  %v6684_v30 = vunpack.i.h.bf16 %v14235_v16  ;;  %v14236_v21 = vld [vmem:[#allocation93_spill] sm:$0xff]  ;;  %v14239_v33 = vpack.i.bf16 %v14237_v61, %v14238_v18  ;;  %v6558_v28 = vunpack.i.l.bf16 %v14234_v47  ;;  %v14248_v61 = vld [vmem:[#allocation231_spill] sm:$0xff] }
 0x863   :  { %7261 = vrot.lane.b32.xlu0 %v14236_v21, %s7604_s5  ;;  %v4664_v5 = vsel %vm13593_vm15, %v4649_v40, %v6548_v48  ;;  %v4665_v2 = vsel %vm13593_vm15, %v4650_v51, %v6549_v22  ;;  %v6699_v1 = vunpack.i.h.bf16 %v14240_v13  ;;  %v14241_v31 = vunpack.i.h.bf16 %v14200_v60  ;;  %v11456_v21 = vpop.permute.xlu0 %7011  ;;  %v14244_v47 = vld [vmem:[#allocation225_spill] sm:$0xff]  ;;  %v14245_v51 = vld [vmem:[#allocation134_spill] sm:$0xff]  ;;  %v14252_v60 = vld [vmem:[#allocation120_spill] sm:$0xff] }
 0x864   :  { %7246 = vrot.lane.b32.xlu1 %v14239_v33, %s7594_s11  ;;  %v6714_v16 = vunpack.i.h.bf16 %v14242_v39  ;;  %v11458_v27 = vpop.permute.xlu1 %6941  ;;  %v11465_v22 = vsel %vm2885_vm10, %v4578_v26, %v6564_v38  ;;  %v14247_v13 = vunpack.i.h.bf16 %v14245_v51  ;;  %v6568_v48 = vunpack.i.l.bf16 %v14248_v61  ;;  %v14249_v26 = vld [vmem:[#allocation108_spill] sm:$0xff]  ;;  %v14250_v40 = vld [vmem:[#allocation98_spill] sm:$0xff] }
 0x865   :  { %v4622_v49 = vsel %vm13596_vm12, %v4607_v7, %v14241_v31  ;;  %14243 = vst [vmem:[#allocation194_spill] sm:$0xff] %v11465_v22  ;;  %v3746_v7 = vsel %vm2850_vm2, %v13901_v10, %v6669_v44  ;;  %v14246_v31 = vunpack.i.l.bf16 %v14245_v51  ;;  %v14251_v18 = vpack.i.bf16 %v14249_v26, %v14250_v40  ;;  %v14253_v10 = vld [vmem:[#allocation95_spill] sm:$0xff]  ;;  %v14269_v22 = vld [vmem:[#allocation196_spill] sm:$0xff] }
 0x866   :  { %v4680_v33 = vsel %vm13592_vm6, %v4665_v2, %v14247_v13  ;;  %v3761_v38 = vsel %vm1597_vm14, %v3746_v7, %v6684_v30  ;;  %v14254_v44 = vpack.i.bf16 %v14252_v60, %v14253_v10  ;;  %v14257_v13 = vld [vmem:[#allocation264_spill] sm:$0xff]  ;;  %v6904_v30 = vunpack.i.h.bf16 %v11325_v45  ;;  %v14258_v7 = vld [vmem:[#allocation230_spill] sm:$0xff] }
 0x867   :  { %v4679_v39 = vsel %vm13592_vm6, %v4664_v5, %v14246_v31  ;;  %7271 = vrot.lane.b32.xlu0 %v14251_v18, %s7604_s5  ;;  %v14255_v5 = vunpack.i.h.bf16 %v14204_v34  ;;  %v3776_v2 = vsel %vm2873_vm3, %v3761_v38, %v6699_v1  ;;  %v6729_v31 = vunpack.i.h.bf16 %v14257_v13  ;;  %v11499_v26 = vpop.permute.xlu0 %7016  ;;  %v14259_v38 = vld [vmem:[#allocation124_spill] sm:$0xff]  ;;  %v14261_v13 = vld [vmem:[#allocation126_spill] sm:$0xff] }
 0x868   :  { %7256 = vrot.lane.b32.xlu1 %v14254_v44, %s7589_s29  ;;  %v3791_v40 = vsel %vm2885_vm10, %v3776_v2, %v6714_v16  ;;  %v6893_v60 = vunpack.i.l.bf16 %v11290_v50  ;;  %v11501_v34 = vpop.permute.xlu1 %6946  ;;  %v11507_v1 = vsel %vm13591_vm7, %v4680_v33, %v6559_v36  ;;  %v6744_v10 = vunpack.i.h.bf16 %v14259_v38  ;;  %v14260_v16 = vld [vmem:[#allocation234_spill] sm:$0xff] }
 0x869   :  { %v11490_v51 = vsel %vm13595_vm13, %v4622_v49, %v14255_v5  ;;  %v11504_v49 = vsel %vm13591_vm7, %v4679_v39, %v6558_v28  ;;  %v6889_v44 = vunpack.i.h.bf16 %v11056_v12  ;;  %v11512_v5 = vsel %vm13591_vm7, %v4681_v57, %v6568_v48  ;;  %v14262_v28 = vld [vmem:[#allocation138_spill] sm:$0xff]  ;;  %v14264_v57 = vld [vmem:[#allocation260_spill] sm:$0xff] }
 0x86a   :  { %14256 = vst [vmem:[#allocation88_spill] sm:$0xff] %v11490_v51  ;;  %v6899_v6 = vunpack.i.h.bf16 %v11092_v19  ;;  %v6898_v18 = vunpack.i.l.bf16 %v11092_v19  ;;  %v3806_v36 = vsel %vm2897_vm11, %v3791_v40, %v6729_v31  ;;  %v14263_v39 = vunpack.i.h.bf16 %v14262_v28  ;;  %v14265_v19 = vld [vmem:[#allocation76_spill] sm:$0xff] }
 0x86b   :  { %4055 = vrot.lane.b32.xlu0 %v14261_v13, %s7601_s21  ;;  %v3760_v48 = vsel %vm2850_vm2, %v14264_v57, %v6904_v30  ;;  %v6944_v2 = vunpack.i.h.bf16 %v11458_v27  ;;  %v6924_v38 = vunpack.i.h.bf16 %v11140_v23  ;;  %v3755_v29 = vsel %vm2850_vm2, %v14265_v19, %v6893_v60  ;;  %v11533_v14 = vpop.permute.xlu0 %7026  ;;  %v14267_v57 = vld [vmem:[#allocation67_spill] sm:$0xff]  ;;  %v14268_v19 = vld [vmem:[#allocation208_spill] sm:$0xff] }
 0x86c   :  { %7266 = vrot.lane.b32.xlu1 %v14025_v24, %s7601_s21  ;;  %v3814_v33 = vsel %vm2897_vm11, %v3791_v40, %v14263_v39  ;;  %v6903_v61 = vunpack.i.l.bf16 %v11325_v45  ;;  %v6909_v24 = vunpack.i.h.bf16 %v11354_v20  ;;  %v11535_v31 = vpop.permute.xlu1 %6956  ;;  %v11538_v40 = vsel %vm13596_vm12, %v3806_v36, %v6744_v10  ;;  %v14266_v39 = vld [vmem:[#allocation206_spill] sm:$0xff]  ;;  %v14271_v36 = vld [vmem:[#allocation112_spill] sm:$0xff] }
 0x86d   :  { %v3754_v30 = vsel %vm2850_vm2, %v14266_v39, %v6889_v44  ;;  %v6913_v51 = vunpack.i.l.bf16 %v14267_v57  ;;  %v6933_v63 = vunpack.i.l.bf16 %v11432_v0  ;;  %v3758_v45 = vsel %vm2850_vm2, %v14268_v19, %v6899_v6  ;;  %v14270_v10 = vld [vmem:[#allocation242_spill] sm:$0xff]  ;;  %v14272_v6 = vld [vmem:[#allocation35_spill] sm:$0xff] }
 0x86e   :  { %v3757_v52 = vsel %vm2850_vm2, %v14269_v22, %v6898_v18  ;;  %v3775_v56 = vsel %vm1597_vm14, %v3760_v48, %v6924_v38  ;;  %v6923_v44 = vunpack.i.l.bf16 %v11140_v23  ;;  %v6964_v39 = vunpack.i.h.bf16 %v11254_v55 }
 0x86f   :  { %4135 = vrot.lane.b32.xlu0 %v14270_v10, %s7602_s22  ;;  %v3770_v60 = vsel %vm1597_vm14, %v3755_v29, %v6913_v51  ;;  %v3790_v3 = vsel %vm2873_vm3, %v3775_v56, %v6944_v2  ;;  %v3759_v19 = vsel %vm2850_vm2, %v14272_v6, %v6903_v61  ;;  %v3769_v22 = vsel %vm1597_vm14, %v3754_v30, %v6909_v24  ;;  %v11563_v48 = vpop.permute.xlu0 %7036  ;;  %v14274_v30 = vld [vmem:[#allocation127_spill] sm:$0xff] }
 0x870   :  { %7276 = vrot.lane.b32.xlu1 %v14271_v36, %s7605_s6  ;;  %v6919_v18 = vunpack.i.h.bf16 %v11396_v43  ;;  %v6918_v38 = vunpack.i.l.bf16 %v11396_v43  ;;  %v6972_v10 = vpop.permute.xlu1 %6971  ;;  %v6929_v23 = vunpack.i.h.bf16 %v11166_v46  ;;  %v3785_v36 = vsel %vm2873_vm3, %v3770_v60, %v6933_v63  ;;  %v14273_v43 = vld [vmem:[#allocation221_spill] sm:$0xff] }
 0x871   :  { %v6943_v29 = vunpack.i.l.bf16 %v11458_v27  ;;  %v6949_v56 = vunpack.i.h.bf16 %v11501_v34  ;;  %v6939_v51 = vunpack.i.h.bf16 %v11194_v37  ;;  %v6953_v61 = vunpack.i.l.bf16 %v11224_v17 }
 0x872   :  { %v6969_v24 = vunpack.i.h.bf16 %v11288_v58  ;;  %v3805_v2 = vsel %vm2885_vm10, %v3790_v3, %v6964_v39  ;;  %v6938_v63 = vunpack.i.l.bf16 %v11194_v37  ;;  %v6963_v27 = vunpack.i.l.bf16 %v11254_v55 }
 0x873   :  { %7286 = vrot.lane.b32.xlu0 %v14273_v43, %s7597_s4  ;;  %v3774_v60 = vsel %vm1597_vm14, %v3759_v19, %v6923_v44  ;;  %v3784_v6 = vsel %vm2873_vm3, %v3769_v22, %v6929_v23  ;;  %v3773_v15 = vsel %vm1597_vm14, %v3758_v45, %v6919_v18  ;;  %v3772_v4 = vsel %vm1597_vm14, %v3757_v52, %v6918_v38  ;;  %v11585_v43 = vpop.permute.xlu0 %7041  ;;  %v14276_v38 = vld [vmem:[#allocation262_spill] sm:$0xff] }
 0x874   :  { %7281 = vrot.lane.b32.xlu1 %v14274_v30, %s7605_s6  ;;  %v3800_v3 = vsel %vm2885_vm10, %v3785_v36, %v6953_v61  ;;  %v6959_v39 = vunpack.i.h.bf16 %v11535_v31  ;;  %v6982_v42 = vpop.permute.xlu1 %6981  ;;  %v3789_v30 = vsel %vm2873_vm3, %v3774_v60, %v6943_v29  ;;  %v14275_v37 = vunpack.i.l.bf16 %v14150_v32  ;;  %v14277_v29 = vld [vmem:[#allocation140_spill] sm:$0xff] }
 0x875   :  { %v3799_v44 = vsel %vm2885_vm10, %v3784_v6, %v6949_v56  ;;  %v6958_v19 = vunpack.i.l.bf16 %v11535_v31  ;;  %v3830_v45 = vsel %vm13596_vm12, %v3814_v33, %v6969_v24  ;;  %v6988_v52 = vunpack.i.l.bf16 %v11352_v25 }
 0x876   :  { %v3821_v55 = vsel %vm2897_vm11, %v3805_v2, %v14275_v37  ;;  %v6974_v22 = vunpack.i.h.bf16 %v6972_v10  ;;  %v6973_v18 = vunpack.i.l.bf16 %v6972_v10  ;;  %v7013_v32 = vunpack.i.l.bf16 %v11456_v21  ;;  %v14281_v37 = vld [vmem:[#allocation99_spill] sm:$0xff] }
 0x877   :  { %7296 = vrot.lane.b32.xlu0 %v14276_v38, %s7597_s4  ;;  %v3787_v23 = vsel %vm2873_vm3, %v3772_v4, %v6938_v63  ;;  %v3788_v36 = vsel %vm2873_vm3, %v3773_v15, %v6939_v51  ;;  %v14278_v31 = vunpack.i.h.bf16 %v14277_v29  ;;  %v3804_v56 = vsel %vm2885_vm10, %v3789_v30, %v6963_v27  ;;  %v11611_v2 = vpop.permute.xlu0 %7051  ;;  %v14282_v38 = vld [vmem:[#allocation60_spill] sm:$0xff] }
 0x878   :  { %7291 = vrot.lane.b32.xlu1 %v10915_v35, %s7596_s3  ;;  %v3837_v10 = vsel %vm13596_vm12, %v3821_v55, %v6988_v52  ;;  %v3803_v61 = vsel %vm2885_vm10, %v3788_v36, %v6959_v39  ;;  %v14279_v24 = vunpack.i.l.bf16 %v14277_v29  ;;  %v6997_v60 = vpop.permute.xlu1 %6996  ;;  %v7038_v4 = vunpack.i.l.bf16 %v11563_v48  ;;  %v14280_v39 = vld [vmem:[#allocation69_spill] sm:$0xff]  ;;  %v14284_v36 = vld [vmem:[#allocation42_spill] sm:$0xff] }
 0x879   :  { %v3816_v33 = vsel %vm2897_vm11, %v3800_v3, %v14278_v31  ;;  %v3802_v15 = vsel %vm2885_vm10, %v3787_v23, %v6958_v19  ;;  %v6999_v51 = vunpack.i.h.bf16 %v6997_v60  ;;  %v6998_v63 = vunpack.i.l.bf16 %v6997_v60 }
 0x87a   :  { %v3815_v35 = vsel %vm2897_vm11, %v3799_v44, %v14279_v24  ;;  %v3832_v27 = vsel %vm13596_vm12, %v3816_v33, %v6974_v22  ;;  %v6984_v3 = vunpack.i.h.bf16 %v6982_v42  ;;  %v6983_v30 = vunpack.i.l.bf16 %v6982_v42 }
 0x87b   :  { %v3831_v6 = vsel %vm13596_vm12, %v3815_v35, %v6973_v18  ;;  %7306 = vrot.lane.b32.xlu0 %v14280_v39, %s7603_s24  ;;  %v6979_v55 = vunpack.i.h.bf16 %v11323_v59  ;;  %v6994_v44 = vunpack.i.h.bf16 %v11394_v8  ;;  %v3848_v52 = vsel %vm13595_vm13, %v3832_v27, %v6999_v51  ;;  %v11633_v33 = vpop.permute.xlu0 %7061  ;;  %v14288_v39 = vld [vmem:[#allocation117_spill] sm:$0xff] }
 0x87c   :  { %7301 = vrot.lane.b32.xlu1 %v14281_v37, %s7606_s7  ;;  %v3847_v19 = vsel %vm13595_vm13, %v3831_v6, %v6998_v63  ;;  %v7019_v18 = vunpack.i.h.bf16 %v11499_v26  ;;  %v3853_v22 = vsel %vm13595_vm13, %v3837_v10, %v7013_v32  ;;  %v14283_v42 = vunpack.i.h.bf16 %v14282_v38  ;;  %v7007_v24 = vpop.permute.xlu1 %7006 }
 0x87d   :  { %v14285_v29 = vunpack.i.h.bf16 %v14284_v36  ;;  %v14286_v35 = vunpack.i.l.bf16 %v14284_v36  ;;  %v7063_v51 = vunpack.i.l.bf16 %v11633_v33  ;;  %v7009_v63 = vunpack.i.h.bf16 %v7007_v24 }
 0x87e   :  { %v3818_v23 = vsel %vm2897_vm11, %v3802_v15, %v14283_v42  ;;  %v7008_v6 = vunpack.i.l.bf16 %v7007_v24  ;;  %v3869_v32 = vsel %vm13594_vm4, %v3853_v22, %v7038_v4  ;;  %v7044_v10 = vunpack.i.h.bf16 %v11585_v43 }
 0x87f   :  { %v3820_v31 = vsel %vm2897_vm11, %v3804_v56, %v14285_v29  ;;  %v3819_v60 = vsel %vm2897_vm11, %v3803_v61, %v14286_v35  ;;  %v14287_v56 = vld [vmem:[#allocation229_spill] sm:$0xff]  ;;  %v3834_v61 = vsel %vm13596_vm12, %v3818_v23, %v6979_v55  ;;  %v11649_v37 = vsel %vm13593_vm15, %v3869_v32, %v7063_v51  ;;  %v11660_v24 = vpop.permute.xlu0 %7066 }
 0x880   :  { %v3835_v15 = vsel %vm13596_vm12, %v3819_v60, %v6983_v30  ;;  %v3836_v27 = vsel %vm13596_vm12, %v3820_v31, %v6984_v3  ;;  %7316 = vrot.lane.b32.xlu0 %v14287_v56, %s7595_s2  ;;  %7311 = vrot.lane.b32.xlu1 %v14288_v39, %s7606_s7  ;;  %v14289_v22 = vunpack.i.l.bf16 %v14260_v16  ;;  %v14290_v30 = vld [vmem:[#allocation89_spill] sm:$0xff]  ;;  %v3846_v29 = vsel %vm13595_vm13, %v3830_v45, %v6994_v44  ;;  %v7022_v55 = vpop.permute.xlu1 %7021  ;;  %v14295_v56 = vld [vmem:[#allocation107_spill] sm:$0xff] }
 0x881   :  { %v3851_v42 = vsel %vm13595_vm13, %v3835_v15, %v7008_v6  ;;  %v3852_v4 = vsel %vm13595_vm13, %v3836_v27, %v7009_v63  ;;  %v6764_v36 = vunpack.i.h.bf16 %v14290_v30  ;;  %v7004_v31 = vunpack.i.h.bf16 %v11430_v11  ;;  %v7468_v63 = vld [vmem:[%s13143_s12] sm:$0xff]   ;;  %v14294_v27 = vld [vmem:[#allocation259_spill] sm:$0xff] }
 0x882   :  { %v4710_v3 = vsel %vm13590_vm9, %v11507_v1, %v14289_v22  ;;  %v3862_v23 = vsel %vm13594_vm4, %v3846_v29, %v7019_v18  ;;  %v7069_v35 = vunpack.i.h.bf16 %v11660_v24  ;;  %v7024_v60 = vunpack.i.h.bf16 %v7022_v55  ;;  %v14291_v1 = vld [vmem:[#allocation77_spill] sm:$0xff]  ;;  %5519 = vmatprep.subr.bf16.mxu1 %v7468_v63 }
 0x883   :  { %v7023_v51 = vunpack.i.l.bf16 %v7022_v55  ;;  %v14292_v6 = vunpack.i.h.bf16 %v14291_v1  ;;  %v3878_v44 = vsel %vm13593_vm15, %v3862_v23, %v7044_v10  ;;  %v7054_v32 = vunpack.i.h.bf16 %v11611_v2  ;;  %v14293_v18 = vld [vmem:[#allocation233_spill] sm:$0xff]  ;;  %v11695_v30 = vpop.permute.xlu0 %7076  ;;  %5520 = vmatpush3.bf16.msra.mxu1 %v7468_v63 }
 0x884   :  { %v3850_v15 = vsel %vm13595_vm13, %v3834_v61, %v7004_v31  ;;  %7326 = vrot.lane.b32.xlu0 %v14293_v18, %s7595_s2  ;;  %v14296_v39 = vpack.i.bf16 %v14294_v27, %v14295_v56  ;;  %v7029_v22 = vunpack.i.h.bf16 %v11533_v14  ;;  %v11682_v29 = vsel %vm13592_vm6, %v3878_v44, %v7069_v35  ;;  %v14298_v55 = vld [vmem:[#allocation257_spill] sm:$0xff]  ;;  %v14299_v18 = vld [vmem:[#allocation32_spill] sm:$0xff]  ;;  %v7032_v35 = vpop.permute.xlu1 %7031 }
 0x885   :  { %v3838_v45 = vsel %vm13595_vm13, %v11538_v40, %v14292_v6  ;;  %v3863_v40 = vsel %vm13594_vm4, %v3847_v19, %v7023_v51  ;;  %v11686_v10 = vsel %vm13594_vm4, %v3848_v52, %v7024_v60  ;;  %v14297_v61 = vunpack.i.h.bf16 %v14260_v16  ;;  %v7469_v19 = vld [vmem:[%s13143_s12 + $0x8] sm:$0xff]   ;;  %v14300_v51 = vld [vmem:[#allocation232_spill] sm:$0xff] }
 0x886   :  { %7321 = vrot.lane.b32.xlu1 %v14296_v39, %s7594_s11  ;;  %v6784_v23 = vunpack.i.h.bf16 %v14298_v55  ;;  %v3854_v6 = vsel %vm13594_vm4, %v3838_v45, %v6764_v36  ;;  %v6804_v39 = vunpack.i.h.bf16 %v14299_v18  ;;  %v3866_v52 = vsel %vm13594_vm4, %v3850_v15, %v7029_v22  ;;  %v14302_v18 = vld [vmem:[#allocation121_spill] sm:$0xff]  ;;  %5521 = vmatprep.subr.bf16.mxu1 %v7469_v19 }
 0x887   :  { %v4711_v31 = vsel %vm13590_vm9, %v11512_v5, %v14297_v61  ;;  %v7079_v16 = vunpack.i.h.bf16 %v11695_v30  ;;  %v7034_v60 = vunpack.i.h.bf16 %v7032_v35  ;;  %v7033_v5 = vunpack.i.l.bf16 %v7032_v35  ;;  %5522 = vmatpush3.bf16.msra.mxu1 %v7469_v19 }
 0x888   :  { %v6599_v44 = vunpack.i.h.bf16 %v14300_v51  ;;  %v6598_v36 = vunpack.i.l.bf16 %v14300_v51  ;;  %v14301_v45 = vunpack.i.h.bf16 %v14244_v47  ;;  %v3882_v63 = vsel %vm13593_vm15, %v3866_v52, %v7054_v32 }
 0x889   :  { %v14303_v15 = vpack.i.bf16 %v10855_v9, %v14302_v18  ;;  %v3870_v22 = vsel %vm13593_vm15, %v3854_v6, %v6784_v23  ;;  %v11719_v35 = vsel %vm13592_vm6, %v3882_v63, %v7079_v16  ;;  %v3867_v51 = vsel %vm13594_vm4, %v3851_v42, %v7033_v5  ;;  %v11733_v23 = vpop.permute.xlu1 %7046  ;;  %v14304_v6 = vld [vmem:[#allocation75_spill] sm:$0xff] }
 0x88a   :  { %v11708_v61 = vsel %vm13590_vm9, %v11504_v49, %v14301_v45  ;;  %7331 = vrot.lane.b32.xlu1 %v13982_v54, %s7607_s25  ;;  %v3868_v49 = vsel %vm13594_vm4, %v3852_v4, %v7034_v60  ;;  %v11724_v32 = vsel %vm13588_vm8, %v4710_v3, %v6598_v36  ;;  %v11727_v52 = vsel %vm13588_vm8, %v4711_v31, %v6599_v44  ;;  %v11731_v45 = vpop.permute.xlu0 %7086  ;;  %v14305_v16 = vld [vmem:[#allocation119_spill] sm:$0xff] }
 0x88b   :  { %7336 = vrot.lane.b32.xlu0 %v14303_v15, %s7589_s29  ;;  %v3886_v18 = vsel %vm13592_vm6, %v3870_v22, %v6804_v39  ;;  %v6844_v54 = vunpack.i.h.bf16 %v11142_v53  ;;  %v6824_v4 = vunpack.i.h.bf16 %v14305_v16  ;;  %v7088_v60 = vunpack.i.l.bf16 %v11731_v45  ;;  %v7470_v31 = vld [vmem:[%s13143_s12 + $0x10] sm:$0xff]   ;;  %v14306_v39 = vld [vmem:[#allocation237_spill] sm:$0xff]  ;;  %v14309_v22 = vld [vmem:[#allocation238_spill] sm:$0xff] }
 0x88c   :  { %v7048_v3 = vunpack.i.l.bf16 %v11733_v23  ;;  %v6888_v19 = vunpack.i.l.bf16 %v11056_v12  ;;  %v14307_v63 = vld [vmem:[#allocation111_spill] sm:$0xff]  ;;  %5523 = vmatprep.subr.bf16.mxu1 %v7470_v31  ;;  %v7014_v12 = vunpack.i.h.bf16 %v11456_v21 }
 0x88d   :  { %v14308_v15 = vpack.i.bf16 %v14261_v13, %v14307_v63  ;;  %v3902_v53 = vsel %vm13591_vm7, %v3886_v18, %v6824_v4  ;;  %v11756_v5 = vsel %vm13592_vm6, %v11649_v37, %v7088_v60  ;;  %v6894_v63 = vunpack.i.h.bf16 %v11290_v50  ;;  %v7057_v42 = vpop.permute.xlu1 %7056  ;;  %5524 = vmatpush3.bf16.msra.mxu1 %v7470_v31  ;;  %v14312_v31 = vld [vmem:[#allocation253_spill] sm:$0xff] }
 0x88e   :  { %7341 = vrot.lane.b32.xlu1 %v14048_v41, %s7607_s25  ;;  %v3879_v44 = vsel %vm13593_vm15, %v3863_v40, %v7048_v3  ;;  %v3918_v36 = vsel %vm13590_vm9, %v3902_v53, %v6844_v54  ;;  %v11763_v41 = vpop.permute.xlu0 %7091  ;;  %v6908_v18 = vunpack.i.l.bf16 %v11354_v20  ;;  %v7059_v4 = vunpack.i.h.bf16 %v7057_v42  ;;  %v7471_v40 = vld [vmem:[%s13143_s12 + $0x18] sm:$0xff]   ;;  %v14311_v54 = vld [vmem:[#allocation145_spill] sm:$0xff] }
 0x88f   :  { %7346 = vrot.lane.b32.xlu0 %v14308_v15, %s7604_s5  ;;  %v6989_v15 = vunpack.i.h.bf16 %v11352_v25  ;;  %v7094_v37 = vunpack.i.h.bf16 %v11763_v41  ;;  %v7058_v60 = vunpack.i.l.bf16 %v7057_v42  ;;  %v14310_v3 = vld [vmem:[#allocation84_spill] sm:$0xff]  ;;  %v3753_v50 = vsel %vm2850_vm2, %v14311_v54, %v6888_v19  ;;  %5525 = vmatprep.subr.bf16.mxu1 %v7471_v40  ;;  %v14314_v54 = vld [vmem:[#allocation87_spill] sm:$0xff] }
 0x890   :  { %v6864_v53 = vunpack.i.h.bf16 %v14310_v3  ;;  %v6914_v25 = vunpack.i.h.bf16 %v14267_v57  ;;  %v14313_v20 = vld [vmem:[#allocation248_spill] sm:$0xff]  ;;  %v7039_v42 = vunpack.i.h.bf16 %v11563_v48  ;;  %v3884_v19 = vsel %vm13593_vm15, %v3868_v49, %v7059_v4 }
 0x891   :  { %v11782_v16 = vsel %vm13591_vm7, %v11682_v29, %v7094_v37  ;;  %v3883_v3 = vsel %vm13593_vm15, %v3867_v51, %v7058_v60  ;;  %v6928_v57 = vunpack.i.l.bf16 %v11166_v46  ;;  %v11793_v48 = vpop.permute.xlu1 %7071  ;;  %5526 = vmatpush3.bf16.msra.mxu1 %v7471_v40  ;;  %v4618_v29 = vsel %vm13596_vm12, %v11392_v62, %v6989_v15  ;;  %v14315_v62 = vld [vmem:[#allocation181_spill] sm:$0xff] }
 0x892   :  { %4431 = vrot.lane.b32.xlu1 %v14313_v20, %s7597_s4  ;;  %v3934_v21 = vsel %vm13588_vm8, %v3918_v36, %v6864_v53  ;;  %v7064_v20 = vunpack.i.h.bf16 %v11633_v33  ;;  %v11791_v55 = vpop.permute.xlu0 %7101  ;;  %v3768_v51 = vsel %vm1597_vm14, %v3753_v50, %v6908_v18  ;;  %v7073_v46 = vunpack.i.l.bf16 %v11793_v48  ;;  %v14316_v53 = vld [vmem:[#allocation174_spill] sm:$0xff] }
 0x893   :  { %4464 = vrot.lane.b32.xlu0 %v14312_v31, %s7606_s7  ;;  %v3756_v31 = vsel %vm2850_vm2, %v14314_v54, %v6894_v63  ;;  %v7104_v49 = vunpack.i.h.bf16 %v11791_v55  ;;  %v4633_v36 = vsel %vm13595_vm13, %v4618_v29, %v7014_v12  ;;  %v6934_v63 = vunpack.i.h.bf16 %v11432_v0 }
 0x894   :  { %v6948_v33 = vunpack.i.l.bf16 %v11501_v34  ;;  %v7089_v37 = vunpack.i.h.bf16 %v11731_v45  ;;  %v6884_v15 = vunpack.i.h.bf16 %v14315_v62  ;;  %v4648_v18 = vsel %vm13594_vm4, %v4633_v36, %v7039_v42  ;;  %v7472_v34 = vld [vmem:[%s13143_s12 + $0x20] sm:$0xff]  }
 0x895   :  { %v11812_v4 = vsel %vm13591_vm7, %v11719_v35, %v7104_v49  ;;  %v11815_v0 = vsel %vm13592_vm6, %v3879_v44, %v7073_v46  ;;  %v3783_v45 = vsel %vm2873_vm3, %v3768_v51, %v6928_v57  ;;  %v4663_v12 = vsel %vm13593_vm15, %v4648_v18, %v7064_v20  ;;  %v7082_v40 = vpop.permute.xlu1 %7081  ;;  %5527 = vmatprep.subr.bf16.mxu1 %v7472_v34  ;;  %v14319_v20 = vld [vmem:[#allocation48_spill] sm:$0xff] }
 0x896   :  { %4497 = vrot.lane.b32.xlu1 %v14294_v27, %s7595_s2  ;;  %v7112_v60 = vpop.permute.xlu0 %7111  ;;  %v14317_v50 = vunpack.i.h.bf16 %v14316_v53  ;;  %v7084_v44 = vunpack.i.h.bf16 %v7082_v40  ;;  %v7083_v29 = vunpack.i.l.bf16 %v7082_v40  ;;  %v6954_v49 = vunpack.i.h.bf16 %v11224_v17  ;;  %5528 = vmatpush3.bf16.msra.mxu1 %v7472_v34 }
 0x897   :  { %4530 = vrot.lane.b32.xlu0 %v10855_v9, %s7607_s25  ;;  %v3771_v9 = vsel %vm1597_vm14, %v3756_v31, %v6914_v25  ;;  %v7114_v42 = vunpack.i.h.bf16 %v7112_v60  ;;  %v7113_v54 = vunpack.i.l.bf16 %v7112_v60  ;;  %v3798_v25 = vsel %vm2885_vm10, %v3783_v45, %v6948_v33  ;;  %v14318_v31 = vld [vmem:[#allocation161_spill] sm:$0xff] }
 0x898   :  { %v3950_v35 = vsel %vm13587_vm0, %v3934_v21, %v14317_v50  ;;  %v3786_v46 = vsel %vm2873_vm3, %v3771_v9, %v6934_v63  ;;  %v4678_v57 = vsel %vm13592_vm6, %v4663_v12, %v7089_v37  ;;  %v3899_v36 = vsel %vm13592_vm6, %v3883_v3, %v7083_v29  ;;  %v7473_v50 = vld [vmem:[%s13143_s12 + $0x28] sm:$0xff]  }
 0x899   :  { %v3917_v21 = vsel %vm13591_vm7, %v11756_v5, %v7113_v54  ;;  %v4693_v51 = vsel %vm13591_vm7, %v4678_v57, %v7114_v42  ;;  %v3900_v17 = vsel %vm13592_vm6, %v3884_v19, %v7084_v44  ;;  %v14320_v63 = vunpack.i.l.bf16 %v14309_v22  ;;  %v11852_v3 = vpop.permute.xlu1 %7096  ;;  %v14323_v19 = vld [vmem:[#allocation50_spill] sm:$0xff]  ;;  %v7474_v42 = vld [vmem:[%s13143_s12 + $0x30] ss:$0 sps:$4 sm:$0x11]   ;;  %5529 = vmatprep.subr.bf16.mxu1 %v7473_v50 }
 0x89a   :  { %7351 = vrot.lane.b32.xlu1 %v14319_v20, %s7587_s26  ;;  %v14321_v37 = vunpack.i.h.bf16 %v14309_v22  ;;  %v14322_v9 = vunpack.i.l.bf16 %v14244_v47  ;;  %v11850_v45 = vpop.permute.xlu0 %7121  ;;  %v14324_v34 = vunpack.i.l.bf16 %v14323_v19  ;;  %v14325_v22 = vunpack.i.l.bf16 %v14262_v28  ;;  %v14327_v54 = vld [vmem:[#allocation66_spill] sm:$0xff]  ;;  %5530 = vmatpush3.bf16.msra.mxu1 %v7473_v50 }
 0x89b   :  { %7356 = vrot.lane.b32.xlu0 %v14318_v31, %s7587_s26  ;;  %v4740_v33 = vsel %vm13587_vm0, %v11724_v32, %v14320_v63  ;;  %v3801_v32 = vsel %vm2885_vm10, %v3786_v46, %v6954_v49  ;;  %v3966_v40 = vsel %vm13589_vm5, %v3950_v35, %v6884_v15  ;;  %v6618_v44 = vunpack.i.l.bf16 %v14327_v54  ;;  %v14329_v46 = vld [vmem:[#allocation110_spill] sm:$0xff]  ;;  %5567 = vmatprep.subr.msk.bf16.mxu1 %vm337_vm1, %v7474_v42 }
 0x89c   :  { %v4741_v18 = vsel %vm13587_vm0, %v11727_v52, %v14321_v37  ;;  %v4708_v5 = vsel %vm13590_vm9, %v4693_v51, %v14322_v9  ;;  %v11857_v12 = vsel %vm13590_vm9, %v3917_v21, %v14324_v34  ;;  %v3813_v60 = vsel %vm2897_vm11, %v3798_v25, %v14325_v22  ;;  %v14330_v15 = vld [vmem:[#allocation38_spill] sm:$0xff] }
 0x89d   :  { %v14326_v52 = vunpack.i.l.bf16 %v14258_v7  ;;  %v14328_v28 = vunpack.i.h.bf16 %v14258_v7  ;;  %v6968_v49 = vunpack.i.l.bf16 %v11288_v58  ;;  %v14331_v35 = vunpack.i.l.bf16 %v14304_v6 }
 0x89e   :  { %7361 = vrot.lane.b32.xlu1 %v14330_v15, %s7587_s26  ;;  %v6619_v57 = vunpack.i.h.bf16 %v14327_v54  ;;  %v14332_v31 = vunpack.i.h.bf16 %v14304_v6  ;;  %v14334_v20 = vunpack.i.h.bf16 %v14306_v39  ;;  %v14335_v51 = vunpack.i.l.bf16 %v14282_v38  ;;  %v7132_v9 = vpop.permute.xlu0 %7131  ;;  %v14336_v6 = vld [vmem:[#allocation192_spill] sm:$0xff] }
 0x89f   :  { %v4723_v47 = vsel %vm13588_vm8, %v4708_v5, %v14326_v52  ;;  %v4724_v29 = vsel %vm13588_vm8, %v11708_v61, %v14328_v28  ;;  %7366 = vrot.lane.b32.xlu0 %v14329_v46, %s7587_s26  ;;  %v14333_v61 = vunpack.i.l.bf16 %v14306_v39  ;;  %v3829_v37 = vsel %vm13596_vm12, %v3813_v60, %v6968_v49  ;;  %v7107_v5 = vpop.permute.xlu1 %7106  ;;  %v14338_v60 = vld [vmem:[#allocation191_spill] sm:$0xff] }
 0x8a0   :  { %v4738_v25 = vsel %vm13587_vm0, %v4723_v47, %v14331_v35  ;;  %v4739_v7 = vsel %vm13587_vm0, %v4724_v29, %v14332_v31  ;;  %v4756_v21 = vsel %vm13589_vm5, %v4741_v18, %v14334_v20  ;;  %v3817_v63 = vsel %vm2897_vm11, %v3801_v32, %v14335_v51  ;;  %v14337_v32 = vld [vmem:[#allocation189_spill] sm:$0xff]  ;;  %v14340_v46 = vld [vmem:[#allocation43_spill] sm:$0xff] }
 0x8a1   :  { %v4755_v58 = vsel %vm13589_vm5, %v4740_v33, %v14333_v61  ;;  %v7370_v34 = vpack.i.bf16 %v14336_v6, %v3966_v40  ;;  %v4753_v22 = vsel %vm13589_vm5, %v4738_v25, %v6618_v44  ;;  %v6978_v33 = vunpack.i.l.bf16 %v11323_v59 }
 0x8a2   :  { %v6993_v39 = vunpack.i.l.bf16 %v11394_v8  ;;  %v7109_v52 = vunpack.i.h.bf16 %v7107_v5  ;;  %v5059_v38 = vsel %vm337_vm1, %v7474_v42, 0  ;;  %v7003_v18 = vunpack.i.l.bf16 %v11430_v11  ;;  %v11916_v29 = vpop.permute.xlu0 %7136 }
 0x8a3   :  { %v14339_v47 = vpack.i.bf16 %v14337_v32, %v14338_v60  ;;  %v7108_v40 = vunpack.i.l.bf16 %v7107_v5  ;;  %v7385_v54 = vpack.i.bf16 %v4756_v21, %v4755_v58  ;;  %7371 = vrot.lane.b32.xlu1 %v7370_v34, %s7590_s30  ;;  %v4754_v59 = vsel %vm13589_vm5, %v4739_v7, %v6619_v57  ;;  %v11922_v25 = vpop.permute.xlu1 %7116  ;;  %5532 = vmatpush3.bf16.msra.mxu1 %v5059_v38  ;;  %v14342_v57 = vld [vmem:[#allocation227_spill] sm:$0xff]  ;;  %v14344_v38 = vld [vmem:[#allocation65_spill] sm:$0xff]  ;;  %v14347_v60 = vld [vmem:[#allocation190_spill] sm:$0xff] }
 0x8a4   :  { %v3833_v8 = vsel %vm13596_vm12, %v3817_v63, %v6978_v33  ;;  %v3845_v50 = vsel %vm13595_vm13, %v3829_v37, %v6993_v39  ;;  %v3916_v44 = vsel %vm13591_vm7, %v3900_v17, %v7109_v52  ;;  %v7380_v42 = vpack.i.bf16 %v4754_v59, %v4753_v22 }
 0x8a5   :  { %7376 = vrot.lane.b32.xlu0 %v14339_v47, %s7590_s30  ;;  %v7134_v28 = vunpack.i.h.bf16 %v7132_v9  ;;  %v7133_v11 = vunpack.i.l.bf16 %v7132_v9  ;;  %v3915_v49 = vsel %vm13591_vm7, %v3899_v36, %v7108_v40  ;;  %v14341_v15 = vunpack.i.h.bf16 %v14340_v46 }
 0x8a6   :  { %v6578_v31 = vunpack.i.l.bf16 %v14342_v57  ;;  %v7018_v7 = vunpack.i.l.bf16 %v11499_v26  ;;  %v7043_v17 = vunpack.i.l.bf16 %v11585_v43  ;;  %v14343_v61 = vunpack.i.l.bf16 %v14340_v46  ;;  %v11943_v34 = vpop.permute.xlu0 %7146 }
 0x8a7   :  { %v3932_v35 = vsel %vm13590_vm9, %v3916_v44, %v14341_v15  ;;  %v3849_v20 = vsel %vm13595_vm13, %v3833_v8, %v7003_v18  ;;  %v7118_v36 = vunpack.i.l.bf16 %v11922_v25  ;;  %7381 = vrot.lane.b32.xlu1 %v7380_v42, %s7586_s23  ;;  %v7028_v26 = vunpack.i.l.bf16 %v11533_v14  ;;  %v11947_v33 = vpop.permute.xlu1 %7126 }
 0x8a8   :  { %v3931_v58 = vsel %vm13590_vm9, %v3915_v49, %v14343_v61  ;;  %v3948_v51 = vsel %vm13588_vm8, %v3932_v35, %v7134_v28  ;;  %v3861_v43 = vsel %vm13594_vm4, %v3845_v50, %v7018_v7  ;;  %v7068_v63 = vunpack.i.l.bf16 %v11660_v24  ;;  %v14349_v28 = vld [vmem:[#allocation194_spill] sm:$0xff]  ;;  %v14352_v49 = vld [vmem:[#allocation88_spill] sm:$0xff] }
 0x8a9   :  { %7386 = vrot.lane.b32.xlu0 %v7385_v54, %s7586_s23  ;;  %v3947_v21 = vsel %vm13588_vm8, %v3931_v58, %v7133_v11  ;;  %v7098_v37 = vunpack.i.l.bf16 %v11852_v3  ;;  %v7093_v9 = vunpack.i.l.bf16 %v11763_v41  ;;  %v7049_v5 = vunpack.i.h.bf16 %v11733_v23  ;;  %v14350_v11 = vld [vmem:[#allocation101_spill] sm:$0xff]  ;;  %v14353_v7 = vld [vmem:[#allocation142_spill] sm:$0xff]  ;;  %v14355_v58 = vld [vmem:[#allocation236_spill] sm:$0xff] }
 0x8aa   :  { %v7138_v6 = vunpack.i.l.bf16 %v11916_v29  ;;  %v3949_v22 = vsel %vm13588_vm8, %v11857_v12, %v7118_v36  ;;  %v3877_v14 = vsel %vm13593_vm15, %v3861_v43, %v7043_v17  ;;  %v7053_v39 = vunpack.i.l.bf16 %v11611_v2  ;;  %v14346_v12 = vld [vmem:[#allocation33_spill] sm:$0xff]  ;;  %v11975_v50 = vpop.permute.xlu0 %7161 }
 0x8ab   :  { %v7074_v24 = vunpack.i.h.bf16 %v11793_v48  ;;  %v7129_v52 = vunpack.i.h.bf16 %v11947_v33  ;;  %v7099_v41 = vunpack.i.h.bf16 %v11852_v3  ;;  %v7149_v23 = vunpack.i.h.bf16 %v11943_v34  ;;  %v7142_v44 = vpop.permute.xlu1 %7141 }
 0x8ac   :  { %v14345_v18 = vunpack.i.h.bf16 %v14344_v38  ;;  %v14348_v47 = vpack.i.bf16 %v14346_v12, %v14347_v60  ;;  %v3965_v2 = vsel %vm13587_vm0, %v3949_v22, %v7138_v6  ;;  %v3893_v48 = vsel %vm13592_vm6, %v3877_v14, %v7068_v63 }
 0x8ad   :  { %v7078_v3 = vunpack.i.l.bf16 %v11695_v30  ;;  %v3911_v40 = vsel %vm13591_vm7, %v11815_v0, %v7098_v37  ;;  %v3880_v59 = vsel %vm13593_vm15, %v11686_v10, %v7049_v5  ;;  %v7103_v8 = vunpack.i.l.bf16 %v11791_v55 }
 0x8ae   :  { %v3930_v32 = vsel %vm13590_vm9, %v11812_v4, %v14345_v18  ;;  %7391 = vrot.lane.b32.xlu1 %v14348_v47, %s7590_s30  ;;  %v3909_v4 = vsel %vm13591_vm7, %v3893_v48, %v7093_v9  ;;  %v4608_v30 = vsel %vm2897_vm11, %v14349_v28, %v6578_v31  ;;  %v14351_v0 = vunpack.i.h.bf16 %v14350_v11 }
 0x8af   :  { %v3946_v54 = vsel %vm13588_vm8, %v3930_v32, %v7129_v52  ;;  %v3865_v15 = vsel %vm13594_vm4, %v3849_v20, %v7028_v26  ;;  %v3896_v10 = vsel %vm13592_vm6, %v3880_v59, %v7074_v24  ;;  %v14354_v17 = vunpack.i.l.bf16 %v14353_v7  ;;  %v7152_v24 = vpop.permute.xlu1 %7151 }
 0x8b0   :  { %v11978_v42 = vsel %vm13587_vm0, %v3946_v54, %v7149_v23  ;;  %v11986_v46 = vsel %vm13594_vm4, %v14352_v49, %v14351_v0  ;;  %v3881_v55 = vsel %vm13593_vm15, %v3865_v15, %v7053_v39  ;;  %v3912_v35 = vsel %vm13591_vm7, %v3896_v10, %v7099_v41 }
 0x8b1   :  { %v3927_v61 = vsel %vm13590_vm9, %v3911_v40, %v14354_v17  ;;  %v7119_v31 = vunpack.i.h.bf16 %v11922_v25  ;;  %v6593_v43 = vunpack.i.l.bf16 %v14355_v58  ;;  %v3897_v63 = vsel %vm13592_vm6, %v3881_v55, %v7078_v3  ;;  %v7172_v25 = vpop.permute.xlu0 %7171  ;;  %v14362_v17 = vld [vmem:[#allocation193_spill] sm:$0xff] }
 0x8b2   :  { %v7123_v37 = vunpack.i.l.bf16 %v11850_v45  ;;  %v14356_v20 = vunpack.i.l.bf16 %v14323_v19  ;;  %v3913_v9 = vsel %vm13591_vm7, %v3897_v63, %v7103_v8  ;;  %v7124_v5 = vunpack.i.h.bf16 %v11850_v45 }
 0x8b3   :  { %v14357_v22 = vunpack.i.h.bf16 %v14323_v19  ;;  %v7143_v39 = vunpack.i.l.bf16 %v7142_v44  ;;  %v14358_v52 = vunpack.i.h.bf16 %v14353_v7  ;;  %v7154_v18 = vunpack.i.h.bf16 %v7152_v24  ;;  %v7157_v59 = vpop.permute.xlu1 %7156 }
 0x8b4   :  { %v3925_v26 = vsel %vm13590_vm9, %v3909_v4, %v14356_v20  ;;  %v3943_v23 = vsel %vm13588_vm8, %v3927_v61, %v7123_v37  ;;  %v7153_v32 = vunpack.i.l.bf16 %v7152_v24  ;;  %v7139_v12 = vunpack.i.h.bf16 %v11916_v29 }
 0x8b5   :  { %v3926_v14 = vsel %vm13590_vm9, %v11782_v16, %v14357_v22  ;;  %v3928_v41 = vsel %vm13590_vm9, %v3912_v35, %v14358_v52  ;;  %v7174_v60 = vunpack.i.h.bf16 %v7172_v25  ;;  %v7173_v19 = vunpack.i.l.bf16 %v7172_v25  ;;  %v12019_v4 = vpop.permute.xlu0 %7181 }
 0x8b6   :  { %v3942_v45 = vsel %vm13588_vm8, %v3926_v14, %v7119_v31  ;;  %v3941_v47 = vsel %vm13588_vm8, %v3925_v26, %v7118_v36  ;;  %v7128_v16 = vunpack.i.l.bf16 %v11947_v33  ;;  %v3963_v48 = vsel %vm13587_vm0, %v3947_v21, %v7153_v32  ;;  %v14364_v14 = vld [vmem:[#allocation240_spill] sm:$0xff] }
 0x8b7   :  { %v3964_v3 = vsel %vm13587_vm0, %v3948_v51, %v7154_v18  ;;  %v7144_v40 = vunpack.i.h.bf16 %v7142_v44  ;;  %v3959_v54 = vsel %vm13587_vm0, %v3943_v23, %v7143_v39  ;;  %v12025_v28 = vsel %vm13589_vm5, %v3963_v48, %v7173_v19  ;;  %v7167_v31 = vpop.permute.xlu1 %7166  ;;  %v14365_v39 = vld [vmem:[#allocation241_spill] sm:$0xff]  ;;  %v14366_v23 = vld [vmem:[#allocation231_spill] sm:$0xff] }
 0x8b8   :  { %v12022_v8 = vsel %vm13589_vm5, %v3964_v3, %v7174_v60  ;;  %v7163_v36 = vunpack.i.l.bf16 %v11975_v50  ;;  %v14360_v33 = vunpack.i.l.bf16 %v14344_v38  ;;  %v7159_v11 = vunpack.i.h.bf16 %v7157_v59  ;;  %v14369_v19 = vld [vmem:[#allocation135_spill] sm:$0xff]  ;;  %v14370_v48 = vld [vmem:[#allocation73_spill] sm:$0xff] }
 0x8b9   :  { %14359 = vst [vmem:[#allocation198_spill] sm:$0xff] %v12022_v8  ;;  %v7158_v51 = vunpack.i.l.bf16 %v7157_v59  ;;  %v7148_v44 = vunpack.i.l.bf16 %v11943_v34  ;;  %v3944_v0 = vsel %vm13588_vm8, %v3928_v41, %v7124_v5  ;;  %v3957_v49 = vsel %vm13587_vm0, %v3941_v47, %v7138_v6  ;;  %v12046_v7 = vpop.permute.xlu0 %4010  ;;  %v14371_v59 = vld [vmem:[#allocation141_spill] sm:$0xff] }
 0x8ba   :  { %v3929_v21 = vsel %vm13590_vm9, %v3913_v9, %v14360_v33  ;;  %v3958_v15 = vsel %vm13587_vm0, %v3942_v45, %v7139_v12  ;;  %v12043_v35 = vsel %vm13589_vm5, %v3959_v54, %v7163_v36  ;;  %v3960_v34 = vsel %vm13587_vm0, %v3944_v0, %v7144_v40  ;;  %v14363_v9 = vld [vmem:[#allocation235_spill] sm:$0xff] }
 0x8bb   :  { %v3945_v10 = vsel %vm13588_vm8, %v3929_v21, %v7128_v16  ;;  %v3973_v55 = vsel %vm13589_vm5, %v3957_v49, %v7158_v51  ;;  %v12040_v38 = vsel %vm13589_vm5, %v3958_v15, %v7159_v11  ;;  %v12049_v29 = vsel %vm13589_vm5, %v3965_v2, %v7158_v51  ;;  %v14373_v15 = vld [vmem:[#allocation239_spill] sm:$0xff] }
 0x8bc   :  { %14361 = vst [vmem:[#allocation82_spill] sm:$0xff] %v12049_v29  ;;  %v7395_v61 = vpack.i.bf16 %v3973_v55, %v14362_v17  ;;  %v7164_v63 = vunpack.i.h.bf16 %v11975_v50  ;;  %v7169_v20 = vunpack.i.h.bf16 %v7167_v31  ;;  %v7168_v26 = vunpack.i.l.bf16 %v7167_v31  ;;  %v14374_v17 = vld [vmem:[#allocation214_spill] sm:$0xff] }
 0x8bd   :  { %v6608_v5 = vunpack.i.l.bf16 %v14363_v9  ;;  %v4623_v22 = vsel %vm13596_vm12, %v4608_v30, %v6593_v43  ;;  %v6623_v2 = vunpack.i.l.bf16 %v14364_v14  ;;  %v3961_v25 = vsel %vm13587_vm0, %v3945_v10, %v7148_v44  ;;  %v14367_v43 = vld [vmem:[#allocation103_spill] sm:$0xff]  ;;  %v12078_v12 = vpop.permute.xlu0 %7196  ;;  %v14372_v44 = vld [vmem:[#allocation96_spill] sm:$0xff] }
 0x8be   :  { %7396 = vrot.lane.b32.xlu0 %v7395_v61, %s7590_s30  ;;  %v6633_v24 = vunpack.i.l.bf16 %v14365_v39  ;;  %v12064_v52 = vsel %vm13589_vm5, %v3961_v25, %v7168_v26  ;;  %v12068_v50 = vsel %vm13589_vm5, %v11978_v42, %v7169_v20  ;;  %v12071_v41 = vsel %vm13589_vm5, %v3960_v34, %v7164_v63  ;;  %v12084_v42 = vpop.permute.xlu1 %7176  ;;  %v14375_v63 = vld [vmem:[#allocation63_spill] sm:$0xff] }
 0x8bf   :  { %v6569_v30 = vunpack.i.h.bf16 %v14366_v23  ;;  %v14368_v18 = vunpack.i.h.bf16 %v14367_v43  ;;  %v5944_v47 = vunpack.i.h.bf16 %v14369_v19  ;;  %v4638_v16 = vsel %vm13595_vm13, %v4623_v22, %v6608_v5  ;;  %v14391_v43 = vld [vmem:[#allocation68_spill] sm:$0xff] }
 0x8c0   :  { %v6638_v3 = vunpack.i.l.bf16 %v14370_v48  ;;  %v4653_v40 = vsel %vm13594_vm4, %v4638_v16, %v6623_v2  ;;  %v12093_v36 = vunpack.i.l.bf16 %v14371_v59  ;;  %v6648_v0 = vunpack.i.l.bf16 %v14372_v44 }
 0x8c1   :  { %v4667_v32 = vsel %vm13593_vm15, %v11986_v46, %v14368_v18  ;;  %v4668_v54 = vsel %vm13593_vm15, %v4653_v40, %v6633_v24  ;;  %v12096_v21 = vpop.permute.xlu0 %7206  ;;  %v6643_v10 = vunpack.i.l.bf16 %v14373_v15  ;;  %v12109_v34 = vunpack.i.h.bf16 %v14370_v48  ;;  %v14379_v40 = vld [vmem:[#allocation150_spill] sm:$0xff] }
 0x8c2   :  { %v4682_v46 = vsel %vm13592_vm6, %v4667_v32, %v5944_v47  ;;  %v12098_v11 = vpop.permute.xlu1 %7186  ;;  %v12103_v49 = vunpack.i.l.bf16 %v12096_v21  ;;  %v4683_v55 = vsel %vm13592_vm6, %v4668_v54, %v12093_v36  ;;  %v6474_v61 = vunpack.i.h.bf16 %v14374_v17  ;;  %v14377_v47 = vld [vmem:[#allocation54_spill] sm:$0xff] }
 0x8c3   :  { %v4697_v33 = vsel %vm13591_vm7, %v4682_v46, %v6569_v30  ;;  %v6473_v31 = vunpack.i.l.bf16 %v14374_v17  ;;  %v6494_v20 = vunpack.i.h.bf16 %v14375_v63  ;;  %v6493_v5 = vunpack.i.l.bf16 %v14375_v63  ;;  %v14376_v30 = vld [vmem:[#allocation109_spill] sm:$0xff]  ;;  %v14380_v54 = vld [vmem:[#allocation34_spill] sm:$0xff] }
 0x8c4   :  { %v4712_v51 = vsel %vm13590_vm9, %v4697_v33, %v6638_v3  ;;  %v4698_v26 = vsel %vm13591_vm7, %v4683_v55, %v12103_v49  ;;  %v12118_v22 = vunpack.i.h.bf16 %v14373_v15  ;;  %v12129_v18 = vunpack.i.h.bf16 %v14372_v44 }
 0x8c5   :  { %v4727_v2 = vsel %vm13588_vm8, %v4712_v51, %v6643_v10  ;;  %v12121_v25 = vpop.permute.xlu0 %7211  ;;  %v4713_v23 = vsel %vm13590_vm9, %v4698_v26, %v12109_v34  ;;  %v12134_v16 = vunpack.i.h.bf16 %v14377_v47  ;;  %v6653_v48 = vunpack.i.l.bf16 %v14377_v47  ;;  %v14381_v51 = vld [vmem:[#allocation186_spill] sm:$0xff] }
 0x8c6   :  { %v12123_v24 = vpop.permute.xlu1 %7191  ;;  %v4742_v32 = vsel %vm13587_vm0, %v4727_v2, %v6648_v0  ;;  %v4728_v3 = vsel %vm13588_vm8, %v4713_v23, %v12118_v22  ;;  %v6048_v46 = vunpack.i.l.bf16 %v14379_v40  ;;  %v4550_v33 = vsel %vm2850_vm2, %v14380_v54, %v6474_v61  ;;  %v14382_v61 = vld [vmem:[#allocation44_spill] sm:$0xff]  ;;  %v14383_v23 = vld [vmem:[#allocation71_spill] sm:$0xff] }
 0x8c7   :  { %14378 = vst [vmem:[#allocation195_spill] sm:$0xff] %v12134_v16  ;;  %v4549_v44 = vsel %vm2850_vm2, %v14381_v51, %v6473_v31  ;;  %v4743_v0 = vsel %vm13587_vm0, %v4728_v3, %v12129_v18  ;;  %v4565_v10 = vsel %vm1597_vm14, %v4550_v33, %v6494_v20  ;;  %v4757_v17 = vsel %vm13589_vm5, %v4742_v32, %v6653_v48  ;;  %v14384_v20 = vld [vmem:[#allocation85_spill] sm:$0xff]  ;;  %v14385_v33 = vld [vmem:[#allocation55_spill] sm:$0xff]  ;;  %v14386_v48 = vld [vmem:[#allocation22_spill] sm:$0xff] }
 0x8c8   :  { %v4564_v15 = vsel %vm1597_vm14, %v4549_v44, %v6493_v5  ;;  %v4758_v63 = vsel %vm13589_vm5, %v4743_v0, %v12134_v16  ;;  %v12157_v31 = vunpack.i.l.bf16 %v14383_v23  ;;  %v6049_v47 = vunpack.i.h.bf16 %v14379_v40  ;;  %v14392_v2 = vld [vmem:[#allocation27_spill] sm:$0xff] }
 0x8c9   :  { %v12148_v55 = vpop.permute.xlu0 %7216  ;;  %v7400_v3 = vpack.i.bf16 %v4758_v63, %v4757_v17  ;;  %v6064_v51 = vunpack.i.h.bf16 %v14385_v33  ;;  %v2851_v44 = vsel %vm2850_vm2, %v14386_v48, %v6048_v46  ;;  %v12169_v0 = vunpack.i.h.bf16 %v14342_v57  ;;  %v14387_v48 = vld [vmem:[#allocation21_spill] sm:$0xff] }
 0x8ca   :  { %v12153_v26 = vpop.permute.xlu1 %7201  ;;  %v4579_v40 = vsel %vm2873_vm3, %v4564_v15, %v12157_v31  ;;  %v4580_v17 = vsel %vm2873_vm3, %v4565_v10, %v12157_v31  ;;  %v6063_v63 = vunpack.i.l.bf16 %v14385_v33  ;;  %v12178_v37 = vunpack.i.h.bf16 %v14355_v58 }
 0x8cb   :  { %v12164_v32 = vunpack.i.l.bf16 %v12153_v26  ;;  %7401 = vrot.lane.b32.xlu1 %v7400_v3, %s7586_s23  ;;  %v2852_v15 = vsel %vm2850_vm2, %v14387_v48, %v6049_v47  ;;  %v12191_v10 = vunpack.i.h.bf16 %v14363_v9  ;;  %v14388_v48 = vld [vmem:[#allocation53_spill] sm:$0xff]  ;;  %v12207_v5 = vunpack.i.h.bf16 %v14365_v39 }
 0x8cc   :  { %v2862_v54 = vsel %vm1597_vm14, %v2851_v44, %v6063_v63  ;;  %v6078_v9 = vunpack.i.l.bf16 %v14388_v48  ;;  %v6093_v19 = vunpack.i.l.bf16 %v14391_v43  ;;  %v7184_v13 = vunpack.i.h.bf16 %v12019_v4 }
 0x8cd   :  { %v12180_v45 = vpop.permute.xlu0 %7231  ;;  %v4594_v46 = vsel %vm2885_vm10, %v4579_v40, %v12164_v32  ;;  %v4595_v57 = vsel %vm2885_vm10, %v4580_v17, %v12164_v32  ;;  %v12199_v40 = vunpack.i.h.bf16 %v14364_v14  ;;  %v14389_v14 = vld [vmem:[#allocation113_spill] sm:$0xff]  ;;  %v7199_v53 = vunpack.i.h.bf16 %v12078_v12 }
 0x8ce   :  { %v12186_v3 = vpop.permute.xlu1 %7221  ;;  %v4609_v58 = vsel %vm2897_vm11, %v4594_v46, %v12169_v0  ;;  %v4610_v33 = vsel %vm2897_vm11, %v4595_v57, %v12169_v0  ;;  %v2863_v57 = vsel %vm1597_vm14, %v2852_v15, %v6064_v51  ;;  %vm5033_vm1 = vcmask 801792  }
 0x8cf   :  { %v4624_v17 = vsel %vm13596_vm12, %v4609_v58, %v12178_v37  ;;  %v4625_v47 = vsel %vm13596_vm12, %v4610_v33, %v12178_v37  ;;  %7406 = vrot.lane.b32.xlu1 %v14389_v14, %s7587_s26 }
 0x8d0   :  { %v4639_v46 = vsel %vm13595_vm13, %v4624_v17, %v12191_v10  ;;  %v4640_v44 = vsel %vm13595_vm13, %v4625_v47, %v12191_v10  ;;  %v6079_v17 = vunpack.i.h.bf16 %v14388_v48  ;;  %v2874_v47 = vsel %vm2873_vm3, %v2862_v54, %v6078_v9 }
 0x8d1   :  { %v4654_v58 = vsel %vm13594_vm4, %v4639_v46, %v12199_v40  ;;  %v4655_v39 = vsel %vm13594_vm4, %v4640_v44, %v12199_v40  ;;  %v12221_v33 = vpop.permute.xlu0 %7236  ;;  %v14390_v46 = vld [vmem:[#allocation144_spill] sm:$0xff]  ;;  %v14393_v54 = vpack.i.bf16 %v12064_v52, %v12071_v41  ;;  %v2886_v63 = vsel %vm2885_vm10, %v2874_v47, %v6093_v19 }
 0x8d2   :  { %v12223_v6 = vpop.permute.xlu1 %7226  ;;  %v4669_v14 = vsel %vm13593_vm15, %v4654_v58, %v12207_v5  ;;  %v4670_v51 = vsel %vm13593_vm15, %v4655_v39, %v12207_v5  ;;  %v2875_v48 = vsel %vm2873_vm3, %v2863_v57, %v6079_v17  ;;  %v6094_v39 = vunpack.i.h.bf16 %v14391_v43  ;;  %v14394_v17 = vld [vmem:[#allocation72_spill] sm:$0xff] }
 0x8d3   :  { %7421 = vrot.lane.b32.xlu1 %v14393_v54, %s7590_s30  ;;  %v4684_v9 = vsel %vm13592_vm6, %v4669_v14, %v12093_v36  ;;  %v4685_v58 = vsel %vm13592_vm6, %v4670_v51, %v12093_v36  ;;  %v6109_v14 = vunpack.i.h.bf16 %v14394_v17  ;;  %v6108_v51 = vunpack.i.l.bf16 %v14394_v17  ;;  %v14395_v54 = vld [vmem:[#allocation154_spill] sm:$0xff] }
 0x8d4   :  { %v4699_v57 = vsel %vm13591_vm7, %v4684_v9, %v12103_v49  ;;  %v4700_v52 = vsel %vm13591_vm7, %v4685_v58, %v12103_v49  ;;  %v6123_v43 = vunpack.i.l.bf16 %v14395_v54  ;;  %v6124_v19 = vunpack.i.h.bf16 %v14395_v54 }
 0x8d5   :  { %v12247_v44 = vpop.permute.xlu0 %7251  ;;  %v2887_v47 = vsel %vm2885_vm10, %v2875_v48, %v6094_v39  ;;  %v4714_v15 = vsel %vm13590_vm9, %v4699_v57, %v12109_v34  ;;  %v4715_v9 = vsel %vm13590_vm9, %v4700_v52, %v12109_v34  ;;  %v2898_v58 = vsel %vm2897_vm11, %v2886_v63, %v6108_v51  ;;  %v14396_v51 = vld [vmem:[#allocation147_spill] sm:$0xff] }
 0x8d6   :  { %v12249_v60 = vpop.permute.xlu1 %7241  ;;  %v7178_v41 = vunpack.i.l.bf16 %v12084_v42  ;;  %v4729_v62 = vsel %vm13588_vm8, %v4714_v15, %v12118_v22  ;;  %v4730_v17 = vsel %vm13588_vm8, %v4715_v9, %v12118_v22  ;;  %v7179_v54 = vunpack.i.h.bf16 %v12084_v42 }
 0x8d7   :  { %v7193_v48 = vunpack.i.l.bf16 %v12123_v24  ;;  %v4744_v52 = vsel %vm13587_vm0, %v4729_v62, %v12129_v18  ;;  %v4745_v63 = vsel %vm13587_vm0, %v4730_v17, %v12129_v18  ;;  %v2899_v15 = vsel %vm2897_vm11, %v2887_v47, %v6109_v14  ;;  %v14398_v14 = vld [vmem:[#allocation213_spill] sm:$0xff] }
 0x8d8   :  { %v12284_v9 = vsel %vm13596_vm12, %v2898_v58, %v6123_v43  ;;  %v7194_v42 = vunpack.i.h.bf16 %v12123_v24  ;;  %v2911_v1 = vsel %vm13596_vm12, %v2899_v15, %v6124_v19  ;;  %v4759_v8 = vsel %vm13589_vm5, %v4744_v52, %v12134_v16  ;;  %v14399_v58 = vld [vmem:[#allocation90_spill] sm:$0xff] }
 0x8d9   :  { %v12273_v39 = vpop.permute.xlu0 %7261  ;;  %14397 = vst [vmem:[#allocation78_spill] sm:$0xff] %v12284_v9  ;;  %v4760_v62 = vsel %vm13589_vm5, %v4745_v63, %v12134_v16  ;;  %v7183_v17 = vunpack.i.l.bf16 %v12019_v4  ;;  %v4551_v43 = vsel %vm2850_vm2, %v14398_v14, %v7178_v41  ;;  %v7198_v24 = vunpack.i.l.bf16 %v12078_v12 }
 0x8da   :  { %v12275_v57 = vpop.permute.xlu1 %7246  ;;  %v7410_v47 = vpack.i.bf16 %v4760_v62, %v4759_v8  ;;  %v4552_v19 = vsel %vm2850_vm2, %v14399_v58, %v7179_v54  ;;  %v4566_v15 = vsel %vm1597_vm14, %v4551_v43, %v7193_v48  ;;  %v7204_v52 = vunpack.i.h.bf16 %v12153_v26  ;;  %v14401_v54 = vld [vmem:[#allocation159_spill] sm:$0xff]  ;;  %v14402_v26 = vld [vmem:[#allocation162_spill] sm:$0xff] }
 0x8db   :  { %v14400_v16 = vunpack.i.l.bf16 %v14382_v61  ;;  %v4567_v8 = vsel %vm1597_vm14, %v4552_v19, %v7194_v42  ;;  %v7223_v12 = vunpack.i.l.bf16 %v12186_v3  ;;  %v14403_v14 = vunpack.i.l.bf16 %v14376_v30 }
 0x8dc   :  { %7411 = vrot.lane.b32.xlu0 %v7410_v47, %s7586_s23  ;;  %v14404_v58 = vunpack.i.h.bf16 %v14376_v30  ;;  %v14406_v47 = vld [vmem:[#allocation202_spill] sm:$0xff]  ;;  %v4557_v62 = vsel %vm2850_vm2, %v14294_v27, %v12046_v7  ;;  %v14407_v48 = vunpack.i.h.bf16 %v14383_v23  ;;  %v7243_v7 = vunpack.i.l.bf16 %v12249_v60 }
 0x8dd   :  { %v12302_v29 = vpop.permute.xlu0 %7271  ;;  %v12310_v41 = vsel %vm13595_vm13, %v2911_v1, %v14400_v16  ;;  %v12321_v43 = vsel %vm13595_vm13, %v12284_v9, %v14403_v14  ;;  %v14405_v16 = vld [vmem:[#allocation94_spill] sm:$0xff]  ;;  %v4553_v19 = vsel %vm2850_vm2, %v14406_v47, %v7183_v17  ;;  %v7224_v47 = vunpack.i.h.bf16 %v12186_v3 }
 0x8de   :  { %v12304_v63 = vpop.permute.xlu1 %7256  ;;  %v12327_v1 = vsel %vm13595_vm13, %v12284_v9, %v14404_v58  ;;  %v4554_v42 = vsel %vm2850_vm2, %v14405_v16, %v7184_v13  ;;  %v4581_v14 = vsel %vm2873_vm3, %v4566_v15, %v14407_v48  ;;  %v4568_v30 = vsel %vm1597_vm14, %v4553_v19, %v7198_v24  ;;  %v14410_v24 = vld [vmem:[#allocation163_spill] sm:$0xff] }
 0x8df   :  { %v4569_v4 = vsel %vm1597_vm14, %v4554_v42, %v7199_v53  ;;  %v14408_v58 = vunpack.i.l.bf16 %v14390_v46  ;;  %v4596_v13 = vsel %vm2885_vm10, %v4581_v14, %v7204_v52  ;;  %v14409_v53 = vpack.i.bf16 %v12043_v35, %v12040_v38 }
 0x8e0   :  { %v4611_v27 = vsel %vm2897_vm11, %v4596_v13, %v7223_v12  ;;  %v6144_v15 = vunpack.i.h.bf16 %v14410_v24  ;;  %v6143_v52 = vunpack.i.l.bf16 %v14410_v24  ;;  %v7233_v48 = vunpack.i.l.bf16 %v12180_v45 }
 0x8e1   :  { %v4582_v9 = vsel %vm2873_vm3, %v4567_v8, %v14408_v58  ;;  %v4056_v16 = vpop.permute.xlu0 %4055  ;;  %7416 = vrot.lane.b32.xlu0 %v14409_v53, %s7590_s30  ;;  %v7213_v8 = vunpack.i.l.bf16 %v12121_v25  ;;  %v7214_v3 = vunpack.i.h.bf16 %v12121_v25  ;;  %v14411_v12 = vunpack.i.h.bf16 %v14390_v46 }
 0x8e2   :  { %v12345_v17 = vpop.permute.xlu1 %7266  ;;  %v4572_v23 = vsel %vm1597_vm14, %v4557_v62, %v4056_v16  ;;  %v7218_v62 = vunpack.i.l.bf16 %v12148_v55  ;;  %v14412_v19 = vunpack.i.l.bf16 %v14392_v2  ;;  %v7228_v14 = vunpack.i.l.bf16 %v12223_v6 }
 0x8e3   :  { %v4583_v42 = vsel %vm2873_vm3, %v4568_v30, %v14411_v12  ;;  %v4597_v35 = vsel %vm2885_vm10, %v4582_v9, %v7213_v8  ;;  %v4626_v58 = vsel %vm13596_vm12, %v4611_v27, %v7233_v48  ;;  %v4587_v13 = vsel %vm2873_vm3, %v4572_v23, %v12157_v31 }
 0x8e4   :  { %v4584_v38 = vsel %vm2873_vm3, %v4569_v4, %v14412_v19  ;;  %v7189_v30 = vunpack.i.h.bf16 %v12098_v11  ;;  %v4612_v16 = vsel %vm2897_vm11, %v4597_v35, %v7224_v47  ;;  %v7229_v53 = vunpack.i.h.bf16 %v12223_v6 }
 0x8e5   :  { %v12372_v25 = vpop.permute.xlu0 %4135  ;;  %v4641_v4 = vsel %vm13595_vm13, %v4626_v58, %v7243_v7  ;;  %v7188_v9 = vunpack.i.l.bf16 %v12098_v11  ;;  %v7234_v8 = vunpack.i.h.bf16 %v12180_v45  ;;  %v7253_v27 = vunpack.i.l.bf16 %v12247_v44 }
 0x8e6   :  { %v12374_v46 = vpop.permute.xlu1 %7276  ;;  %v7244_v31 = vunpack.i.h.bf16 %v12249_v60  ;;  %v4598_v23 = vsel %vm2885_vm10, %v4583_v42, %v7214_v3  ;;  %v4599_v48 = vsel %vm2885_vm10, %v4584_v38, %v7218_v62  ;;  %v7239_v12 = vunpack.i.h.bf16 %v12221_v33 }
 0x8e7   :  { %v4602_v47 = vsel %vm2885_vm10, %v4587_v13, %v12164_v32  ;;  %v7238_v6 = vunpack.i.l.bf16 %v12221_v33  ;;  %v4613_v7 = vsel %vm2897_vm11, %v4598_v23, %v7228_v14  ;;  %v4627_v11 = vsel %vm13596_vm12, %v4612_v16, %v7234_v8 }
 0x8e8   :  { %v4656_v45 = vsel %vm13594_vm4, %v4641_v4, %v7253_v27  ;;  %v4614_v3 = vsel %vm2897_vm11, %v4599_v48, %v7229_v53  ;;  %v7263_v42 = vunpack.i.l.bf16 %v12273_v39  ;;  %v7249_v62 = vunpack.i.h.bf16 %v12275_v57  ;;  %v14413_v4 = vld [vmem:[#allocation216_spill] sm:$0xff] }
 0x8e9   :  { %v12393_v19 = vpop.permute.xlu0 %7286  ;;  %v7248_v32 = vunpack.i.l.bf16 %v12275_v57  ;;  %v4642_v33 = vsel %vm13595_vm13, %v4627_v11, %v7244_v31  ;;  %v4617_v38 = vsel %vm2897_vm11, %v4602_v47, %v12169_v0  ;;  %v7259_v35 = vunpack.i.h.bf16 %v12304_v63 }
 0x8ea   :  { %v12395_v60 = vpop.permute.xlu1 %7281  ;;  %v7258_v14 = vunpack.i.l.bf16 %v12304_v63  ;;  %v7254_v58 = vunpack.i.h.bf16 %v12247_v44  ;;  %v4671_v13 = vsel %vm13593_vm15, %v4656_v45, %v7263_v42  ;;  %v7269_v16 = vunpack.i.h.bf16 %v12345_v17 }
 0x8eb   :  { %v7268_v53 = vunpack.i.l.bf16 %v12345_v17  ;;  %v4556_v57 = vsel %vm2850_vm2, %v14295_v56, %v7189_v30  ;;  %v4555_v8 = vsel %vm2850_vm2, %v14413_v4, %v7188_v9  ;;  %v4628_v0 = vsel %vm13596_vm12, %v4613_v7, %v7238_v6 }
 0x8ec   :  { %v4629_v27 = vsel %vm13596_vm12, %v4614_v3, %v7239_v12  ;;  %v4657_v44 = vsel %vm13594_vm4, %v4642_v33, %v7254_v58  ;;  %v4643_v23 = vsel %vm13595_vm13, %v4628_v0, %v7248_v32  ;;  %v4632_v17 = vsel %vm13596_vm12, %v4617_v38, %v12178_v37 }
 0x8ed   :  { %v12416_v31 = vpop.permute.xlu0 %7296  ;;  %v4644_v48 = vsel %vm13595_vm13, %v4629_v27, %v7249_v62  ;;  %v7264_v56 = vunpack.i.h.bf16 %v12273_v39  ;;  %v4658_v30 = vsel %vm13594_vm4, %v4643_v23, %v7258_v14  ;;  %v14414_v12 = vunpack.i.h.bf16 %v14371_v59 }
 0x8ee   :  { %v7292_v63 = vpop.permute.xlu1 %7291  ;;  %v4659_v9 = vsel %vm13594_vm4, %v4644_v48, %v7259_v35  ;;  %v7274_v6 = vunpack.i.h.bf16 %v12302_v29  ;;  %v7273_v7 = vunpack.i.l.bf16 %v12302_v29  ;;  %v4570_v11 = vsel %vm1597_vm14, %v4555_v8, %v7268_v53  ;;  %v14416_v35 = vld [vmem:[#allocation148_spill] sm:$0xff] }
 0x8ef   :  { %v4686_v47 = vsel %vm13592_vm6, %v4671_v13, %v14414_v12  ;;  %v4571_v45 = vsel %vm1597_vm14, %v4556_v57, %v7269_v16  ;;  %v7209_v37 = vunpack.i.h.bf16 %v12096_v21  ;;  %v4647_v39 = vsel %vm13595_vm13, %v4632_v17, %v12191_v10 }
 0x8f0   :  { %v7278_v3 = vunpack.i.l.bf16 %v12374_v46  ;;  %v4672_v42 = vsel %vm13593_vm15, %v4657_v44, %v7264_v56  ;;  %v12442_v29 = vsel %vm13594_vm4, %v12321_v43, %v6143_v52  ;;  %v7219_v32 = vunpack.i.h.bf16 %v12148_v55 }
 0x8f1   :  { %v7307_v59 = vpop.permute.xlu0 %7306  ;;  %v4673_v33 = vsel %vm13593_vm15, %v4658_v30, %v7273_v7  ;;  %v4674_v21 = vsel %vm13593_vm15, %v4659_v9, %v7274_v6  ;;  %v14415_v10 = vunpack.i.h.bf16 %v14392_v2  ;;  %v4586_v14 = vsel %vm2873_vm3, %v4571_v45, %v14416_v35 }
 0x8f2   :  { %v7302_v62 = vpop.permute.xlu1 %7301  ;;  %v7288_v58 = vunpack.i.l.bf16 %v12393_v19  ;;  %v4701_v13 = vsel %vm13591_vm7, %v4686_v47, %v7209_v37  ;;  %v4662_v43 = vsel %vm13594_vm4, %v4647_v39, %v12199_v40  ;;  %v7289_v55 = vunpack.i.h.bf16 %v12393_v19 }
 0x8f3   :  { %v4585_v38 = vsel %vm2873_vm3, %v4570_v11, %v14415_v10  ;;  %v14417_v52 = vunpack.i.l.bf16 %v14396_v51  ;;  %v7283_v2 = vunpack.i.l.bf16 %v12395_v60  ;;  %v7279_v53 = vunpack.i.h.bf16 %v12374_v46 }
 0x8f4   :  { %v14418_v57 = vunpack.i.h.bf16 %v14396_v51  ;;  %v14419_v0 = vunpack.i.l.bf16 %v14384_v20  ;;  %v7294_v44 = vunpack.i.h.bf16 %v7292_v63  ;;  %v7293_v23 = vunpack.i.l.bf16 %v7292_v63 }
 0x8f5   :  { %v4687_v16 = vsel %vm13592_vm6, %v4672_v42, %v14417_v52  ;;  %v7317_v27 = vpop.permute.xlu0 %7316  ;;  %v4600_v48 = vsel %vm2885_vm10, %v4585_v38, %v7219_v32  ;;  %v4601_v17 = vsel %vm2885_vm10, %v4586_v14, %v12372_v25  ;;  %v4716_v46 = vsel %vm13590_vm9, %v4701_v13, %v7288_v58 }
 0x8f6   :  { %v4688_v4 = vsel %vm13592_vm6, %v4673_v33, %v14418_v57  ;;  %v4702_v8 = vsel %vm13591_vm7, %v4687_v16, %v7278_v3  ;;  %v4689_v40 = vsel %vm13592_vm6, %v4674_v21, %v14419_v0  ;;  %v7312_v19 = vpop.permute.xlu1 %7311  ;;  %v7304_v51 = vunpack.i.h.bf16 %v7302_v62 }
 0x8f7   :  { %v7303_v56 = vunpack.i.l.bf16 %v7302_v62  ;;  %v4677_v30 = vsel %vm13593_vm15, %v4662_v43, %v12207_v5  ;;  %v7299_v9 = vunpack.i.h.bf16 %v12416_v31  ;;  %v7298_v12 = vunpack.i.l.bf16 %v12416_v31 }
 0x8f8   :  { %v4704_v47 = vsel %vm13591_vm7, %v4689_v40, %v7283_v2  ;;  %v4717_v63 = vsel %vm13590_vm9, %v4702_v8, %v7289_v55  ;;  %v7309_v6 = vunpack.i.h.bf16 %v7307_v59  ;;  %v7308_v7 = vunpack.i.l.bf16 %v7307_v59 }
 0x8f9   :  { %v7327_v11 = vpop.permute.xlu0 %7326  ;;  %v7314_v45 = vunpack.i.h.bf16 %v7312_v19  ;;  %v7313_v25 = vunpack.i.l.bf16 %v7312_v19  ;;  %v4615_v39 = vsel %vm2897_vm11, %v4600_v48, %v7293_v23  ;;  %v4616_v3 = vsel %vm2897_vm11, %v4601_v17, %v7294_v44 }
 0x8fa   :  { %v7322_v37 = vpop.permute.xlu1 %7321  ;;  %v7319_v42 = vunpack.i.h.bf16 %v7317_v27  ;;  %v7318_v5 = vunpack.i.l.bf16 %v7317_v27  ;;  %v4703_v62 = vsel %vm13591_vm7, %v4688_v4, %v7279_v53  ;;  %v4731_v31 = vsel %vm13588_vm8, %v4716_v46, %v7303_v56 }
 0x8fb   :  { %v4732_v32 = vsel %vm13588_vm8, %v4717_v63, %v7304_v51  ;;  %v4692_v33 = vsel %vm13592_vm6, %v4677_v30, %v12093_v36  ;;  %v4718_v59 = vsel %vm13590_vm9, %v4703_v62, %v7298_v12  ;;  %v4719_v21 = vsel %vm13590_vm9, %v4704_v47, %v7299_v9  ;;  %v14421_v62 = vld [vmem:[#allocation81_spill] sm:$0xff] }
 0x8fc   :  { %v7324_v10 = vunpack.i.h.bf16 %v7322_v37  ;;  %v7323_v38 = vunpack.i.l.bf16 %v7322_v37  ;;  %v4733_v35 = vsel %vm13588_vm8, %v4718_v59, %v7313_v25  ;;  %v4734_v14 = vsel %vm13588_vm8, %v4719_v21, %v7314_v45 }
 0x8fd   :  { %v7337_v58 = vpop.permute.xlu0 %7336  ;;  %v4630_v13 = vsel %vm13596_vm12, %v4615_v39, %v7308_v7  ;;  %v4631_v43 = vsel %vm13596_vm12, %v4616_v3, %v7309_v6  ;;  %v4746_v2 = vsel %vm13587_vm0, %v4731_v31, %v7318_v5  ;;  %v4747_v53 = vsel %vm13587_vm0, %v4732_v32, %v7319_v42  ;;  %v14422_v32 = vld [vmem:[#allocation165_spill] sm:$0xff] }
 0x8fe   :  { %v7332_v55 = vpop.permute.xlu1 %7331  ;;  %v7329_v57 = vunpack.i.h.bf16 %v7327_v11  ;;  %v7328_v4 = vunpack.i.l.bf16 %v7327_v11  ;;  %v7339_v8 = vunpack.i.h.bf16 %v7337_v58  ;;  %v7338_v0 = vunpack.i.l.bf16 %v7337_v58 }
 0x8ff   :  { %v7334_v52 = vunpack.i.h.bf16 %v7332_v55  ;;  %v7333_v16 = vunpack.i.l.bf16 %v7332_v55  ;;  %v4645_v40 = vsel %vm13595_vm13, %v4630_v13, %v7323_v38  ;;  %v4646_v27 = vsel %vm13595_vm13, %v4631_v43, %v7324_v10 }
 0x900   :  { %v2936_v23 = vsel %vm13594_vm4, %v12327_v1, %v6144_v15  ;;  %v7284_v48 = vunpack.i.h.bf16 %v12395_v60  ;;  %v4707_v56 = vsel %vm13591_vm7, %v4692_v33, %v12103_v49  ;;  %v4660_v63 = vsel %vm13594_vm4, %v4645_v40, %v7338_v0  ;;  %v14429_v40 = vld [vmem:[#allocation195_spill] sm:$0xff] }
 0x901   :  { %v4761_v19 = vsel %vm13589_vm5, %v4746_v2, %v7333_v16  ;;  %v4762_v44 = vsel %vm13589_vm5, %v4747_v53, %v7334_v52  ;;  %v7347_v17 = vpop.permute.xlu0 %7346  ;;  %v4661_v6 = vsel %vm13594_vm4, %v4646_v27, %v7339_v8  ;;  %v4748_v24 = vsel %vm13587_vm0, %v4733_v35, %v7328_v4  ;;  %v14427_v53 = vld [vmem:[#allocation169_spill] sm:$0xff] }
 0x902   :  { %v7425_v46 = vpack.i.bf16 %v4762_v44, %v4761_v19  ;;  %v7342_v51 = vpop.permute.xlu1 %7341  ;;  %v7349_v30 = vunpack.i.h.bf16 %v7347_v17  ;;  %v7348_v9 = vunpack.i.l.bf16 %v7347_v17  ;;  %v4749_v1 = vsel %vm13587_vm0, %v4734_v14, %v7329_v57  ;;  %v14430_v19 = vld [vmem:[#allocation82_spill] sm:$0xff]  ;;  %v14433_v17 = vld [vmem:[#allocation164_spill] sm:$0xff] }
 0x903   :  { %v7344_v12 = vunpack.i.h.bf16 %v7342_v51  ;;  %v7343_v47 = vunpack.i.l.bf16 %v7342_v51  ;;  %v14420_v3 = vunpack.i.h.bf16 %v14384_v20  ;;  %v4722_v5 = vsel %vm13590_vm9, %v4707_v56, %v12109_v34  ;;  %v14431_v44 = vld [vmem:[#allocation198_spill] sm:$0xff] }
 0x904   :  { %7426 = vrot.lane.b32.xlu0 %v7425_v46, %s7586_s23  ;;  %v4675_v15 = vsel %vm13593_vm15, %v4660_v63, %v7348_v9  ;;  %v4676_v60 = vsel %vm13593_vm15, %v4661_v6, %v7349_v30  ;;  %v6163_v31 = vunpack.i.l.bf16 %v14421_v62  ;;  %v6174_v33 = vunpack.i.h.bf16 %v14422_v32 }
 0x905   :  { %v4763_v7 = vsel %vm13589_vm5, %v4748_v24, %v7343_v47  ;;  %v4764_v11 = vsel %vm13589_vm5, %v4749_v1, %v7344_v12  ;;  %v4691_v45 = vsel %vm13592_vm6, %v4676_v60, %v12093_v36  ;;  %v4465_v25 = vpop.permute.xlu0 %4464  ;;  %v4690_v42 = vsel %vm13592_vm6, %v4675_v15, %v14420_v3  ;;  %v14435_v60 = vld [vmem:[#allocation168_spill] sm:$0xff] }
 0x906   :  { %v7430_v37 = vpack.i.bf16 %v4764_v11, %v4763_v7  ;;  %v4432_v39 = vpop.permute.xlu1 %4431  ;;  %v4706_v59 = vsel %vm13591_vm7, %v4691_v45, %v12103_v49  ;;  %v4705_v21 = vsel %vm13591_vm7, %v4690_v42, %v7284_v48  ;;  %v14423_v36 = vunpack.i.l.bf16 %v14401_v54 }
 0x907   :  { %v6159_v20 = vunpack.i.h.bf16 %v14402_v26  ;;  %v4720_v38 = vsel %vm13590_vm9, %v4705_v21, %v4432_v39  ;;  %v14424_v35 = vpack.i.bf16 %v12025_v28, %v12068_v50  ;;  %v4721_v49 = vsel %vm13590_vm9, %v4706_v59, %v12109_v34  ;;  %v14426_v28 = vld [vmem:[#allocation79_spill] sm:$0xff] }
 0x908   :  { %v2937_v10 = vsel %vm13594_vm4, %v12310_v41, %v14423_v36  ;;  %7431 = vrot.lane.b32.xlu1 %v7430_v37, %s7586_s23  ;;  %v6173_v14 = vunpack.i.l.bf16 %v14422_v32  ;;  %v14425_v58 = vunpack.i.l.bf16 %v14402_v26  ;;  %v4736_v13 = vsel %vm13588_vm8, %v4721_v49, %v12118_v22  ;;  %v14438_v36 = vld [vmem:[#allocation126_spill] sm:$0xff] }
 0x909   :  { %7436 = vrot.lane.b32.xlu0 %v14424_v35, %s7590_s30  ;;  %v4737_v43 = vsel %vm13588_vm8, %v4722_v5, %v12118_v22  ;;  %v6178_v50 = vunpack.i.l.bf16 %v14426_v28  ;;  %v2950_v55 = vsel %vm13593_vm15, %v2936_v23, %v6159_v20  ;;  %v4531_v52 = vpop.permute.xlu0 %4530  ;;  %v4735_v34 = vsel %vm13588_vm8, %v4720_v38, %v4465_v25  ;;  %v14428_v22 = vld [vmem:[#allocation171_spill] sm:$0xff]  ;;  %v14436_v25 = vld [vmem:[#allocation170_spill] sm:$0xff] }
 0x90a   :  { %v2949_v41 = vsel %vm13593_vm15, %v12442_v29, %v14425_v58  ;;  %v4498_v16 = vpop.permute.xlu1 %4497  ;;  %v4751_v26 = vsel %vm13587_vm0, %v4736_v13, %v12129_v18  ;;  %v2951_v2 = vsel %vm13593_vm15, %v2937_v10, %v6163_v31  ;;  %v2964_v29 = vsel %vm13592_vm6, %v2950_v55, %v6174_v33  ;;  %v14437_v33 = vld [vmem:[#allocation176_spill] sm:$0xff]  ;;  %v14439_v10 = vld [vmem:[#allocation118_spill] sm:$0xff] }
 0x90b   :  { %v6193_v57 = vunpack.i.l.bf16 %v14427_v53  ;;  %v4750_v4 = vsel %vm13587_vm0, %v4735_v34, %v4498_v16  ;;  %v6204_v8 = vunpack.i.h.bf16 %v14428_v22  ;;  %v4766_v27 = vsel %vm13589_vm5, %v4751_v26, %v14429_v40  ;;  %v14440_v49 = vld [vmem:[#allocation106_spill] sm:$0xff] }
 0x90c   :  { %v4765_v0 = vsel %vm13589_vm5, %v4750_v4, %v4531_v52  ;;  %v14432_v23 = vpack.i.bf16 %v14430_v19, %v14431_v44  ;;  %v4752_v48 = vsel %vm13587_vm0, %v4737_v43, %v12129_v18  ;;  %v6189_v46 = vunpack.i.h.bf16 %v14433_v17  ;;  %v14434_v18 = vld [vmem:[#allocation175_spill] sm:$0xff] }
 0x90d   :  { %v2963_v51 = vsel %vm13592_vm6, %v2949_v41, %v6173_v14  ;;  %v6203_v56 = vunpack.i.l.bf16 %v14428_v22  ;;  %v7445_v30 = vpack.i.bf16 %v4766_v27, %v4765_v0  ;;  %v6188_v9 = vunpack.i.l.bf16 %v14433_v17  ;;  %v12572_v47 = vpop.permute.xlu0 %7356  ;;  %v14441_v41 = vld [vmem:[#allocation177_spill] sm:$0xff] }
 0x90e   :  { %7441 = vrot.lane.b32.xlu1 %v14432_v23, %s7590_s30  ;;  %v2965_v12 = vsel %vm13592_vm6, %v2951_v2, %v6178_v50  ;;  %v12574_v63 = vpop.permute.xlu1 %7351  ;;  %v2978_v24 = vsel %vm13591_vm7, %v2964_v29, %v6189_v46  ;;  %v6223_v1 = vunpack.i.l.bf16 %v14434_v18  ;;  %v4767_v15 = vsel %vm13589_vm5, %v4752_v48, %v14429_v40 }
 0x90f   :  { %v2979_v6 = vsel %vm13591_vm7, %v2965_v12, %v6193_v57  ;;  %7446 = vrot.lane.b32.xlu0 %v7445_v30, %s7586_s23  ;;  %v6208_v7 = vunpack.i.l.bf16 %v14435_v60  ;;  %v2977_v11 = vsel %vm13591_vm7, %v2963_v51, %v6188_v9  ;;  %v2992_v45 = vsel %vm13590_vm9, %v2978_v24, %v6204_v8 }
 0x910   :  { %v6219_v37 = vunpack.i.h.bf16 %v14436_v25  ;;  %v2991_v39 = vsel %vm13590_vm9, %v2977_v11, %v6203_v56  ;;  %v6218_v3 = vunpack.i.l.bf16 %v14436_v25  ;;  %v6243_v59 = vunpack.i.l.bf16 %v14437_v33 }
 0x911   :  { %v2993_v42 = vsel %vm13590_vm9, %v2979_v6, %v6208_v7  ;;  %v12590_v5 = vpop.permute.xlu0 %7366  ;;  %v5879_v20 = vunpack.i.h.bf16 %v14439_v10  ;;  %v5878_v38 = vunpack.i.l.bf16 %v14439_v10  ;;  %v5874_v14 = vunpack.i.h.bf16 %v14440_v49  ;;  %v14456_v10 = vld [vmem:[#allocation155_spill] sm:$0xff] }
 0x912   :  { %4875 = vrot.lane.b32.xlu1 %v4767_v15, %s7586_s23  ;;  %v12592_v31 = vpop.permute.xlu1 %7361  ;;  %v3006_v32 = vsel %vm13588_vm8, %v2992_v45, %v6219_v37  ;;  %v3007_v21 = vsel %vm13588_vm8, %v2993_v42, %v6223_v1  ;;  %v12602_v35 = vsel %vm13588_vm8, %v2991_v39, %v6218_v3  ;;  %v5873_v58 = vunpack.i.l.bf16 %v14440_v49  ;;  %v14454_v42 = vld [vmem:[#allocation59_spill] sm:$0xff]  ;;  %v14457_v49 = vld [vmem:[#allocation156_spill] sm:$0xff] }
 0x913   :  { %4912 = vrot.lane.b32.xlu0 %v14438_v36, %s7587_s26  ;;  %v6239_v13 = vunpack.i.h.bf16 %v14441_v41  ;;  %v6238_v43 = vunpack.i.l.bf16 %v14441_v41  ;;  %v3021_v50 = vsel %vm13587_vm0, %v3006_v32, %v5878_v38  ;;  %v3022_v55 = vsel %vm13587_vm0, %v3007_v21, %v5879_v20  ;;  %s7608_s26 = smov [#allocation2]  }
 0x914   :  { %v6244_v34 = vunpack.i.h.bf16 %v14437_v33  ;;  %v3037_v26 = vsel %vm13589_vm5, %v3021_v50, %v6243_v59  ;;  %v3019_v2 = vsel %vm13587_vm0, %v12602_v35, %v5873_v58  ;;  %v3020_v29 = vsel %vm13587_vm0, %v12602_v35, %v5874_v14  ;;  %v14455_v59 = vld [vmem:[#allocation62_spill] sm:$0xff]  ;;  %v14458_v58 = vld [vmem:[#allocation23_spill] sm:$0xff]  ;;  %s5323_s30 = sshll.u32 %s7608_s26, 4  ;;  %s5324_s30 = int_to_ptr.vmem [resolvable:$true] %s5323_s30 }
 0x915   :  { %v12617_v0 = vsel %vm13589_vm5, %v3019_v2, %v6238_v43  ;;  %v3036_v40 = vsel %vm13589_vm5, %v3020_v29, %v6239_v13  ;;  %v7359_v19 = vunpack.i.h.bf16 %v12572_v47  ;;  %v7358_v44 = vunpack.i.l.bf16 %v12572_v47  ;;  %v14459_v43 = vld [vmem:[#allocation157_spill] sm:$0xff]  ;;  %v14462_v29 = vld [vmem:[#allocation151_spill] sm:$0xff]  ;;  %s7559_s19 = scalar_lea.vmem %s5324_s30, 2048  ;;  %p7564_p1 = scmp.lt.s32.totalorder %s5324_s30, %s5324_s30 }
 0x916   :  { %v7372_v16 = vpop.permute.xlu1 %7371  ;;  %v3038_v27 = vsel %vm13589_vm5, %v3022_v55, %v6244_v34  ;;  %v7354_v23 = vunpack.i.h.bf16 %v12574_v63  ;;  %v7353_v48 = vunpack.i.l.bf16 %v12574_v63  ;;  %vm14442_vm0 = vcmask 261120   ;;  %v14460_v55 = vld [vmem:[#allocation24_spill] sm:$0xff]  ;;  %p7560_p0 = scmp.ne.s32.totalorder %s5324_s30, %s7559_s19  ;;  %p7565_p2 = scmp.lt.s32.totalorder %s7559_s19, %s7559_s19 }
 0x917   :  { %v7377_v52 = vpop.permute.xlu0 %7376  ;;  %v7374_v22 = vunpack.i.h.bf16 %v7372_v16  ;;  %v7373_v8 = vunpack.i.l.bf16 %v7372_v16  ;;  %vm14443_vm8 = vmmov %vm14442_vm0  ;;  %vm14446_vm7 = vcmask 523264   ;;  %vm14450_vm13 = vcmask 785408  }
 0x918   :  { %v7379_v57 = vunpack.i.h.bf16 %v7377_v52  ;;  %v7378_v4 = vunpack.i.l.bf16 %v7377_v52  ;;  %vm14444_vm5 = vmmov %vm14442_vm0  ;;  %v6053_v32 = vunpack.i.l.bf16 %v14454_v42  ;;  %v6054_v33 = vunpack.i.h.bf16 %v14454_v42  ;;  %p7566_p3 = por %p7565_p2, %p7564_p1 }
 0x919   :  { %v4925_v24 = vsel %vm14444_vm5, %v12617_v0, %v7373_v8  ;;  %vm14445_vm9 = vmmov %vm14442_vm0  ;;  %v6068_v21 = vunpack.i.l.bf16 %v14455_v59  ;;  %v6069_v36 = vunpack.i.h.bf16 %v14455_v59  ;;  %v6083_v20 = vunpack.i.l.bf16 %v14456_v10 }
 0x91a   :  { %v7382_v46 = vpop.permute.xlu1 %7381  ;;  %v4927_v12 = vsel %vm14442_vm0, %v3037_v26, %v7378_v4  ;;  %v4928_v6 = vsel %vm14443_vm8, %v3038_v27, %v7379_v57  ;;  %v4926_v1 = vsel %vm14445_vm9, %v3036_v40, %v7374_v22  ;;  %vm14447_vm6 = vmmov %vm14446_vm7  ;;  %v6084_v38 = vunpack.i.h.bf16 %v14456_v10  ;;  %v14461_v26 = vld [vmem:[#allocation160_spill] sm:$0xff]  ;;  %p7567_p4 = pnand %p7566_p3, %p7560_p0 }
 0x91b   :  { %v7387_v17 = vpop.permute.xlu0 %7386  ;;  %v7384_v30 = vunpack.i.h.bf16 %v7382_v46  ;;  %v7383_v9 = vunpack.i.l.bf16 %v7382_v46  ;;  %vm14448_vm15 = vmmov %vm14447_vm6  ;;  %v6098_v14 = vunpack.i.l.bf16 %v14457_v49  ;;  %v2853_v41 = vsel %vm2850_vm2, %v14458_v58, %v6053_v32  ;;  %v14474_v32 = vld [vmem:[#allocation167_spill] sm:$0xff] }
 0x91c   :  { %v7389_v51 = vunpack.i.h.bf16 %v7387_v17  ;;  %v7388_v56 = vunpack.i.l.bf16 %v7387_v17  ;;  %vm14449_vm4 = vmmov %vm14447_vm6  ;;  %v6099_v13 = vunpack.i.h.bf16 %v14457_v49  ;;  %v6113_v50 = vunpack.i.l.bf16 %v14459_v43  ;;  %v14478_v49 = vld [vmem:[#allocation149_spill] sm:$0xff] }
 0x91d   :  { %v4941_v63 = vsel %vm14448_vm15, %v4925_v24, %v7383_v9  ;;  %v4942_v7 = vsel %vm14449_vm4, %v4926_v1, %v7384_v30  ;;  %vm14451_vm12 = vmmov %vm14450_vm13  ;;  %v2854_v52 = vsel %vm2850_vm2, %v14460_v55, %v6054_v33  ;;  %v2864_v16 = vsel %vm1597_vm14, %v2853_v41, %v6068_v21  ;;  %v14466_v9 = vld [vmem:[#allocation28_spill] sm:$0xff]  ;;  %v14468_v1 = vld [vmem:[#allocation143_spill] sm:$0xff] }
 0x91e   :  { %v4943_v47 = vsel %vm14446_vm7, %v4927_v12, %v7388_v56  ;;  %v4944_v15 = vsel %vm14447_vm6, %v4928_v6, %v7389_v51  ;;  %vm14452_vm0 = vmmov %vm14451_vm12  ;;  %v6114_v34 = vunpack.i.h.bf16 %v14459_v43  ;;  %v6128_v2 = vunpack.i.l.bf16 %v14461_v26  ;;  %v14464_v51 = vld [vmem:[#allocation25_spill] sm:$0xff]  ;;  %v14467_v6 = vld [vmem:[#allocation114_spill] sm:$0xff] }
 0x91f   :  { %v4959_v11 = vsel %vm14450_vm13, %v4943_v47, %v7358_v44  ;;  %v4960_v45 = vsel %vm14451_vm12, %v4944_v15, %v7359_v19  ;;  %v4957_v25 = vsel %vm14452_vm0, %v4941_v63, %v7353_v48  ;;  %vm14453_vm8 = vmmov %vm14452_vm0  ;;  %v6058_v57 = vunpack.i.l.bf16 %v14462_v29  ;;  %v14469_v15 = vld [vmem:[#allocation26_spill] sm:$0xff]  ;;  %v14475_v21 = vld [vmem:[#allocation64_spill] sm:$0xff] }
 0x920   :  { %v4958_v37 = vsel %vm14453_vm8, %v4942_v7, %v7354_v23  ;;  %v4974_v3 = vpack.c.bf16 %v4960_v45, %v4959_v11  ;;  %v2865_v4 = vsel %vm1597_vm14, %v2854_v52, %v6069_v36  ;;  %v2876_v22 = vsel %vm2873_vm3, %v2864_v16, %v6083_v20  ;;  %v14482_v52 = vld [vmem:[#allocation74_spill] sm:$0xff] }
 0x921   :  { %v4973_v39 = vpack.c.bf16 %v4958_v37, %v4957_v25  ;;  %v6129_v8 = vunpack.i.h.bf16 %v14461_v26  ;;  %v2877_v40 = vsel %vm2873_vm3, %v2865_v4, %v6084_v38  ;;  %v2888_v27 = vsel %vm2885_vm10, %v2876_v22, %v6098_v14  ;;  %v14483_v26 = vld [vmem:[#allocation166_spill] sm:$0xff] }
 0x922   :  { %v6059_v19 = vunpack.i.h.bf16 %v14462_v29  ;;  %v2889_v44 = vsel %vm2885_vm10, %v2877_v40, %v6099_v13  ;;  %v2900_v23 = vsel %vm2897_vm11, %v2888_v27, %v6113_v50  ;;  %vm14463_vm4 = vcmask 97280   ;;  %v14481_v50 = vld [vmem:[#allocation173_spill] sm:$0xff] }
 0x923   :  { %5533 = vmatprep.mubr.msk.bf16.mxu1 %vm5033_vm1, %v4973_v39  ;;  %v2901_v48 = vsel %vm2897_vm11, %v2889_v44, %v6114_v34  ;;  %v2912_v17 = vsel %vm14463_vm4, %v2900_v23, %v6128_v2  ;;  %v5864_v46 = vunpack.i.h.bf16 %v14382_v61  ;;  %v2855_v56 = vsel %vm2850_vm2, %v14464_v51, %v6058_v57  ;;  %vm14465_vm5 = vmmov %vm14463_vm4  ;;  %v14472_v39 = vld [vmem:[#allocation146_spill] sm:$0xff]  ;;  %v14485_v57 = vld [vmem:[#allocation153_spill] sm:$0xff] }
 0x924   :  { %5534 = vmatmul.mubr.msk.bf16.vlgmr.msra.gmra.mrb[24].mxu1 %vm5033_vm1, %v4974_v3  ;;  %v2913_v30 = vsel %vm14465_vm5, %v2901_v48, %v6129_v8  ;;  %v6153_v12 = vunpack.i.l.bf16 %v14466_v9  ;;  %v5868_v24 = vunpack.i.l.bf16 %v14467_v6  ;;  %v6073_v47 = vunpack.i.l.bf16 %v14468_v1 }
 0x925   :  { %v2856_v63 = vsel %vm2850_vm2, %v14469_v15, %v6059_v19  ;;  %vm14470_vm12 = vcmask 113664   ;;  %v6164_v11 = vunpack.i.h.bf16 %v14421_v62  ;;  %v6074_v61 = vunpack.i.h.bf16 %v14468_v1 }
 0x926   :  { %v2925_v7 = vsel %vm14470_vm12, %v2912_v17, %v5864_v46  ;;  %v2866_v45 = vsel %vm1597_vm14, %v2855_v56, %v6073_v47  ;;  %v6149_v25 = vunpack.i.h.bf16 %v14401_v54  ;;  %vm14471_vm13 = vmmov %vm14470_vm12  ;;  %v6088_v3 = vunpack.i.l.bf16 %v14472_v39  ;;  %v14490_v46 = vld [vmem:[#allocation172_spill] sm:$0xff]  ;;  %v7392_v56 = vpop.permute.xlu1 %7391  ;;  %v14494_v47 = vld [vmem:[#allocation115_spill] sm:$0xff] }
 0x927   :  { %v2926_v37 = vsel %vm14471_vm13, %v2913_v30, %v5868_v24  ;;  %vm14473_vm15 = vcmask 130048   ;;  %v6183_v33 = vunpack.i.l.bf16 %v14474_v32  ;;  %v2867_v59 = vsel %vm1597_vm14, %v2856_v63, %v6074_v61  ;;  %v14493_v24 = vld [vmem:[#allocation179_spill] sm:$0xff] }
 0x928   :  { %v2939_v42 = vsel %vm14473_vm15, %v2926_v37, %v6153_v12  ;;  %v6168_v36 = vunpack.i.l.bf16 %v14475_v21  ;;  %vm14476_vm6 = vmmov %vm14473_vm15  ;;  %v6089_v10 = vunpack.i.h.bf16 %v14472_v39  ;;  %v2878_v20 = vsel %vm2873_vm3, %v2866_v45, %v6088_v3 }
 0x929   :  { %v2938_v62 = vsel %vm14476_vm6, %v2925_v7, %v6149_v25  ;;  %vm14477_vm7 = vcmask 146432   ;;  %v6194_v38 = vunpack.i.h.bf16 %v14427_v53  ;;  %v6103_v14 = vunpack.i.l.bf16 %v14478_v49  ;;  %v14497_v25 = vld [vmem:[#allocation137_spill] sm:$0xff] }
 0x92a   :  { %v2952_v54 = vsel %vm14477_vm7, %v2938_v62, %v6164_v11  ;;  %v6179_v58 = vunpack.i.h.bf16 %v14426_v28  ;;  %vm14479_vm9 = vmmov %vm14477_vm7  ;;  %v2879_v13 = vsel %vm2873_vm3, %v2867_v59, %v6089_v10  ;;  %vm14480_vm0 = vcmask 162816   ;;  %v14503_v62 = vld [vmem:[#allocation158_spill] sm:$0xff] }
 0x92b   :  { %v2953_v41 = vsel %vm14479_vm9, %v2939_v42, %v6168_v36  ;;  %v6213_v55 = vunpack.i.l.bf16 %v14481_v50  ;;  %v6133_v16 = vunpack.i.l.bf16 %v14482_v52  ;;  %v2890_v34 = vsel %vm2885_vm10, %v2878_v20, %v6103_v14  ;;  %vm14484_vm8 = vmmov %vm14480_vm0 }
 0x92c   :  { %v2967_v43 = vsel %vm14480_vm0, %v2953_v41, %v6183_v33  ;;  %v6198_v2 = vunpack.i.l.bf16 %v14483_v26  ;;  %v2966_v53 = vsel %vm14484_vm8, %v2952_v54, %v6179_v58  ;;  %v6104_v29 = vunpack.i.h.bf16 %v14478_v49 }
 0x92d   :  { %v6118_v28 = vunpack.i.l.bf16 %v14485_v57  ;;  %vm14486_vm4 = vcmask 179200   ;;  %v6224_v22 = vunpack.i.h.bf16 %v14434_v18  ;;  %v6209_v8 = vunpack.i.h.bf16 %v14435_v60 }
 0x92e   :  { %v2980_v4 = vsel %vm14486_vm4, %v2966_v53, %v6194_v38  ;;  %vm14487_vm5 = vmmov %vm14486_vm4  ;;  %v6134_v27 = vunpack.i.h.bf16 %v14482_v52  ;;  %v2891_v19 = vsel %vm2885_vm10, %v2879_v13, %v6104_v29  ;;  %vm14488_vm12 = vcmask 195584   ;;  %v14505_v38 = vld [vmem:[#allocation116_spill] sm:$0xff] }
 0x92f   :  { %v2981_v40 = vsel %vm14487_vm5, %v2967_v43, %v6198_v2  ;;  %v2902_v44 = vsel %vm2897_vm11, %v2890_v34, %v6118_v28  ;;  %vm14489_vm13 = vcmask 97280   ;;  %v6154_v17 = vunpack.i.h.bf16 %v14466_v9  ;;  %vm14491_vm15 = vmmov %vm14488_vm12  ;;  %v14515_v28 = vld [vmem:[#allocation49_spill] sm:$0xff] }
 0x930   :  { %v2995_v23 = vsel %vm14488_vm12, %v2981_v40, %v6213_v55  ;;  %v2914_v48 = vsel %vm14489_vm13, %v2902_v44, %v6133_v16  ;;  %v6228_v51 = vunpack.i.l.bf16 %v14490_v46  ;;  %v2994_v18 = vsel %vm14491_vm15, %v2980_v4, %v6209_v8  ;;  %vm14498_vm0 = vmmov %vm14489_vm13  ;;  %v14517_v40 = vld [vmem:[#allocation261_spill] sm:$0xff] }
 0x931   :  { %v5869_v60 = vunpack.i.h.bf16 %v14467_v6  ;;  %v6119_v30 = vunpack.i.h.bf16 %v14485_v57  ;;  %vm14492_vm6 = vcmask 211968   ;;  %v6248_v1 = vunpack.i.l.bf16 %v14493_v24 }
 0x932   :  { %v3008_v12 = vsel %vm14492_vm6, %v2994_v18, %v6224_v22  ;;  %v5884_v15 = vunpack.i.h.bf16 %v14494_v47  ;;  %v5883_v63 = vunpack.i.l.bf16 %v14494_v47  ;;  %vm14495_vm7 = vmmov %vm14492_vm6  ;;  %v6249_v9 = vunpack.i.h.bf16 %v14493_v24  ;;  %v14522_v18 = vld [vmem:[#allocation182_spill] sm:$0xff]  ;;  %v14525_v24 = vld [vmem:[#allocation128_spill] sm:$0xff] }
 0x933   :  { %v3009_v7 = vsel %vm14495_vm7, %v2995_v23, %v6228_v51  ;;  %v2903_v11 = vsel %vm2897_vm11, %v2891_v19, %v6119_v30  ;;  %vm14496_vm9 = vcmask 113664   ;;  %v7394_v45 = vunpack.i.h.bf16 %v7392_v56  ;;  %v14519_v23 = vld [vmem:[#allocation123_spill] sm:$0xff]  ;;  %v14523_v30 = vld [vmem:[#allocation45_spill] sm:$0xff]  ;;  %v14526_v47 = vld [vmem:[#allocation136_spill] sm:$0xff] }
 0x934   :  { %v2927_v61 = vsel %vm14496_vm9, %v2914_v48, %v5869_v60  ;;  %v7393_v6 = vunpack.i.l.bf16 %v7392_v56  ;;  %v5948_v37 = vunpack.i.l.bf16 %v14497_v25  ;;  %v2915_v39 = vsel %vm14498_vm0, %v2903_v11, %v6134_v27  ;;  %vm14508_vm7 = vmmov %vm14496_vm9  ;;  %v14527_v11 = vld [vmem:[#allocation139_spill] sm:$0xff] }
 0x935   :  { %vm14499_vm8 = vcmask 130048   ;;  %vm14500_vm4 = vcmask 228352   ;;  %v6184_v33 = vunpack.i.h.bf16 %v14474_v32  ;;  %vm14502_vm12 = vcmask 244736  }
 0x936   :  { %v2940_v3 = vsel %vm14499_vm8, %v2927_v61, %v6154_v17  ;;  %v3023_v42 = vsel %vm14500_vm4, %v3008_v12, %v5883_v63  ;;  %vm14501_vm5 = vmmov %vm14500_vm4  ;;  %v6748_v10 = vunpack.i.l.bf16 %v14503_v62  ;;  %v6768_v49 = vunpack.i.l.bf16 %v14505_v38 }
 0x937   :  { %v3024_v59 = vsel %vm14501_vm5, %v3009_v7, %v5884_v15  ;;  %v3039_v36 = vsel %vm14502_vm12, %v3023_v42, %v6248_v1  ;;  %vm14504_vm13 = vmmov %vm14502_vm12  ;;  %v12737_v41 = vunpack.i.h.bf16 %v12592_v31  ;;  %v7363_v13 = vunpack.i.l.bf16 %v12592_v31 }
 0x938   :  { %v3040_v54 = vsel %vm14504_vm13, %v3024_v59, %v6249_v9  ;;  %vm14506_vm15 = vcmask 261120   ;;  %v6169_v55 = vunpack.i.h.bf16 %v14475_v21  ;;  %v2928_v52 = vsel %vm14508_vm7, %v2915_v39, %v5948_v37  ;;  %v14530_v39 = vld [vmem:[#allocation56_spill] sm:$0xff]  ;;  %v7397_v59 = vpop.permute.xlu0 %7396 }
 0x939   :  { %v4929_v32 = vsel %vm14506_vm15, %v3039_v36, %v7393_v6  ;;  %vm14507_vm6 = vmmov %vm14506_vm15  ;;  %vm14509_vm9 = vcmask 523264   ;;  %v2941_v2 = vsel %vm14499_vm8, %v2928_v52, %v6748_v10  ;;  %vm14511_vm4 = vcmask 785408   ;;  %v14532_v36 = vld [vmem:[#allocation41_spill] sm:$0xff] }
 0x93a   :  { %v4930_v43 = vsel %vm14507_vm6, %v3040_v54, %v7394_v45  ;;  %vm14510_vm0 = vmmov %vm14509_vm9  ;;  %vm14513_vm12 = vcmask 146432   ;;  %v6808_v4 = vunpack.i.l.bf16 %v14515_v28  ;;  %vm14516_vm15 = vcmask 162816  }
 0x93b   :  { %vm14512_vm5 = vmmov %vm14511_vm4  ;;  %v2954_v31 = vsel %vm14513_vm12, %v2940_v3, %v6169_v55  ;;  %v6214_v8 = vunpack.i.h.bf16 %v14481_v50  ;;  %v6788_v27 = vunpack.i.l.bf16 %v14517_v40  ;;  %v6199_v19 = vunpack.i.h.bf16 %v14483_v26 }
 0x93c   :  { %vm14514_vm13 = vmmov %vm14513_vm12  ;;  %v2968_v22 = vsel %vm14516_vm15, %v2954_v31, %v6184_v33  ;;  %v5889_v48 = vunpack.i.h.bf16 %v14519_v23  ;;  %vm14520_vm7 = vcmask 179200   ;;  %v6848_v56 = vunpack.i.l.bf16 %v14522_v18 }
 0x93d   :  { %v7402_v20 = vpop.permute.xlu1 %7401  ;;  %v2955_v57 = vsel %vm14514_vm13, %v2941_v2, %v6768_v49  ;;  %vm14518_vm6 = vmmov %vm14516_vm15  ;;  %v2982_v17 = vsel %vm14520_vm7, %v2968_v22, %v6199_v19  ;;  %v5888_v60 = vunpack.i.l.bf16 %v14519_v23  ;;  %v5954_v50 = vunpack.i.h.bf16 %v14523_v30 }
 0x93e   :  { %v7404_v14 = vunpack.i.h.bf16 %v7402_v20  ;;  %v7403_v58 = vunpack.i.l.bf16 %v7402_v20  ;;  %v2969_v44 = vsel %vm14518_vm6, %v2955_v57, %v6788_v27  ;;  %v6828_v26 = vunpack.i.l.bf16 %v14525_v24  ;;  %v14541_v57 = vld [vmem:[#allocation30_spill] sm:$0xff] }
 0x93f   :  { %v5953_v1 = vunpack.i.l.bf16 %v14523_v30  ;;  %v5969_v15 = vunpack.i.h.bf16 %v14526_v47  ;;  %v5968_v63 = vunpack.i.l.bf16 %v14526_v47  ;;  %v6229_v7 = vunpack.i.h.bf16 %v14490_v46  ;;  %v14533_v46 = vld [vmem:[#allocation178_spill] sm:$0xff] }
 0x940   :  { %v4945_v16 = vsel %vm14509_vm9, %v4929_v32, %v7403_v58  ;;  %v4946_v34 = vsel %vm14510_vm0, %v4930_v43, %v7404_v14  ;;  %vm14521_vm9 = vmmov %vm14520_vm7  ;;  %vm14524_vm0 = vcmask 195584   ;;  %v5949_v9 = vunpack.i.h.bf16 %v14497_v25  ;;  %v14534_v25 = vld [vmem:[#allocation243_spill] sm:$0xff]  ;;  %v14536_v43 = vld [vmem:[#allocation78_spill] sm:$0xff] }
 0x941   :  { %v4961_v53 = vsel %vm14511_vm4, %v4945_v16, %v7363_v13  ;;  %v4962_v29 = vsel %vm14512_vm5, %v4946_v34, %v12737_v41  ;;  %v2983_v51 = vsel %vm14521_vm9, %v2969_v44, %v6808_v4  ;;  %v2996_v12 = vsel %vm14524_vm0, %v2982_v17, %v6214_v8  ;;  %vm14528_vm8 = vmmov %vm14524_vm0  ;;  %v14535_v58 = vld [vmem:[#allocation51_spill] sm:$0xff] }
 0x942   :  { %v4975_v21 = vpack.c.bf16 %v4962_v29, %v4961_v53  ;;  %v5959_v61 = vunpack.i.h.bf16 %v14527_v11  ;;  %v5958_v45 = vunpack.i.l.bf16 %v14527_v11  ;;  %v2997_v6 = vsel %vm14528_vm8, %v2983_v51, %v6828_v26  ;;  %v14540_v29 = vld [vmem:[#allocation31_spill] sm:$0xff] }
 0x943   :  { %vm14529_vm4 = vcmask 211968   ;;  %v6664_v3 = vunpack.i.h.bf16 %v14530_v39  ;;  %v6663_v42 = vunpack.i.l.bf16 %v14530_v39  ;;  %v5964_v10 = vunpack.i.h.bf16 %v14532_v36  ;;  %v14549_v39 = vld [vmem:[#allocation249_spill] sm:$0xff] }
 0x944   :  { %5537 = vmatprep.mubr.msk.bf16.mxu1 %vm5033_vm1, %v4975_v21  ;;  %v3010_v37 = vsel %vm14529_vm4, %v2996_v12, %v6229_v7  ;;  %vm14531_vm5 = vmmov %vm14529_vm4  ;;  %v6253_v20 = vunpack.i.l.bf16 %v14533_v46  ;;  %v6679_v54 = vunpack.i.h.bf16 %v14534_v25  ;;  %v6678_v49 = vunpack.i.l.bf16 %v14534_v25  ;;  %v14542_v21 = vld [vmem:[#allocation244_spill] sm:$0xff]  ;;  %v14546_v12 = vld [vmem:[#allocation246_spill] sm:$0xff] }
 0x945   :  { %v3011_v33 = vsel %vm14531_vm5, %v2997_v6, %v6848_v56  ;;  %v5963_v14 = vunpack.i.l.bf16 %v14532_v36  ;;  %v5974_v13 = vunpack.i.h.bf16 %v14535_v58  ;;  %v5973_v32 = vunpack.i.l.bf16 %v14535_v58 }
 0x946   :  { %vm14537_vm12 = vcmask 113664   ;;  %vm14538_vm13 = vcmask 228352   ;;  %v7399_v34 = vunpack.i.h.bf16 %v7397_v59  ;;  %v7398_v2 = vunpack.i.l.bf16 %v7397_v59 }
 0x947   :  { %v12788_v55 = vsel %vm14537_vm12, %v14536_v43, %v5949_v9  ;;  %v3025_v52 = vsel %vm14538_vm13, %v3010_v37, %v5888_v60  ;;  %vm14539_vm15 = vmmov %vm14538_vm13  ;;  %v6254_v53 = vunpack.i.h.bf16 %v14533_v46  ;;  %v2860_v31 = vsel %vm2850_vm2, %v14540_v29, %v6664_v3  ;;  %v14552_v46 = vld [vmem:[#allocation122_spill] sm:$0xff]  ;;  %v14555_v43 = vld [vmem:[#allocation247_spill] sm:$0xff] }
 0x948   :  { %v3026_v16 = vsel %vm14539_vm15, %v3011_v33, %v5889_v48  ;;  %v2859_v4 = vsel %vm2850_vm2, %v14541_v57, %v6663_v42  ;;  %v6693_v22 = vunpack.i.l.bf16 %v14542_v21  ;;  %vm14543_vm6 = vcmask 244736   ;;  %v14544_v48 = vld [vmem:[#allocation245_spill] sm:$0xff]  ;;  %v14557_v57 = vld [vmem:[#allocation251_spill] sm:$0xff] }
 0x949   :  { %v3041_v8 = vsel %vm14543_vm6, %v3025_v52, %v6253_v20  ;;  %v2870_v27 = vsel %vm1597_vm14, %v2859_v4, %v6678_v49  ;;  %v2871_v19 = vsel %vm1597_vm14, %v2860_v31, %v6679_v54  ;;  %v6694_v44 = vunpack.i.h.bf16 %v14542_v21  ;;  %vm14545_vm7 = vmmov %vm14543_vm6  ;;  %v14558_v21 = vld [vmem:[#allocation77_spill] sm:$0xff] }
 0x94a   :  { %v6659_v17 = vunpack.i.h.bf16 %v14544_v48  ;;  %v3042_v51 = vsel %vm14545_vm7, %v3026_v16, %v6254_v53  ;;  %v6708_v26 = vunpack.i.l.bf16 %v14546_v12  ;;  %v6658_v7 = vunpack.i.l.bf16 %v14544_v48  ;;  %v14556_v16 = vld [vmem:[#allocation250_spill] sm:$0xff] }
 0x94b   :  { %vm14547_vm9 = vcmask 261120   ;;  %v2882_v37 = vsel %vm2873_vm3, %v2870_v27, %v6693_v22  ;;  %v6723_v3 = vunpack.i.l.bf16 %v14549_v39  ;;  %vm14550_vm8 = vcmask 523264  }
 0x94c   :  { %v4932_v9 = vsel %vm14547_vm9, %v3042_v51, %v7399_v34  ;;  %vm14548_vm0 = vmmov %vm14547_vm9  ;;  %v6709_v59 = vunpack.i.h.bf16 %v14546_v12  ;;  %v6738_v20 = vunpack.i.l.bf16 %v14552_v46  ;;  %vm14553_vm5 = vcmask 785408   ;;  %v14559_v51 = vld [vmem:[#allocation174_spill] sm:$0xff] }
 0x94d   :  { %v4931_v6 = vsel %vm14548_vm0, %v3041_v8, %v7398_v2  ;;  %vm14551_vm4 = vmmov %vm14550_vm8  ;;  %v6724_v49 = vunpack.i.h.bf16 %v14549_v39  ;;  %v6668_v52 = vunpack.i.l.bf16 %v14555_v43  ;;  %v6673_v34 = vunpack.i.l.bf16 %v14556_v16  ;;  %v14563_v39 = vld [vmem:[#allocation40_spill] sm:$0xff] }
 0x94e   :  { %v12802_v23 = vpop.permute.xlu0 %7411  ;;  %vm14554_vm12 = vmmov %vm14553_vm5  ;;  %v2894_v53 = vsel %vm2885_vm10, %v2882_v37, %v6708_v26  ;;  %v6739_v29 = vunpack.i.h.bf16 %v14552_v46  ;;  %v6674_v31 = vunpack.i.h.bf16 %v14556_v16  ;;  %v6683_v4 = vunpack.i.l.bf16 %v14557_v57  ;;  %v14560_v26 = vld [vmem:[#allocation37_spill] sm:$0xff]  ;;  %v14572_v57 = vld [vmem:[#allocation264_spill] sm:$0xff] }
 0x94f   :  { %v7414_v56 = vunpack.i.h.bf16 %v12802_v23  ;;  %v7413_v60 = vunpack.i.l.bf16 %v12802_v23  ;;  %v6138_v22 = vunpack.i.l.bf16 %v14558_v21  ;;  %v2883_v8 = vsel %vm2873_vm3, %v2871_v19, %v6694_v44  ;;  %v14562_v37 = vld [vmem:[#allocation29_spill] sm:$0xff] }
 0x950   :  { %v2906_v27 = vsel %vm2897_vm11, %v2894_v53, %v6723_v3  ;;  %v12836_v48 = vsel %vm14538_vm13, %v12602_v35, %v5963_v14  ;;  %v2895_v12 = vsel %vm2885_vm10, %v2883_v8, %v6709_v59  ;;  %vm14561_vm15 = vcmask 97280  }
 0x951   :  { %v4947_v42 = vsel %vm14550_vm8, %v4931_v6, %v7413_v60  ;;  %v4948_v33 = vsel %vm14551_vm4, %v4932_v9, %v7414_v56  ;;  %v6233_v60 = vunpack.i.l.bf16 %v14559_v51  ;;  %v2857_v9 = vsel %vm2850_vm2, %v14560_v26, %v6658_v7  ;;  %vm14564_vm6 = vmmov %vm14561_vm15 }
 0x952   :  { %v4963_v25 = vsel %vm14553_vm5, %v4947_v42, %v12737_v41  ;;  %v4964_v54 = vsel %vm14554_vm12, %v4948_v33, %v12737_v41  ;;  %v2918_v6 = vsel %vm14561_vm15, %v2906_v27, %v6738_v20  ;;  %v2858_v19 = vsel %vm2850_vm2, %v14562_v37, %v6659_v17  ;;  %v14566_v17 = vld [vmem:[#allocation252_spill] sm:$0xff]  ;;  %vm14579_vm8 = vmmov %vm14564_vm6 }
 0x953   :  { %v4976_v2 = vpack.c.bf16 %v4964_v54, %v4963_v25  ;;  %v2907_v44 = vsel %vm2897_vm11, %v2895_v12, %v6724_v49  ;;  %v2861_v35 = vsel %vm2850_vm2, %v14563_v39, %v6668_v52  ;;  %v2868_v14 = vsel %vm1597_vm14, %v2857_v9, %v6673_v34  ;;  %v14567_v25 = vld [vmem:[#allocation39_spill] sm:$0xff]  ;;  %v14568_v49 = vld [vmem:[#allocation254_spill] sm:$0xff]  ;;  %v14569_v52 = vld [vmem:[#allocation256_spill] sm:$0xff] }
 0x954   :  { %v2919_v3 = vsel %vm14564_vm6, %v2907_v44, %v6739_v29  ;;  %v2869_v42 = vsel %vm1597_vm14, %v2858_v19, %v6674_v31  ;;  %v6749_v33 = vunpack.i.h.bf16 %v14503_v62  ;;  %v2872_v7 = vsel %vm1597_vm14, %v2861_v35, %v6683_v4  ;;  %v14571_v29 = vld [vmem:[#allocation105_spill] sm:$0xff]  ;;  %v14576_v44 = vld [vmem:[#allocation124_spill] sm:$0xff] }
 0x955   :  { %5538 = vmatmul.mubr.msk.bf16.gmra.mrb[28].mxu1 %vm5033_vm1, %v4976_v2  ;;  %vm14565_vm7 = vcmask 113664   ;;  %v6689_v46 = vunpack.i.h.bf16 %v14566_v17  ;;  %v6688_v20 = vunpack.i.l.bf16 %v14566_v17  ;;  %v6698_v54 = vunpack.i.l.bf16 %v14567_v25  ;;  %v14570_v2 = vld [vmem:[#allocation258_spill] sm:$0xff]  ;;  %v14575_v12 = vld [vmem:[#allocation265_spill] sm:$0xff]  ;;  %v14582_v25 = vld [vmem:[#allocation255_spill] sm:$0xff] }
 0x956   :  { %v2932_v59 = vsel %vm14565_vm7, %v2918_v6, %v5958_v45  ;;  %v6758_v43 = vunpack.i.l.bf16 %v14568_v49  ;;  %v6704_v16 = vunpack.i.h.bf16 %v14569_v52  ;;  %v6703_v34 = vunpack.i.l.bf16 %v14569_v52  ;;  %vm14574_vm2 = vmmov %vm14565_vm7  ;;  %v14584_v52 = vld [vmem:[#allocation89_spill] sm:$0xff] }
 0x957   :  { %v6713_v62 = vunpack.i.l.bf16 %v14570_v2  ;;  %v6759_v53 = vunpack.i.h.bf16 %v14568_v49  ;;  %v6719_v31 = vunpack.i.h.bf16 %v14571_v29  ;;  %v6718_v45 = vunpack.i.l.bf16 %v14571_v29  ;;  %vm14589_vm4 = vmmov %vm14574_vm2 }
 0x958   :  { %v6728_v4 = vunpack.i.l.bf16 %v14572_v57  ;;  %vm14573_vm14 = vcmask 130048   ;;  %v2933_v27 = vsel %vm14574_vm2, %v2919_v3, %v5959_v61  ;;  %v6734_v26 = vunpack.i.h.bf16 %v14575_v12  ;;  %v14587_v57 = vld [vmem:[#allocation80_spill] sm:$0xff]  ;;  %vm14592_vm13 = vmmov %vm14574_vm2 }
 0x959   :  { %v2942_v8 = vsel %vm14573_vm14, %v12788_v55, %v6749_v33  ;;  %v6733_v9 = vunpack.i.l.bf16 %v14575_v12  ;;  %v2880_v6 = vsel %vm2873_vm3, %v2868_v14, %v6688_v20  ;;  %v2881_v37 = vsel %vm2873_vm3, %v2869_v42, %v6689_v46  ;;  %vm14577_vm9 = vmmov %vm14573_vm14  ;;  %v14581_v46 = vld [vmem:[#allocation129_spill] sm:$0xff] }
 0x95a   :  { %v2884_v19 = vsel %vm2873_vm3, %v2872_v7, %v6698_v54  ;;  %v6743_v39 = vunpack.i.l.bf16 %v14576_v44  ;;  %v2945_v35 = vsel %vm14577_vm9, %v2932_v59, %v6758_v43  ;;  %v2892_v55 = vsel %vm2885_vm10, %v2880_v6, %v6703_v34  ;;  %vm14578_vm0 = vmmov %vm14577_vm9  ;;  %v14585_v34 = vld [vmem:[#allocation257_spill] sm:$0xff]  ;;  %v14593_v6 = vld [vmem:[#allocation119_spill] sm:$0xff] }
 0x95b   :  { %v2893_v11 = vsel %vm2885_vm10, %v2881_v37, %v6704_v16  ;;  %v2896_v61 = vsel %vm2885_vm10, %v2884_v19, %v6713_v62  ;;  %v2946_v3 = vsel %vm14578_vm0, %v2933_v27, %v6759_v53  ;;  %v2904_v33 = vsel %vm2897_vm11, %v2892_v55, %v6718_v45  ;;  %vm14580_vm3 = vmmov %vm14564_vm6  ;;  %v14586_v53 = vld [vmem:[#allocation263_spill] sm:$0xff]  ;;  %v14595_v44 = vld [vmem:[#allocation180_spill] sm:$0xff] }
 0x95c   :  { %v2905_v14 = vsel %vm2897_vm11, %v2893_v11, %v6719_v31  ;;  %v2908_v42 = vsel %vm2897_vm11, %v2896_v61, %v6728_v4  ;;  %v2916_v7 = vsel %vm14579_vm8, %v2904_v33, %v6733_v9  ;;  %v6754_v59 = vunpack.i.h.bf16 %v14581_v46  ;;  %vm14583_vm10 = vmmov %vm14580_vm3  ;;  %v14600_v33 = vld [vmem:[#allocation32_spill] sm:$0xff] }
 0x95d   :  { %v2917_v17 = vsel %vm14580_vm3, %v2905_v14, %v6734_v26  ;;  %v6753_v20 = vunpack.i.l.bf16 %v14581_v46  ;;  %v6774_v54 = vunpack.i.h.bf16 %v14582_v25  ;;  %v6773_v49 = vunpack.i.l.bf16 %v14582_v25  ;;  %vm14588_vm11 = vmmov %vm14574_vm2 }
 0x95e   :  { %v2920_v43 = vsel %vm14583_vm10, %v2908_v42, %v6743_v39  ;;  %v6763_v16 = vunpack.i.l.bf16 %v14584_v52  ;;  %v6783_v2 = vunpack.i.l.bf16 %v14585_v34  ;;  %v6789_v62 = vunpack.i.h.bf16 %v14517_v40  ;;  %vm14590_vm5 = vmmov %vm14578_vm0  ;;  %v14596_v39 = vld [vmem:[#allocation47_spill] sm:$0xff] }
 0x95f   :  { %v6799_v29 = vunpack.i.h.bf16 %v14586_v53  ;;  %v6769_v31 = vunpack.i.h.bf16 %v14505_v38  ;;  %v6798_v45 = vunpack.i.l.bf16 %v14586_v53  ;;  %v6814_v4 = vunpack.i.h.bf16 %v14587_v57  ;;  %vm14591_vm12 = vmmov %vm14578_vm0 }
 0x960   :  { %v2930_v27 = vsel %vm14588_vm11, %v2916_v7, %v5953_v1  ;;  %v2931_v12 = vsel %vm14589_vm4, %v2917_v17, %v5954_v50  ;;  %v6813_v26 = vunpack.i.l.bf16 %v14587_v57  ;;  %v2934_v38 = vsel %vm14592_vm13, %v2920_v43, %v6138_v22  ;;  %vm14594_vm15 = vmmov %vm14578_vm0  ;;  %v14601_v7 = vld [vmem:[#allocation36_spill] sm:$0xff]  ;;  %v14607_v43 = vld [vmem:[#allocation91_spill] sm:$0xff] }
 0x961   :  { %v2943_v40 = vsel %vm14590_vm5, %v2930_v27, %v6753_v20  ;;  %v2944_v9 = vsel %vm14591_vm12, %v2931_v12, %v6754_v59  ;;  %v6823_v37 = vunpack.i.l.bf16 %v14593_v6  ;;  %v2947_v19 = vsel %vm14594_vm15, %v2934_v38, %v6763_v16  ;;  %v14602_v59 = vld [vmem:[#allocation130_spill] sm:$0xff]  ;;  %v14610_v16 = vld [vmem:[#allocation183_spill] sm:$0xff]  ;;  %v14613_v57 = vld [vmem:[#allocation185_spill] sm:$0xff]  ;;  %v12945_v38 = vpop.permute.xlu1 %7406 }
 0x962   :  { %v6778_v1 = vunpack.i.l.bf16 %v14595_v44  ;;  %v6793_v30 = vunpack.i.l.bf16 %v14596_v39  ;;  %v6829_v50 = vunpack.i.h.bf16 %v14525_v24  ;;  %vm14597_vm6 = vcmask 146432   ;;  %v14614_v12 = vld [vmem:[#allocation84_spill] sm:$0xff] }
 0x963   :  { %v2956_v55 = vsel %vm14597_vm6, %v2942_v8, %v6769_v31  ;;  %v6779_v11 = vunpack.i.h.bf16 %v14595_v44  ;;  %v6794_v61 = vunpack.i.h.bf16 %v14596_v39  ;;  %vm14598_vm7 = vmmov %vm14597_vm6  ;;  %v6803_v14 = vunpack.i.l.bf16 %v14600_v33 }
 0x964   :  { %v2957_v21 = vsel %vm14598_vm7, %v2943_v40, %v6773_v49  ;;  %vm14599_vm14 = vmmov %vm14597_vm6  ;;  %v6809_v42 = vunpack.i.h.bf16 %v14515_v28  ;;  %v6839_v17 = vunpack.i.h.bf16 %v14601_v7  ;;  %v6838_v46 = vunpack.i.l.bf16 %v14601_v7 }
 0x965   :  { %v2958_v22 = vsel %vm14599_vm14, %v2944_v9, %v6774_v54  ;;  %v6854_v24 = vunpack.i.h.bf16 %v14602_v59  ;;  %vm14603_vm2 = vmmov %vm14597_vm6  ;;  %vm14605_vm0 = vcmask 162816   ;;  %v6833_v54 = vunpack.i.l.bf16 %v14607_v43 }
 0x966   :  { %v2961_v8 = vsel %vm14603_vm2, %v2947_v19, %v6783_v2  ;;  %vm14604_vm9 = vmmov %vm14603_vm2  ;;  %v2971_v25 = vsel %vm14605_vm0, %v2957_v21, %v6793_v30  ;;  %v6819_v34 = vunpack.i.h.bf16 %v14610_v16  ;;  %v6818_v53 = vunpack.i.l.bf16 %v14610_v16 }
 0x967   :  { %v2959_v20 = vsel %vm14604_vm9, %v2945_v35, %v6778_v1  ;;  %vm14606_vm8 = vmmov %vm14605_vm0  ;;  %vm14612_vm4 = vcmask 179200   ;;  %v6834_v35 = vunpack.i.h.bf16 %v14607_v43  ;;  %v6843_v27 = vunpack.i.l.bf16 %v14613_v57 }
 0x968   :  { %v2970_v49 = vsel %vm14606_vm8, %v2956_v55, %v6789_v62  ;;  %vm14608_vm3 = vmmov %vm14603_vm2  ;;  %v6853_v62 = vunpack.i.l.bf16 %v14602_v59  ;;  %v6863_v40 = vunpack.i.l.bf16 %v14614_v12  ;;  %v6849_v9 = vunpack.i.h.bf16 %v14522_v18  ;;  %v14646_v12 = vld [vmem:[#allocation188_spill] sm:$0xff] }
 0x969   :  { %v2960_v52 = vsel %vm14608_vm3, %v2946_v3, %v6779_v11  ;;  %vm14609_vm10 = vmmov %vm14605_vm0  ;;  %v2984_v2 = vsel %vm14612_vm4, %v2970_v49, %v6809_v42  ;;  %vm14619_vm6 = vcmask 195584   ;;  %v7417_v11 = vpop.permute.xlu0 %7416  ;;  %vm14630_vm3 = vcmask 211968  }
 0x96a   :  { %v2972_v28 = vsel %vm14609_vm10, %v2958_v22, %v6794_v61  ;;  %vm14611_vm11 = vmmov %vm14605_vm0 }
 0x96b   :  { %v2975_v31 = vsel %vm14611_vm11, %v2961_v8, %v6803_v14  ;;  %vm14615_vm5 = vmmov %vm14612_vm4  ;;  %v14629_v14 = vld [vmem:[#allocation181_spill] sm:$0xff]  ;;  %v7419_v8 = vunpack.i.h.bf16 %v7417_v11 }
 0x96c   :  { %v2985_v3 = vsel %vm14615_vm5, %v2971_v25, %v6813_v26  ;;  %vm14616_vm12 = vmmov %vm14605_vm0  ;;  %v6883_v42 = vunpack.i.l.bf16 %v14629_v14 }
 0x96d   :  { %v2973_v6 = vsel %vm14616_vm12, %v2959_v20, %v6798_v45  ;;  %vm14617_vm13 = vmmov %vm14605_vm0  ;;  %v2999_v1 = vsel %vm14619_vm6, %v2985_v3, %v6833_v54  ;;  %v14626_v45 = vld [vmem:[#allocation184_spill] sm:$0xff]  ;;  %v7418_v20 = vunpack.i.l.bf16 %v7417_v11 }
 0x96e   :  { %v2974_v19 = vsel %vm14617_vm13, %v2960_v52, %v6799_v29  ;;  %vm14618_vm15 = vmmov %vm14612_vm4  ;;  %v6858_v21 = vunpack.i.l.bf16 %v14626_v45  ;;  %v14627_v29 = vld [vmem:[#allocation187_spill] sm:$0xff]  ;;  %v3013_v7 = vsel %vm14630_vm3, %v2999_v1, %v6853_v62  ;;  %v6859_v43 = vunpack.i.h.bf16 %v14626_v45  ;;  %v7422_v52 = vpop.permute.xlu1 %7421 }
 0x96f   :  { %v2986_v44 = vsel %vm14618_vm15, %v2972_v28, %v6814_v4  ;;  %vm14620_vm7 = vmmov %vm14612_vm4  ;;  %v6868_v22 = vunpack.i.l.bf16 %v14627_v29  ;;  %v14628_v4 = vld [vmem:[#allocation46_spill] sm:$0xff]  ;;  %v6869_v54 = vunpack.i.h.bf16 %v14627_v29  ;;  %vm14637_vm15 = vcmask 228352  }
 0x970   :  { %v2987_v39 = vsel %vm14620_vm7, %v2973_v6, %v6818_v53  ;;  %vm14621_vm14 = vmmov %vm14612_vm4  ;;  %v6873_v33 = vunpack.i.l.bf16 %v14628_v4  ;;  %v7368_v53 = vunpack.i.l.bf16 %v12590_v5  ;;  %v7423_v57 = vunpack.i.l.bf16 %v7422_v52 }
 0x971   :  { %v2988_v30 = vsel %vm14621_vm14, %v2974_v19, %v6819_v34  ;;  %vm14622_vm2 = vmmov %vm14612_vm4  ;;  %v7369_v34 = vunpack.i.h.bf16 %v12590_v5  ;;  %vm14640_vm14 = vcmask 261120   ;;  %v6878_v5 = vunpack.i.l.bf16 %v14646_v12 }
 0x972   :  { %v2989_v55 = vsel %vm14622_vm2, %v2975_v31, %v6823_v37  ;;  %vm14623_vm9 = vmmov %vm14619_vm6  ;;  %v7409_v19 = vunpack.i.h.bf16 %v12945_v38  ;;  %v6874_v47 = vunpack.i.h.bf16 %v14628_v4 }
 0x973   :  { %v2998_v26 = vsel %vm14623_vm9, %v2984_v2, %v6829_v50  ;;  %vm14624_vm0 = vmmov %vm14619_vm6  ;;  %vm14638_vm6 = vcmask 244736  }
 0x974   :  { %v3000_v18 = vsel %vm14624_vm0, %v2986_v44, %v6834_v35  ;;  %vm14625_vm8 = vmmov %vm14624_vm0  ;;  %v7424_v35 = vunpack.i.h.bf16 %v7422_v52 }
 0x975   :  { %v3003_v61 = vsel %vm14625_vm8, %v2989_v55, %v6843_v27  ;;  %vm14631_vm10 = vmmov %vm14630_vm3  ;;  %vm14644_vm8 = vcmask 523264  }
 0x976   :  { %v3012_v59 = vsel %vm14631_vm10, %v2998_v26, %v6849_v9  ;;  %vm14632_vm11 = vmmov %vm14624_vm0  ;;  %vm14647_vm10 = vcmask 785408  }
 0x977   :  { %v3001_v37 = vsel %vm14632_vm11, %v2987_v39, %v6838_v46  ;;  %vm14633_vm4 = vmmov %vm14624_vm0  ;;  %v3028_v16 = vsel %vm14637_vm15, %v3012_v59, %v5964_v10 }
 0x978   :  { %v3002_v50 = vsel %vm14633_vm4, %v2988_v30, %v6839_v17  ;;  %vm14634_vm5 = vmmov %vm14630_vm3  ;;  %v3043_v17 = vsel %vm14638_vm6, %v12836_v48, %v6868_v22  ;;  %v7408_v30 = vunpack.i.l.bf16 %v12945_v38 }
 0x979   :  { %v3014_v25 = vsel %vm14634_vm5, %v3000_v18, %v6854_v24  ;;  %vm14635_vm12 = vmmov %vm14630_vm3  ;;  %v7427_v24 = vpop.permute.xlu0 %7426  ;;  %v4934_v36 = vsel %vm14640_vm14, %v3043_v17, %v7419_v8 }
 0x97a   :  { %v3017_v49 = vsel %vm14635_vm12, %v3003_v61, %v6863_v40  ;;  %vm14636_vm13 = vmmov %vm14630_vm3  ;;  %v7429_v31 = vunpack.i.h.bf16 %v7427_v24  ;;  %v7428_v2 = vunpack.i.l.bf16 %v7427_v24  ;;  %v6879_v40 = vunpack.i.h.bf16 %v14646_v12  ;;  %v7432_v3 = vpop.permute.xlu1 %7431 }
 0x97b   :  { %v3015_v28 = vsel %vm14636_vm13, %v3001_v37, %v6858_v21  ;;  %vm14639_vm7 = vmmov %vm14637_vm15  ;;  %v7434_v1 = vunpack.i.h.bf16 %v7432_v3  ;;  %v7433_v39 = vunpack.i.l.bf16 %v7432_v3 }
 0x97c   :  { %v3029_v46 = vsel %vm14639_vm7, %v3013_v7, %v5968_v63  ;;  %vm14641_vm2 = vmmov %vm14640_vm14 }
 0x97d   :  { %v4933_v10 = vsel %vm14641_vm2, %v12617_v0, %v7418_v20  ;;  %vm14642_vm9 = vmmov %vm14630_vm3  ;;  %v7437_v44 = vpop.permute.xlu0 %7436 }
 0x97e   :  { %v3016_v48 = vsel %vm14642_vm9, %v3002_v50, %v6859_v43  ;;  %vm14643_vm0 = vmmov %vm14638_vm6  ;;  %v4949_v63 = vsel %vm14644_vm8, %v4933_v10, %v7428_v2  ;;  %v7439_v29 = vunpack.i.h.bf16 %v7437_v44  ;;  %v7438_v7 = vunpack.i.l.bf16 %v7437_v44 }
 0x97f   :  { %v3044_v27 = vsel %vm14643_vm0, %v3028_v16, %v6869_v54  ;;  %vm14645_vm3 = vmmov %vm14644_vm8  ;;  %v4965_v9 = vsel %vm14647_vm10, %v4949_v63, %v7368_v53 }
 0x980   :  { %v4950_v62 = vsel %vm14645_vm3, %v4934_v36, %v7429_v31  ;;  %vm14648_vm11 = vmmov %vm14647_vm10  ;;  %v7442_v38 = vpop.permute.xlu1 %7441 }
 0x981   :  { %v4966_v6 = vsel %vm14648_vm11, %v4950_v62, %v7369_v34  ;;  %vm14649_vm4 = vmmov %vm14643_vm0  ;;  %v7444_v51 = vunpack.i.h.bf16 %v7442_v38  ;;  %v7443_v59 = vunpack.i.l.bf16 %v7442_v38 }
 0x982   :  { %v3045_v0 = vsel %vm14649_vm4, %v3029_v46, %v6873_v33  ;;  %vm14650_vm5 = vmmov %vm14641_vm2  ;;  %v4977_v11 = vpack.c.bf16 %v4966_v6, %v4965_v9 }
 0x983   :  { %v4936_v55 = vsel %vm14650_vm5, %v3045_v0, %v7424_v35  ;;  %vm14651_vm12 = vmmov %vm14641_vm2  ;;  %v14675_v0 = vld [vmem:[#allocation8_spill] sm:$0xff] }
 0x984   :  { %v4935_v26 = vsel %vm14651_vm12, %v3044_v27, %v7423_v57  ;;  %vm14652_vm13 = vmmov %vm14645_vm3  ;;  %5541 = vmatprep.mubr.msk.bf16.mxu1 %vm5033_vm1, %v4977_v11  ;;  %v4876_v4 = vpop.permute.xlu1 %4875 }
 0x985   :  { %v4951_v18 = vsel %vm14652_vm13, %v4935_v26, %v7433_v39  ;;  %vm14653_vm15 = vmmov %vm14645_vm3  ;;  %v14676_v39 = vld [vmem:[#allocation6_spill] sm:$0xff]  ;;  %v7543_v26 = vld [vmem:[%s13131_s0 + $0x10] sm:$0xff] }
 0x986   :  { %v4952_v61 = vsel %vm14653_vm15, %v4936_v55, %v7434_v1  ;;  %vm14654_vm6 = vmmov %vm14639_vm7 }
 0x987   :  { %v3033_v45 = vsel %vm14654_vm6, %v3017_v49, %v6233_v60  ;;  %vm14655_vm7 = vmmov %vm14654_vm6 }
 0x988   :  { %v3030_v21 = vsel %vm14655_vm7, %v3014_v25, %v5969_v15  ;;  %vm14656_vm14 = vmmov %vm14647_vm10  ;;  %v7447_v25 = vpop.permute.xlu0 %7446 }
 0x989   :  { %v4967_v22 = vsel %vm14656_vm14, %v4951_v18, %v7408_v30  ;;  %vm14657_vm2 = vmmov %vm14647_vm10  ;;  %v7449_v49 = vunpack.i.h.bf16 %v7447_v25  ;;  %v7448_v43 = vunpack.i.l.bf16 %v7447_v25  ;;  %v14677_v18 = vld [vmem:[#allocation10_spill] sm:$0xff] }
 0x98a   :  { %v4968_v33 = vsel %vm14657_vm2, %v4952_v61, %v7409_v19  ;;  %vm14658_vm9 = vmmov %vm14654_vm6 }
 0x98b   :  { %v3032_v14 = vsel %vm14658_vm9, %v3016_v48, %v5974_v13  ;;  %v4978_v60 = vpack.c.bf16 %v4968_v33, %v4967_v22  ;;  %vm14659_vm0 = vmmov %vm14654_vm6  ;;  %v7545_v33 = vld [vmem:[%s13131_s0 + $0x18] sm:$0xff] }
 0x98c   :  { %v3031_v15 = vsel %vm14659_vm0, %v3015_v28, %v5973_v32  ;;  %vm14660_vm8 = vmmov %vm14649_vm4  ;;  %v4913_v46 = vpop.permute.xlu0 %4912 }
 0x98d   :  { %v3049_v37 = vsel %vm14660_vm8, %v3033_v45, %v6883_v42  ;;  %vm14661_vm3 = vmmov %vm14649_vm4  ;;  %5542 = vmatmul.mubr.msk.bf16.gmra.mrb[32].mxu1 %vm5033_vm1, %v4978_v60  ;;  %v7544_v45 = vld [vmem:[%s13131_s0] sm:$0xff] }
 0x98e   :  { %v3048_v50 = vsel %vm14661_vm3, %v3032_v14, %v6879_v40  ;;  %vm14662_vm10 = vmmov %vm14661_vm3 }
 0x98f   :  { %v3047_v8 = vsel %vm14662_vm10, %v3031_v15, %v6878_v5  ;;  %vm14663_vm11 = vmmov %vm14650_vm5 }
 0x990   :  { %v4940_v20 = vsel %vm14663_vm11, %v3049_v37, %v7444_v51  ;;  %vm14664_vm4 = vmmov %vm14650_vm5  ;;  %v7546_v51 = vld [vmem:[%s13131_s0 + $0x8] sm:$0xff] }
 0x991   :  { %v4939_v13 = vsel %vm14664_vm4, %v3048_v50, %v7443_v59  ;;  %vm14665_vm5 = vmmov %vm14652_vm13 }
 0x992   :  { %v4956_v58 = vsel %vm14665_vm5, %v4940_v20, %v7414_v56  ;;  %vm14666_vm12 = vmmov %vm14661_vm3 }
 0x993   :  { %v3046_v32 = vsel %vm14666_vm12, %v3030_v21, %v6874_v47  ;;  %vm14667_vm13 = vmmov %vm14664_vm4 }
 0x994   :  { %v4938_v42 = vsel %vm14667_vm13, %v3047_v8, %v7439_v29  ;;  %vm14668_vm15 = vmmov %vm14665_vm5  ;;  %v14678_v29 = vld [vmem:[#allocation5_spill] sm:$0xff] }
 0x995   :  { %v4955_v54 = vsel %vm14668_vm15, %v4939_v13, %v4876_v4  ;;  %vm14669_vm6 = vmmov %vm14664_vm4 }
 0x996   :  { %v4937_v52 = vsel %vm14669_vm6, %v3046_v32, %v7438_v7  ;;  %vm14670_vm7 = vmmov %vm14665_vm5  ;;  %v4971_v17 = vsel %vm14657_vm2, %v4955_v54, %v12737_v41 }
 0x997   :  { %v4953_v28 = vsel %vm14670_vm7, %v4937_v52, %v7448_v43  ;;  %vm14671_vm14 = vmmov %vm14665_vm5 }
 0x998   :  { %v4954_v16 = vsel %vm14671_vm14, %v4938_v42, %v7449_v49  ;;  %vm14672_vm9 = vmmov %vm14657_vm2 }
 0x999   :  { %v4972_v23 = vsel %vm14672_vm9, %v4956_v58, %v12737_v41  ;;  %vm14673_vm0 = vmmov %vm14657_vm2 }
 0x99a   :  { %v4970_v56 = vsel %vm14673_vm0, %v4954_v16, %v12737_v41  ;;  %vm14674_vm8 = vmmov %vm14673_vm0  ;;  %v4980_v53 = vpack.c.bf16 %v4972_v23, %v4971_v17  ;;  %v14683_v23 = vld [vmem:[#allocation9_spill] sm:$0xff] }
 0x99b   :  { %v4969_v24 = vsel %vm14674_vm8, %v4953_v28, %v4913_v46 }
 0x99c   :  { %v4979_v34 = vpack.c.bf16 %v4970_v56, %v4969_v24  ;;  %v14684_v24 = vld [vmem:[#allocation7_spill] sm:$0xff] }
 0x99e   :  { %5545 = vmatprep.mubr.msk.bf16.mxu1 %vm5033_vm1, %v4979_v34 }
 0x99f   :  { %5546 = vmatmul.mubr.msk.bf16.gmra.mrb[36].mxu1 %vm5033_vm1, %v4980_v53  ;;  %vm14679_vm1 = vmmov %vm14665_vm5 }
 0x9a0   :  { %vm14680_vm3 = vmmov %vm14679_vm1 }
 0x9a1   :  { %vm14681_vm10 = vmmov %vm14679_vm1 }
 0x9a2   :  { %vm14682_vm11 = vmmov %vm14679_vm1 }
 0x9a3   :  { %vm14687_vm4 = vmmov %vm14679_vm1 }
 0x9a4   :  { %vm14688_vm5 = vmmov %vm14679_vm1 }
 0x9a5   :  { %vm14689_vm12 = vmmov %vm14679_vm1 }
 0x9a6   :  { %vm14690_vm13 = vmmov %vm14679_vm1 }
 0x9a7   :  { %vm14695_vm15 = vmmov %vm14679_vm1 }
 0x9a8   :  { %vm14696_vm6 = vmmov %vm14679_vm1 }
 0x9a9   :  { %vm14697_vm7 = vmmov %vm14679_vm1 }
 0x9aa   :  { %vm14698_vm14 = vmmov %vm14679_vm1 }
 0x9ab   :  { %vm14703_vm2 = vmmov %vm14679_vm1 }
 0x9ac   :  { %vm14704_vm9 = vmmov %vm14679_vm1 }
 0x9ad   :  { %vm14705_vm0 = vmmov %vm14679_vm1 }
 0x9ae   :  { %vm14706_vm8 = vmmov %vm14705_vm0 }
 0x9f7   :  { %v5535_v31 = vpop.f32.mrb[24].mxu1 }
 0x9f8   :  { %v5402_v2 = vmul.f32 -1.442695, %v5535_v31  ;;  %v5095_v35 = vpop.f32.mrb[25].mxu1  ;;  %v7547_v31 = vld [vmem:[%s13131_s0 + $0x30] sm:$0xff] }
 0x9f9   :  { %v5400_v57 = vmul.f32 -1.442695, %v5095_v35  ;;  %v5536_v36 = vpop.f32.mrb[26].mxu1  ;;  %v14685_v35 = vld [vmem:[#allocation12_spill] sm:$0xff] }
 0x9fa   :  { %7479 = vpow2.f32 %v5402_v2  ;;  %v5403_v10 = vmul.f32 -1.442695, %v5536_v36  ;;  %v5098_v48 = vpop.f32.mrb[27].mxu1  ;;  %v7548_v36 = vld [vmem:[%s13131_s0 + $0x20] sm:$0xff] }
 0x9fb   :  { %7481 = vpow2.f32 %v5400_v57  ;;  %v5401_v27 = vmul.f32 -1.442695, %v5098_v48  ;;  %v14686_v48 = vld [vmem:[#allocation11_spill] sm:$0xff] }
 0x9fc   :  { %7483 = vpow2.f32 %v5403_v10 }
 0x9fd   :  { %7485 = vpow2.f32 %v5401_v27 }
 0xa04   :  { %v7480_v41 = vpop.eup %7479 }
 0xa05   :  { %v7482_v63 = vpop.eup %7481  ;;  %v5208_v62 = vadd.f32 1.0, %v7480_v41 }
 0xa06   :  { %v7484_v12 = vpop.eup %7483  ;;  %v5206_v40 = vadd.f32 1.0, %v7482_v63  ;;  %v7549_v63 = vld [vmem:[%s13131_s0 + $0x38] sm:$0xff] }
 0xa07   :  { %v7486_v5 = vpop.eup %7485  ;;  %7487 = vrcp.f32 %v5208_v62  ;;  %v5209_v3 = vadd.f32 1.0, %v7484_v12 }
 0xa08   :  { %7489 = vrcp.f32 %v5206_v40  ;;  %v5207_v9 = vadd.f32 1.0, %v7486_v5  ;;  %v7550_v40 = vld [vmem:[%s13131_s0 + $0x28] sm:$0xff] }
 0xa09   :  { %7491 = vrcp.f32 %v5209_v3 }
 0xa0a   :  { %7493 = vrcp.f32 %v5207_v9 }
 0xa11   :  { %v7488_v6 = vpop.eup %7487 }
 0xa12   :  { %v7490_v19 = vpop.eup %7489  ;;  %v5256_v44 = vmul.f32 %v7488_v6, %v14675_v0 }
 0xa13   :  { %v7492_v1 = vpop.eup %7491  ;;  %v5254_v30 = vmul.f32 %v7490_v19, %v14676_v39 }
 0xa14   :  { %v7494_v55 = vpop.eup %7493  ;;  %v5272_v11 = vadd.f32 %v7543_v26, %v5256_v44  ;;  %v5257_v61 = vmul.f32 %v7492_v1, %v14677_v18 }
 0xa15   :  { %v5270_v21 = vadd.f32 %v7544_v45, %v5254_v30  ;;  %v5255_v38 = vmul.f32 %v7494_v55, %v14678_v29 }
 0xa16   :  { %v5288_v22 = vmax.f32 %v5272_v11, 0.0  ;;  %v5273_v14 = vadd.f32 %v7545_v33, %v5257_v61 }
 0xa17   :  { %v5286_v7 = vmax.f32 %v5270_v21, 0.0  ;;  %v5271_v59 = vadd.f32 %v7546_v51, %v5255_v38 }
 0xa18   :  { %5304 = vst.msk [vmem:[#allocation2 + $0x10] sm:$0xff] %vm14679_vm1, %v5288_v22  ;;  %v5289_v60 = vmax.f32 %v5273_v14, 0.0 }
 0xa19   :  { %5302 = vst.msk [vmem:[#allocation2] sm:$0xff] %vm14680_vm3, %v5286_v7  ;;  %v5287_v47 = vmax.f32 %v5271_v59, 0.0 }
 0xa1a   :  { %5305 = vst.msk [vmem:[#allocation2 + $0x18] sm:$0xff] %vm14681_vm10, %v5289_v60 }
 0xa1b   :  { %5303 = vst.msk [vmem:[#allocation2 + $0x8] sm:$0xff] %vm14682_vm11, %v5287_v47 }
 0xa28   :  { %v5539_v15 = vpop.f32.mrb[28].mxu1 }
 0xa29   :  { %v5406_v37 = vmul.f32 -1.442695, %v5539_v15  ;;  %v5111_v50 = vpop.f32.mrb[29].mxu1 }
 0xa2a   :  { %v5404_v8 = vmul.f32 -1.442695, %v5111_v50  ;;  %v5540_v20 = vpop.f32.mrb[30].mxu1 }
 0xa2b   :  { %7495 = vpow2.f32 %v5406_v37  ;;  %v5407_v25 = vmul.f32 -1.442695, %v5540_v20  ;;  %v5114_v13 = vpop.f32.mrb[31].mxu1 }
 0xa2c   :  { %7497 = vpow2.f32 %v5404_v8  ;;  %v5405_v49 = vmul.f32 -1.442695, %v5114_v13 }
 0xa2d   :  { %7499 = vpow2.f32 %v5407_v25 }
 0xa2e   :  { %7501 = vpow2.f32 %v5405_v49 }
 0xa35   :  { %v7496_v43 = vpop.eup %7495 }
 0xa36   :  { %v7498_v4 = vpop.eup %7497  ;;  %v5212_v58 = vadd.f32 1.0, %v7496_v43 }
 0xa37   :  { %v7500_v32 = vpop.eup %7499  ;;  %v5210_v42 = vadd.f32 1.0, %v7498_v4 }
 0xa38   :  { %v7502_v54 = vpop.eup %7501  ;;  %7503 = vrcp.f32 %v5212_v58  ;;  %v5213_v52 = vadd.f32 1.0, %v7500_v32  ;;  %v14691_v58 = vld [vmem:[#allocation14_spill] sm:$0xff] }
 0xa39   :  { %7505 = vrcp.f32 %v5210_v42  ;;  %v5211_v28 = vadd.f32 1.0, %v7502_v54  ;;  %v14692_v54 = vld [vmem:[#allocation13_spill] sm:$0xff] }
 0xa3a   :  { %7507 = vrcp.f32 %v5213_v52 }
 0xa3b   :  { %7509 = vrcp.f32 %v5211_v28 }
 0xa42   :  { %v7504_v16 = vpop.eup %7503 }
 0xa43   :  { %v7506_v17 = vpop.eup %7505  ;;  %v5260_v46 = vmul.f32 %v7504_v16, %v14683_v23  ;;  %v7551_v16 = vld [vmem:[%s13131_s0 + $0x50] sm:$0xff]  ;;  %v14693_v23 = vld [vmem:[#allocation17_spill] sm:$0xff] }
 0xa44   :  { %v7508_v56 = vpop.eup %7507  ;;  %v5258_v34 = vmul.f32 %v7506_v17, %v14684_v24 }
 0xa45   :  { %v7510_v53 = vpop.eup %7509  ;;  %v5276_v2 = vadd.f32 %v7547_v31, %v5260_v46  ;;  %v5261_v57 = vmul.f32 %v7508_v56, %v14685_v35  ;;  %v7552_v56 = vld [vmem:[%s13131_s0 + $0x40] sm:$0xff] }
 0xa46   :  { %v5274_v10 = vadd.f32 %v7548_v36, %v5258_v34  ;;  %v5259_v27 = vmul.f32 %v7510_v53, %v14686_v48  ;;  %v14694_v34 = vld [vmem:[#allocation15_spill] sm:$0xff]  ;;  %v7554_v36 = vld [vmem:[%s13131_s0 + $0x48] sm:$0xff] }
 0xa47   :  { %v5292_v41 = vmax.f32 %v5276_v2, 0.0  ;;  %v5277_v62 = vadd.f32 %v7549_v63, %v5261_v57  ;;  %v7553_v2 = vld [vmem:[%s13131_s0 + $0x58] sm:$0xff] }
 0xa48   :  { %v5290_v12 = vmax.f32 %v5274_v10, 0.0  ;;  %v5275_v5 = vadd.f32 %v7550_v40, %v5259_v27 }
 0xa49   :  { %5308 = vst.msk [vmem:[#allocation2 + $0x30] sm:$0xff] %vm14687_vm4, %v5292_v41  ;;  %v5293_v3 = vmax.f32 %v5277_v62, 0.0  ;;  %v14699_v62 = vld [vmem:[#allocation18_spill] sm:$0xff] }
 0xa4a   :  { %5306 = vst.msk [vmem:[#allocation2 + $0x20] sm:$0xff] %vm14688_vm5, %v5290_v12  ;;  %v5291_v9 = vmax.f32 %v5275_v5, 0.0  ;;  %v14700_v5 = vld [vmem:[#allocation16_spill] sm:$0xff] }
 0xa4b   :  { %5309 = vst.msk [vmem:[#allocation2 + $0x38] sm:$0xff] %vm14689_vm12, %v5293_v3 }
 0xa4c   :  { %5307 = vst.msk [vmem:[#allocation2 + $0x28] sm:$0xff] %vm14690_vm13, %v5291_v9 }
 0xa60   :  { %v5543_v6 = vpop.f32.mrb[32].mxu1 }
 0xa61   :  { %v5410_v19 = vmul.f32 -1.442695, %v5543_v6  ;;  %v5127_v0 = vpop.f32.mrb[33].mxu1  ;;  %v7555_v6 = vld [vmem:[%s13131_s0 + $0x70] sm:$0xff] }
 0xa62   :  { %v5408_v44 = vmul.f32 -1.442695, %v5127_v0  ;;  %v5544_v1 = vpop.f32.mrb[34].mxu1  ;;  %v14701_v0 = vld [vmem:[#allocation20_spill] sm:$0xff] }
 0xa63   :  { %7511 = vpow2.f32 %v5410_v19  ;;  %v5411_v39 = vmul.f32 -1.442695, %v5544_v1  ;;  %v5130_v30 = vpop.f32.mrb[35].mxu1  ;;  %v7556_v1 = vld [vmem:[%s13131_s0 + $0x60] sm:$0xff] }
 0xa64   :  { %7513 = vpow2.f32 %v5408_v44  ;;  %v5409_v55 = vmul.f32 -1.442695, %v5130_v30  ;;  %v14702_v30 = vld [vmem:[#allocation19_spill] sm:$0xff] }
 0xa65   :  { %7515 = vpow2.f32 %v5411_v39 }
 0xa66   :  { %7517 = vpow2.f32 %v5409_v55 }
 0xa6d   :  { %v7512_v38 = vpop.eup %7511 }
 0xa6e   :  { %v7514_v33 = vpop.eup %7513  ;;  %v5216_v14 = vadd.f32 1.0, %v7512_v38 }
 0xa6f   :  { %v7516_v7 = vpop.eup %7515  ;;  %v5214_v51 = vadd.f32 1.0, %v7514_v33 }
 0xa70   :  { %v7518_v59 = vpop.eup %7517  ;;  %v5217_v60 = vadd.f32 1.0, %v7516_v7 }
 0xa71   :  { %v5215_v47 = vadd.f32 1.0, %v7518_v59 }
 0xa72   :  { %v5547_v26 = vpop.f32.mrb[36].mxu1 }
 0xa73   :  { %v5414_v11 = vmul.f32 -1.442695, %v5547_v26  ;;  %v5143_v18 = vpop.f32.mrb[37].mxu1 }
 0xa74   :  { %v5412_v61 = vmul.f32 -1.442695, %v5143_v18  ;;  %v5548_v45 = vpop.f32.mrb[38].mxu1 }
 0xa75   :  { %7519 = vpow2.f32 %v5414_v11  ;;  %v5415_v21 = vmul.f32 -1.442695, %v5548_v45  ;;  %v5146_v29 = vpop.f32.mrb[39].mxu1  ;;  %v7557_v11 = vld [vmem:[%s13131_s0 + $0x78] sm:$0xff]  ;;  %v7558_v45 = vld [vmem:[%s13131_s0 + $0x68] sm:$0xff] }
 0xa76   :  { %7521 = vpow2.f32 %v5412_v61  ;;  %v5413_v22 = vmul.f32 -1.442695, %v5146_v29 }
 0xa77   :  { %7523 = vpow2.f32 %v5415_v21 }
 0xa78   :  { %7525 = vpow2.f32 %v5413_v22 }
 0xa79   :  { %7527 = vrcp.f32 %v5216_v14 }
 0xa7a   :  { %7529 = vrcp.f32 %v5214_v51 }
 0xa7b   :  { %7531 = vrcp.f32 %v5217_v60 }
 0xa7c   :  { %7533 = vrcp.f32 %v5215_v47 }
 0xa7f   :  { %v7520_v15 = vpop.eup %7519 }
 0xa80   :  { %v7522_v37 = vpop.eup %7521  ;;  %v5220_v50 = vadd.f32 1.0, %v7520_v15 }
 0xa81   :  { %v7524_v8 = vpop.eup %7523  ;;  %v5218_v20 = vadd.f32 1.0, %v7522_v37 }
 0xa82   :  { %v7526_v25 = vpop.eup %7525  ;;  %7535 = vrcp.f32 %v5220_v50  ;;  %v5221_v13 = vadd.f32 1.0, %v7524_v8 }
 0xa83   :  { %v7528_v49 = vpop.eup %7527  ;;  %7537 = vrcp.f32 %v5218_v20  ;;  %v5219_v43 = vadd.f32 1.0, %v7526_v25 }
 0xa84   :  { %v7530_v4 = vpop.eup %7529  ;;  %v5264_v32 = vmul.f32 %v7528_v49, %v14691_v58  ;;  %7539 = vrcp.f32 %v5221_v13 }
 0xa85   :  { %v7532_v42 = vpop.eup %7531  ;;  %v5262_v52 = vmul.f32 %v7530_v4, %v14692_v54  ;;  %7541 = vrcp.f32 %v5219_v43 }
 0xa86   :  { %v7534_v28 = vpop.eup %7533  ;;  %v5280_v17 = vadd.f32 %v7551_v16, %v5264_v32  ;;  %v5265_v46 = vmul.f32 %v7532_v42, %v14693_v23 }
 0xa87   :  { %v5278_v24 = vadd.f32 %v7552_v56, %v5262_v52  ;;  %v5263_v53 = vmul.f32 %v7534_v28, %v14694_v34 }
 0xa88   :  { %v5296_v31 = vmax.f32 %v5280_v17, 0.0  ;;  %v5281_v35 = vadd.f32 %v7553_v2, %v5265_v46 }
 0xa89   :  { %v5294_v57 = vmax.f32 %v5278_v24, 0.0  ;;  %v5279_v10 = vadd.f32 %v7554_v36, %v5263_v53 }
 0xa8a   :  { %5312 = vst.msk [vmem:[#allocation2 + $0x50] sm:$0xff] %vm14695_vm15, %v5296_v31  ;;  %v5297_v48 = vmax.f32 %v5281_v35, 0.0 }
 0xa8b   :  { %5310 = vst.msk [vmem:[#allocation2 + $0x40] sm:$0xff] %vm14696_vm6, %v5294_v57  ;;  %v5295_v27 = vmax.f32 %v5279_v10, 0.0 }
 0xa8c   :  { %v7536_v41 = vpop.eup %7535  ;;  %5313 = vst.msk [vmem:[#allocation2 + $0x58] sm:$0xff] %vm14697_vm7, %v5297_v48 }
 0xa8d   :  { %v7538_v63 = vpop.eup %7537  ;;  %5311 = vst.msk [vmem:[#allocation2 + $0x48] sm:$0xff] %vm14698_vm14, %v5295_v27  ;;  %v5268_v12 = vmul.f32 %v7536_v41, %v14699_v62 }
 0xa8e   :  { %v7540_v40 = vpop.eup %7539  ;;  %v5266_v3 = vmul.f32 %v7538_v63, %v14700_v5 }
 0xa8f   :  { %v7542_v9 = vpop.eup %7541  ;;  %v5284_v19 = vadd.f32 %v7555_v6, %v5268_v12  ;;  %v5269_v44 = vmul.f32 %v7540_v40, %v14701_v0 }
 0xa90   :  { %v5282_v39 = vadd.f32 %v7556_v1, %v5266_v3  ;;  %v5267_v55 = vmul.f32 %v7542_v9, %v14702_v30 }
 0xa91   :  { %v5300_v26 = vmax.f32 %v5284_v19, 0.0  ;;  %v5285_v18 = vadd.f32 %v7557_v11, %v5269_v44 }
 0xa92   :  { %v5298_v61 = vmax.f32 %v5282_v39, 0.0  ;;  %v5283_v21 = vadd.f32 %v7558_v45, %v5267_v55 }
 0xa93   :  { %5316 = vst.msk [vmem:[#allocation2 + $0x70] sm:$0xff] %vm14703_vm2, %v5300_v26  ;;  %v5301_v29 = vmax.f32 %v5285_v18, 0.0 }
 0xa94   :  { %5314 = vst.msk [vmem:[#allocation2 + $0x60] sm:$0xff] %vm14704_vm9, %v5298_v61  ;;  %v5299_v38 = vmax.f32 %v5283_v21, 0.0 }
 0xa95   :  { %5317 = vst.msk [vmem:[#allocation2 + $0x78] sm:$0xff] %vm14705_vm0, %v5301_v29 }
 0xa96   :  { %5315 = vst.msk [vmem:[#allocation2 + $0x68] sm:$0xff] %vm14706_vm8, %v5299_v38 }
 0xa97   :  { %7570 = shalt.err (!%p7567_p4)
}
 0xa98   :  { %s7571_s21 = scalar_lea.hbm %s13144_s13, 2048 }
 0xa99   :  { %p7572_p5 = scmp.ne.s32.totalorder %s13144_s13, %s7571_s21  ;;  %p7575_p6 = scmp.lt.u32.totalorder %s7571_s21, %s13144_s13 }
 0xa9b   :  { %p7577_p7 = pnand %p7575_p6, %p7572_p5 }
 0xa9d   :  { %7580 = shalt.err (!%p7577_p7)
}
 0xa9e   :  { %s7609_s25 = smov 128  }
 0xa9f   :  { %5329 = dma.vmem_to_hbm [thread:$0]  %s5324_s30, 2048, %s13144_s13, [#allocation3], %s7609_s25, %s7609_s25, %s7602_s22  }
 0xaa0   :  { %7581 = dma.done.wait [#allocation3], 2048  }
 0xaa1   :  { %7582 = vsyncadd [#allocation3], 4294965248 }
 0xaa2   :  { %5333 = vsyncpa [#allocation3], 1 }

</bundles_post_ra>
